<compile_context>
chip_gen: v7x
topology: tpu7x:2x2x1
jax: 0.10.0
libtpu: 0.0.40
codegen_flags: <defaults>
</compile_context>

<pallas_src>
import jax
import jax.numpy as jnp
from jax.experimental import pallas as pl
from jax.experimental.pallas import tpu as pltpu

_CLAMP_MIN = 1e-4
_FAST_PATH_ELEMS = 1 << 15                  # below this, plain XLA wins
_TILE_BYTES_PER_INPUT = 2 * 1024 * 1024     # ~2 MiB/input tile -> 8 MiB double-buffered
_INTERMEDIATE_BYTES_MAX = 4 * 1024 * 1024   # cap on f32 elementwise intermediates/tile
_VMEM_LIMIT_BYTES = 32 * 1024 * 1024


def _sq_log_diff(p, t):
    p = jnp.maximum(p.astype(jnp.float32), _CLAMP_MIN)
    t = jnp.maximum(t.astype(jnp.float32), _CLAMP_MIN)
    d = jnp.log1p(p) - jnp.log1p(t)
    return d * d


def rmsle_loss_ref(prediction, target):
    """Pure-JAX reference (also the small-input fast path)."""
    return jnp.sqrt(jnp.mean(_sq_log_diff(prediction, target)))


def _num_tensorcores() -> int:
    # 2 TensorCores per device on v7x (and megacore v4/v5p); 1 on v5e/v6e.
    try:
        kind = jax.devices()[0].device_kind.lower()
    except Exception:
        return 1
    return 2 if any(tag in kind for tag in ("v7", "v4", "v5p")) else 1


def _round_up(x: int, m: int) -> int:
    return ((x + m - 1) // m) * m


def _sublane_pack(dtype) -> int:
    # Rows per packed sublane group: f32 -> 8, bf16/f16 -> 16, int8/fp8 -> 32.
    itemsize = jnp.dtype(dtype).itemsize
    return max(8, 8 * (4 // max(1, itemsize)))


def rmsle_loss(prediction: jax.Array, target: jax.Array) -> jax.Array:
    assert prediction.shape == target.shape
    total = prediction.size

    # Tiny / empty inputs: fixed pallas_call overhead dominates; XLA fuses fine.
    if total <= _FAST_PATH_ELEMS:
        return rmsle_loss_ref(prediction, target)

    pred_flat = prediction.reshape(-1)
    tgt_flat = target.reshape(-1)

    # Largest lane width in {512, 256, 128} dividing the element count ->
    # the 2-D view is a pure metadata reshape (zero extra HBM traffic).
    lane = None
    for cand in (512, 256, 128):
        if total % cand == 0:
            lane = cand
            break

    if lane is None:
        # General case: the < lane tail is folded in with plain jnp; only here
        # do we pay a prefix slice (never a whole-array jnp.pad copy).
        lane = 512
        bulk_rows = total // lane
        bulk = bulk_rows * lane
        pred2d = pred_flat[:bulk].reshape(bulk_rows, lane)
        tgt2d = tgt_flat[:bulk].reshape(bulk_rows, lane)
        tail_sq_sum = jnp.sum(_sq_log_diff(pred_flat[bulk:], tgt_flat[bulk:]))
    else:
        bulk_rows = total // lane
        pred2d = pred_flat.reshape(bulk_rows, lane)
        tgt2d = tgt_flat.reshape(bulk_rows, lane)
        tail_sq_sum = jnp.float32(0.0)

    ncores = _num_tensorcores()
    pack = max(_sublane_pack(prediction.dtype), _sublane_pack(target.dtype))
    itemsize = max(jnp.dtype(prediction.dtype).itemsize,
                   jnp.dtype(target.dtype).itemsize)

    # Tile rows: big enough to amortize per-step overhead, small enough that
    # (2 inputs x 2 buffers x tile) + f32 intermediates stay well under the
    # 32 MiB scoped VMEM limit (v7x-safe). f32@512 -> 1024 rows, bf16 -> 2048.
    tm_max = min(_TILE_BYTES_PER_INPUT // (lane * itemsize),
                 _INTERMEDIATE_BYTES_MAX // (lane * 4))
    tm_max = max(pack, (tm_max // pack) * pack)

    rows_per_core = pl.cdiv(bulk_rows, ncores)
    tm = max(pack, min(tm_max, _round_up(rows_per_core, pack)))
    tiles_per_core = pl.cdiv(rows_per_core, tm)
    rows_covered = ncores * tiles_per_core * tm
    needs_mask = rows_covered != bulk_rows        # compile-time constant
    last_block = pl.cdiv(bulk_rows, tm) - 1       # clamp target for index_map

    def kernel(pred_ref, tgt_ref, acc_ref):
        i = pl.program_id(1)

        @pl.when(i == 0)
        def _init():
            acc_ref[...] = jnp.zeros_like(acc_ref)

        sq = _sq_log_diff(pred_ref[...], tgt_ref[...])
        if needs_mask:
            c = pl.program_id(0)
            base = (c * tiles_per_core + i) * tm
            row_ids = base + jax.lax.broadcasted_iota(jnp.int32, (tm, lane), 0)
            sq = jnp.where(row_ids < bulk_rows, sq, 0.0)
        # Fold tm rows into the (8, lane) resident accumulator: layout-preserving
        # sublane split + leading-axis sum = pure vreg-wise VALU adds (no XLU),
        # tiny per-core writeback instead of a full (tm, lane) block.
        acc_ref[...] += jnp.sum(sq.reshape(tm // 8, 8, lane), axis=0)

    def in_map(c, i):
        blk = c * tiles_per_core + i
        # Clamp so a core whose rounded-up share runs past the array never
        # issues a fully out-of-bounds block DMA; the row mask zeroes it out.
        return (jnp.minimum(blk, last_block), 0)

    cost = pl.CostEstimate(
        flops=5 * bulk_rows * lane,
        transcendentals=2 * bulk_rows * lane,
        bytes_accessed=bulk_rows * lane * (jnp.dtype(prediction.dtype).itemsize
                                           + jnp.dtype(target.dtype).itemsize)
        + ncores * 8 * lane * 4,
    )

    partials = pl.pallas_call(
        kernel,
        out_shape=jax.ShapeDtypeStruct((ncores, 8, lane), jnp.float32),
        grid_spec=pltpu.PrefetchScalarGridSpec(
            num_scalar_prefetch=0,
            grid=(ncores, tiles_per_core),
            in_specs=[
                pl.BlockSpec((tm, lane), in_map),
                pl.BlockSpec((tm, lane), in_map),
            ],
            # Per-core private accumulator block, resident across the
            # "arbitrary" reduction axis (no shared state -> no race).
            out_specs=pl.BlockSpec((None, 8, lane), lambda c, i: (c, 0, 0)),
        ),
        compiler_params=pltpu.CompilerParams(
            dimension_semantics=("parallel", "arbitrary"),
            vmem_limit_bytes=_VMEM_LIMIT_BYTES,
        ),
        cost_estimate=cost,
    )(pred2d, tgt2d)

    # Tiny epilogue: combine (ncores, 8, lane) partials + tail, normalize, sqrt.
    sq_sum = jnp.sum(partials) + tail_sq_sum
    return jnp.sqrt(sq_sum / jnp.float32(total))


if __name__ == "__main__":
    root = jax.random.PRNGKey(0)
    cases = [
        ((2, 8, 32), jnp.float32),      # transformer head shape: tiny -> fast path
        ((2, 128, 512), jnp.float32),   # Pallas path, exact tiling
        ((5, 59, 512), jnp.float32),    # Pallas path, partial row-tile (in-kernel mask)
        ((7, 123, 67), jnp.float32),    # Pallas path + <1-row tail in epilogue
        ((4, 128, 512), jnp.bfloat16),  # Pallas path, bf16 streaming (16-row packing)
    ]
    for idx, (shape, dt) in enumerate(cases):
        kp, kt = jax.random.split(jax.random.fold_in(root, idx))
        prediction = (jax.random.normal(kp, shape, dtype=jnp.float32) * 2.0).astype(dt)
        target = (jax.random.normal(kt, shape, dtype=jnp.float32) * 2.0).astype(dt)

        loss = rmsle_loss(prediction, target)
        jax.block_until_ready(loss)

        ref = rmsle_loss_ref(prediction, target)
        assert jnp.allclose(loss, ref, rtol=1e-4, atol=1e-6), (shape, dt, loss, ref)

    print("KERNEL_OK")
</pallas_src>

<mosaic_0001>
module attributes {stable_mosaic.version = 11 : i64} {
  func.func @kernel(%arg0: i32, %arg1: i32, %arg2: memref<256x512xf32, #tpu.memory_space<vmem>>, %arg3: memref<256x512xf32, #tpu.memory_space<vmem>>, %arg4: memref<1x8x512xf32, #tpu.memory_space<vmem>>) attributes {dimension_semantics = [#tpu.dimension_semantics<parallel>, #tpu.dimension_semantics<arbitrary>], iteration_bounds = array<i64: 1, 1>, scalar_prefetch = 0 : i64, scratch_operands = 0 : i64, tpu.core_type = #tpu.core_type<tc>, window_params = [{transform_indices = @transform_0, window_bounds = array<i64: 256, 512>}, {transform_indices = @transform_1, window_bounds = array<i64: 256, 512>}, {transform_indices = @transform_2, window_bounds = array<i64: 1, 8, 512>}]} {
    %c0_i32 = arith.constant 0 : i32
    %0 = arith.cmpi eq, %arg1, %c0_i32 : i32
    %1 = arith.extui %0 : i1 to i32
    %c0_i32_0 = arith.constant 0 : i32
    %2 = arith.cmpi ne, %1, %c0_i32_0 : i32
    scf.if %2 {
      %cst_12 = arith.constant 0.000000e+00 : f32
      %21 = vector.broadcast %cst_12 : f32 to vector<8x512xf32>
      %c0_13 = arith.constant 0 : index
      %c0_14 = arith.constant 0 : index
      %c0_15 = arith.constant 0 : index
      %22 = vector.load %arg4[%c0_13, %c0_14, %c0_15] : memref<1x8x512xf32, #tpu.memory_space<vmem>>, vector<1x8x512xf32>
      %23 = vector.shape_cast %22 : vector<1x8x512xf32> to vector<8x512xf32>
      %24 = vector.shape_cast %21 : vector<8x512xf32> to vector<1x8x512xf32>
      tpu.vector_store %arg4[%c0_13, %c0_14, %c0_15], %24 {strides = array<i32>} : memref<1x8x512xf32, #tpu.memory_space<vmem>>, vector<1x8x512xf32>,
    } else {
    }
    %c0 = arith.constant 0 : index
    %c0_1 = arith.constant 0 : index
    %3 = vector.load %arg2[%c0, %c0_1] : memref<256x512xf32, #tpu.memory_space<vmem>>, vector<256x512xf32>
    %c0_2 = arith.constant 0 : index
    %c0_3 = arith.constant 0 : index
    %4 = vector.load %arg3[%c0_2, %c0_3] : memref<256x512xf32, #tpu.memory_space<vmem>>, vector<256x512xf32>
    %cst = arith.constant 9.99999974E-5 : f32
    %5 = vector.broadcast %cst : f32 to vector<256x512xf32>
    %6 = arith.maximumf %3, %5 : vector<256x512xf32>
    %cst_4 = arith.constant 9.99999974E-5 : f32
    %7 = vector.broadcast %cst_4 : f32 to vector<256x512xf32>
    %8 = arith.maximumf %4, %7 : vector<256x512xf32>
    %9 = math.log1p %6 : vector<256x512xf32>
    %10 = math.log1p %8 : vector<256x512xf32>
    %11 = arith.subf %9, %10 : vector<256x512xf32>
    %12 = arith.mulf %11, %11 : vector<256x512xf32>
    %c0_5 = arith.constant 0 : index
    %c0_6 = arith.constant 0 : index
    %c0_7 = arith.constant 0 : index
    %13 = vector.load %arg4[%c0_5, %c0_6, %c0_7] : memref<1x8x512xf32, #tpu.memory_space<vmem>>, vector<1x8x512xf32>
    %14 = vector.shape_cast %13 : vector<1x8x512xf32> to vector<8x512xf32>
    %15 = vector.shape_cast %12 : vector<256x512xf32> to vector<32x8x512xf32>
    %cst_8 = arith.constant dense<0.000000e+00> : vector<8x512xf32>
    %16 = vector.multi_reduction <add>, %15, %cst_8 [0] : vector<32x8x512xf32> to vector<8x512xf32>
    %17 = arith.addf %14, %16 : vector<8x512xf32>
    %c0_9 = arith.constant 0 : index
    %c0_10 = arith.constant 0 : index
    %c0_11 = arith.constant 0 : index
    %18 = vector.load %arg4[%c0_9, %c0_10, %c0_11] : memref<1x8x512xf32, #tpu.memory_space<vmem>>, vector<1x8x512xf32>
    %19 = vector.shape_cast %18 : vector<1x8x512xf32> to vector<8x512xf32>
    %20 = vector.shape_cast %17 : vector<8x512xf32> to vector<1x8x512xf32>
    tpu.vector_store %arg4[%c0_9, %c0_10, %c0_11], %20 {strides = array<i32>} : memref<1x8x512xf32, #tpu.memory_space<vmem>>, vector<1x8x512xf32>,
    return
  }
  func.func @transform_0(%arg0: i32, %arg1: i32) -> (i32, i32) {
    %c1_i32 = arith.constant 1 : i32
    %0 = arith.muli %arg0, %c1_i32 : i32
    %1 = arith.addi %0, %arg1 : i32
    %c0_i32 = arith.constant 0 : i32
    %2 = arith.minsi %1, %c0_i32 : i32
    %c0_i32_0 = arith.constant 0 : i32
    %c0_i32_1 = arith.constant 0 : i32
    return %2, %c0_i32_0 : i32, i32
  }
  func.func @transform_1(%arg0: i32, %arg1: i32) -> (i32, i32) {
    %c1_i32 = arith.constant 1 : i32
    %0 = arith.muli %arg0, %c1_i32 : i32
    %1 = arith.addi %0, %arg1 : i32
    %c0_i32 = arith.constant 0 : i32
    %2 = arith.minsi %1, %c0_i32 : i32
    %c0_i32_0 = arith.constant 0 : i32
    %c0_i32_1 = arith.constant 0 : i32
    return %2, %c0_i32_0 : i32, i32
  }
  func.func @transform_2(%arg0: i32, %arg1: i32) -> (i32, i32, i32) {
    %c0_i32 = arith.constant 0 : i32
    %c0_i32_0 = arith.constant 0 : i32
    %c0_i32_1 = arith.constant 0 : i32
    return %arg0, %c0_i32, %c0_i32_0 : i32, i32, i32
  }
}

</mosaic_0001>

<bundles_post_ra>
// kernel: tpu_custom_call.1
= control target key start
LH: loop header
LB: loop body
LE: loop exit
PB: predicated region body
PF: predicated region fallthrough
CT: control target
= control target key end

     0   :  { %7 = vsyncpa [#allocation3], 0  ;;  %s10593_s0 = inlined_call_operand.hbm [shape: f32[256,512], index: 0, kind: input, shape index: {}]   ;;  %s10594_s1 = inlined_call_operand.hbm [shape: f32[256,512], index: 1, kind: input, shape index: {}]   ;;  %s10595_s2 = inlined_call_operand.hbm [shape: f32[1,8,512], index: 2, kind: output, shape index: {}]  }
   0x1   :  { %8 = vsyncpa [#allocation6], 0 }
   0x2   :  { %9 = vsyncpa [#allocation4], 0  ;;  %s3888_s9 = smov [#allocation2]   ;;  %s3816_s13 = scalar_lea.hbm %s10593_s0, 16384 }
   0x3   :  { %s22_s10 = sshll.u32 %s3888_s9, 4  ;;  %p3817_p0 = scmp.ne.s32.totalorder %s10593_s0, %s3816_s13  ;;  %s23_s10 = int_to_ptr.vmem [resolvable:$true] %s22_s10 }
   0x4   :  { %p3820_p1 = scmp.lt.u32.totalorder %s3816_s13, %s10593_s0 }
   0x6   :  { %p3822_p2 = pnand %p3820_p1, %p3817_p0 }
   0x8   :  { %3825 = shalt.err (!%p3822_p2)
}
   0x9   :  { %s3826_s18 = scalar_lea.vmem %s23_s10, 16384  ;;  %p3831_p4 = scmp.lt.s32.totalorder %s23_s10, %s23_s10 }
   0xa   :  { %p3827_p3 = scmp.ne.s32.totalorder %s23_s10, %s3826_s18  ;;  %p3832_p5 = scmp.lt.s32.totalorder %s3826_s18, %s3826_s18 }
   0xc   :  { %p3833_p6 = por %p3832_p5, %p3831_p4 }
   0xe   :  { %p3834_p7 = pnand %p3833_p6, %p3827_p3 }
  0x10   :  { %3837 = shalt.err (!%p3834_p7)
}
  0x11   :  { %s3889_s19 = smov 512   ;;  %s3890_s20 = smov 32  }
  0x12   :  { %28 = dma.hbm_to_vmem [thread:$0]  %s10593_s0, 16384, %s23_s10, [#allocation3], %s3889_s19, %s3889_s19, %s3890_s20  }
  0x13   :  { %s3891_s23 = smov [#allocation5]   ;;  %s3838_s27 = scalar_lea.hbm %s10594_s1, 16384 }
  0x14   :  { %s41_s24 = sshll.u32 %s3891_s23, 4  ;;  %p3839_p8 = scmp.ne.s32.totalorder %s10594_s1, %s3838_s27  ;;  %s42_s24 = int_to_ptr.vmem [resolvable:$true] %s41_s24 }
  0x15   :  { %p3842_p9 = scmp.lt.u32.totalorder %s3838_s27, %s10594_s1 }
  0x17   :  { %p3844_p10 = pnand %p3842_p9, %p3839_p8 }
  0x19   :  { %3847 = shalt.err (!%p3844_p10)
}
  0x1a   :  { %s3848_s4 = scalar_lea.vmem %s42_s24, 16384  ;;  %p3853_p12 = scmp.lt.s32.totalorder %s42_s24, %s42_s24 }
  0x1b   :  { %p3849_p11 = scmp.ne.s32.totalorder %s42_s24, %s3848_s4  ;;  %p3854_p13 = scmp.lt.s32.totalorder %s3848_s4, %s3848_s4 }
  0x1d   :  { %p3855_p0 = por %p3854_p13, %p3853_p12 }
  0x1f   :  { %p3856_p1 = pnand %p3855_p0, %p3849_p11 }
  0x21   :  { %3859 = shalt.err (!%p3856_p1)
}
  0x22   :  { %47 = dma.hbm_to_vmem [thread:$0]  %s10594_s1, 16384, %s42_s24, [#allocation6], %s3889_s19, %s3889_s19, %s3890_s20  }
  0x23   :  { %3882 = dma.done.wait [#allocation3], 16384  }
  0x24   :  { %3883 = vsyncadd [#allocation3], 4294950912 }
  0x25   :  { %3884 = dma.done.wait [#allocation6], 16384  }
  0x26   :  { %3885 = vsyncadd [#allocation6], 4294950912  ;;  %v70_v0 = vld [vmem:[#allocation2] sm:$0xff]  ;;  %v71_v1 = vld [vmem:[#allocation2 + $0x8] sm:$0xff]  ;;  %s3892_s1 = smov [#allocation7]  }
  0x27   :  { %v72_v2 = vld [vmem:[#allocation2 + $0x10] sm:$0xff]  ;;  %v73_v3 = vld [vmem:[#allocation2 + $0x18] sm:$0xff]  ;;  %v74_v4 = vld [vmem:[#allocation2 + $0x20] sm:$0xff]  ;;  %v3932_v7 = vmax.f32 %v70_v0, 0.0001  ;;  %s3284_s6 = sshll.u32 %s3892_s1, 4  ;;  %s3285_s6 = int_to_ptr.vmem [resolvable:$true] %s3284_s6 }
  0x28   :  { %v75_v5 = vld [vmem:[#allocation2 + $0x28] sm:$0xff]  ;;  %v76_v6 = vld [vmem:[#allocation2 + $0x30] sm:$0xff]  ;;  %v77_v8 = vld [vmem:[#allocation2 + $0x38] sm:$0xff]  ;;  %v3934_v9 = vmax.f32 %v71_v1, 0.0001  ;;  %s3860_s7 = scalar_lea.vmem %s3285_s6, 512  ;;  %p3865_p3 = scmp.lt.s32.totalorder %s3285_s6, %s3285_s6 }
  0x29   :  { %v3936_v10 = vmax.f32 %v72_v2, 0.0001  ;;  %v3938_v11 = vmax.f32 %v73_v3, 0.0001  ;;  %v3940_v12 = vmax.f32 %v74_v4, 0.0001  ;;  %p3861_p2 = scmp.ne.s32.totalorder %s3285_s6, %s3860_s7  ;;  %p3866_p4 = scmp.lt.s32.totalorder %s3860_s7, %s3860_s7 }
  0x2a   :  { %v3942_v13 = vmax.f32 %v75_v5, 0.0001  ;;  %v78_v14 = vld [vmem:[#allocation2 + $0x40] sm:$0xff]  ;;  %v79_v15 = vld [vmem:[#allocation2 + $0x48] sm:$0xff]  ;;  %v3944_v16 = vmax.f32 %v76_v6, 0.0001 }
  0x2b   :  { %v80_v17 = vld [vmem:[#allocation2 + $0x50] sm:$0xff]  ;;  %v81_v18 = vld [vmem:[#allocation2 + $0x58] sm:$0xff]  ;;  %v82_v19 = vld [vmem:[#allocation2 + $0x60] sm:$0xff]  ;;  %v3946_v20 = vmax.f32 %v77_v8, 0.0001  ;;  %v3949_v24 = vadd.f32 1.0, %v3932_v7  ;;  %p3867_p5 = por %p3866_p4, %p3865_p3 }
  0x2c   :  { %11817 = vst [vmem:[#allocation11_spill] sm:$0xff] %v3944_v16  ;;  %v83_v21 = vld [vmem:[#allocation2 + $0x68] sm:$0xff]  ;;  %v84_v22 = vld [vmem:[#allocation2 + $0x70] sm:$0xff]  ;;  %v85_v23 = vld [vmem:[#allocation2 + $0x78] sm:$0xff]  ;;  %v3952_v25 = vadd.f32 1.0, %v3934_v9  ;;  %v3955_v26 = vadd.f32 1.0, %v3936_v10 }
  0x2d   :  { %11818 = vst [vmem:[#allocation12_spill] sm:$0xff] %v3946_v20  ;;  %v86_v27 = vld [vmem:[#allocation2 + $0x80] sm:$0xff]  ;;  %v87_v28 = vld [vmem:[#allocation2 + $0x88] sm:$0xff]  ;;  %v585_v29 = vmul.f32 -0.5, %v3932_v7  ;;  %v3959_v30 = vadd.f32 1.0, %v3938_v11  ;;  %v3962_v31 = vadd.f32 1.0, %v3940_v12  ;;  %3304 = vlog2.f32 %v3949_v24  ;;  %p3868_p6 = pnand %p3867_p5, %p3861_p2 }
  0x2e   :  { %v3965_v32 = vadd.f32 1.0, %v3942_v13  ;;  %v88_v33 = vld [vmem:[#allocation2 + $0x90] sm:$0xff]  ;;  %v89_v34 = vld [vmem:[#allocation2 + $0x98] sm:$0xff]  ;;  %v3967_v35 = vmax.f32 %v78_v14, 0.0001  ;;  %v594_v37 = vmul.f32 -0.5, %v3934_v9  ;;  %3306 = vlog2.f32 %v3952_v25 }
  0x2f   :  { %v3969_v36 = vmax.f32 %v79_v15, 0.0001  ;;  %v3973_v38 = vadd.f32 1.0, %v3944_v16  ;;  %v90_v39 = vld [vmem:[#allocation2 + $0xa0] sm:$0xff]  ;;  %v91_v40 = vld [vmem:[#allocation2 + $0xa8] sm:$0xff]  ;;  %v603_v43 = vmul.f32 -0.5, %v3936_v10  ;;  %3308 = vlog2.f32 %v3955_v26 }
  0x30   :  { %11819 = vst [vmem:[#allocation13_spill] sm:$0xff] %v3967_v35  ;;  %v3975_v41 = vmax.f32 %v80_v17, 0.0001  ;;  %v3977_v42 = vmax.f32 %v81_v18, 0.0001  ;;  %v3981_v44 = vadd.f32 1.0, %v3946_v20  ;;  %3310 = vlog2.f32 %v3959_v30 }
  0x31   :  { %11820 = vst [vmem:[#allocation14_spill] sm:$0xff] %v3969_v36  ;;  %v92_v45 = vld [vmem:[#allocation2 + $0xb0] sm:$0xff]  ;;  %v93_v46 = vld [vmem:[#allocation2 + $0xb8] sm:$0xff]  ;;  %v3983_v47 = vmax.f32 %v82_v19, 0.0001  ;;  %v612_v49 = vmul.f32 -0.5, %v3938_v11  ;;  %3312 = vlog2.f32 %v3962_v31 }
  0x32   :  { %11821 = vst [vmem:[#allocation15_spill] sm:$0xff] %v3975_v41  ;;  %11822 = vst [vmem:[#allocation16_spill] sm:$0xff] %v3977_v42  ;;  %v3985_v48 = vmax.f32 %v83_v21, 0.0001  ;;  %v621_v50 = vmul.f32 -0.5, %v3940_v12  ;;  %v94_v51 = vld [vmem:[#allocation2 + $0xc0] sm:$0xff]  ;;  %3314 = vlog2.f32 %v3965_v32 }
  0x33   :  { %11823 = vst [vmem:[#allocation17_spill] sm:$0xff] %v3983_v47  ;;  %v95_v52 = vld [vmem:[#allocation2 + $0xc8] sm:$0xff]  ;;  %v3989_v53 = vmax.f32 %v84_v22, 0.0001  ;;  %v3991_v54 = vmax.f32 %v85_v23, 0.0001  ;;  %3316 = vlog2.f32 %v3973_v38 }
  0x34   :  { %11824 = vst [vmem:[#allocation18_spill] sm:$0xff] %v3985_v48  ;;  %v3993_v55 = vadd.f32 1.0, %v585_v29  ;;  %v630_v56 = vmul.f32 -0.5, %v3942_v13  ;;  %v96_v57 = vld [vmem:[#allocation2 + $0xd0] sm:$0xff]  ;;  %v97_v58 = vld [vmem:[#allocation2 + $0xd8] sm:$0xff]  ;;  %v4000_v61 = vadd.f32 1.0, %v594_v37  ;;  %3318 = vlog2.f32 %v3981_v44 }
  0x35   :  { %11825 = vst [vmem:[#allocation19_spill] sm:$0xff] %v3989_v53  ;;  %11826 = vst [vmem:[#allocation20_spill] sm:$0xff] %v3991_v54  ;;  %v3996_v59 = vmax.f32 %v86_v27, 0.0001  ;;  %v3998_v60 = vmax.f32 %v87_v28, 0.0001 }
  0x36   :  { %v639_v62 = vmul.f32 -0.5, %v3944_v16  ;;  %v98_v63 = vld [vmem:[#allocation2 + $0xe0] sm:$0xff]  ;;  %v99_v0 = vld [vmem:[#allocation2 + $0xe8] sm:$0xff]  ;;  %v4003_v1 = vmax.f32 %v88_v33, 0.0001  ;;  %v4007_v3 = vadd.f32 1.0, %v603_v43  ;;  %v4380_v38 = vmul.f32 %v3993_v55, %v3932_v7 }
  0x37   :  { %11827 = vst [vmem:[#allocation21_spill] sm:$0xff] %v3996_v59  ;;  %11828 = vst [vmem:[#allocation22_spill] sm:$0xff] %v3998_v60  ;;  %v4005_v2 = vmax.f32 %v89_v34, 0.0001  ;;  %v648_v4 = vmul.f32 -0.5, %v3946_v20  ;;  %v100_v5 = vld [vmem:[#allocation2 + $0xf0] sm:$0xff] }
  0x38   :  { %11829 = vst [vmem:[#allocation23_spill] sm:$0xff] %v4003_v1  ;;  %v101_v6 = vld [vmem:[#allocation2 + $0xf8] sm:$0xff]  ;;  %v4010_v8 = vmax.f32 %v90_v39, 0.0001  ;;  %v4012_v14 = vmax.f32 %v91_v40, 0.0001 }
  0x39   :  { %11830 = vst [vmem:[#allocation24_spill] sm:$0xff] %v4005_v2  ;;  %v4014_v15 = vadd.f32 1.0, %v612_v49  ;;  %v4016_v17 = vadd.f32 1.0, %v621_v50  ;;  %v102_v18 = vld [vmem:[#allocation2 + $0x100] sm:$0xff]  ;;  %v103_v19 = vld [vmem:[#allocation2 + $0x108] sm:$0xff]  ;;  %v4022_v23 = vadd.f32 1.0, %v630_v56 }
  0x3a   :  { %11831 = vst [vmem:[#allocation25_spill] sm:$0xff] %v4010_v8  ;;  %11832 = vst [vmem:[#allocation26_spill] sm:$0xff] %v4012_v14  ;;  %v4018_v21 = vmax.f32 %v92_v45, 0.0001  ;;  %v4020_v22 = vmax.f32 %v93_v46, 0.0001 }
  0x3b   :  { %v657_v27 = vmul.f32 -0.5, %v3967_v35  ;;  %v104_v28 = vld [vmem:[#allocation2 + $0x110] sm:$0xff]  ;;  %v105_v29 = vld [vmem:[#allocation2 + $0x118] sm:$0xff]  ;;  %v4025_v33 = vmax.f32 %v94_v51, 0.0001  ;;  %v4029_v37 = vadd.f32 1.0, %v639_v62 }
  0x3c   :  { %11833 = vst [vmem:[#allocation27_spill] sm:$0xff] %v4018_v21  ;;  %11834 = vst [vmem:[#allocation28_spill] sm:$0xff] %v4020_v22  ;;  %v4027_v34 = vmax.f32 %v95_v52, 0.0001  ;;  %v666_v39 = vmul.f32 -0.5, %v3969_v36  ;;  %v106_v40 = vld [vmem:[#allocation2 + $0x120] sm:$0xff] }
  0x3d   :  { %11835 = vst [vmem:[#allocation29_spill] sm:$0xff] %v4025_v33  ;;  %11837 = vst [vmem:[#allocation31_spill] sm:$0xff] %v4029_v37  ;;  %v107_v43 = vld [vmem:[#allocation2 + $0x128] sm:$0xff]  ;;  %v4032_v45 = vmax.f32 %v96_v57, 0.0001  ;;  %v4036_v49 = vadd.f32 1.0, %v648_v4 }
  0x3e   :  { %11836 = vst [vmem:[#allocation30_spill] sm:$0xff] %v4027_v34  ;;  %v4034_v46 = vmax.f32 %v97_v58, 0.0001  ;;  %v4039_v50 = vadd.f32 1.0, %v3967_v35  ;;  %v108_v56 = vld [vmem:[#allocation2 + $0x130] sm:$0xff]  ;;  %v109_v51 = vld [vmem:[#allocation2 + $0x138] sm:$0xff] }
  0x3f   :  { %11838 = vst [vmem:[#allocation32_spill] sm:$0xff] %v4032_v45  ;;  %11840 = vst [vmem:[#allocation34_spill] sm:$0xff] %v4036_v49  ;;  %v4041_v20 = vmax.f32 %v98_v63, 0.0001  ;;  %v4043_v52 = vmax.f32 %v99_v0, 0.0001 }
  0x40   :  { %11839 = vst [vmem:[#allocation33_spill] sm:$0xff] %v4034_v46  ;;  %11841 = vst [vmem:[#allocation35_spill] sm:$0xff] %v4039_v50  ;;  %v4046_v62 = vadd.f32 1.0, %v3969_v36  ;;  %v675_v37 = vmul.f32 -0.5, %v3975_v41  ;;  %v110_v57 = vld [vmem:[#allocation2 + $0x140] sm:$0xff]  ;;  %v111_v16 = vld [vmem:[#allocation2 + $0x148] sm:$0xff] }
  0x41   :  { %11842 = vst [vmem:[#allocation36_spill] sm:$0xff] %v4041_v20  ;;  %11843 = vst [vmem:[#allocation37_spill] sm:$0xff] %v4043_v52  ;;  %v4049_v58 = vmax.f32 %v100_v5, 0.0001  ;;  %v4051_v4 = vmax.f32 %v101_v6, 0.0001 }
  0x42   :  { %11844 = vst [vmem:[#allocation38_spill] sm:$0xff] %v4046_v62  ;;  %v4053_v49 = vadd.f32 1.0, %v657_v27  ;;  %v684_v35 = vmul.f32 -0.5, %v3977_v42  ;;  %v112_v50 = vld [vmem:[#allocation2 + $0x150] sm:$0xff]  ;;  %v113_v63 = vld [vmem:[#allocation2 + $0x158] sm:$0xff]  ;;  %v4060_v52 = vadd.f32 1.0, %v666_v39 }
  0x43   :  { %11845 = vst [vmem:[#allocation39_spill] sm:$0xff] %v4049_v58  ;;  %11846 = vst [vmem:[#allocation40_spill] sm:$0xff] %v4051_v4  ;;  %v4056_v20 = vmax.f32 %v102_v18, 0.0001  ;;  %v4058_v0 = vmax.f32 %v103_v19, 0.0001 }
  0x44   :  { %11849 = vst [vmem:[#allocation43_spill] sm:$0xff] %v4060_v52  ;;  %v4063_v36 = vadd.f32 1.0, %v3975_v41  ;;  %v114_v62 = vld [vmem:[#allocation2 + $0x160] sm:$0xff]  ;;  %v115_v5 = vld [vmem:[#allocation2 + $0x168] sm:$0xff]  ;;  %v4065_v58 = vmax.f32 %v104_v28, 0.0001 }
  0x45   :  { %11847 = vst [vmem:[#allocation41_spill] sm:$0xff] %v4056_v20  ;;  %11848 = vst [vmem:[#allocation42_spill] sm:$0xff] %v4058_v0  ;;  %v4067_v6 = vmax.f32 %v105_v29, 0.0001  ;;  %v4070_v27 = vadd.f32 1.0, %v3977_v42  ;;  %v693_v4 = vmul.f32 -0.5, %v3983_v47 }
  0x46   :  { %11850 = vst [vmem:[#allocation44_spill] sm:$0xff] %v4065_v58  ;;  %v116_v18 = vld [vmem:[#allocation2 + $0x170] sm:$0xff]  ;;  %v117_v20 = vld [vmem:[#allocation2 + $0x178] sm:$0xff]  ;;  %v4073_v19 = vmax.f32 %v106_v40, 0.0001  ;;  %v4077_v0 = vadd.f32 1.0, %v675_v37 }
  0x47   :  { %11851 = vst [vmem:[#allocation45_spill] sm:$0xff] %v4067_v6  ;;  %11852 = vst [vmem:[#allocation46_spill] sm:$0xff] %v4070_v27  ;;  %v4075_v39 = vmax.f32 %v107_v43, 0.0001  ;;  %v702_v41 = vmul.f32 -0.5, %v3985_v48  ;;  %v118_v52 = vld [vmem:[#allocation2 + $0x180] sm:$0xff] }
  0x48   :  { %11853 = vst [vmem:[#allocation47_spill] sm:$0xff] %v4073_v19  ;;  %v119_v28 = vld [vmem:[#allocation2 + $0x188] sm:$0xff]  ;;  %v4080_v58 = vmax.f32 %v108_v56, 0.0001  ;;  %v4082_v29 = vmax.f32 %v109_v51, 0.0001 }
  0x49   :  { %11854 = vst [vmem:[#allocation48_spill] sm:$0xff] %v4075_v39  ;;  %v4084_v6 = vadd.f32 1.0, %v684_v35  ;;  %v4087_v42 = vadd.f32 1.0, %v3983_v47  ;;  %v120_v27 = vld [vmem:[#allocation2 + $0x190] sm:$0xff]  ;;  %v121_v40 = vld [vmem:[#allocation2 + $0x198] sm:$0xff]  ;;  %v4094_v37 = vadd.f32 1.0, %v3985_v48 }
  0x4a   :  { %11855 = vst [vmem:[#allocation49_spill] sm:$0xff] %v4080_v58  ;;  %11856 = vst [vmem:[#allocation50_spill] sm:$0xff] %v4082_v29  ;;  %v4089_v19 = vmax.f32 %v110_v57, 0.0001  ;;  %v4091_v43 = vmax.f32 %v111_v16, 0.0001 }
  0x4b   :  { %11857 = vst [vmem:[#allocation51_spill] sm:$0xff] %v4084_v6  ;;  %11860 = vst [vmem:[#allocation54_spill] sm:$0xff] %v4094_v37  ;;  %v711_v39 = vmul.f32 -0.5, %v3989_v53  ;;  %v122_v56 = vld [vmem:[#allocation2 + $0x1a0] sm:$0xff]  ;;  %v123_v58 = vld [vmem:[#allocation2 + $0x1a8] sm:$0xff]  ;;  %v4101_v29 = vadd.f32 1.0, %v693_v4 }
  0x4c   :  { %11858 = vst [vmem:[#allocation52_spill] sm:$0xff] %v4089_v19  ;;  %11859 = vst [vmem:[#allocation53_spill] sm:$0xff] %v4091_v43  ;;  %v4097_v51 = vmax.f32 %v112_v50, 0.0001  ;;  %v4099_v35 = vmax.f32 %v113_v63, 0.0001 }
  0x4d   :  { %v720_v47 = vmul.f32 -0.5, %v3991_v54  ;;  %v124_v6 = vld [vmem:[#allocation2 + $0x1b0] sm:$0xff]  ;;  %v125_v57 = vld [vmem:[#allocation2 + $0x1b8] sm:$0xff]  ;;  %v4104_v19 = vmax.f32 %v114_v62, 0.0001  ;;  %v4108_v43 = vadd.f32 1.0, %v702_v41 }
  0x4e   :  { %11861 = vst [vmem:[#allocation55_spill] sm:$0xff] %v4097_v51  ;;  %11862 = vst [vmem:[#allocation56_spill] sm:$0xff] %v4099_v35  ;;  %v4106_v16 = vmax.f32 %v115_v5, 0.0001  ;;  %v4111_v48 = vadd.f32 1.0, %v3989_v53  ;;  %v126_v37 = vld [vmem:[#allocation2 + $0x1c0] sm:$0xff] }
  0x4f   :  { %11863 = vst [vmem:[#allocation57_spill] sm:$0xff] %v4104_v19  ;;  %11865 = vst [vmem:[#allocation59_spill] sm:$0xff] %v4108_v43  ;;  %v127_v50 = vld [vmem:[#allocation2 + $0x1c8] sm:$0xff]  ;;  %v4113_v51 = vmax.f32 %v116_v18, 0.0001  ;;  %v4118_v4 = vadd.f32 1.0, %v3991_v54 }
  0x50   :  { %11864 = vst [vmem:[#allocation58_spill] sm:$0xff] %v4106_v16  ;;  %v4115_v63 = vmax.f32 %v117_v20, 0.0001  ;;  %v729_v35 = vmul.f32 -0.5, %v3996_v59  ;;  %v128_v62 = vld [vmem:[#allocation2 + $0x1d0] sm:$0xff]  ;;  %v129_v19 = vld [vmem:[#allocation2 + $0x1d8] sm:$0xff] }
  0x51   :  { %11866 = vst [vmem:[#allocation60_spill] sm:$0xff] %v4113_v51  ;;  %11868 = vst [vmem:[#allocation62_spill] sm:$0xff] %v4118_v4  ;;  %v4121_v5 = vmax.f32 %v118_v52, 0.0001  ;;  %v4123_v41 = vmax.f32 %v119_v28, 0.0001 }
  0x52   :  { %11867 = vst [vmem:[#allocation61_spill] sm:$0xff] %v4115_v63  ;;  %v4125_v16 = vadd.f32 1.0, %v711_v39  ;;  %v738_v53 = vmul.f32 -0.5, %v3998_v60  ;;  %v130_v43 = vld [vmem:[#allocation2 + $0x1e0] sm:$0xff]  ;;  %v131_v18 = vld [vmem:[#allocation2 + $0x1e8] sm:$0xff]  ;;  %v4132_v63 = vadd.f32 1.0, %v720_v47 }
  0x53   :  { %11869 = vst [vmem:[#allocation63_spill] sm:$0xff] %v4121_v5  ;;  %11870 = vst [vmem:[#allocation64_spill] sm:$0xff] %v4123_v41  ;;  %v4128_v51 = vmax.f32 %v120_v27, 0.0001  ;;  %v4130_v20 = vmax.f32 %v121_v40, 0.0001 }
  0x54   :  { %11873 = vst [vmem:[#allocation67_spill] sm:$0xff] %v4132_v63  ;;  %v4135_v54 = vadd.f32 1.0, %v3996_v59  ;;  %v132_v4 = vld [vmem:[#allocation2 + $0x1f0] sm:$0xff]  ;;  %v133_v52 = vld [vmem:[#allocation2 + $0x1f8] sm:$0xff]  ;;  %v4137_v5 = vmax.f32 %v122_v56, 0.0001 }
  0x55   :  { %11871 = vst [vmem:[#allocation65_spill] sm:$0xff] %v4128_v51  ;;  %11872 = vst [vmem:[#allocation66_spill] sm:$0xff] %v4130_v20  ;;  %v4139_v28 = vmax.f32 %v123_v58, 0.0001  ;;  %v4142_v39 = vadd.f32 1.0, %v3998_v60  ;;  %v747_v41 = vmul.f32 -0.5, %v4003_v1 }
  0x56   :  { %11874 = vst [vmem:[#allocation68_spill] sm:$0xff] %v4137_v5  ;;  %v134_v27 = vld [vmem:[#allocation2 + $0x200] sm:$0xff]  ;;  %v135_v51 = vld [vmem:[#allocation2 + $0x208] sm:$0xff]  ;;  %v4145_v40 = vmax.f32 %v124_v6, 0.0001  ;;  %v4149_v20 = vadd.f32 1.0, %v729_v35 }
  0x57   :  { %11875 = vst [vmem:[#allocation69_spill] sm:$0xff] %v4139_v28  ;;  %11876 = vst [vmem:[#allocation70_spill] sm:$0xff] %v4142_v39  ;;  %v4147_v47 = vmax.f32 %v125_v57, 0.0001  ;;  %v756_v59 = vmul.f32 -0.5, %v4005_v2  ;;  %v136_v63 = vld [vmem:[#allocation2 + $0x210] sm:$0xff] }
  0x58   :  { %11877 = vst [vmem:[#allocation71_spill] sm:$0xff] %v4145_v40  ;;  %v137_v56 = vld [vmem:[#allocation2 + $0x218] sm:$0xff]  ;;  %v4152_v5 = vmax.f32 %v126_v37, 0.0001  ;;  %v4154_v58 = vmax.f32 %v127_v50, 0.0001 }
  0x59   :  { %11878 = vst [vmem:[#allocation72_spill] sm:$0xff] %v4147_v47  ;;  %v4156_v28 = vadd.f32 1.0, %v738_v53  ;;  %v4159_v60 = vadd.f32 1.0, %v4003_v1  ;;  %v138_v39 = vld [vmem:[#allocation2 + $0x220] sm:$0xff]  ;;  %v139_v6 = vld [vmem:[#allocation2 + $0x228] sm:$0xff]  ;;  %v4166_v35 = vadd.f32 1.0, %v4005_v2 }
  0x5a   :  { %11879 = vst [vmem:[#allocation73_spill] sm:$0xff] %v4152_v5  ;;  %11880 = vst [vmem:[#allocation74_spill] sm:$0xff] %v4154_v58  ;;  %v4161_v40 = vmax.f32 %v128_v62, 0.0001  ;;  %v4163_v57 = vmax.f32 %v129_v19, 0.0001 }
  0x5b   :  { %11881 = vst [vmem:[#allocation75_spill] sm:$0xff] %v4156_v28  ;;  %11884 = vst [vmem:[#allocation78_spill] sm:$0xff] %v4166_v35  ;;  %v765_v47 = vmul.f32 -0.5, %v4010_v8  ;;  %v140_v37 = vld [vmem:[#allocation2 + $0x230] sm:$0xff]  ;;  %v141_v5 = vld [vmem:[#allocation2 + $0x238] sm:$0xff]  ;;  %v4173_v58 = vadd.f32 1.0, %v747_v41 }
  0x5c   :  { %11882 = vst [vmem:[#allocation76_spill] sm:$0xff] %v4161_v40  ;;  %11883 = vst [vmem:[#allocation77_spill] sm:$0xff] %v4163_v57  ;;  %v4169_v50 = vmax.f32 %v130_v43, 0.0001  ;;  %v4171_v53 = vmax.f32 %v131_v18, 0.0001 }
  0x5d   :  { %v774_v1 = vmul.f32 -0.5, %v4012_v14  ;;  %v142_v28 = vld [vmem:[#allocation2 + $0x240] sm:$0xff]  ;;  %v143_v62 = vld [vmem:[#allocation2 + $0x248] sm:$0xff]  ;;  %v4176_v40 = vmax.f32 %v132_v4, 0.0001  ;;  %v4180_v57 = vadd.f32 1.0, %v756_v59 }
  0x5e   :  { %11885 = vst [vmem:[#allocation79_spill] sm:$0xff] %v4169_v50  ;;  %11886 = vst [vmem:[#allocation80_spill] sm:$0xff] %v4171_v53  ;;  %v4178_v19 = vmax.f32 %v133_v52, 0.0001  ;;  %v4183_v2 = vadd.f32 1.0, %v4010_v8  ;;  %v144_v35 = vld [vmem:[#allocation2 + $0x250] sm:$0xff] }
  0x5f   :  { %11887 = vst [vmem:[#allocation81_spill] sm:$0xff] %v4176_v40  ;;  %11889 = vst [vmem:[#allocation83_spill] sm:$0xff] %v4180_v57  ;;  %v145_v43 = vld [vmem:[#allocation2 + $0x258] sm:$0xff]  ;;  %v4185_v50 = vmax.f32 %v134_v27, 0.0001  ;;  %v4190_v41 = vadd.f32 1.0, %v4012_v14 }
  0x60   :  { %11888 = vst [vmem:[#allocation82_spill] sm:$0xff] %v4178_v19  ;;  %v4187_v18 = vmax.f32 %v135_v51, 0.0001  ;;  %v783_v53 = vmul.f32 -0.5, %v4018_v21  ;;  %v146_v4 = vld [vmem:[#allocation2 + $0x260] sm:$0xff]  ;;  %v147_v40 = vld [vmem:[#allocation2 + $0x268] sm:$0xff] }
  0x61   :  { %11890 = vst [vmem:[#allocation84_spill] sm:$0xff] %v4185_v50  ;;  %11892 = vst [vmem:[#allocation86_spill] sm:$0xff] %v4190_v41  ;;  %v4193_v52 = vmax.f32 %v136_v63, 0.0001  ;;  %v4195_v59 = vmax.f32 %v137_v56, 0.0001 }
  0x62   :  { %11891 = vst [vmem:[#allocation85_spill] sm:$0xff] %v4187_v18  ;;  %v4197_v19 = vadd.f32 1.0, %v765_v47  ;;  %v792_v8 = vmul.f32 -0.5, %v4020_v22  ;;  %v148_v57 = vld [vmem:[#allocation2 + $0x270] sm:$0xff]  ;;  %v149_v27 = vld [vmem:[#allocation2 + $0x278] sm:$0xff]  ;;  %v4204_v18 = vadd.f32 1.0, %v774_v1 }
  0x63   :  { %11893 = vst [vmem:[#allocation87_spill] sm:$0xff] %v4193_v52  ;;  %11894 = vst [vmem:[#allocation88_spill] sm:$0xff] %v4195_v59  ;;  %v4200_v50 = vmax.f32 %v138_v39, 0.0001  ;;  %v4202_v51 = vmax.f32 %v139_v6, 0.0001 }
  0x64   :  { %11895 = vst [vmem:[#allocation89_spill] sm:$0xff] %v4197_v19  ;;  %11898 = vst [vmem:[#allocation92_spill] sm:$0xff] %v4204_v18  ;;  %v4207_v14 = vadd.f32 1.0, %v4018_v21  ;;  %v150_v41 = vld [vmem:[#allocation2 + $0x280] sm:$0xff]  ;;  %v151_v63 = vld [vmem:[#allocation2 + $0x288] sm:$0xff]  ;;  %v4214_v59 = vadd.f32 1.0, %v4020_v22 }
  0x65   :  { %11896 = vst [vmem:[#allocation90_spill] sm:$0xff] %v4200_v50  ;;  %11897 = vst [vmem:[#allocation91_spill] sm:$0xff] %v4202_v51  ;;  %v152_v52 = vld [vmem:[#allocation2 + $0x290] sm:$0xff]  ;;  %v4209_v56 = vmax.f32 %v140_v37, 0.0001  ;;  %v801_v39 = vmul.f32 -0.5, %v4025_v33 }
  0x66   :  { %11899 = vst [vmem:[#allocation93_spill] sm:$0xff] %v4207_v14  ;;  %v4211_v47 = vmax.f32 %v141_v5, 0.0001  ;;  %11902 = vst [vmem:[#allocation96_spill] sm:$0xff] %v4214_v59  ;;  %v153_v50 = vld [vmem:[#allocation2 + $0x298] sm:$0xff]  ;;  %v154_v6 = vld [vmem:[#allocation2 + $0x2a0] sm:$0xff] }
  0x67   :  { %11900 = vst [vmem:[#allocation94_spill] sm:$0xff] %v4209_v56  ;;  %v4217_v51 = vmax.f32 %v142_v28, 0.0001  ;;  %v4219_v1 = vmax.f32 %v143_v62, 0.0001  ;;  %v4221_v21 = vadd.f32 1.0, %v783_v53 }
  0x68   :  { %11901 = vst [vmem:[#allocation95_spill] sm:$0xff] %v4211_v47  ;;  %v4224_v18 = vadd.f32 1.0, %v4025_v33  ;;  %v155_v37 = vld [vmem:[#allocation2 + $0x2a8] sm:$0xff]  ;;  %v156_v56 = vld [vmem:[#allocation2 + $0x2b0] sm:$0xff]  ;;  %v4226_v5 = vmax.f32 %v144_v35, 0.0001 }
  0x69   :  { %11903 = vst [vmem:[#allocation97_spill] sm:$0xff] %v4217_v51  ;;  %11904 = vst [vmem:[#allocation98_spill] sm:$0xff] %v4219_v1  ;;  %v4228_v47 = vmax.f32 %v145_v43, 0.0001  ;;  %v4230_v22 = vadd.f32 1.0, %v792_v8  ;;  %v810_v59 = vmul.f32 -0.5, %v4027_v34 }
  0x6a   :  { %11905 = vst [vmem:[#allocation99_spill] sm:$0xff] %v4221_v21  ;;  %11906 = vst [vmem:[#allocation100_spill] sm:$0xff] %v4224_v18  ;;  %v157_v14 = vld [vmem:[#allocation2 + $0x2b8] sm:$0xff]  ;;  %v158_v28 = vld [vmem:[#allocation2 + $0x2c0] sm:$0xff]  ;;  %v4233_v62 = vmax.f32 %v146_v4, 0.0001 }
  0x6b   :  { %11907 = vst [vmem:[#allocation101_spill] sm:$0xff] %v4226_v5  ;;  %11908 = vst [vmem:[#allocation102_spill] sm:$0xff] %v4228_v47  ;;  %v159_v51 = vld [vmem:[#allocation2 + $0x2c8] sm:$0xff]  ;;  %v4235_v53 = vmax.f32 %v147_v40, 0.0001  ;;  %v4238_v1 = vadd.f32 1.0, %v4027_v34 }
  0x6c   :  { %11909 = vst [vmem:[#allocation103_spill] sm:$0xff] %v4230_v22  ;;  %11910 = vst [vmem:[#allocation104_spill] sm:$0xff] %v4233_v62  ;;  %v819_v33 = vmul.f32 -0.5, %v4032_v45  ;;  %v160_v35 = vld [vmem:[#allocation2 + $0x2d0] sm:$0xff]  ;;  %v161_v5 = vld [vmem:[#allocation2 + $0x2d8] sm:$0xff]  ;;  %v4245_v22 = vadd.f32 1.0, %v801_v39 }
  0x6d   :  { %11911 = vst [vmem:[#allocation105_spill] sm:$0xff] %v4235_v53  ;;  %11912 = vst [vmem:[#allocation106_spill] sm:$0xff] %v4238_v1  ;;  %v162_v43 = vld [vmem:[#allocation2 + $0x2e0] sm:$0xff]  ;;  %v4241_v47 = vmax.f32 %v148_v57, 0.0001  ;;  %v4248_v18 = vadd.f32 1.0, %v4032_v45 }
  0x6e   :  { %v4243_v8 = vmax.f32 %v149_v27, 0.0001  ;;  %v163_v4 = vld [vmem:[#allocation2 + $0x2e8] sm:$0xff]  ;;  %v164_v40 = vld [vmem:[#allocation2 + $0x2f0] sm:$0xff]  ;;  %v165_v53 = vld [vmem:[#allocation2 + $0x2f8] sm:$0xff]  ;;  %v4260_v39 = vadd.f32 1.0, %v810_v59 }
  0x6f   :  { %11913 = vst [vmem:[#allocation107_spill] sm:$0xff] %v4241_v47  ;;  %11915 = vst [vmem:[#allocation109_spill] sm:$0xff] %v4248_v18  ;;  %v4250_v62 = vmax.f32 %v150_v41, 0.0001  ;;  %v4252_v34 = vmax.f32 %v151_v63, 0.0001 }
  0x70   :  { %11914 = vst [vmem:[#allocation108_spill] sm:$0xff] %v4243_v8  ;;  %v4254_v1 = vmax.f32 %v152_v52, 0.0001  ;;  %v166_v21 = vld [vmem:[#allocation2 + $0x300] sm:$0xff]  ;;  %v167_v19 = vld [vmem:[#allocation2 + $0x308] sm:$0xff]  ;;  %v168_v57 = vld [vmem:[#allocation2 + $0x310] sm:$0xff] }
  0x71   :  { %11916 = vst [vmem:[#allocation110_spill] sm:$0xff] %v4250_v62  ;;  %11917 = vst [vmem:[#allocation111_spill] sm:$0xff] %v4252_v34  ;;  %v4256_v47 = vmax.f32 %v153_v50, 0.0001  ;;  %v4258_v27 = vmax.f32 %v154_v6, 0.0001 }
  0x72   :  { %11918 = vst [vmem:[#allocation112_spill] sm:$0xff] %v4254_v1  ;;  %11921 = vst [vmem:[#allocation115_spill] sm:$0xff] %v4260_v39  ;;  %v4263_v8 = vadd.f32 1.0, %v4034_v46  ;;  %v169_v45 = vld [vmem:[#allocation2 + $0x318] sm:$0xff]  ;;  %v170_v18 = vld [vmem:[#allocation2 + $0x320] sm:$0xff]  ;;  %v4269_v52 = vadd.f32 1.0, %v819_v33 }
  0x73   :  { %11919 = vst [vmem:[#allocation113_spill] sm:$0xff] %v4256_v47  ;;  %11920 = vst [vmem:[#allocation114_spill] sm:$0xff] %v4258_v27  ;;  %v171_v41 = vld [vmem:[#allocation2 + $0x328] sm:$0xff]  ;;  %v4265_v62 = vmax.f32 %v155_v37, 0.0001  ;;  %v4272_v1 = vmul.f32 -0.5, %v4034_v46 }
  0x74   :  { %11922 = vst [vmem:[#allocation116_spill] sm:$0xff] %v4263_v8  ;;  %v4267_v63 = vmax.f32 %v156_v56, 0.0001  ;;  %11925 = vst [vmem:[#allocation119_spill] sm:$0xff] %v4269_v52  ;;  %v172_v50 = vld [vmem:[#allocation2 + $0x330] sm:$0xff]  ;;  %v173_v6 = vld [vmem:[#allocation2 + $0x338] sm:$0xff] }
  0x75   :  { %11923 = vst [vmem:[#allocation117_spill] sm:$0xff] %v4265_v62  ;;  %11926 = vst [vmem:[#allocation120_spill] sm:$0xff] %v4272_v1  ;;  %v174_v27 = vld [vmem:[#allocation2 + $0x340] sm:$0xff]  ;;  %v4274_v59 = vmax.f32 %v157_v14, 0.0001  ;;  %v175_v8 = vld [vmem:[#allocation2 + $0x348] sm:$0xff] }
  0x76   :  { %11924 = vst [vmem:[#allocation118_spill] sm:$0xff] %v4267_v63  ;;  %v4276_v47 = vmax.f32 %v158_v28, 0.0001  ;;  %v4278_v34 = vmax.f32 %v159_v51, 0.0001  ;;  %v176_v39 = vld [vmem:[#allocation2 + $0x350] sm:$0xff] }
  0x77   :  { %11927 = vst [vmem:[#allocation121_spill] sm:$0xff] %v4274_v59  ;;  %v177_v37 = vld [vmem:[#allocation2 + $0x358] sm:$0xff]  ;;  %v4280_v62 = vmax.f32 %v160_v35, 0.0001  ;;  %v4282_v56 = vmax.f32 %v161_v5, 0.0001 }
  0x78   :  { %11928 = vst [vmem:[#allocation122_spill] sm:$0xff] %v4276_v47  ;;  %11929 = vst [vmem:[#allocation123_spill] sm:$0xff] %v4278_v34  ;;  %v4284_v33 = vmax.f32 %v162_v43, 0.0001  ;;  %v178_v63 = vld [vmem:[#allocation2 + $0x360] sm:$0xff]  ;;  %v179_v46 = vld [vmem:[#allocation2 + $0x368] sm:$0xff] }
  0x79   :  { %11930 = vst [vmem:[#allocation124_spill] sm:$0xff] %v4280_v62  ;;  %11931 = vst [vmem:[#allocation125_spill] sm:$0xff] %v4282_v56  ;;  %v180_v1 = vld [vmem:[#allocation2 + $0x370] sm:$0xff]  ;;  %v4286_v52 = vmax.f32 %v163_v4, 0.0001  ;;  %v181_v51 = vld [vmem:[#allocation2 + $0x378] sm:$0xff] }
  0x7a   :  { %11932 = vst [vmem:[#allocation126_spill] sm:$0xff] %v4284_v33  ;;  %v4288_v14 = vmax.f32 %v164_v40, 0.0001  ;;  %v4290_v28 = vmax.f32 %v165_v53, 0.0001  ;;  %v182_v34 = vld [vmem:[#allocation2 + $0x380] sm:$0xff] }
  0x7b   :  { %11933 = vst [vmem:[#allocation127_spill] sm:$0xff] %v4286_v52  ;;  %v183_v47 = vld [vmem:[#allocation2 + $0x388] sm:$0xff]  ;;  %v4292_v59 = vmax.f32 %v166_v21, 0.0001  ;;  %v4294_v35 = vmax.f32 %v167_v19, 0.0001 }
  0x7c   :  { %11934 = vst [vmem:[#allocation128_spill] sm:$0xff] %v4288_v14  ;;  %11935 = vst [vmem:[#allocation129_spill] sm:$0xff] %v4290_v28  ;;  %v4296_v5 = vmax.f32 %v168_v57, 0.0001  ;;  %v184_v43 = vld [vmem:[#allocation2 + $0x390] sm:$0xff]  ;;  %v185_v33 = vld [vmem:[#allocation2 + $0x398] sm:$0xff] }
  0x7d   :  { %11936 = vst [vmem:[#allocation130_spill] sm:$0xff] %v4292_v59  ;;  %11937 = vst [vmem:[#allocation131_spill] sm:$0xff] %v4294_v35  ;;  %v186_v56 = vld [vmem:[#allocation2 + $0x3a0] sm:$0xff]  ;;  %v4298_v62 = vmax.f32 %v169_v45, 0.0001  ;;  %v187_v53 = vld [vmem:[#allocation2 + $0x3a8] sm:$0xff] }
  0x7e   :  { %11938 = vst [vmem:[#allocation132_spill] sm:$0xff] %v4296_v5  ;;  %v4300_v4 = vmax.f32 %v170_v18, 0.0001  ;;  %v4302_v40 = vmax.f32 %v171_v41, 0.0001  ;;  %v188_v28 = vld [vmem:[#allocation2 + $0x3b0] sm:$0xff] }
  0x7f   :  { %11939 = vst [vmem:[#allocation133_spill] sm:$0xff] %v4298_v62  ;;  %v189_v14 = vld [vmem:[#allocation2 + $0x3b8] sm:$0xff]  ;;  %v4304_v52 = vmax.f32 %v172_v50, 0.0001  ;;  %v4306_v21 = vmax.f32 %v173_v6, 0.0001 }
  0x80   :  { %11940 = vst [vmem:[#allocation134_spill] sm:$0xff] %v4300_v4  ;;  %11941 = vst [vmem:[#allocation135_spill] sm:$0xff] %v4302_v40  ;;  %v4308_v19 = vmax.f32 %v174_v27, 0.0001  ;;  %v190_v57 = vld [vmem:[#allocation2 + $0x3c0] sm:$0xff]  ;;  %v191_v5 = vld [vmem:[#allocation2 + $0x3c8] sm:$0xff] }
  0x81   :  { %11942 = vst [vmem:[#allocation136_spill] sm:$0xff] %v4304_v52  ;;  %11943 = vst [vmem:[#allocation137_spill] sm:$0xff] %v4306_v21  ;;  %v192_v35 = vld [vmem:[#allocation2 + $0x3d0] sm:$0xff]  ;;  %v4310_v59 = vmax.f32 %v175_v8, 0.0001  ;;  %v193_v41 = vld [vmem:[#allocation2 + $0x3d8] sm:$0xff] }
  0x82   :  { %11944 = vst [vmem:[#allocation138_spill] sm:$0xff] %v4308_v19  ;;  %v4312_v45 = vmax.f32 %v176_v39, 0.0001  ;;  %v4314_v18 = vmax.f32 %v177_v37, 0.0001  ;;  %v194_v40 = vld [vmem:[#allocation2 + $0x3e0] sm:$0xff] }
  0x83   :  { %11945 = vst [vmem:[#allocation139_spill] sm:$0xff] %v4310_v59  ;;  %v195_v4 = vld [vmem:[#allocation2 + $0x3e8] sm:$0xff]  ;;  %v4316_v62 = vmax.f32 %v178_v63, 0.0001  ;;  %v4318_v50 = vmax.f32 %v179_v46, 0.0001 }
  0x84   :  { %11946 = vst [vmem:[#allocation140_spill] sm:$0xff] %v4312_v45  ;;  %11947 = vst [vmem:[#allocation141_spill] sm:$0xff] %v4314_v18  ;;  %v4320_v6 = vmax.f32 %v180_v1, 0.0001  ;;  %v196_v27 = vld [vmem:[#allocation2 + $0x3f0] sm:$0xff]  ;;  %v197_v19 = vld [vmem:[#allocation2 + $0x3f8] sm:$0xff] }
  0x85   :  { %11948 = vst [vmem:[#allocation142_spill] sm:$0xff] %v4316_v62  ;;  %11949 = vst [vmem:[#allocation143_spill] sm:$0xff] %v4318_v50  ;;  %v198_v21 = vld [vmem:[#allocation5] sm:$0xff]  ;;  %v4323_v8 = vmax.f32 %v181_v51, 0.0001  ;;  %v199_v18 = vld [vmem:[#allocation5 + $0x8] sm:$0xff] }
  0x86   :  { %11950 = vst [vmem:[#allocation144_spill] sm:$0xff] %v4320_v6  ;;  %v4325_v39 = vmax.f32 %v182_v34, 0.0001  ;;  %v4327_v37 = vmax.f32 %v183_v47, 0.0001  ;;  %v200_v63 = vld [vmem:[#allocation5 + $0x10] sm:$0xff] }
  0x87   :  { %11951 = vst [vmem:[#allocation145_spill] sm:$0xff] %v4323_v8  ;;  %v201_v62 = vld [vmem:[#allocation5 + $0x18] sm:$0xff]  ;;  %v4330_v46 = vmax.f32 %v184_v43, 0.0001  ;;  %v4332_v1 = vmax.f32 %v185_v33, 0.0001 }
  0x88   :  { %11952 = vst [vmem:[#allocation146_spill] sm:$0xff] %v4325_v39  ;;  %11953 = vst [vmem:[#allocation147_spill] sm:$0xff] %v4327_v37  ;;  %v4334_v6 = vmax.f32 %v186_v56, 0.0001  ;;  %v202_v24 = vld [vmem:[#allocation5 + $0x20] sm:$0xff]  ;;  %v203_v51 = vld [vmem:[#allocation5 + $0x28] sm:$0xff] }
  0x89   :  { %11954 = vst [vmem:[#allocation148_spill] sm:$0xff] %v4330_v46  ;;  %11955 = vst [vmem:[#allocation149_spill] sm:$0xff] %v4332_v1  ;;  %v204_v8 = vld [vmem:[#allocation5 + $0x30] sm:$0xff]  ;;  %v4337_v34 = vmax.f32 %v187_v53, 0.0001  ;;  %v205_v25 = vld [vmem:[#allocation5 + $0x38] sm:$0xff] }
  0x8a   :  { %11956 = vst [vmem:[#allocation150_spill] sm:$0xff] %v4334_v6  ;;  %v4339_v47 = vmax.f32 %v188_v28, 0.0001  ;;  %v4341_v37 = vmax.f32 %v189_v14, 0.0001  ;;  %v206_v43 = vld [vmem:[#allocation5 + $0x40] sm:$0xff] }
  0x8b   :  { %11957 = vst [vmem:[#allocation151_spill] sm:$0xff] %v4337_v34  ;;  %v207_v46 = vld [vmem:[#allocation5 + $0x48] sm:$0xff]  ;;  %v4344_v33 = vmax.f32 %v190_v57, 0.0001  ;;  %v4346_v56 = vmax.f32 %v191_v5, 0.0001 }
  0x8c   :  { %11958 = vst [vmem:[#allocation152_spill] sm:$0xff] %v4339_v47  ;;  %11959 = vst [vmem:[#allocation153_spill] sm:$0xff] %v4341_v37  ;;  %v4348_v6 = vmax.f32 %v192_v35, 0.0001  ;;  %v208_v26 = vld [vmem:[#allocation5 + $0x50] sm:$0xff]  ;;  %v209_v53 = vld [vmem:[#allocation5 + $0x58] sm:$0xff] }
  0x8d   :  { %11960 = vst [vmem:[#allocation154_spill] sm:$0xff] %v4344_v33  ;;  %11961 = vst [vmem:[#allocation155_spill] sm:$0xff] %v4346_v56  ;;  %v210_v34 = vld [vmem:[#allocation5 + $0x60] sm:$0xff]  ;;  %v4351_v28 = vmax.f32 %v193_v41, 0.0001  ;;  %v211_v30 = vld [vmem:[#allocation5 + $0x68] sm:$0xff] }
  0x8e   :  { %11962 = vst [vmem:[#allocation156_spill] sm:$0xff] %v4348_v6  ;;  %v4353_v14 = vmax.f32 %v194_v40, 0.0001  ;;  %v4355_v37 = vmax.f32 %v195_v4, 0.0001  ;;  %v212_v57 = vld [vmem:[#allocation5 + $0x70] sm:$0xff] }
  0x8f   :  { %11963 = vst [vmem:[#allocation157_spill] sm:$0xff] %v4351_v28  ;;  %v213_v33 = vld [vmem:[#allocation5 + $0x78] sm:$0xff]  ;;  %v4358_v5 = vmax.f32 %v196_v27, 0.0001  ;;  %v4360_v35 = vmax.f32 %v197_v19, 0.0001 }
  0x90   :  { %11964 = vst [vmem:[#allocation158_spill] sm:$0xff] %v4353_v14  ;;  %11965 = vst [vmem:[#allocation159_spill] sm:$0xff] %v4355_v37  ;;  %v4362_v6 = vmax.f32 %v198_v21, 0.0001  ;;  %v214_v31 = vld [vmem:[#allocation5 + $0x80] sm:$0xff]  ;;  %v215_v41 = vld [vmem:[#allocation5 + $0x88] sm:$0xff] }
  0x91   :  { %11966 = vst [vmem:[#allocation160_spill] sm:$0xff] %v4358_v5  ;;  %11967 = vst [vmem:[#allocation161_spill] sm:$0xff] %v4360_v35  ;;  %v216_v28 = vld [vmem:[#allocation5 + $0x90] sm:$0xff]  ;;  %v4365_v40 = vmax.f32 %v199_v18, 0.0001  ;;  %v217_v32 = vld [vmem:[#allocation5 + $0x98] sm:$0xff] }
  0x92   :  { %11968 = vst [vmem:[#allocation162_spill] sm:$0xff] %v4362_v6  ;;  %v4367_v4 = vmax.f32 %v200_v63, 0.0001  ;;  %v4369_v37 = vmax.f32 %v201_v62, 0.0001  ;;  %v218_v27 = vld [vmem:[#allocation5 + $0xa0] sm:$0xff] }
  0x93   :  { %11969 = vst [vmem:[#allocation163_spill] sm:$0xff] %v4365_v40  ;;  %v219_v5 = vld [vmem:[#allocation5 + $0xa8] sm:$0xff]  ;;  %v4372_v19 = vmax.f32 %v202_v24, 0.0001  ;;  %v4374_v21 = vmax.f32 %v203_v51, 0.0001  ;;  %v4390_v24 = vmul.f32 %v4000_v61, %v3934_v9  ;;  %v4392_v51 = vpop.eup %3304 }
  0x94   :  { %11970 = vst [vmem:[#allocation164_spill] sm:$0xff] %v4367_v4  ;;  %11971 = vst [vmem:[#allocation165_spill] sm:$0xff] %v4369_v37  ;;  %v4376_v6 = vmax.f32 %v204_v8, 0.0001  ;;  %v220_v18 = vld [vmem:[#allocation5 + $0xb0] sm:$0xff]  ;;  %v221_v63 = vld [vmem:[#allocation5 + $0xb8] sm:$0xff] }
  0x95   :  { %11972 = vst [vmem:[#allocation166_spill] sm:$0xff] %v4372_v19  ;;  %11973 = vst [vmem:[#allocation167_spill] sm:$0xff] %v4374_v21  ;;  %v222_v4 = vld [vmem:[#allocation5 + $0xc0] sm:$0xff]  ;;  %v4382_v62 = vmax.f32 %v205_v25, 0.0001  ;;  %v223_v8 = vld [vmem:[#allocation5 + $0xc8] sm:$0xff]  ;;  %v4402_v25 = vmul.f32 %v4007_v3, %v3936_v10 }
  0x96   :  { %11974 = vst [vmem:[#allocation168_spill] sm:$0xff] %v4376_v6  ;;  %v4384_v37 = vmax.f32 %v206_v43, 0.0001  ;;  %v4386_v44 = vmax.f32 %v207_v46, 0.0001  ;;  %v224_v6 = vld [vmem:[#allocation5 + $0xd0] sm:$0xff]  ;;  %v4404_v46 = vpop.eup %3306 }
  0x97   :  { %11975 = vst [vmem:[#allocation169_spill] sm:$0xff] %v4382_v62  ;;  %v225_v21 = vld [vmem:[#allocation5 + $0xd8] sm:$0xff]  ;;  %v4394_v55 = vmax.f32 %v208_v26, 0.0001  ;;  %v4396_v19 = vmax.f32 %v209_v53, 0.0001  ;;  %v4414_v26 = vmul.f32 %v4014_v15, %v3938_v11 }
  0x98   :  { %11976 = vst [vmem:[#allocation170_spill] sm:$0xff] %v4384_v37  ;;  %11977 = vst [vmem:[#allocation171_spill] sm:$0xff] %v4386_v44  ;;  %v4398_v40 = vmax.f32 %v210_v34, 0.0001  ;;  %v226_v43 = vld [vmem:[#allocation5 + $0xe0] sm:$0xff]  ;;  %v227_v61 = vld [vmem:[#allocation5 + $0xe8] sm:$0xff]  ;;  %v4416_v34 = vpop.eup %3308 }
  0x99   :  { %11978 = vst [vmem:[#allocation172_spill] sm:$0xff] %v4394_v55  ;;  %11979 = vst [vmem:[#allocation173_spill] sm:$0xff] %v4396_v19  ;;  %v228_v44 = vld [vmem:[#allocation5 + $0xf0] sm:$0xff]  ;;  %v4406_v37 = vmax.f32 %v211_v30, 0.0001  ;;  %v229_v53 = vld [vmem:[#allocation5 + $0xf8] sm:$0xff]  ;;  %v4426_v30 = vmul.f32 %v4016_v17, %v3940_v12 }
  0x9a   :  { %11980 = vst [vmem:[#allocation174_spill] sm:$0xff] %v4398_v40  ;;  %11981 = vst [vmem:[#allocation175_spill] sm:$0xff] %v4402_v25  ;;  %v4408_v62 = vmax.f32 %v212_v57, 0.0001  ;;  %v4410_v35 = vmax.f32 %v213_v33, 0.0001  ;;  %v4428_v33 = vpop.eup %3310 }
  0x9b   :  { %11982 = vst [vmem:[#allocation176_spill] sm:$0xff] %v4406_v37  ;;  %v230_v3 = vld [vmem:[#allocation5 + $0x100] sm:$0xff]  ;;  %v231_v40 = vld [vmem:[#allocation5 + $0x108] sm:$0xff]  ;;  %v4418_v19 = vmax.f32 %v214_v31, 0.0001  ;;  %11988 = vst [vmem:[#allocation182_spill] sm:$0xff] %v4426_v30  ;;  %v4438_v31 = vmul.f32 %v4022_v23, %v3942_v13 }
  0x9c   :  { %11983 = vst [vmem:[#allocation177_spill] sm:$0xff] %v4408_v62  ;;  %11984 = vst [vmem:[#allocation178_spill] sm:$0xff] %v4410_v35  ;;  %v4420_v55 = vmax.f32 %v215_v41, 0.0001  ;;  %v4422_v14 = vmax.f32 %v216_v28, 0.0001  ;;  %v4440_v28 = vpop.eup %3312 }
  0x9d   :  { %11985 = vst [vmem:[#allocation179_spill] sm:$0xff] %v4418_v19  ;;  %v232_v57 = vld [vmem:[#allocation5 + $0x110] sm:$0xff]  ;;  %v233_v15 = vld [vmem:[#allocation5 + $0x118] sm:$0xff]  ;;  %v234_v35 = vld [vmem:[#allocation5 + $0x120] sm:$0xff]  ;;  %v4430_v62 = vmax.f32 %v217_v32, 0.0001 }
  0x9e   :  { %11986 = vst [vmem:[#allocation180_spill] sm:$0xff] %v4420_v55  ;;  %11987 = vst [vmem:[#allocation181_spill] sm:$0xff] %v4422_v14  ;;  %v4432_v37 = vmax.f32 %v218_v27, 0.0001  ;;  %v4434_v56 = vmax.f32 %v219_v5, 0.0001  ;;  %v4452_v5 = vpop.eup %3314 }
  0x9f   :  { %11989 = vst [vmem:[#allocation183_spill] sm:$0xff] %v4430_v62  ;;  %11992 = vst [vmem:[#allocation186_spill] sm:$0xff] %v4438_v31  ;;  %v235_v41 = vld [vmem:[#allocation5 + $0x128] sm:$0xff]  ;;  %v236_v17 = vld [vmem:[#allocation5 + $0x130] sm:$0xff]  ;;  %v4442_v55 = vmax.f32 %v220_v18, 0.0001 }
  0xa0   :  { %11990 = vst [vmem:[#allocation184_spill] sm:$0xff] %v4432_v37  ;;  %11991 = vst [vmem:[#allocation185_spill] sm:$0xff] %v4434_v56  ;;  %v237_v14 = vld [vmem:[#allocation5 + $0x138] sm:$0xff]  ;;  %v4444_v19 = vmax.f32 %v221_v63, 0.0001  ;;  %v11996_v32 = vld [vmem:[#allocation11_spill] sm:$0xff]  ;;  %v4461_v63 = vpop.eup %3316 }
  0xa1   :  { %11993 = vst [vmem:[#allocation187_spill] sm:$0xff] %v4442_v55  ;;  %v4446_v47 = vmax.f32 %v222_v4, 0.0001  ;;  %v11997_v27 = vld [vmem:[#allocation31_spill] sm:$0xff]  ;;  %v239_v23 = vld [vmem:[#allocation5 + $0x148] sm:$0xff]  ;;  %v240_v62 = vld [vmem:[#allocation5 + $0x150] sm:$0xff] }
  0xa2   :  { %11994 = vst [vmem:[#allocation188_spill] sm:$0xff] %v4444_v19  ;;  %v4450_v37 = vmul.f32 %v11997_v27, %v11996_v32  ;;  %v238_v56 = vld [vmem:[#allocation5 + $0x140] sm:$0xff]  ;;  %v4454_v1 = vmax.f32 %v223_v8, 0.0001  ;;  %v4456_v39 = vmax.f32 %v224_v6, 0.0001  ;;  %v4473_v6 = vpop.eup %3318 }
  0xa3   :  { %11995 = vst [vmem:[#allocation189_spill] sm:$0xff] %v4446_v47  ;;  %v4458_v50 = vmax.f32 %v225_v21, 0.0001  ;;  %v12002_v18 = vld [vmem:[#allocation35_spill] sm:$0xff]  ;;  %v241_v4 = vld [vmem:[#allocation5 + $0x158] sm:$0xff]  ;;  %v243_v19 = vld [vmem:[#allocation5 + $0x168] sm:$0xff] }
  0xa4   :  { %11998 = vst [vmem:[#allocation11_spill] sm:$0xff] %v4450_v37  ;;  %11999 = vst [vmem:[#allocation31_spill] sm:$0xff] %v4454_v1  ;;  %3320 = vlog2.f32 %v12002_v18  ;;  %v242_v47 = vld [vmem:[#allocation5 + $0x160] sm:$0xff]  ;;  %v4463_v27 = vmax.f32 %v226_v43, 0.0001  ;;  %v12006_v59 = vld [vmem:[#allocation12_spill] sm:$0xff] }
  0xa5   :  { %12000 = vst [vmem:[#allocation190_spill] sm:$0xff] %v4456_v39  ;;  %12001 = vst [vmem:[#allocation191_spill] sm:$0xff] %v4458_v50  ;;  %v4465_v55 = vmax.f32 %v227_v61, 0.0001  ;;  %v4467_v45 = vmax.f32 %v228_v44, 0.0001 }
  0xa6   :  { %12003 = vst [vmem:[#allocation35_spill] sm:$0xff] %v4463_v27  ;;  %v12007_v8 = vld [vmem:[#allocation34_spill] sm:$0xff]  ;;  %v244_v21 = vld [vmem:[#allocation5 + $0x170] sm:$0xff]  ;;  %v246_v18 = vld [vmem:[#allocation5 + $0x180] sm:$0xff]  ;;  %v4475_v39 = vmax.f32 %v229_v53, 0.0001 }
  0xa7   :  { %12004 = vst [vmem:[#allocation192_spill] sm:$0xff] %v4465_v55  ;;  %12005 = vst [vmem:[#allocation193_spill] sm:$0xff] %v4467_v45  ;;  %v4471_v1 = vmul.f32 %v12007_v8, %v12006_v59  ;;  %v245_v50 = vld [vmem:[#allocation5 + $0x178] sm:$0xff]  ;;  %v4477_v52 = vmax.f32 %v230_v3, 0.0001  ;;  %v247_v61 = vld [vmem:[#allocation5 + $0x188] sm:$0xff] }
  0xa8   :  { %12009 = vst [vmem:[#allocation34_spill] sm:$0xff] %v4475_v39  ;;  %v4479_v37 = vmax.f32 %v231_v40, 0.0001  ;;  %v12012_v43 = vld [vmem:[#allocation38_spill] sm:$0xff]  ;;  %v248_v44 = vld [vmem:[#allocation5 + $0x190] sm:$0xff]  ;;  %v250_v53 = vld [vmem:[#allocation5 + $0x1a0] sm:$0xff] }
  0xa9   :  { %12008 = vst [vmem:[#allocation12_spill] sm:$0xff] %v4471_v1  ;;  %12010 = vst [vmem:[#allocation194_spill] sm:$0xff] %v4477_v52  ;;  %3322 = vlog2.f32 %v12012_v43  ;;  %v249_v45 = vld [vmem:[#allocation5 + $0x198] sm:$0xff]  ;;  %v4482_v55 = vmax.f32 %v232_v57, 0.0001  ;;  %v12016_v1 = vld [vmem:[#allocation13_spill] sm:$0xff] }
  0xaa   :  { %12011 = vst [vmem:[#allocation195_spill] sm:$0xff] %v4479_v37  ;;  %v4484_v8 = vmax.f32 %v233_v15, 0.0001  ;;  %v4486_v27 = vmax.f32 %v234_v35, 0.0001  ;;  %v4490_v31 = vmul.f32 %v4053_v49, %v12016_v1  ;;  %v251_v3 = vld [vmem:[#allocation5 + $0x1a8] sm:$0xff]  ;;  %3324 = vlog2.f32 %v4063_v36 }
  0xab   :  { %12013 = vst [vmem:[#allocation38_spill] sm:$0xff] %v4482_v55  ;;  %v252_v52 = vld [vmem:[#allocation5 + $0x1b0] sm:$0xff]  ;;  %v4492_v40 = vmax.f32 %v235_v41, 0.0001  ;;  %v4494_v37 = vmax.f32 %v236_v17, 0.0001 }
  0xac   :  { %12014 = vst [vmem:[#allocation196_spill] sm:$0xff] %v4484_v8  ;;  %12015 = vst [vmem:[#allocation197_spill] sm:$0xff] %v4486_v27  ;;  %v4496_v43 = vmax.f32 %v237_v14, 0.0001  ;;  %v253_v57 = vld [vmem:[#allocation5 + $0x1b8] sm:$0xff]  ;;  %v254_v15 = vld [vmem:[#allocation5 + $0x1c0] sm:$0xff] }
  0xad   :  { %12017 = vst [vmem:[#allocation13_spill] sm:$0xff] %v4490_v31  ;;  %12018 = vst [vmem:[#allocation198_spill] sm:$0xff] %v4492_v40  ;;  %v255_v8 = vld [vmem:[#allocation5 + $0x1c8] sm:$0xff]  ;;  %v4499_v35 = vmax.f32 %v238_v56, 0.0001  ;;  %v12024_v55 = vld [vmem:[#allocation14_spill] sm:$0xff] }
  0xae   :  { %12019 = vst [vmem:[#allocation199_spill] sm:$0xff] %v4494_v37  ;;  %12020 = vst [vmem:[#allocation200_spill] sm:$0xff] %v4496_v43  ;;  %v4501_v27 = vmax.f32 %v239_v23, 0.0001  ;;  %v4503_v49 = vmax.f32 %v240_v62, 0.0001 }
  0xaf   :  { %12021 = vst [vmem:[#allocation201_spill] sm:$0xff] %v4499_v35  ;;  %v12025_v39 = vld [vmem:[#allocation43_spill] sm:$0xff]  ;;  %v256_v41 = vld [vmem:[#allocation5 + $0x1d0] sm:$0xff]  ;;  %v257_v17 = vld [vmem:[#allocation5 + $0x1d8] sm:$0xff]  ;;  %v4509_v14 = vmax.f32 %v241_v4, 0.0001 }
  0xb0   :  { %12022 = vst [vmem:[#allocation202_spill] sm:$0xff] %v4501_v27  ;;  %12023 = vst [vmem:[#allocation203_spill] sm:$0xff] %v4503_v49  ;;  %v4507_v31 = vmul.f32 %v12025_v39, %v12024_v55  ;;  %v258_v37 = vld [vmem:[#allocation5 + $0x1e0] sm:$0xff]  ;;  %v4511_v43 = vmax.f32 %v242_v47, 0.0001  ;;  %v12030_v40 = vld [vmem:[#allocation46_spill] sm:$0xff] }
  0xb1   :  { %12027 = vst [vmem:[#allocation43_spill] sm:$0xff] %v4509_v14  ;;  %v4513_v36 = vmax.f32 %v243_v19, 0.0001  ;;  %3326 = vlog2.f32 %v12030_v40  ;;  %v259_v56 = vld [vmem:[#allocation5 + $0x1e8] sm:$0xff]  ;;  %v260_v23 = vld [vmem:[#allocation5 + $0x1f0] sm:$0xff]  ;;  %v261_v27 = vld [vmem:[#allocation5 + $0x1f8] sm:$0xff] }
  0xb2   :  { %12026 = vst [vmem:[#allocation14_spill] sm:$0xff] %v4507_v31  ;;  %12028 = vst [vmem:[#allocation204_spill] sm:$0xff] %v4511_v43  ;;  %v4516_v62 = vmax.f32 %v244_v21, 0.0001  ;;  %v4518_v49 = vmax.f32 %v245_v50, 0.0001  ;;  %3328 = vlog2.f32 %v4087_v42 }
  0xb3   :  { %12029 = vst [vmem:[#allocation205_spill] sm:$0xff] %v4513_v36  ;;  %v4520_v39 = vmax.f32 %v246_v18, 0.0001  ;;  %v12034_v35 = vld [vmem:[#allocation15_spill] sm:$0xff]  ;;  %v263_v47 = vld [vmem:[#allocation5 + $0x208] sm:$0xff]  ;;  %v264_v43 = vld [vmem:[#allocation5 + $0x210] sm:$0xff] }
  0xb4   :  { %12031 = vst [vmem:[#allocation46_spill] sm:$0xff] %v4516_v62  ;;  %12032 = vst [vmem:[#allocation206_spill] sm:$0xff] %v4518_v49  ;;  %v4524_v31 = vmul.f32 %v4077_v0, %v12034_v35  ;;  %v262_v4 = vld [vmem:[#allocation5 + $0x200] sm:$0xff]  ;;  %v4526_v19 = vmax.f32 %v247_v61, 0.0001  ;;  %v265_v21 = vld [vmem:[#allocation5 + $0x218] sm:$0xff]  ;;  %v4543_v61 = vpop.eup %3320 }
  0xb5   :  { %12033 = vst [vmem:[#allocation207_spill] sm:$0xff] %v4520_v39  ;;  %v4528_v36 = vmax.f32 %v248_v44, 0.0001  ;;  %v4530_v40 = vmax.f32 %v249_v45, 0.0001  ;;  %v266_v50 = vld [vmem:[#allocation5 + $0x220] sm:$0xff] }
  0xb6   :  { %12035 = vst [vmem:[#allocation15_spill] sm:$0xff] %v4524_v31  ;;  %12036 = vst [vmem:[#allocation208_spill] sm:$0xff] %v4526_v19  ;;  %v267_v49 = vld [vmem:[#allocation5 + $0x228] sm:$0xff]  ;;  %v4533_v18 = vmax.f32 %v250_v53, 0.0001  ;;  %v12043_v14 = vld [vmem:[#allocation51_spill] sm:$0xff] }
  0xb7   :  { %12037 = vst [vmem:[#allocation209_spill] sm:$0xff] %v4528_v36  ;;  %12038 = vst [vmem:[#allocation210_spill] sm:$0xff] %v4530_v40  ;;  %v4535_v39 = vmax.f32 %v251_v3, 0.0001  ;;  %v4537_v0 = vmax.f32 %v252_v52, 0.0001 }
  0xb8   :  { %12039 = vst [vmem:[#allocation211_spill] sm:$0xff] %v4533_v18  ;;  %v12042_v62 = vld [vmem:[#allocation16_spill] sm:$0xff]  ;;  %v268_v44 = vld [vmem:[#allocation5 + $0x230] sm:$0xff]  ;;  %v269_v45 = vld [vmem:[#allocation5 + $0x238] sm:$0xff]  ;;  %v4545_v36 = vmax.f32 %v253_v57, 0.0001  ;;  %v4562_v57 = vpop.eup %3322 }
  0xb9   :  { %12040 = vst [vmem:[#allocation212_spill] sm:$0xff] %v4535_v39  ;;  %12041 = vst [vmem:[#allocation213_spill] sm:$0xff] %v4537_v0  ;;  %v4541_v31 = vmul.f32 %v12043_v14, %v12042_v62  ;;  %v270_v40 = vld [vmem:[#allocation5 + $0x240] sm:$0xff]  ;;  %v4547_v42 = vmax.f32 %v254_v15, 0.0001  ;;  %v12048_v53 = vld [vmem:[#allocation54_spill] sm:$0xff] }
  0xba   :  { %12045 = vst [vmem:[#allocation51_spill] sm:$0xff] %v4545_v36  ;;  %v4549_v19 = vmax.f32 %v255_v8, 0.0001  ;;  %3330 = vlog2.f32 %v12048_v53  ;;  %v271_v3 = vld [vmem:[#allocation5 + $0x248] sm:$0xff]  ;;  %v272_v52 = vld [vmem:[#allocation5 + $0x250] sm:$0xff]  ;;  %v273_v0 = vld [vmem:[#allocation5 + $0x258] sm:$0xff] }
  0xbb   :  { %12044 = vst [vmem:[#allocation16_spill] sm:$0xff] %v4541_v31  ;;  %12046 = vst [vmem:[#allocation214_spill] sm:$0xff] %v4547_v42  ;;  %v4552_v39 = vmax.f32 %v256_v41, 0.0001  ;;  %v4554_v14 = vmax.f32 %v257_v17, 0.0001  ;;  %3332 = vlog2.f32 %v4111_v48 }
  0xbc   :  { %12047 = vst [vmem:[#allocation215_spill] sm:$0xff] %v4549_v19  ;;  %v4556_v18 = vmax.f32 %v258_v37, 0.0001  ;;  %v12052_v31 = vld [vmem:[#allocation17_spill] sm:$0xff]  ;;  %v274_v15 = vld [vmem:[#allocation5 + $0x260] sm:$0xff]  ;;  %v275_v8 = vld [vmem:[#allocation5 + $0x268] sm:$0xff] }
  0xbd   :  { %12049 = vst [vmem:[#allocation54_spill] sm:$0xff] %v4552_v39  ;;  %12050 = vst [vmem:[#allocation216_spill] sm:$0xff] %v4554_v14  ;;  %v4560_v30 = vmul.f32 %v4101_v29, %v12052_v31  ;;  %v276_v19 = vld [vmem:[#allocation5 + $0x270] sm:$0xff]  ;;  %v4564_v42 = vmax.f32 %v259_v56, 0.0001  ;;  %v277_v41 = vld [vmem:[#allocation5 + $0x278] sm:$0xff]  ;;  %v4581_v56 = vpop.eup %3324 }
  0xbe   :  { %12051 = vst [vmem:[#allocation217_spill] sm:$0xff] %v4556_v18  ;;  %v4566_v53 = vmax.f32 %v260_v23, 0.0001  ;;  %v4568_v36 = vmax.f32 %v261_v27, 0.0001  ;;  %v278_v37 = vld [vmem:[#allocation5 + $0x280] sm:$0xff] }
  0xbf   :  { %12053 = vst [vmem:[#allocation218_spill] sm:$0xff] %v4560_v30  ;;  %12054 = vst [vmem:[#allocation219_spill] sm:$0xff] %v4564_v42  ;;  %v279_v17 = vld [vmem:[#allocation5 + $0x288] sm:$0xff]  ;;  %v4571_v18 = vmax.f32 %v262_v4, 0.0001  ;;  %v12060_v39 = vld [vmem:[#allocation18_spill] sm:$0xff] }
  0xc0   :  { %12055 = vst [vmem:[#allocation220_spill] sm:$0xff] %v4566_v53  ;;  %12056 = vst [vmem:[#allocation221_spill] sm:$0xff] %v4568_v36  ;;  %v4573_v29 = vmax.f32 %v263_v47, 0.0001  ;;  %v4575_v14 = vmax.f32 %v264_v43, 0.0001 }
  0xc1   :  { %12057 = vst [vmem:[#allocation222_spill] sm:$0xff] %v4571_v18  ;;  %v12061_v30 = vld [vmem:[#allocation59_spill] sm:$0xff]  ;;  %v280_v23 = vld [vmem:[#allocation5 + $0x290] sm:$0xff]  ;;  %v281_v27 = vld [vmem:[#allocation5 + $0x298] sm:$0xff]  ;;  %v4583_v53 = vmax.f32 %v265_v21, 0.0001  ;;  %v4600_v21 = vpop.eup %3326 }
  0xc2   :  { %12058 = vst [vmem:[#allocation223_spill] sm:$0xff] %v4573_v29  ;;  %12059 = vst [vmem:[#allocation224_spill] sm:$0xff] %v4575_v14  ;;  %v4579_v31 = vmul.f32 %v12061_v30, %v12060_v39  ;;  %v282_v36 = vld [vmem:[#allocation5 + $0x2a0] sm:$0xff]  ;;  %v4585_v48 = vmax.f32 %v266_v50, 0.0001  ;;  %v12066_v4 = vld [vmem:[#allocation62_spill] sm:$0xff] }
  0xc3   :  { %12063 = vst [vmem:[#allocation225_spill] sm:$0xff] %v4583_v53  ;;  %v4587_v42 = vmax.f32 %v267_v49, 0.0001  ;;  %3334 = vlog2.f32 %v12066_v4  ;;  %v283_v47 = vld [vmem:[#allocation5 + $0x2a8] sm:$0xff]  ;;  %v284_v43 = vld [vmem:[#allocation5 + $0x2b0] sm:$0xff]  ;;  %v285_v14 = vld [vmem:[#allocation5 + $0x2b8] sm:$0xff] }
  0xc4   :  { %12062 = vst [vmem:[#allocation59_spill] sm:$0xff] %v4579_v31  ;;  %12064 = vst [vmem:[#allocation226_spill] sm:$0xff] %v4585_v48  ;;  %v4590_v29 = vmax.f32 %v268_v44, 0.0001  ;;  %v4592_v30 = vmax.f32 %v269_v45, 0.0001  ;;  %3336 = vlog2.f32 %v4135_v54 }
  0xc5   :  { %12065 = vst [vmem:[#allocation227_spill] sm:$0xff] %v4587_v42  ;;  %v4594_v18 = vmax.f32 %v270_v40, 0.0001  ;;  %v12070_v31 = vld [vmem:[#allocation19_spill] sm:$0xff]  ;;  %v287_v49 = vld [vmem:[#allocation5 + $0x2c8] sm:$0xff]  ;;  %v288_v42 = vld [vmem:[#allocation5 + $0x2d0] sm:$0xff] }
  0xc6   :  { %12067 = vst [vmem:[#allocation62_spill] sm:$0xff] %v4590_v29  ;;  %12068 = vst [vmem:[#allocation228_spill] sm:$0xff] %v4592_v30  ;;  %v4598_v39 = vmul.f32 %v4125_v16, %v12070_v31  ;;  %v286_v50 = vld [vmem:[#allocation5 + $0x2c0] sm:$0xff]  ;;  %v4602_v48 = vmax.f32 %v271_v3, 0.0001  ;;  %v289_v44 = vld [vmem:[#allocation5 + $0x2d8] sm:$0xff]  ;;  %v4619_v3 = vpop.eup %3328 }
  0xc7   :  { %12069 = vst [vmem:[#allocation229_spill] sm:$0xff] %v4594_v18  ;;  %v4604_v4 = vmax.f32 %v272_v52, 0.0001  ;;  %v4606_v53 = vmax.f32 %v273_v0, 0.0001  ;;  %v290_v40 = vld [vmem:[#allocation5 + $0x2e0] sm:$0xff] }
  0xc8   :  { %12071 = vst [vmem:[#allocation230_spill] sm:$0xff] %v4598_v39  ;;  %12072 = vst [vmem:[#allocation231_spill] sm:$0xff] %v4602_v48  ;;  %v291_v45 = vld [vmem:[#allocation5 + $0x2e8] sm:$0xff]  ;;  %v4609_v18 = vmax.f32 %v274_v15, 0.0001  ;;  %v12079_v39 = vld [vmem:[#allocation67_spill] sm:$0xff] }
  0xc9   :  { %12073 = vst [vmem:[#allocation232_spill] sm:$0xff] %v4604_v4  ;;  %12074 = vst [vmem:[#allocation233_spill] sm:$0xff] %v4606_v53  ;;  %v4611_v16 = vmax.f32 %v275_v8, 0.0001  ;;  %v4613_v30 = vmax.f32 %v276_v19, 0.0001 }
  0xca   :  { %12075 = vst [vmem:[#allocation234_spill] sm:$0xff] %v4609_v18  ;;  %v12078_v29 = vld [vmem:[#allocation20_spill] sm:$0xff]  ;;  %v292_v52 = vld [vmem:[#allocation5 + $0x2f0] sm:$0xff]  ;;  %v293_v0 = vld [vmem:[#allocation5 + $0x2f8] sm:$0xff]  ;;  %v4621_v4 = vmax.f32 %v277_v41, 0.0001  ;;  %v4638_v41 = vpop.eup %3330 }
  0xcb   :  { %12076 = vst [vmem:[#allocation235_spill] sm:$0xff] %v4611_v16  ;;  %12077 = vst [vmem:[#allocation236_spill] sm:$0xff] %v4613_v30  ;;  %v4617_v31 = vmul.f32 %v12079_v39, %v12078_v29  ;;  %v294_v53 = vld [vmem:[#allocation5 + $0x300] sm:$0xff]  ;;  %v4623_v54 = vmax.f32 %v278_v37, 0.0001  ;;  %v12084_v15 = vld [vmem:[#allocation70_spill] sm:$0xff] }
  0xcc   :  { %12081 = vst [vmem:[#allocation237_spill] sm:$0xff] %v4621_v4  ;;  %v4625_v48 = vmax.f32 %v279_v17, 0.0001  ;;  %3338 = vlog2.f32 %v12084_v15  ;;  %v295_v8 = vld [vmem:[#allocation5 + $0x308] sm:$0xff]  ;;  %v296_v19 = vld [vmem:[#allocation5 + $0x310] sm:$0xff]  ;;  %v297_v30 = vld [vmem:[#allocation5 + $0x318] sm:$0xff] }
  0xcd   :  { %12080 = vst [vmem:[#allocation67_spill] sm:$0xff] %v4617_v31  ;;  %12082 = vst [vmem:[#allocation238_spill] sm:$0xff] %v4623_v54  ;;  %v4628_v16 = vmax.f32 %v280_v23, 0.0001  ;;  %v4630_v39 = vmax.f32 %v281_v27, 0.0001  ;;  %3340 = vlog2.f32 %v4159_v60 }
  0xce   :  { %12083 = vst [vmem:[#allocation239_spill] sm:$0xff] %v4625_v48  ;;  %v4632_v18 = vmax.f32 %v282_v36, 0.0001  ;;  %v12088_v31 = vld [vmem:[#allocation21_spill] sm:$0xff]  ;;  %v298_v37 = vld [vmem:[#allocation5 + $0x320] sm:$0xff]  ;;  %v299_v17 = vld [vmem:[#allocation5 + $0x328] sm:$0xff] }
  0xcf   :  { %12085 = vst [vmem:[#allocation70_spill] sm:$0xff] %v4628_v16  ;;  %12086 = vst [vmem:[#allocation240_spill] sm:$0xff] %v4630_v39  ;;  %v4636_v29 = vmul.f32 %v4149_v20, %v12088_v31  ;;  %v300_v48 = vld [vmem:[#allocation5 + $0x330] sm:$0xff]  ;;  %v4640_v54 = vmax.f32 %v283_v47, 0.0001  ;;  %v301_v23 = vld [vmem:[#allocation5 + $0x338] sm:$0xff]  ;;  %v4657_v47 = vpop.eup %3332 }
  0xd0   :  { %12087 = vst [vmem:[#allocation241_spill] sm:$0xff] %v4632_v18  ;;  %v4642_v15 = vmax.f32 %v284_v43, 0.0001  ;;  %v4644_v4 = vmax.f32 %v285_v14, 0.0001  ;;  %v302_v36 = vld [vmem:[#allocation5 + $0x340] sm:$0xff] }
  0xd1   :  { %12089 = vst [vmem:[#allocation242_spill] sm:$0xff] %v4636_v29  ;;  %12090 = vst [vmem:[#allocation243_spill] sm:$0xff] %v4640_v54  ;;  %v303_v27 = vld [vmem:[#allocation5 + $0x348] sm:$0xff]  ;;  %v4647_v18 = vmax.f32 %v286_v50, 0.0001  ;;  %v12096_v16 = vld [vmem:[#allocation22_spill] sm:$0xff] }
  0xd2   :  { %12091 = vst [vmem:[#allocation244_spill] sm:$0xff] %v4642_v15  ;;  %12092 = vst [vmem:[#allocation245_spill] sm:$0xff] %v4644_v4  ;;  %v4649_v20 = vmax.f32 %v287_v49, 0.0001  ;;  %v4651_v39 = vmax.f32 %v288_v42, 0.0001 }
  0xd3   :  { %12093 = vst [vmem:[#allocation246_spill] sm:$0xff] %v4647_v18  ;;  %v12097_v29 = vld [vmem:[#allocation75_spill] sm:$0xff]  ;;  %v304_v43 = vld [vmem:[#allocation5 + $0x350] sm:$0xff]  ;;  %v305_v14 = vld [vmem:[#allocation5 + $0x358] sm:$0xff]  ;;  %v4659_v15 = vmax.f32 %v289_v44, 0.0001  ;;  %v4676_v44 = vpop.eup %3334 }
  0xd4   :  { %12094 = vst [vmem:[#allocation247_spill] sm:$0xff] %v4649_v20  ;;  %12095 = vst [vmem:[#allocation248_spill] sm:$0xff] %v4651_v39  ;;  %v4655_v31 = vmul.f32 %v12097_v29, %v12096_v16  ;;  %v306_v4 = vld [vmem:[#allocation5 + $0x360] sm:$0xff]  ;;  %v4661_v60 = vmax.f32 %v290_v40, 0.0001  ;;  %v12102_v50 = vld [vmem:[#allocation78_spill] sm:$0xff] }
  0xd5   :  { %12099 = vst [vmem:[#allocation249_spill] sm:$0xff] %v4659_v15  ;;  %v4663_v54 = vmax.f32 %v291_v45, 0.0001  ;;  %3342 = vlog2.f32 %v12102_v50  ;;  %v307_v49 = vld [vmem:[#allocation5 + $0x368] sm:$0xff]  ;;  %v308_v42 = vld [vmem:[#allocation5 + $0x370] sm:$0xff]  ;;  %v309_v39 = vld [vmem:[#allocation5 + $0x378] sm:$0xff] }
  0xd6   :  { %12098 = vst [vmem:[#allocation75_spill] sm:$0xff] %v4655_v31  ;;  %12100 = vst [vmem:[#allocation250_spill] sm:$0xff] %v4661_v60  ;;  %v4666_v20 = vmax.f32 %v292_v52, 0.0001  ;;  %v4668_v29 = vmax.f32 %v293_v0, 0.0001  ;;  %3344 = vlog2.f32 %v4183_v2 }
  0xd7   :  { %12101 = vst [vmem:[#allocation251_spill] sm:$0xff] %v4663_v54  ;;  %v4670_v18 = vmax.f32 %v294_v53, 0.0001  ;;  %v12106_v31 = vld [vmem:[#allocation23_spill] sm:$0xff]  ;;  %v311_v45 = vld [vmem:[#allocation5 + $0x388] sm:$0xff]  ;;  %v312_v54 = vld [vmem:[#allocation5 + $0x390] sm:$0xff] }
  0xd8   :  { %12103 = vst [vmem:[#allocation78_spill] sm:$0xff] %v4666_v20  ;;  %12104 = vst [vmem:[#allocation252_spill] sm:$0xff] %v4668_v29  ;;  %v4674_v16 = vmul.f32 %v4173_v58, %v12106_v31  ;;  %v310_v40 = vld [vmem:[#allocation5 + $0x380] sm:$0xff]  ;;  %v4678_v60 = vmax.f32 %v295_v8, 0.0001  ;;  %v313_v52 = vld [vmem:[#allocation5 + $0x398] sm:$0xff]  ;;  %v4695_v8 = vpop.eup %3336 }
  0xd9   :  { %12105 = vst [vmem:[#allocation253_spill] sm:$0xff] %v4670_v18  ;;  %v4680_v50 = vmax.f32 %v296_v19, 0.0001  ;;  %v4682_v15 = vmax.f32 %v297_v30, 0.0001  ;;  %v314_v53 = vld [vmem:[#allocation5 + $0x3a0] sm:$0xff] }
  0xda   :  { %12107 = vst [vmem:[#allocation254_spill] sm:$0xff] %v4674_v16  ;;  %12108 = vst [vmem:[#allocation255_spill] sm:$0xff] %v4678_v60  ;;  %v315_v0 = vld [vmem:[#allocation5 + $0x3a8] sm:$0xff]  ;;  %v4685_v18 = vmax.f32 %v298_v37, 0.0001  ;;  %v12115_v16 = vld [vmem:[#allocation83_spill] sm:$0xff] }
  0xdb   :  { %12109 = vst [vmem:[#allocation256_spill] sm:$0xff] %v4680_v50  ;;  %12110 = vst [vmem:[#allocation257_spill] sm:$0xff] %v4682_v15  ;;  %v4687_v58 = vmax.f32 %v299_v17, 0.0001  ;;  %v4689_v29 = vmax.f32 %v300_v48, 0.0001 }
  0xdc   :  { %12111 = vst [vmem:[#allocation258_spill] sm:$0xff] %v4685_v18  ;;  %v12114_v20 = vld [vmem:[#allocation24_spill] sm:$0xff]  ;;  %12117 = vst [vmem:[#allocation261_spill] sm:$0xff] %v4695_v8  ;;  %v316_v19 = vld [vmem:[#allocation5 + $0x3b0] sm:$0xff]  ;;  %v4697_v50 = vmax.f32 %v301_v23, 0.0001  ;;  %v4714_v23 = vpop.eup %3338 }
  0xdd   :  { %12112 = vst [vmem:[#allocation259_spill] sm:$0xff] %v4687_v58  ;;  %12113 = vst [vmem:[#allocation260_spill] sm:$0xff] %v4689_v29  ;;  %v4693_v31 = vmul.f32 %v12115_v16, %v12114_v20  ;;  %v317_v30 = vld [vmem:[#allocation5 + $0x3b8] sm:$0xff]  ;;  %v318_v15 = vld [vmem:[#allocation5 + $0x3c0] sm:$0xff]  ;;  %v4699_v2 = vmax.f32 %v302_v36, 0.0001 }
  0xde   :  { %12118 = vst [vmem:[#allocation262_spill] sm:$0xff] %v4697_v50  ;;  %v4701_v60 = vmax.f32 %v303_v27, 0.0001  ;;  %v12121_v37 = vld [vmem:[#allocation86_spill] sm:$0xff]  ;;  %v319_v17 = vld [vmem:[#allocation5 + $0x3c8] sm:$0xff]  ;;  %v320_v48 = vld [vmem:[#allocation5 + $0x3d0] sm:$0xff] }
  0xdf   :  { %12116 = vst [vmem:[#allocation83_spill] sm:$0xff] %v4693_v31  ;;  %12119 = vst [vmem:[#allocation263_spill] sm:$0xff] %v4699_v2  ;;  %3346 = vlog2.f32 %v12121_v37  ;;  %v321_v29 = vld [vmem:[#allocation5 + $0x3d8] sm:$0xff]  ;;  %v4704_v58 = vmax.f32 %v304_v43, 0.0001  ;;  %v12125_v31 = vld [vmem:[#allocation25_spill] sm:$0xff] }
  0xe0   :  { %12120 = vst [vmem:[#allocation264_spill] sm:$0xff] %v4701_v60  ;;  %v4706_v16 = vmax.f32 %v305_v14, 0.0001  ;;  %v4708_v18 = vmax.f32 %v306_v4, 0.0001  ;;  %v12126_v20 = vld [vmem:[#allocation89_spill] sm:$0xff] }
  0xe1   :  { %12122 = vst [vmem:[#allocation86_spill] sm:$0xff] %v4704_v58  ;;  %v4712_v8 = vmul.f32 %v12126_v20, %v12125_v31  ;;  %v322_v36 = vld [vmem:[#allocation5 + $0x3e0] sm:$0xff]  ;;  %v4716_v27 = vmax.f32 %v307_v49, 0.0001  ;;  %v4718_v60 = vmax.f32 %v308_v42, 0.0001  ;;  %v4733_v49 = vpop.eup %3340 }
  0xe2   :  { %12123 = vst [vmem:[#allocation265_spill] sm:$0xff] %v4706_v16  ;;  %12124 = vst [vmem:[#allocation266_spill] sm:$0xff] %v4708_v18  ;;  %v4720_v37 = vmax.f32 %v309_v39, 0.0001  ;;  %v12130_v2 = vld [vmem:[#allocation93_spill] sm:$0xff]  ;;  %v323_v43 = vld [vmem:[#allocation5 + $0x3e8] sm:$0xff] }
  0xe3   :  { %12127 = vst [vmem:[#allocation25_spill] sm:$0xff] %v4712_v8  ;;  %12128 = vst [vmem:[#allocation89_spill] sm:$0xff] %v4718_v60  ;;  %3348 = vlog2.f32 %v12130_v2  ;;  %v324_v14 = vld [vmem:[#allocation5 + $0x3f0] sm:$0xff]  ;;  %v4723_v16 = vmax.f32 %v310_v40, 0.0001  ;;  %v12134_v20 = vld [vmem:[#allocation26_spill] sm:$0xff] }
  0xe4   :  { %12129 = vst [vmem:[#allocation267_spill] sm:$0xff] %v4720_v37  ;;  %v4725_v4 = vmax.f32 %v311_v45, 0.0001  ;;  %v4727_v18 = vmax.f32 %v312_v54, 0.0001  ;;  %v12135_v58 = vld [vmem:[#allocation92_spill] sm:$0xff] }
  0xe5   :  { %12131 = vst [vmem:[#allocation93_spill] sm:$0xff] %v4723_v16  ;;  %v4731_v50 = vmul.f32 %v12135_v58, %v12134_v20  ;;  %v325_v42 = vld [vmem:[#allocation5 + $0x3f8] sm:$0xff]  ;;  %v4735_v60 = vmax.f32 %v313_v52, 0.0001  ;;  %v4737_v39 = vmax.f32 %v314_v53, 0.0001  ;;  %v4752_v16 = vpop.eup %3342 }
  0xe6   :  { %12132 = vst [vmem:[#allocation268_spill] sm:$0xff] %v4725_v4  ;;  %12133 = vst [vmem:[#allocation269_spill] sm:$0xff] %v4727_v18  ;;  %v4739_v2 = vmax.f32 %v315_v0, 0.0001  ;;  %v12138_v37 = vld [vmem:[#allocation96_spill] sm:$0xff]  ;;  %v12141_v18 = vld [vmem:[#allocation27_spill] sm:$0xff] }
  0xe7   :  { %12136 = vst [vmem:[#allocation26_spill] sm:$0xff] %v4731_v50  ;;  %3350 = vlog2.f32 %v12138_v37  ;;  %v4742_v40 = vmax.f32 %v316_v19, 0.0001  ;;  %v4744_v45 = vmax.f32 %v317_v30, 0.0001  ;;  %v12142_v58 = vld [vmem:[#allocation99_spill] sm:$0xff] }
  0xe8   :  { %12137 = vst [vmem:[#allocation92_spill] sm:$0xff] %v4739_v2  ;;  %v4746_v54 = vmax.f32 %v318_v15, 0.0001  ;;  %v4750_v4 = vmul.f32 %v12142_v58, %v12141_v18  ;;  %v4754_v52 = vmax.f32 %v319_v17, 0.0001  ;;  %v12147_v2 = vld [vmem:[#allocation100_spill] sm:$0xff] }
  0xe9   :  { %12139 = vst [vmem:[#allocation96_spill] sm:$0xff] %v4744_v45  ;;  %v4756_v53 = vmax.f32 %v320_v48, 0.0001  ;;  %v4758_v0 = vmax.f32 %v321_v29, 0.0001  ;;  %3352 = vlog2.f32 %v12147_v2  ;;  %v12149_v37 = vld [vmem:[#allocation28_spill] sm:$0xff]  ;;  %v4769_v45 = vpop.eup %3344 }
  0xea   :  { %12140 = vst [vmem:[#allocation270_spill] sm:$0xff] %v4746_v54  ;;  %12143 = vst [vmem:[#allocation27_spill] sm:$0xff] %v4750_v4  ;;  %v4761_v19 = vmax.f32 %v322_v36, 0.0001  ;;  %v588_v30 = vand.u32 2147483647, %v3932_v7 }
  0xeb   :  { %12144 = vst [vmem:[#allocation99_spill] sm:$0xff] %v4754_v52  ;;  %12145 = vst [vmem:[#allocation271_spill] sm:$0xff] %v4756_v53  ;;  %v597_v15 = vand.u32 2147483647, %v3934_v9  ;;  %v12150_v54 = vld [vmem:[#allocation103_spill] sm:$0xff]  ;;  %v12156_v2 = vld [vmem:[#allocation29_spill] sm:$0xff] }
  0xec   :  { %12146 = vst [vmem:[#allocation272_spill] sm:$0xff] %v4758_v0  ;;  %12148 = vst [vmem:[#allocation100_spill] sm:$0xff] %v4761_v19  ;;  %v4767_v58 = vmul.f32 %v12150_v54, %v12149_v37  ;;  %v4771_v17 = vmax.f32 %v323_v43, 0.0001  ;;  %v4773_v48 = vmax.f32 %v324_v14, 0.0001  ;;  %v4785_v54 = vmul.f32 %v4245_v22, %v12156_v2  ;;  %v4787_v19 = vpop.eup %3346 }
  0xed   :  { %v606_v29 = vand.u32 2147483647, %v3936_v10  ;;  %v12154_v0 = vld [vmem:[#allocation106_spill] sm:$0xff]  ;;  %v4777_v36 = vmax.f32 %v325_v42, 0.0001  ;;  %v12160_v42 = vld [vmem:[#allocation109_spill] sm:$0xff] }
  0xee   :  { %12151 = vst [vmem:[#allocation28_spill] sm:$0xff] %v4767_v58  ;;  %12152 = vst [vmem:[#allocation103_spill] sm:$0xff] %v4771_v17  ;;  %3354 = vlog2.f32 %v12154_v0  ;;  %v4780_v7 = vmul.f32 0.6931472, %v4392_v51  ;;  %v615_v9 = vand.u32 2147483647, %v3938_v11 }
  0xef   :  { %12153 = vst [vmem:[#allocation273_spill] sm:$0xff] %v4773_v48  ;;  %12155 = vst [vmem:[#allocation106_spill] sm:$0xff] %v4777_v36  ;;  %v4790_v43 = vmul.f32 0.6931472, %v4404_v46  ;;  %v4793_v10 = vmul.f32 0.6931472, %v4416_v34  ;;  %3356 = vlog2.f32 %v12160_v42  ;;  %v4812_v34 = vpop.eup %3348 }
  0xf0   :  { %12157 = vst [vmem:[#allocation29_spill] sm:$0xff] %v4785_v54  ;;  %v4796_v14 = vmul.f32 0.6931472, %v4428_v33  ;;  %vm4799_vm0 = vcmp.lt.f32.partialorder %v588_v30, 0.0004427343  ;;  %v12165_v46 = vld [vmem:[#allocation30_spill] sm:$0xff] }
  0xf1   :  { %12158 = vst [vmem:[#allocation274_spill] sm:$0xff] %v4793_v10  ;;  %vm4803_vm1 = vcmp.lt.f32.partialorder %v597_v15, 0.0004427343  ;;  %v624_v22 = vand.u32 2147483647, %v3940_v12  ;;  %v12166_v0 = vld [vmem:[#allocation115_spill] sm:$0xff]  ;;  %v4833_v52 = vpop.eup %3350 }
  0xf2   :  { %12159 = vst [vmem:[#allocation275_spill] sm:$0xff] %v4796_v14  ;;  %v4810_v36 = vmul.f32 %v12166_v0, %v12165_v46  ;;  %vm4814_vm2 = vcmp.lt.f32.partialorder %v606_v29, 0.0004427343  ;;  %v633_v30 = vand.u32 2147483647, %v3942_v13  ;;  %v12170_v15 = vld [vmem:[#allocation116_spill] sm:$0xff] }
  0xf3   :  { %v642_v42 = vand.u32 2147483647, %v11996_v32  ;;  %3358 = vlog2.f32 %v12170_v15  ;;  %vm4821_vm3 = vcmp.lt.f32.partialorder %v615_v9, 0.0004427343  ;;  %v4826_v12 = vmul.f32 0.6931472, %v4440_v28  ;;  %v4858_v13 = vpop.eup %3352 }
  0xf4   :  { %12167 = vst [vmem:[#allocation109_spill] sm:$0xff] %v4810_v36  ;;  %v651_v0 = vand.u32 2147483647, %v12006_v59  ;;  %v12174_v17 = vld [vmem:[#allocation32_spill] sm:$0xff]  ;;  %v12175_v29 = vld [vmem:[#allocation119_spill] sm:$0xff]  ;;  %v12179_v15 = vmov 0 }
  0xf5   :  { %12173 = vst [vmem:[#allocation30_spill] sm:$0xff] %v4826_v12  ;;  %v4831_v53 = vmul.f32 %v12175_v29, %v12174_v17  ;;  %v4840_v32 = vmul.f32 0.6931472, %v4452_v5  ;;  %v4843_v9 = vmul.f32 0.6931472, %v4461_v63  ;;  %v12183_v63 = vmov 0 }
  0xf6   :  { %v660_v28 = vand.u32 2147483647, %v12016_v1  ;;  %vm4850_vm4 = vcmp.lt.f32.partialorder %v624_v22, 0.0004427343  ;;  %v4855_v29 = vmul.f32 0.6931472, %v4473_v6 }
  0xf7   :  { %12176 = vst [vmem:[#allocation115_spill] sm:$0xff] %v4831_v53  ;;  %12177 = vst [vmem:[#allocation116_spill] sm:$0xff] %v4840_v32  ;;  %v12180_v15 = vsel %vm4850_vm4, 4294967295, %v12179_v15  ;;  %v669_v5 = vand.u32 2147483647, %v12024_v55  ;;  %v12186_v22 = vmov 0 }
  0xf8   :  { %12178 = vst [vmem:[#allocation32_spill] sm:$0xff] %v4843_v9  ;;  %12181 = vst [vmem:[#allocation119_spill] sm:$0xff] %v12180_v15  ;;  %vm4864_vm5 = vcmp.lt.f32.partialorder %v633_v30, 0.0004427343  ;;  %vm4868_vm6 = vcmp.lt.f32.partialorder %v642_v42, 0.0004427343  ;;  %v4885_v42 = vpop.eup %3354 }
  0xf9   :  { %12182 = vst [vmem:[#allocation276_spill] sm:$0xff] %v4855_v29  ;;  %v12184_v63 = vsel %vm4864_vm5, 4294967295, %v12183_v63  ;;  %v12187_v22 = vsel %vm4868_vm6, 4294967295, %v12186_v22  ;;  %v678_v6 = vand.u32 2147483647, %v12034_v35  ;;  %v12189_v59 = vmov 0  ;;  %v4913_v10 = vpop.eup %3356 }
  0xfa   :  { %12185 = vst [vmem:[#allocation277_spill] sm:$0xff] %v12184_v63  ;;  %12188 = vst [vmem:[#allocation278_spill] sm:$0xff] %v12187_v22  ;;  %vm4877_vm7 = vcmp.lt.f32.partialorder %v651_v0, 0.0004427343  ;;  %v4882_v30 = vmul.f32 0.6931472, %v4543_v61 }
  0xfb   :  { %v12190_v59 = vsel %vm4877_vm7, 4294967295, %v12189_v59  ;;  %v687_v1 = vand.u32 2147483647, %v12042_v62  ;;  %vm4891_vm8 = vcmp.lt.f32.partialorder %v660_v28, 0.0004427343  ;;  %v12194_v25 = vmov 0 }
  0xfc   :  { %12191 = vst [vmem:[#allocation279_spill] sm:$0xff] %v12190_v59  ;;  %12192 = vst [vmem:[#allocation280_spill] sm:$0xff] %v4882_v30  ;;  %v12195_v25 = vsel %vm4891_vm8, 4294967295, %v12194_v25  ;;  %v4896_v0 = vmul.f32 0.6931472, %v4562_v57  ;;  %v12200_v14 = vmov 0 }
  0xfd   :  { %12196 = vst [vmem:[#allocation281_spill] sm:$0xff] %v12195_v25  ;;  %v4899_v55 = vmul.f32 0.6931472, %v4581_v56  ;;  %vm4905_vm9 = vcmp.lt.f32.partialorder %v669_v5, 0.0004427343  ;;  %v12204_v35 = vld [vmem:[#allocation17_spill] sm:$0xff]  ;;  %v3359_v57 = vpop.eup %3358 }
  0xfe   :  { %12197 = vst [vmem:[#allocation282_spill] sm:$0xff] %v4896_v0  ;;  %v12201_v14 = vsel %vm4905_vm9, 4294967295, %v12200_v14  ;;  %v4910_v28 = vmul.f32 0.6931472, %v4600_v21  ;;  %v696_v12 = vand.u32 2147483647, %v12204_v35 }
  0xff   :  { %12198 = vst [vmem:[#allocation283_spill] sm:$0xff] %v4899_v55  ;;  %12202 = vst [vmem:[#allocation284_spill] sm:$0xff] %v12201_v14  ;;  %vm4919_vm10 = vcmp.lt.f32.partialorder %v678_v6, 0.0004427343  ;;  %v12206_v15 = vmov 0  ;;  %v12210_v62 = vld [vmem:[#allocation18_spill] sm:$0xff] }
 0x100   :  { %12203 = vst [vmem:[#allocation285_spill] sm:$0xff] %v4910_v28  ;;  %v12207_v15 = vsel %vm4919_vm10, 4294967295, %v12206_v15  ;;  %v4924_v5 = vmul.f32 0.6931472, %v4619_v3  ;;  %v705_v32 = vand.u32 2147483647, %v12210_v62 }
 0x101   :  { %12208 = vst [vmem:[#allocation17_spill] sm:$0xff] %v12207_v15  ;;  %vm4931_vm11 = vcmp.lt.f32.partialorder %v687_v1, 0.0004427343  ;;  %v12212_v61 = vmov 0  ;;  %v4936_v56 = vmul.f32 0.6931472, %v4638_v41 }
 0x102   :  { %12209 = vst [vmem:[#allocation286_spill] sm:$0xff] %v4924_v5  ;;  %v12213_v61 = vsel %vm4931_vm11, 4294967295, %v12212_v61  ;;  %v12216_v6 = vld [vmem:[#allocation19_spill] sm:$0xff]  ;;  %v4944_v22 = vmul.f32 0.6931472, %v4657_v47  ;;  %v12219_v59 = vld [vmem:[#allocation20_spill] sm:$0xff] }
 0x103   :  { %12214 = vst [vmem:[#allocation18_spill] sm:$0xff] %v12213_v61  ;;  %12215 = vst [vmem:[#allocation287_spill] sm:$0xff] %v4936_v56  ;;  %v714_v9 = vand.u32 2147483647, %v12216_v6  ;;  %v723_v35 = vand.u32 2147483647, %v12219_v59 }
 0x104   :  { %12218 = vst [vmem:[#allocation19_spill] sm:$0xff] %v4944_v22  ;;  %v12220_v1 = vld [vmem:[#allocation21_spill] sm:$0xff]  ;;  %vm4952_vm12 = vcmp.lt.f32.partialorder %v696_v12, 0.0004427343  ;;  %v12222_v6 = vmov 0  ;;  %v12226_v62 = vld [vmem:[#allocation22_spill] sm:$0xff] }
 0x105   :  { %v732_v29 = vand.u32 2147483647, %v12220_v1  ;;  %v12223_v6 = vsel %vm4952_vm12, 4294967295, %v12222_v6  ;;  %v4957_v63 = vmul.f32 0.6931472, %v4676_v44  ;;  %v12228_v1 = vmov 0 }
 0x106   :  { %12224 = vst [vmem:[#allocation20_spill] sm:$0xff] %v12223_v6  ;;  %v741_v30 = vand.u32 2147483647, %v12226_v62  ;;  %vm4964_vm13 = vcmp.lt.f32.partialorder %v705_v32, 0.0004427343  ;;  %v12231_v14 = vld [vmem:[#allocation261_spill] sm:$0xff] }
 0x107   :  { %12225 = vst [vmem:[#allocation21_spill] sm:$0xff] %v4957_v63  ;;  %v12229_v1 = vsel %vm4964_vm13, 4294967295, %v12228_v1  ;;  %v4969_v41 = vmul.f32 0.6931472, %v12231_v14  ;;  %v12233_v12 = vld [vmem:[#allocation23_spill] sm:$0xff]  ;;  %v12235_v62 = vmov 0 }
 0x108   :  { %12230 = vst [vmem:[#allocation22_spill] sm:$0xff] %v12229_v1  ;;  %v750_v0 = vand.u32 2147483647, %v12233_v12  ;;  %vm4976_vm14 = vcmp.lt.f32.partialorder %v714_v9, 0.0004427343  ;;  %v12239_v32 = vld [vmem:[#allocation24_spill] sm:$0xff] }
 0x109   :  { %12232 = vst [vmem:[#allocation261_spill] sm:$0xff] %v4969_v41  ;;  %v12236_v62 = vsel %vm4976_vm14, 4294967295, %v12235_v62  ;;  %v4981_v59 = vmul.f32 0.6931472, %v4714_v23  ;;  %v759_v55 = vand.u32 2147483647, %v12239_v32 }
 0x10a   :  { %12237 = vst [vmem:[#allocation23_spill] sm:$0xff] %v12236_v62  ;;  %vm4988_vm15 = vcmp.lt.f32.partialorder %v723_v35, 0.0004427343  ;;  %v12241_v12 = vmov 0  ;;  %vm4992_vm10 = vcmp.lt.f32.partialorder %v732_v29, 0.0004427343 }
 0x10b   :  { %12238 = vst [vmem:[#allocation288_spill] sm:$0xff] %v4981_v59  ;;  %v12242_v12 = vsel %vm4988_vm15, 4294967295, %v12241_v12  ;;  %v12244_v44 = vmov 0  ;;  %v768_v9 = vand.u32 2147483647, %v12125_v31  ;;  %v12248_v28 = vmov 0 }
 0x10c   :  { %12243 = vst [vmem:[#allocation24_spill] sm:$0xff] %v12242_v12  ;;  %v12245_v44 = vsel %vm4992_vm10, 4294967295, %v12244_v44  ;;  %vm5001_vm11 = vcmp.lt.f32.partialorder %v741_v30, 0.0004427343  ;;  %v5006_v35 = vmul.f32 0.6931472, %v4733_v49 }
 0x10d   :  { %12246 = vst [vmem:[#allocation289_spill] sm:$0xff] %v12245_v44  ;;  %v12249_v28 = vsel %vm5001_vm11, 4294967295, %v12248_v28  ;;  %v777_v14 = vand.u32 2147483647, %v12134_v20  ;;  %vm5013_vm12 = vcmp.lt.f32.partialorder %v750_v0, 0.0004427343 }
 0x10e   :  { %12250 = vst [vmem:[#allocation290_spill] sm:$0xff] %v12249_v28  ;;  %12251 = vst [vmem:[#allocation291_spill] sm:$0xff] %v5006_v35  ;;  %v12253_v31 = vmov 0  ;;  %v5018_v32 = vmul.f32 0.6931472, %v4752_v16  ;;  %v12259_v0 = vmov 0 }
 0x10f   :  { %v12254_v31 = vsel %vm5013_vm12, 4294967295, %v12253_v31  ;;  %v786_v30 = vand.u32 2147483647, %v12141_v18  ;;  %vm5029_vm14 = vcmp.lt.f32.partialorder %v759_v55, 0.0004427343  ;;  %v12264_v12 = vmov 0 }
 0x110   :  { %12255 = vst [vmem:[#allocation292_spill] sm:$0xff] %v12254_v31  ;;  %12256 = vst [vmem:[#allocation293_spill] sm:$0xff] %v5018_v32  ;;  %v12260_v0 = vsel %vm5029_vm14, 4294967295, %v12259_v0  ;;  %v5034_v5 = vmul.f32 0.6931472, %v4769_v45  ;;  %v12270_v41 = vmov 0 }
 0x111   :  { %12261 = vst [vmem:[#allocation294_spill] sm:$0xff] %v12260_v0  ;;  %vm5040_vm13 = vcmp.lt.f32.partialorder %v768_v9, 0.0004427343  ;;  %v5045_v49 = vmul.f32 0.6931472, %v4787_v19  ;;  %v12275_v59 = vmov 0 }
 0x112   :  { %12262 = vst [vmem:[#allocation295_spill] sm:$0xff] %v5034_v5  ;;  %v12265_v12 = vsel %vm5040_vm13, 4294967295, %v12264_v12  ;;  %v5048_v55 = vmul.f32 0.6931472, %v4812_v34  ;;  %vm5054_vm10 = vcmp.lt.f32.partialorder %v777_v14, 0.0004427343 }
 0x113   :  { %12266 = vst [vmem:[#allocation296_spill] sm:$0xff] %v12265_v12  ;;  %12267 = vst [vmem:[#allocation297_spill] sm:$0xff] %v5045_v49  ;;  %v12271_v41 = vsel %vm5054_vm10, 4294967295, %v12270_v41  ;;  %v5059_v9 = vmul.f32 0.6931472, %v4833_v52  ;;  %v12278_v14 = vld [vmem:[#allocation36_spill] sm:$0xff] }
 0x114   :  { %12268 = vst [vmem:[#allocation298_spill] sm:$0xff] %v5048_v55  ;;  %12272 = vst [vmem:[#allocation299_spill] sm:$0xff] %v12271_v41  ;;  %v795_v18 = vand.u32 2147483647, %v12149_v37  ;;  %vm5066_vm11 = vcmp.lt.f32.partialorder %v786_v30, 0.0004427343 }
 0x115   :  { %12273 = vst [vmem:[#allocation300_spill] sm:$0xff] %v5059_v9  ;;  %v12276_v59 = vsel %vm5066_vm11, 4294967295, %v12275_v59  ;;  %v804_v45 = vand.u32 2147483647, %v12156_v2  ;;  %v834_v35 = vadd.f32 1.0, %v12278_v14  ;;  %v12279_v31 = vld [vmem:[#allocation37_spill] sm:$0xff] }
 0x116   :  { %12277 = vst [vmem:[#allocation301_spill] sm:$0xff] %v12276_v59  ;;  %v813_v37 = vand.u32 2147483647, %v12165_v46  ;;  %v822_v62 = vand.u32 2147483647, %v12174_v17  ;;  %v843_v0 = vadd.f32 1.0, %v12279_v31 }
 0x117   :  { %v5084_v2 = vmul.f32 0.6931472, %v4858_v13  ;;  %v12281_v34 = vld [vmem:[#allocation120_spill] sm:$0xff]  ;;  %v12282_v19 = vld [vmem:[#allocation33_spill] sm:$0xff]  ;;  %vm5092_vm13 = vcmp.lt.f32.partialorder %v795_v18, 0.0004427343  ;;  %3360 = vlog2.f32 %v834_v35 }
 0x118   :  { %v829_v32 = vadd.f32 1.0, %v12281_v34  ;;  %v831_v16 = vand.u32 2147483647, %v12282_v19  ;;  %v12283_v17 = vmov 0  ;;  %v5097_v52 = vmul.f32 0.6931472, %v4885_v42 }
 0x119   :  { %12280 = vst [vmem:[#allocation36_spill] sm:$0xff] %v5084_v2  ;;  %v12284_v17 = vsel %vm5092_vm13, 4294967295, %v12283_v17  ;;  %v12287_v30 = vld [vmem:[#allocation39_spill] sm:$0xff]  ;;  %vm5100_vm10 = vcmp.lt.f32.partialorder %v804_v45, 0.0004427343  ;;  %v12288_v13 = vmov 0  ;;  %3362 = vlog2.f32 %v843_v0 }
 0x11a   :  { %12285 = vst [vmem:[#allocation37_spill] sm:$0xff] %v12284_v17  ;;  %12286 = vst [vmem:[#allocation120_spill] sm:$0xff] %v5097_v52  ;;  %v852_v49 = vadd.f32 1.0, %v12287_v30  ;;  %v12289_v13 = vsel %vm5100_vm10, 4294967295, %v12288_v13  ;;  %v5105_v34 = vmul.f32 0.6931472, %v4913_v10  ;;  %v5119_v45 = vmul.f32 %v829_v32, %v12282_v19 }
 0x11b   :  { %12290 = vst [vmem:[#allocation33_spill] sm:$0xff] %v12289_v13  ;;  %v5107_v50 = vmul.f32 0.6931472, %v3359_v57  ;;  %vm5109_vm11 = vcmp.lt.f32.partialorder %v813_v37, 0.0004427343  ;;  %v12293_v18 = vmov 0 }
 0x11c   :  { %12291 = vst [vmem:[#allocation39_spill] sm:$0xff] %v5105_v34  ;;  %v12294_v18 = vsel %vm5109_vm11, 4294967295, %v12293_v18  ;;  %vm5113_vm14 = vcmp.lt.f32.partialorder %v822_v62, 0.0004427343  ;;  %v12296_v46 = vmov 0  ;;  %v837_v42 = vmul.f32 -0.5, %v12278_v14 }
 0x11d   :  { %12292 = vst [vmem:[#allocation302_spill] sm:$0xff] %v5107_v50  ;;  %12295 = vst [vmem:[#allocation303_spill] sm:$0xff] %v12294_v18  ;;  %v12297_v46 = vsel %vm5113_vm14, 4294967295, %v12296_v46  ;;  %vm5121_vm12 = vcmp.lt.f32.partialorder %v831_v16, 0.0004427343  ;;  %v12300_v10 = vmov 0  ;;  %3364 = vlog2.f32 %v852_v49 }
 0x11e   :  { %12298 = vst [vmem:[#allocation304_spill] sm:$0xff] %v12297_v46  ;;  %12299 = vst [vmem:[#allocation305_spill] sm:$0xff] %v5119_v45  ;;  %v12301_v10 = vsel %vm5121_vm12, 4294967295, %v12300_v10  ;;  %v846_v57 = vmul.f32 -0.5, %v12279_v31  ;;  %v12303_v35 = vld [vmem:[#allocation40_spill] sm:$0xff]  ;;  %v855_v62 = vmul.f32 -0.5, %v12287_v30 }
 0x11f   :  { %12302 = vst [vmem:[#allocation306_spill] sm:$0xff] %v12301_v10  ;;  %v861_v37 = vadd.f32 1.0, %v12303_v35  ;;  %v840_v55 = vand.u32 2147483647, %v12278_v14  ;;  %v12304_v4 = vld [vmem:[#allocation41_spill] sm:$0xff]  ;;  %v864_v16 = vmul.f32 -0.5, %v12303_v35 }
 0x120   :  { %v870_v59 = vadd.f32 1.0, %v12304_v4  ;;  %v12305_v19 = vld [vmem:[#allocation42_spill] sm:$0xff]  ;;  %v838_v32 = vadd.f32 1.0, %v837_v42  ;;  %v12306_v9 = vld [vmem:[#allocation44_spill] sm:$0xff]  ;;  %v847_v2 = vadd.f32 1.0, %v846_v57  ;;  %v12307_v18 = vmov 0 }
 0x121   :  { %v879_v41 = vadd.f32 1.0, %v12305_v19  ;;  %v888_v58 = vadd.f32 1.0, %v12306_v9  ;;  %v849_v54 = vand.u32 2147483647, %v12279_v31  ;;  %3366 = vlog2.f32 %v861_v37  ;;  %v3361_v50 = vpop.eup %3360  ;;  %v12316_v45 = vld [vmem:[#allocation47_spill] sm:$0xff]  ;;  %v12325_v52 = vld [vmem:[#allocation48_spill] sm:$0xff] }
 0x122   :  { %vm5154_vm10 = vcmp.lt.f32.partialorder %v840_v55, 0.0004427343  ;;  %v856_v49 = vadd.f32 1.0, %v855_v62  ;;  %v858_v46 = vand.u32 2147483647, %v12287_v30  ;;  %3368 = vlog2.f32 %v870_v59  ;;  %v12311_v55 = vld [vmem:[#allocation45_spill] sm:$0xff] }
 0x123   :  { %v12308_v18 = vsel %vm5154_vm10, 4294967295, %v12307_v18  ;;  %v865_v42 = vadd.f32 1.0, %v864_v16  ;;  %v867_v17 = vand.u32 2147483647, %v12303_v35  ;;  %v873_v34 = vmul.f32 -0.5, %v12304_v4  ;;  %v3363_v10 = vpop.eup %3362  ;;  %v12951_v61 = vld [vmem:[#allocation178_spill] sm:$0xff] }
 0x124   :  { %12309 = vst [vmem:[#allocation40_spill] sm:$0xff] %v12308_v18  ;;  %3370 = vlog2.f32 %v879_v41  ;;  %v5162_v0 = vmul.f32 %v838_v32, %v12278_v14  ;;  %v882_v57 = vmul.f32 -0.5, %v12305_v19  ;;  %v897_v37 = vadd.f32 1.0, %v12311_v55  ;;  %v13636_v48 = vld [vmem:[#allocation30_spill] sm:$0xff] }
 0x125   :  { %3372 = vlog2.f32 %v888_v58  ;;  %v5167_v62 = vmul.f32 %v847_v2, %v12279_v31  ;;  %vm5169_vm12 = vcmp.lt.f32.partialorder %v849_v54, 0.0004427343  ;;  %v12313_v59 = vmov 0 }
 0x126   :  { %12310 = vst [vmem:[#allocation41_spill] sm:$0xff] %v5162_v0  ;;  %v12314_v59 = vsel %vm5169_vm12, 4294967295, %v12313_v59  ;;  %v891_v16 = vmul.f32 -0.5, %v12306_v9  ;;  %v906_v41 = vadd.f32 1.0, %v12316_v45  ;;  %v5176_v14 = vmul.f32 %v856_v49, %v12287_v30 }
 0x127   :  { %12312 = vst [vmem:[#allocation42_spill] sm:$0xff] %v5167_v62  ;;  %12315 = vst [vmem:[#allocation44_spill] sm:$0xff] %v12314_v59  ;;  %vm5178_vm14 = vcmp.lt.f32.partialorder %v858_v46, 0.0004427343  ;;  %v12318_v58 = vmov 0  ;;  %v900_v31 = vmul.f32 -0.5, %v12311_v55  ;;  %v5185_v54 = vmul.f32 %v865_v42, %v12303_v35  ;;  %v3365_v30 = vpop.eup %3364 }
 0x128   :  { %12317 = vst [vmem:[#allocation45_spill] sm:$0xff] %v5176_v14  ;;  %v12319_v58 = vsel %vm5178_vm14, 4294967295, %v12318_v58  ;;  %v876_v32 = vand.u32 2147483647, %v12304_v4  ;;  %vm5187_vm11 = vcmp.lt.f32.partialorder %v867_v17, 0.0004427343  ;;  %3374 = vlog2.f32 %v897_v37 }
 0x129   :  { %12320 = vst [vmem:[#allocation47_spill] sm:$0xff] %v12319_v58  ;;  %12321 = vst [vmem:[#allocation307_spill] sm:$0xff] %v5185_v54  ;;  %v12322_v2 = vmov 0  ;;  %v874_v53 = vadd.f32 1.0, %v873_v34  ;;  %v915_v36 = vadd.f32 1.0, %v12325_v52  ;;  %v883_v49 = vadd.f32 1.0, %v882_v57 }
 0x12a   :  { %v12323_v2 = vsel %vm5187_vm11, 4294967295, %v12322_v2  ;;  %v885_v46 = vand.u32 2147483647, %v12305_v19  ;;  %v894_v13 = vand.u32 2147483647, %v12306_v9  ;;  %v892_v35 = vadd.f32 1.0, %v891_v16 }
 0x12b   :  { %12324 = vst [vmem:[#allocation308_spill] sm:$0xff] %v12323_v2  ;;  %v5194_v5 = vmul.f32 0.6931472, %v3361_v50  ;;  %v5196_v8 = vmul.f32 0.6931472, %v3363_v10  ;;  %3376 = vlog2.f32 %v906_v41  ;;  %v12328_v17 = vmov 0  ;;  %v3367_v12 = vpop.eup %3366 }
 0x12c   :  { %vm5198_vm13 = vcmp.lt.f32.partialorder %v876_v32, 0.0004427343  ;;  %v901_v34 = vadd.f32 1.0, %v900_v31  ;;  %v903_v42 = vand.u32 2147483647, %v12311_v55  ;;  %v909_v57 = vmul.f32 -0.5, %v12316_v45  ;;  %v3369_v16 = vpop.eup %3368 }
 0x12d   :  { %12326 = vst [vmem:[#allocation48_spill] sm:$0xff] %v5194_v5  ;;  %12327 = vst [vmem:[#allocation309_spill] sm:$0xff] %v5196_v8  ;;  %v12329_v17 = vsel %vm5198_vm13, 4294967295, %v12328_v17  ;;  %v5204_v28 = vmul.f32 0.6931472, %v3365_v30  ;;  %v5207_v37 = vmul.f32 %v874_v53, %v12304_v4  ;;  %3378 = vlog2.f32 %v915_v36  ;;  %v12333_v50 = vld [vmem:[#allocation49_spill] sm:$0xff] }
 0x12e   :  { %12330 = vst [vmem:[#allocation310_spill] sm:$0xff] %v12329_v17  ;;  %v924_v10 = vadd.f32 1.0, %v12333_v50  ;;  %v5211_v41 = vmul.f32 %v883_v49, %v12305_v19  ;;  %vm5213_vm15 = vcmp.lt.f32.partialorder %v885_v46, 0.0004427343  ;;  %v12335_v32 = vmov 0  ;;  %v3371_v20 = vpop.eup %3370  ;;  %v12360_v59 = vld [vmem:[#allocation55_spill] sm:$0xff] }
 0x12f   :  { %12331 = vst [vmem:[#allocation311_spill] sm:$0xff] %v5204_v28  ;;  %12332 = vst [vmem:[#allocation312_spill] sm:$0xff] %v5207_v37  ;;  %v12336_v32 = vsel %vm5213_vm15, 4294967295, %v12335_v32  ;;  %vm5217_vm9 = vcmp.lt.f32.partialorder %v894_v13, 0.0004427343  ;;  %v12338_v31 = vmov 0  ;;  %v5231_v36 = vmul.f32 %v892_v35, %v12306_v9  ;;  %v3373_v49 = vpop.eup %3372 }
 0x130   :  { %12334 = vst [vmem:[#allocation49_spill] sm:$0xff] %v5211_v41  ;;  %12337 = vst [vmem:[#allocation313_spill] sm:$0xff] %v12336_v32  ;;  %v12339_v31 = vsel %vm5217_vm9, 4294967295, %v12338_v31  ;;  %v918_v30 = vmul.f32 -0.5, %v12325_v52  ;;  %v12342_v13 = vld [vmem:[#allocation50_spill] sm:$0xff]  ;;  %v5237_v44 = vmul.f32 %v901_v34, %v12311_v55  ;;  %v12345_v63 = vmov 0 }
 0x131   :  { %12340 = vst [vmem:[#allocation314_spill] sm:$0xff] %v12339_v31  ;;  %12341 = vst [vmem:[#allocation315_spill] sm:$0xff] %v5231_v36  ;;  %v933_v19 = vadd.f32 1.0, %v12342_v13  ;;  %v5234_v46 = vmul.f32 0.6931472, %v3367_v12  ;;  %v910_v4 = vadd.f32 1.0, %v909_v57  ;;  %3380 = vlog2.f32 %v924_v10 }
 0x132   :  { %12344 = vst [vmem:[#allocation316_spill] sm:$0xff] %v5237_v44  ;;  %vm5239_vm8 = vcmp.lt.f32.partialorder %v903_v42, 0.0004427343  ;;  %v912_v5 = vand.u32 2147483647, %v12316_v45  ;;  %v12348_v12 = vld [vmem:[#allocation52_spill] sm:$0xff]  ;;  %v3375_v9 = vpop.eup %3374 }
 0x133   :  { %12343 = vst [vmem:[#allocation50_spill] sm:$0xff] %v5234_v46  ;;  %v12346_v63 = vsel %vm5239_vm8, 4294967295, %v12345_v63  ;;  %v921_v35 = vand.u32 2147483647, %v12325_v52  ;;  %v942_v53 = vadd.f32 1.0, %v12348_v12  ;;  %v919_v55 = vadd.f32 1.0, %v918_v30 }
 0x134   :  { %12347 = vst [vmem:[#allocation317_spill] sm:$0xff] %v12346_v63  ;;  %v5250_v8 = vmul.f32 0.6931472, %v3369_v16  ;;  %v927_v34 = vmul.f32 -0.5, %v12333_v50  ;;  %v930_v42 = vand.u32 2147483647, %v12333_v50  ;;  %3382 = vlog2.f32 %v933_v19 }
 0x135   :  { %v5254_v57 = vmul.f32 0.6931472, %v3371_v20  ;;  %v5256_v62 = vmul.f32 0.6931472, %v3373_v49  ;;  %v936_v58 = vmul.f32 -0.5, %v12342_v13  ;;  %v5264_v16 = vmul.f32 %v910_v4, %v12316_v45  ;;  %v12356_v20 = vld [vmem:[#allocation53_spill] sm:$0xff]  ;;  %v3377_v49 = vpop.eup %3376 }
 0x136   :  { %12349 = vst [vmem:[#allocation52_spill] sm:$0xff] %v5250_v8  ;;  %vm5266_vm14 = vcmp.lt.f32.partialorder %v912_v5, 0.0004427343  ;;  %v12353_v30 = vmov 0  ;;  %v951_v28 = vadd.f32 1.0, %v12356_v20  ;;  %v12357_v19 = vmov 0 }
 0x137   :  { %12350 = vst [vmem:[#allocation318_spill] sm:$0xff] %v5254_v57  ;;  %12351 = vst [vmem:[#allocation319_spill] sm:$0xff] %v5256_v62  ;;  %v12354_v30 = vsel %vm5266_vm14, 4294967295, %v12353_v30  ;;  %vm5271_vm12 = vcmp.lt.f32.partialorder %v921_v35, 0.0004427343  ;;  %3384 = vlog2.f32 %v942_v53  ;;  %v945_v14 = vmul.f32 -0.5, %v12348_v12  ;;  %v3379_v35 = vpop.eup %3378 }
 0x138   :  { %12352 = vst [vmem:[#allocation320_spill] sm:$0xff] %v5264_v16  ;;  %12355 = vst [vmem:[#allocation321_spill] sm:$0xff] %v12354_v30  ;;  %v12358_v19 = vsel %vm5271_vm12, 4294967295, %v12357_v19  ;;  %v960_v2 = vadd.f32 1.0, %v12360_v59  ;;  %v5282_v45 = vmul.f32 %v919_v55, %v12325_v52  ;;  %v928_v4 = vadd.f32 1.0, %v927_v34  ;;  %v12367_v31 = vld [vmem:[#allocation56_spill] sm:$0xff] }
 0x139   :  { %12359 = vst [vmem:[#allocation53_spill] sm:$0xff] %v12358_v19  ;;  %v939_v10 = vand.u32 2147483647, %v12342_v13  ;;  %v5293_v54 = vmul.f32 0.6931472, %v3375_v9  ;;  %v12363_v5 = vmov 0  ;;  %3386 = vlog2.f32 %v951_v28 }
 0x13a   :  { %12361 = vst [vmem:[#allocation55_spill] sm:$0xff] %v5282_v45  ;;  %vm5295_vm13 = vcmp.lt.f32.partialorder %v930_v42, 0.0004427343  ;;  %v937_v52 = vadd.f32 1.0, %v936_v58  ;;  %v5299_v55 = vmul.f32 0.6931472, %v3377_v49  ;;  %3388 = vlog2.f32 %v960_v2 }
 0x13b   :  { %12362 = vst [vmem:[#allocation322_spill] sm:$0xff] %v5293_v54  ;;  %v12364_v5 = vsel %vm5295_vm13, 4294967295, %v12363_v5  ;;  %v948_v34 = vand.u32 2147483647, %v12348_v12  ;;  %v954_v32 = vmul.f32 -0.5, %v12356_v20  ;;  %v946_v53 = vadd.f32 1.0, %v945_v14  ;;  %v3381_v28 = vpop.eup %3380 }
 0x13c   :  { %12365 = vst [vmem:[#allocation323_spill] sm:$0xff] %v12364_v5  ;;  %12366 = vst [vmem:[#allocation324_spill] sm:$0xff] %v5299_v55  ;;  %v963_v57 = vmul.f32 -0.5, %v12360_v59  ;;  %v969_v46 = vadd.f32 1.0, %v12367_v31  ;;  %v5305_v9 = vmul.f32 0.6931472, %v3379_v35  ;;  %v5308_v42 = vmul.f32 %v928_v4, %v12333_v50 }
 0x13d   :  { %vm5310_vm9 = vcmp.lt.f32.partialorder %v939_v10, 0.0004427343  ;;  %v12370_v58 = vmov 0  ;;  %v957_v49 = vand.u32 2147483647, %v12356_v20  ;;  %v5320_v2 = vmul.f32 %v937_v52, %v12342_v13  ;;  %v12374_v62 = vld [vmem:[#allocation57_spill] sm:$0xff] }
 0x13e   :  { %12368 = vst [vmem:[#allocation56_spill] sm:$0xff] %v5305_v9  ;;  %12369 = vst [vmem:[#allocation325_spill] sm:$0xff] %v5308_v42  ;;  %v12371_v58 = vsel %vm5310_vm9, 4294967295, %v12370_v58  ;;  %v972_v35 = vmul.f32 -0.5, %v12367_v31  ;;  %v978_v50 = vadd.f32 1.0, %v12374_v62  ;;  %v12375_v4 = vmov 0  ;;  %v3383_v14 = vpop.eup %3382 }
 0x13f   :  { %12372 = vst [vmem:[#allocation326_spill] sm:$0xff] %v12371_v58  ;;  %12373 = vst [vmem:[#allocation327_spill] sm:$0xff] %v5320_v2  ;;  %vm5328_vm15 = vcmp.lt.f32.partialorder %v948_v34, 0.0004427343  ;;  %v955_v36 = vadd.f32 1.0, %v954_v32  ;;  %v12378_v41 = vld [vmem:[#allocation58_spill] sm:$0xff]  ;;  %v5334_v13 = vmul.f32 %v946_v53, %v12348_v12  ;;  %3390 = vlog2.f32 %v969_v46 }
 0x140   :  { %v12376_v4 = vsel %vm5328_vm15, 4294967295, %v12375_v4  ;;  %v987_v63 = vadd.f32 1.0, %v12378_v41  ;;  %v964_v52 = vadd.f32 1.0, %v963_v57  ;;  %v966_v54 = vand.u32 2147483647, %v12360_v59  ;;  %v12384_v53 = vld [vmem:[#allocation60_spill] sm:$0xff] }
 0x141   :  { %12377 = vst [vmem:[#allocation57_spill] sm:$0xff] %v12376_v4  ;;  %12379 = vst [vmem:[#allocation58_spill] sm:$0xff] %v5334_v13  ;;  %v5341_v34 = vmul.f32 0.6931472, %v3381_v28  ;;  %vm5343_vm14 = vcmp.lt.f32.partialorder %v957_v49, 0.0004427343  ;;  %v3385_v16 = vpop.eup %3384  ;;  %3392 = vlog2.f32 %v978_v50  ;;  %v5353_v19 = vmul.f32 %v955_v36, %v12356_v20 }
 0x142   :  { %v12381_v55 = vmov 0  ;;  %v981_v32 = vmul.f32 -0.5, %v12374_v62  ;;  %v973_v12 = vadd.f32 1.0, %v972_v35  ;;  %v975_v57 = vand.u32 2147483647, %v12367_v31  ;;  %v12391_v50 = vld [vmem:[#allocation61_spill] sm:$0xff] }
 0x143   :  { %12380 = vst [vmem:[#allocation328_spill] sm:$0xff] %v5341_v34  ;;  %v12382_v55 = vsel %vm5343_vm14, 4294967295, %v12381_v55  ;;  %v996_v46 = vadd.f32 1.0, %v12384_v53  ;;  %v5350_v30 = vmul.f32 0.6931472, %v3383_v14  ;;  %12386 = vst [vmem:[#allocation330_spill] sm:$0xff] %v5353_v19  ;;  %3394 = vlog2.f32 %v987_v63  ;;  %v3387_v45 = vpop.eup %3386 }
 0x144   :  { %12383 = vst [vmem:[#allocation329_spill] sm:$0xff] %v12382_v55  ;;  %v990_v49 = vmul.f32 -0.5, %v12378_v41  ;;  %v5357_v28 = vmul.f32 %v964_v52, %v12360_v59  ;;  %vm5359_vm12 = vcmp.lt.f32.partialorder %v966_v54, 0.0004427343  ;;  %v12388_v10 = vmov 0  ;;  %v3389_v14 = vpop.eup %3388  ;;  %v12397_v44 = vld [vmem:[#allocation63_spill] sm:$0xff] }
 0x145   :  { %12385 = vst [vmem:[#allocation60_spill] sm:$0xff] %v5350_v30  ;;  %v12389_v10 = vsel %vm5359_vm12, 4294967295, %v12388_v10  ;;  %v984_v35 = vand.u32 2147483647, %v12374_v62  ;;  %v1005_v9 = vadd.f32 1.0, %v12391_v50  ;;  %v982_v20 = vadd.f32 1.0, %v981_v32 }
 0x146   :  { %12387 = vst [vmem:[#allocation331_spill] sm:$0xff] %v5357_v28  ;;  %12390 = vst [vmem:[#allocation332_spill] sm:$0xff] %v12389_v10  ;;  %v5369_v63 = vmul.f32 0.6931472, %v3385_v16  ;;  %v999_v59 = vmul.f32 -0.5, %v12384_v53  ;;  %v5373_v54 = vmul.f32 %v973_v12, %v12367_v31  ;;  %v12394_v52 = vmov 0 }
 0x147   :  { %vm5375_vm8 = vcmp.lt.f32.partialorder %v975_v57, 0.0004427343  ;;  %3396 = vlog2.f32 %v996_v46  ;;  %v1014_v8 = vadd.f32 1.0, %v12397_v44  ;;  %v991_v36 = vadd.f32 1.0, %v990_v49  ;;  %v12402_v57 = vld [vmem:[#allocation64_spill] sm:$0xff] }
 0x148   :  { %12392 = vst [vmem:[#allocation61_spill] sm:$0xff] %v5369_v63  ;;  %12393 = vst [vmem:[#allocation333_spill] sm:$0xff] %v5373_v54  ;;  %v12395_v52 = vsel %vm5375_vm8, 4294967295, %v12394_v52  ;;  %v993_v32 = vand.u32 2147483647, %v12378_v41  ;;  %v1008_v34 = vmul.f32 -0.5, %v12391_v50  ;;  %3398 = vlog2.f32 %v1005_v9 }
 0x149   :  { %12396 = vst [vmem:[#allocation334_spill] sm:$0xff] %v12395_v52  ;;  %v5386_v42 = vmul.f32 0.6931472, %v3387_v45  ;;  %vm5388_vm13 = vcmp.lt.f32.partialorder %v984_v35, 0.0004427343  ;;  %v12399_v31 = vmov 0  ;;  %v5401_v30 = vmul.f32 %v982_v20, %v12374_v62  ;;  %v3391_v35 = vpop.eup %3390 }
 0x14a   :  { %v12400_v31 = vsel %vm5388_vm13, 4294967295, %v12399_v31  ;;  %v1002_v12 = vand.u32 2147483647, %v12384_v53  ;;  %v1023_v46 = vadd.f32 1.0, %v12402_v57  ;;  %v5398_v16 = vmul.f32 0.6931472, %v3389_v14 }
 0x14b   :  { %12398 = vst [vmem:[#allocation63_spill] sm:$0xff] %v5386_v42  ;;  %12401 = vst [vmem:[#allocation335_spill] sm:$0xff] %v12400_v31  ;;  %v1000_v45 = vadd.f32 1.0, %v999_v59  ;;  %v1011_v2 = vand.u32 2147483647, %v12391_v50  ;;  %3400 = vlog2.f32 %v1014_v8  ;;  %v1017_v58 = vmul.f32 -0.5, %v12397_v44  ;;  %v3393_v20 = vpop.eup %3392 }
 0x14c   :  { %12403 = vst [vmem:[#allocation64_spill] sm:$0xff] %v5398_v16  ;;  %12404 = vst [vmem:[#allocation336_spill] sm:$0xff] %v5401_v30  ;;  %v12405_v9 = vld [vmem:[#allocation65_spill] sm:$0xff]  ;;  %v5407_v37 = vmul.f32 %v991_v36, %v12378_v41  ;;  %vm5409_vm9 = vcmp.lt.f32.partialorder %v993_v32, 0.0004427343  ;;  %v12407_v4 = vmov 0  ;;  %3402 = vlog2.f32 %v1023_v46 }
 0x14d   :  { %v1032_v5 = vadd.f32 1.0, %v12405_v9  ;;  %v12408_v4 = vsel %vm5409_vm9, 4294967295, %v12407_v4  ;;  %v1009_v14 = vadd.f32 1.0, %v1008_v34  ;;  %v1026_v62 = vmul.f32 -0.5, %v12402_v57  ;;  %v12413_v41 = vld [vmem:[#allocation66_spill] sm:$0xff]  ;;  %v3395_v32 = vpop.eup %3394  ;;  %v12422_v16 = vld [vmem:[#allocation68_spill] sm:$0xff] }
 0x14e   :  { %12406 = vst [vmem:[#allocation65_spill] sm:$0xff] %v5407_v37  ;;  %12409 = vst [vmem:[#allocation337_spill] sm:$0xff] %v12408_v4  ;;  %vm5418_vm15 = vcmp.lt.f32.partialorder %v1002_v12, 0.0004427343  ;;  %v12410_v59 = vmov 0  ;;  %v1041_v36 = vadd.f32 1.0, %v12413_v41  ;;  %v5430_v63 = vmul.f32 %v1000_v45, %v12384_v53 }
 0x14f   :  { %v12411_v59 = vsel %vm5418_vm15, 4294967295, %v12410_v59  ;;  %v5427_v49 = vmul.f32 0.6931472, %v3391_v35  ;;  %v1020_v8 = vand.u32 2147483647, %v12397_v44  ;;  %v12416_v12 = vmov 0 }
 0x150   :  { %12412 = vst [vmem:[#allocation338_spill] sm:$0xff] %v12411_v59  ;;  %12415 = vst [vmem:[#allocation339_spill] sm:$0xff] %v5430_v63  ;;  %vm5433_vm14 = vcmp.lt.f32.partialorder %v1011_v2, 0.0004427343  ;;  %v1018_v46 = vadd.f32 1.0, %v1017_v58  ;;  %3404 = vlog2.f32 %v1032_v5  ;;  %v5441_v10 = vmul.f32 %v1009_v14, %v12391_v50  ;;  %v12426_v14 = vld [vmem:[#allocation69_spill] sm:$0xff] }
 0x151   :  { %12414 = vst [vmem:[#allocation66_spill] sm:$0xff] %v5427_v49  ;;  %v12417_v12 = vsel %vm5433_vm14, 4294967295, %v12416_v12  ;;  %v1029_v42 = vand.u32 2147483647, %v12402_v57  ;;  %v5438_v19 = vmul.f32 0.6931472, %v3393_v20  ;;  %v3397_v53 = vpop.eup %3396  ;;  %3406 = vlog2.f32 %v1041_v36 }
 0x152   :  { %12418 = vst [vmem:[#allocation340_spill] sm:$0xff] %v12417_v12  ;;  %12420 = vst [vmem:[#allocation342_spill] sm:$0xff] %v5441_v10  ;;  %v1027_v35 = vadd.f32 1.0, %v1026_v62  ;;  %v1035_v34 = vmul.f32 -0.5, %v12405_v9  ;;  %v5444_v45 = vmul.f32 0.6931472, %v3395_v32  ;;  %v3399_v20 = vpop.eup %3398  ;;  %v5459_v32 = vmul.f32 %v1018_v46, %v12397_v44 }
 0x153   :  { %12419 = vst [vmem:[#allocation341_spill] sm:$0xff] %v5438_v19  ;;  %v1038_v2 = vand.u32 2147483647, %v12405_v9  ;;  %v1050_v28 = vadd.f32 1.0, %v12422_v16  ;;  %vm5452_vm12 = vcmp.lt.f32.partialorder %v1020_v8, 0.0004427343 }
 0x154   :  { %12421 = vst [vmem:[#allocation343_spill] sm:$0xff] %v5444_v45  ;;  %v12423_v58 = vmov 0  ;;  %v1044_v50 = vmul.f32 -0.5, %v12413_v41  ;;  %v1059_v62 = vadd.f32 1.0, %v12426_v14  ;;  %12427 = vst [vmem:[#allocation69_spill] sm:$0xff] %v5459_v32  ;;  %v12428_v36 = vmov 0 }
 0x155   :  { %v12424_v58 = vsel %vm5452_vm12, 4294967295, %v12423_v58  ;;  %vm5461_vm11 = vcmp.lt.f32.partialorder %v1029_v42, 0.0004427343  ;;  %v1053_v55 = vmul.f32 -0.5, %v12422_v16  ;;  %v12431_v52 = vld [vmem:[#allocation71_spill] sm:$0xff]  ;;  %v5474_v54 = vmul.f32 %v1027_v35, %v12402_v57  ;;  %v3401_v46 = vpop.eup %3400  ;;  %v12444_v30 = vld [vmem:[#allocation73_spill] sm:$0xff] }
 0x156   :  { %12425 = vst [vmem:[#allocation68_spill] sm:$0xff] %v12424_v58  ;;  %v12429_v36 = vsel %vm5461_vm11, 4294967295, %v12428_v36  ;;  %v1068_v5 = vadd.f32 1.0, %v12431_v52  ;;  %v5471_v49 = vmul.f32 0.6931472, %v3397_v53  ;;  %v1036_v44 = vadd.f32 1.0, %v1035_v34  ;;  %v3403_v35 = vpop.eup %3402 }
 0x157   :  { %12430 = vst [vmem:[#allocation344_spill] sm:$0xff] %v12429_v36  ;;  %12433 = vst [vmem:[#allocation345_spill] sm:$0xff] %v5474_v54  ;;  %vm5480_vm8 = vcmp.lt.f32.partialorder %v1038_v2, 0.0004427343  ;;  %v12434_v13 = vmov 0  ;;  %3408 = vlog2.f32 %v1050_v28  ;;  %v1062_v53 = vmul.f32 -0.5, %v12426_v14 }
 0x158   :  { %12432 = vst [vmem:[#allocation71_spill] sm:$0xff] %v5471_v49  ;;  %v12435_v13 = vsel %vm5480_vm8, 4294967295, %v12434_v13  ;;  %v1047_v17 = vand.u32 2147483647, %v12413_v41  ;;  %v5486_v8 = vmul.f32 0.6931472, %v3399_v20  ;;  %3410 = vlog2.f32 %v1059_v62 }
 0x159   :  { %12436 = vst [vmem:[#allocation346_spill] sm:$0xff] %v12435_v13  ;;  %v1045_v57 = vadd.f32 1.0, %v1044_v50  ;;  %v1056_v34 = vand.u32 2147483647, %v12422_v16  ;;  %v1054_v19 = vadd.f32 1.0, %v1053_v55  ;;  %3412 = vlog2.f32 %v1068_v5  ;;  %v12438_v2 = vld [vmem:[#allocation72_spill] sm:$0xff] }
 0x15a   :  { %12437 = vst [vmem:[#allocation347_spill] sm:$0xff] %v5486_v8  ;;  %v1071_v42 = vmul.f32 -0.5, %v12431_v52  ;;  %v1077_v45 = vadd.f32 1.0, %v12438_v2  ;;  %v5495_v37 = vmul.f32 0.6931472, %v3401_v46  ;;  %v5498_v20 = vmul.f32 %v1036_v44, %v12405_v9  ;;  %v3405_v62 = vpop.eup %3404  ;;  %v12451_v59 = vld [vmem:[#allocation74_spill] sm:$0xff] }
 0x15b   :  { %v1065_v50 = vand.u32 2147483647, %v12426_v14  ;;  %vm5501_vm9 = vcmp.lt.f32.partialorder %v1047_v17, 0.0004427343  ;;  %v12441_v55 = vmov 0  ;;  %v1063_v5 = vadd.f32 1.0, %v1062_v53  ;;  %v3407_v44 = vpop.eup %3406 }
 0x15c   :  { %12439 = vst [vmem:[#allocation72_spill] sm:$0xff] %v5495_v37  ;;  %12440 = vst [vmem:[#allocation348_spill] sm:$0xff] %v5498_v20  ;;  %v12442_v55 = vsel %vm5501_vm9, 4294967295, %v12441_v55  ;;  %v1080_v4 = vmul.f32 -0.5, %v12438_v2  ;;  %v1086_v31 = vadd.f32 1.0, %v12444_v30  ;;  %v5514_v9 = vmul.f32 %v1045_v57, %v12413_v41 }
 0x15d   :  { %12443 = vst [vmem:[#allocation349_spill] sm:$0xff] %v12442_v55  ;;  %v5511_v28 = vmul.f32 0.6931472, %v3403_v35  ;;  %v1074_v17 = vand.u32 2147483647, %v12431_v52  ;;  %v5518_v49 = vmul.f32 %v1054_v19, %v12422_v16  ;;  %v12448_v53 = vmov 0 }
 0x15e   :  { %12446 = vst [vmem:[#allocation350_spill] sm:$0xff] %v5514_v9  ;;  %vm5520_vm15 = vcmp.lt.f32.partialorder %v1056_v34, 0.0004427343  ;;  %v1072_v63 = vadd.f32 1.0, %v1071_v42  ;;  %3414 = vlog2.f32 %v1077_v45  ;;  %v1095_v12 = vadd.f32 1.0, %v12451_v59  ;;  %v12456_v16 = vld [vmem:[#allocation76_spill] sm:$0xff] }
 0x15f   :  { %12445 = vst [vmem:[#allocation73_spill] sm:$0xff] %v5511_v28  ;;  %12447 = vst [vmem:[#allocation351_spill] sm:$0xff] %v5518_v49  ;;  %v12449_v53 = vsel %vm5520_vm15, 4294967295, %v12448_v53  ;;  %v5529_v57 = vmul.f32 0.6931472, %v3405_v62  ;;  %v12453_v35 = vmov 0  ;;  %v5538_v42 = vmul.f32 %v1063_v5, %v12426_v14 }
 0x160   :  { %12450 = vst [vmem:[#allocation352_spill] sm:$0xff] %v12449_v53  ;;  %vm5531_vm14 = vcmp.lt.f32.partialorder %v1065_v50, 0.0004427343  ;;  %v1089_v19 = vmul.f32 -0.5, %v12444_v30  ;;  %v1104_v34 = vadd.f32 1.0, %v12456_v16  ;;  %v1081_v45 = vadd.f32 1.0, %v1080_v4 }
 0x161   :  { %12452 = vst [vmem:[#allocation74_spill] sm:$0xff] %v5529_v57  ;;  %v12454_v35 = vsel %vm5531_vm14, 4294967295, %v12453_v35  ;;  %12457 = vst [vmem:[#allocation76_spill] sm:$0xff] %v5538_v42  ;;  %v1083_v46 = vand.u32 2147483647, %v12438_v2  ;;  %3416 = vlog2.f32 %v1086_v31  ;;  %v12459_v41 = vmov 0  ;;  %v3409_v32 = vpop.eup %3408 }
 0x162   :  { %12455 = vst [vmem:[#allocation353_spill] sm:$0xff] %v12454_v35  ;;  %v5545_v50 = vmul.f32 0.6931472, %v3407_v44  ;;  %vm5547_vm12 = vcmp.lt.f32.partialorder %v1074_v17, 0.0004427343  ;;  %v1098_v37 = vmul.f32 -0.5, %v12451_v59  ;;  %v5553_v14 = vmul.f32 %v1072_v63, %v12431_v52  ;;  %v3411_v58 = vpop.eup %3410 }
 0x163   :  { %v12460_v41 = vsel %vm5547_vm12, 4294967295, %v12459_v41  ;;  %3418 = vlog2.f32 %v1095_v12  ;;  %v1107_v4 = vmul.f32 -0.5, %v12456_v16  ;;  %v12463_v31 = vld [vmem:[#allocation77_spill] sm:$0xff]  ;;  %v1090_v44 = vadd.f32 1.0, %v1089_v19  ;;  %v3413_v28 = vpop.eup %3412  ;;  %v12468_v12 = vld [vmem:[#allocation79_spill] sm:$0xff] }
 0x164   :  { %12458 = vst [vmem:[#allocation354_spill] sm:$0xff] %v5545_v50  ;;  %12461 = vst [vmem:[#allocation355_spill] sm:$0xff] %v12460_v41  ;;  %v1113_v5 = vadd.f32 1.0, %v12463_v31  ;;  %v1092_v62 = vand.u32 2147483647, %v12444_v30  ;;  %3420 = vlog2.f32 %v1104_v34  ;;  %v5563_v54 = vmul.f32 %v1081_v45, %v12438_v2 }
 0x165   :  { %12462 = vst [vmem:[#allocation356_spill] sm:$0xff] %v5553_v14  ;;  %vm5565_vm11 = vcmp.lt.f32.partialorder %v1083_v46, 0.0004427343  ;;  %v12465_v63 = vmov 0  ;;  %v1101_v52 = vand.u32 2147483647, %v12451_v59  ;;  %v5584_v13 = vmul.f32 %v1090_v44, %v12444_v30 }
 0x166   :  { %12464 = vst [vmem:[#allocation77_spill] sm:$0xff] %v5563_v54  ;;  %v12466_v63 = vsel %vm5565_vm11, 4294967295, %v12465_v63  ;;  %v1122_v36 = vadd.f32 1.0, %v12468_v12  ;;  %v5575_v17 = vmul.f32 0.6931472, %v3409_v32  ;;  %v1099_v34 = vadd.f32 1.0, %v1098_v37 }
 0x167   :  { %12467 = vst [vmem:[#allocation357_spill] sm:$0xff] %v12466_v63  ;;  %v1110_v57 = vand.u32 2147483647, %v12456_v16  ;;  %v5578_v2 = vmul.f32 0.6931472, %v3411_v58  ;;  %v1108_v46 = vadd.f32 1.0, %v1107_v4  ;;  %3422 = vlog2.f32 %v1113_v5 }
 0x168   :  { %12469 = vst [vmem:[#allocation79_spill] sm:$0xff] %v5575_v17  ;;  %v1116_v45 = vmul.f32 -0.5, %v12463_v31  ;;  %v5581_v20 = vmul.f32 0.6931472, %v3413_v28  ;;  %12472 = vst [vmem:[#allocation360_spill] sm:$0xff] %v5584_v13  ;;  %v12473_v8 = vmov 0  ;;  %v3415_v37 = vpop.eup %3414  ;;  %3424 = vlog2.f32 %v1122_v36 }
 0x169   :  { %12470 = vst [vmem:[#allocation358_spill] sm:$0xff] %v5578_v2  ;;  %vm5586_vm8 = vcmp.lt.f32.partialorder %v1092_v62, 0.0004427343  ;;  %v12476_v32 = vld [vmem:[#allocation80_spill] sm:$0xff]  ;;  %vm5591_vm9 = vcmp.lt.f32.partialorder %v1101_v52, 0.0004427343  ;;  %v5603_v62 = vmul.f32 %v1099_v34, %v12451_v59  ;;  %v5615_v55 = vmul.f32 %v1108_v46, %v12456_v16 }
 0x16a   :  { %12471 = vst [vmem:[#allocation359_spill] sm:$0xff] %v5581_v20  ;;  %v12474_v8 = vsel %vm5586_vm8, 4294967295, %v12473_v8  ;;  %v1131_v19 = vadd.f32 1.0, %v12476_v32  ;;  %v12477_v50 = vmov 0  ;;  %v1119_v58 = vand.u32 2147483647, %v12463_v31 }
 0x16b   :  { %12475 = vst [vmem:[#allocation361_spill] sm:$0xff] %v12474_v8  ;;  %v12478_v50 = vsel %vm5591_vm9, 4294967295, %v12477_v50  ;;  %v1125_v28 = vmul.f32 -0.5, %v12468_v12  ;;  %v12480_v4 = vld [vmem:[#allocation81_spill] sm:$0xff]  ;;  %vm5605_vm13 = vcmp.lt.f32.partialorder %v1110_v57, 0.0004427343  ;;  %v3417_v9 = vpop.eup %3416 }
 0x16c   :  { %12479 = vst [vmem:[#allocation80_spill] sm:$0xff] %v12478_v50  ;;  %v1140_v5 = vadd.f32 1.0, %v12480_v4  ;;  %12481 = vst [vmem:[#allocation81_spill] sm:$0xff] %v5603_v62  ;;  %v12482_v44 = vmov 0  ;;  %v1134_v52 = vmul.f32 -0.5, %v12476_v32  ;;  %v1117_v53 = vadd.f32 1.0, %v1116_v45 }
 0x16d   :  { %v12483_v44 = vsel %vm5605_vm13, 4294967295, %v12482_v44  ;;  %12485 = vst [vmem:[#allocation363_spill] sm:$0xff] %v5615_v55  ;;  %v12486_v30 = vld [vmem:[#allocation82_spill] sm:$0xff]  ;;  %v5622_v57 = vmul.f32 0.6931472, %v3415_v37  ;;  %3426 = vlog2.f32 %v1131_v19  ;;  %v1143_v34 = vmul.f32 -0.5, %v12480_v4  ;;  %v3419_v49 = vpop.eup %3418 }
 0x16e   :  { %12484 = vst [vmem:[#allocation362_spill] sm:$0xff] %v12483_v44  ;;  %v1149_v17 = vadd.f32 1.0, %v12486_v30  ;;  %vm5625_vm15 = vcmp.lt.f32.partialorder %v1119_v58, 0.0004427343  ;;  %v12488_v35 = vmov 0  ;;  %v1126_v16 = vadd.f32 1.0, %v1125_v28  ;;  %v3421_v45 = vpop.eup %3420 }
 0x16f   :  { %12487 = vst [vmem:[#allocation82_spill] sm:$0xff] %v5622_v57  ;;  %v12489_v35 = vsel %vm5625_vm15, 4294967295, %v12488_v35  ;;  %v1128_v46 = vand.u32 2147483647, %v12468_v12  ;;  %3428 = vlog2.f32 %v1140_v5  ;;  %v5630_v36 = vmul.f32 0.6931472, %v3417_v9 }
 0x170   :  { %12490 = vst [vmem:[#allocation364_spill] sm:$0xff] %v12489_v35  ;;  %v1135_v2 = vadd.f32 1.0, %v1134_v52  ;;  %v1137_v59 = vand.u32 2147483647, %v12476_v32  ;;  %v12492_v37 = vld [vmem:[#allocation84_spill] sm:$0xff]  ;;  %3430 = vlog2.f32 %v1149_v17  ;;  %v1152_v58 = vmul.f32 -0.5, %v12486_v30 }
 0x171   :  { %12491 = vst [vmem:[#allocation365_spill] sm:$0xff] %v5630_v36  ;;  %v1158_v20 = vadd.f32 1.0, %v12492_v37  ;;  %v1146_v19 = vand.u32 2147483647, %v12480_v4  ;;  %v12493_v14 = vld [vmem:[#allocation85_spill] sm:$0xff]  ;;  %v5644_v9 = vmul.f32 %v1117_v53, %v12463_v31  ;;  %v1144_v52 = vadd.f32 1.0, %v1143_v34  ;;  %v3423_v42 = vpop.eup %3422 }
 0x172   :  { %v1167_v41 = vadd.f32 1.0, %v12493_v14  ;;  %v5641_v5 = vmul.f32 0.6931472, %v3419_v49  ;;  %v5646_v10 = vmul.f32 0.6931472, %v3421_v45  ;;  %v5649_v17 = vmul.f32 %v1126_v16, %v12468_v12  ;;  %v12505_v12 = vld [vmem:[#allocation87_spill] sm:$0xff]  ;;  %v3425_v16 = vpop.eup %3424 }
 0x173   :  { %12495 = vst [vmem:[#allocation85_spill] sm:$0xff] %v5644_v9  ;;  %vm5651_vm12 = vcmp.lt.f32.partialorder %v1128_v46, 0.0004427343  ;;  %v12498_v0 = vmov 0  ;;  %v1161_v18 = vmul.f32 -0.5, %v12492_v37  ;;  %v5661_v53 = vmul.f32 %v1135_v2, %v12476_v32  ;;  %v12511_v36 = vld [vmem:[#allocation88_spill] sm:$0xff] }
 0x174   :  { %12494 = vst [vmem:[#allocation84_spill] sm:$0xff] %v5641_v5  ;;  %12496 = vst [vmem:[#allocation366_spill] sm:$0xff] %v5646_v10  ;;  %v12499_v0 = vsel %vm5651_vm12, 4294967295, %v12498_v0  ;;  %vm5663_vm11 = vcmp.lt.f32.partialorder %v1137_v59, 0.0004427343  ;;  %v12502_v31 = vmov 0  ;;  %3432 = vlog2.f32 %v1158_v20 }
 0x175   :  { %12497 = vst [vmem:[#allocation367_spill] sm:$0xff] %v5649_v17  ;;  %12500 = vst [vmem:[#allocation368_spill] sm:$0xff] %v12499_v0  ;;  %v12503_v31 = vsel %vm5663_vm11, 4294967295, %v12502_v31  ;;  %v1176_v34 = vadd.f32 1.0, %v12505_v12  ;;  %vm5668_vm14 = vcmp.lt.f32.partialorder %v1146_v19, 0.0004427343  ;;  %3434 = vlog2.f32 %v1167_v41 }
 0x176   :  { %12501 = vst [vmem:[#allocation369_spill] sm:$0xff] %v5661_v53  ;;  %12504 = vst [vmem:[#allocation370_spill] sm:$0xff] %v12503_v31  ;;  %v12506_v46 = vmov 0  ;;  %v1153_v45 = vadd.f32 1.0, %v1152_v58  ;;  %v1155_v28 = vand.u32 2147483647, %v12486_v30  ;;  %v5681_v20 = vmul.f32 %v1144_v52, %v12480_v4 }
 0x177   :  { %v12507_v46 = vsel %vm5668_vm14, 4294967295, %v12506_v46  ;;  %v1170_v49 = vmul.f32 -0.5, %v12493_v14  ;;  %v5678_v32 = vmul.f32 0.6931472, %v3423_v42  ;;  %v1164_v59 = vand.u32 2147483647, %v12492_v37  ;;  %v3427_v8 = vpop.eup %3426 }
 0x178   :  { %12508 = vst [vmem:[#allocation87_spill] sm:$0xff] %v12507_v46  ;;  %12510 = vst [vmem:[#allocation372_spill] sm:$0xff] %v5681_v20  ;;  %v1162_v41 = vadd.f32 1.0, %v1161_v18  ;;  %v1179_v58 = vmul.f32 -0.5, %v12505_v12  ;;  %v1185_v13 = vadd.f32 1.0, %v12511_v36  ;;  %3436 = vlog2.f32 %v1176_v34  ;;  %v12513_v4 = vld [vmem:[#allocation90_spill] sm:$0xff] }
 0x179   :  { %12509 = vst [vmem:[#allocation371_spill] sm:$0xff] %v5678_v32  ;;  %v5690_v50 = vmul.f32 0.6931472, %v3425_v16  ;;  %v1173_v42 = vand.u32 2147483647, %v12493_v14  ;;  %v1194_v52 = vadd.f32 1.0, %v12513_v4  ;;  %v3429_v2 = vpop.eup %3428  ;;  %v5695_v5 = vmul.f32 %v1153_v45, %v12486_v30 }
 0x17a   :  { %vm5697_vm9 = vcmp.lt.f32.partialorder %v1155_v28, 0.0004427343  ;;  %v12515_v44 = vmov 0  ;;  %v1171_v18 = vadd.f32 1.0, %v1170_v49  ;;  %v1188_v19 = vmul.f32 -0.5, %v12511_v36  ;;  %v12521_v30 = vld [vmem:[#allocation91_spill] sm:$0xff]  ;;  %v3431_v28 = vpop.eup %3430 }
 0x17b   :  { %12512 = vst [vmem:[#allocation88_spill] sm:$0xff] %v5690_v50  ;;  %12514 = vst [vmem:[#allocation90_spill] sm:$0xff] %v5695_v5  ;;  %v12516_v44 = vsel %vm5697_vm9, 4294967295, %v12515_v44  ;;  %vm5706_vm13 = vcmp.lt.f32.partialorder %v1164_v59, 0.0004427343  ;;  %v12518_v34 = vmov 0  ;;  %v5715_v49 = vmul.f32 %v1162_v41, %v12492_v37 }
 0x17c   :  { %12517 = vst [vmem:[#allocation373_spill] sm:$0xff] %v12516_v44  ;;  %v12519_v34 = vsel %vm5706_vm13, 4294967295, %v12518_v34  ;;  %v1182_v10 = vand.u32 2147483647, %v12505_v12  ;;  %v1203_v45 = vadd.f32 1.0, %v12521_v30  ;;  %v1180_v62 = vadd.f32 1.0, %v1179_v58 }
 0x17d   :  { %12520 = vst [vmem:[#allocation374_spill] sm:$0xff] %v12519_v34  ;;  %v5712_v55 = vmul.f32 0.6931472, %v3427_v8  ;;  %12523 = vst [vmem:[#allocation375_spill] sm:$0xff] %v5715_v49  ;;  %3438 = vlog2.f32 %v1185_v13  ;;  %v5721_v16 = vmul.f32 0.6931472, %v3429_v2  ;;  %v5729_v9 = vmul.f32 %v1171_v18, %v12493_v14 }
 0x17e   :  { %vm5723_vm15 = vcmp.lt.f32.partialorder %v1173_v42, 0.0004427343  ;;  %v12525_v32 = vmov 0  ;;  %3440 = vlog2.f32 %v1194_v52  ;;  %v1197_v8 = vmul.f32 -0.5, %v12513_v4  ;;  %v12529_v41 = vld [vmem:[#allocation94_spill] sm:$0xff]  ;;  %v3433_v35 = vpop.eup %3432 }
 0x17f   :  { %12522 = vst [vmem:[#allocation91_spill] sm:$0xff] %v5712_v55  ;;  %12524 = vst [vmem:[#allocation376_spill] sm:$0xff] %v5721_v16  ;;  %v12526_v32 = vsel %vm5723_vm15, 4294967295, %v12525_v32  ;;  %v1189_v37 = vadd.f32 1.0, %v1188_v19  ;;  %v1191_v13 = vand.u32 2147483647, %v12511_v36  ;;  %3442 = vlog2.f32 %v1203_v45  ;;  %v3435_v52 = vpop.eup %3434 }
 0x180   :  { %12527 = vst [vmem:[#allocation377_spill] sm:$0xff] %v12526_v32  ;;  %12528 = vst [vmem:[#allocation378_spill] sm:$0xff] %v5729_v9  ;;  %v1212_v58 = vadd.f32 1.0, %v12529_v41  ;;  %v5733_v0 = vmul.f32 0.6931472, %v3431_v28  ;;  %v12531_v2 = vmov 0  ;;  %v5745_v19 = vmul.f32 %v1180_v62, %v12505_v12 }
 0x181   :  { %vm5735_vm12 = vcmp.lt.f32.partialorder %v1182_v10, 0.0004427343  ;;  %v1206_v42 = vmul.f32 -0.5, %v12521_v30  ;;  %v1215_v18 = vmul.f32 -0.5, %v12529_v41  ;;  %v12535_v28 = vld [vmem:[#allocation95_spill] sm:$0xff]  ;;  %v1198_v45 = vadd.f32 1.0, %v1197_v8 }
 0x182   :  { %12530 = vst [vmem:[#allocation94_spill] sm:$0xff] %v5733_v0  ;;  %v12532_v2 = vsel %vm5735_vm12, 4294967295, %v12531_v2  ;;  %12534 = vst [vmem:[#allocation380_spill] sm:$0xff] %v5745_v19  ;;  %v1221_v59 = vadd.f32 1.0, %v12535_v28  ;;  %v1200_v50 = vand.u32 2147483647, %v12513_v4  ;;  %v5758_v14 = vmul.f32 %v1189_v37, %v12511_v36  ;;  %v3437_v53 = vpop.eup %3436 }
 0x183   :  { %12533 = vst [vmem:[#allocation379_spill] sm:$0xff] %v12532_v2  ;;  %v1209_v17 = vand.u32 2147483647, %v12521_v30  ;;  %v5755_v57 = vmul.f32 0.6931472, %v3433_v35  ;;  %v12538_v62 = vmov 0  ;;  %3444 = vlog2.f32 %v1212_v58 }
 0x184   :  { %12537 = vst [vmem:[#allocation381_spill] sm:$0xff] %v5758_v14  ;;  %vm5760_vm11 = vcmp.lt.f32.partialorder %v1191_v13, 0.0004427343  ;;  %v12541_v12 = vld [vmem:[#allocation97_spill] sm:$0xff]  ;;  %v5769_v10 = vmul.f32 0.6931472, %v3435_v52  ;;  %3446 = vlog2.f32 %v1221_v59  ;;  %v5775_v58 = vmul.f32 %v1198_v45, %v12513_v4 }
 0x185   :  { %12536 = vst [vmem:[#allocation95_spill] sm:$0xff] %v5755_v57  ;;  %v12539_v62 = vsel %vm5760_vm11, 4294967295, %v12538_v62  ;;  %v1230_v55 = vadd.f32 1.0, %v12541_v12  ;;  %v1207_v35 = vadd.f32 1.0, %v1206_v42  ;;  %v1218_v16 = vand.u32 2147483647, %v12529_v41 }
 0x186   :  { %12540 = vst [vmem:[#allocation382_spill] sm:$0xff] %v12539_v62  ;;  %12542 = vst [vmem:[#allocation97_spill] sm:$0xff] %v5769_v10  ;;  %v1216_v36 = vadd.f32 1.0, %v1215_v18  ;;  %v1224_v37 = vmul.f32 -0.5, %v12535_v28  ;;  %v12543_v13 = vld [vmem:[#allocation98_spill] sm:$0xff]  ;;  %v12545_v46 = vmov 0 }
 0x187   :  { %v1239_v20 = vadd.f32 1.0, %v12543_v13  ;;  %12544 = vst [vmem:[#allocation98_spill] sm:$0xff] %v5775_v58  ;;  %vm5777_vm14 = vcmp.lt.f32.partialorder %v1200_v50, 0.0004427343  ;;  %vm5781_vm8 = vcmp.lt.f32.partialorder %v1209_v17, 0.0004427343  ;;  %v3439_v0 = vpop.eup %3438  ;;  %3448 = vlog2.f32 %v1230_v55 }
 0x188   :  { %v12546_v46 = vsel %vm5777_vm14, 4294967295, %v12545_v46  ;;  %v12548_v8 = vmov 0  ;;  %v12551_v42 = vld [vmem:[#allocation101_spill] sm:$0xff]  ;;  %v5790_v18 = vmul.f32 0.6931472, %v3437_v53  ;;  %v1233_v50 = vmul.f32 -0.5, %v12541_v12  ;;  %v3441_v4 = vpop.eup %3440 }
 0x189   :  { %12547 = vst [vmem:[#allocation383_spill] sm:$0xff] %v12546_v46  ;;  %v12549_v8 = vsel %vm5781_vm8, 4294967295, %v12548_v8  ;;  %v1248_v52 = vadd.f32 1.0, %v12551_v42  ;;  %v5794_v45 = vmul.f32 %v1207_v35, %v12521_v30  ;;  %v1227_v17 = vand.u32 2147483647, %v12535_v28  ;;  %v12554_v44 = vld [vmem:[#allocation102_spill] sm:$0xff]  ;;  %v3443_v35 = vpop.eup %3442 }
 0x18a   :  { %12550 = vst [vmem:[#allocation384_spill] sm:$0xff] %v12549_v8  ;;  %12552 = vst [vmem:[#allocation101_spill] sm:$0xff] %v5790_v18  ;;  %v1242_v5 = vmul.f32 -0.5, %v12543_v13  ;;  %v1257_v31 = vadd.f32 1.0, %v12554_v44  ;;  %v5804_v53 = vmul.f32 %v1216_v36, %v12529_v41  ;;  %vm5806_vm13 = vcmp.lt.f32.partialorder %v1218_v16, 0.0004427343 }
 0x18b   :  { %12553 = vst [vmem:[#allocation385_spill] sm:$0xff] %v5794_v45  ;;  %v12556_v55 = vmov 0  ;;  %v1225_v30 = vadd.f32 1.0, %v1224_v37  ;;  %3450 = vlog2.f32 %v1239_v20  ;;  %v5810_v57 = vmul.f32 0.6931472, %v3439_v0  ;;  %v12566_v41 = vld [vmem:[#allocation104_spill] sm:$0xff] }
 0x18c   :  { %12555 = vst [vmem:[#allocation102_spill] sm:$0xff] %v5804_v53  ;;  %v12557_v55 = vsel %vm5806_vm13, 4294967295, %v12556_v55  ;;  %v1236_v49 = vand.u32 2147483647, %v12541_v12  ;;  %3452 = vlog2.f32 %v1248_v52  ;;  %v1251_v34 = vmul.f32 -0.5, %v12551_v42  ;;  %v12570_v18 = vld [vmem:[#allocation105_spill] sm:$0xff] }
 0x18d   :  { %12558 = vst [vmem:[#allocation386_spill] sm:$0xff] %v12557_v55  ;;  %12559 = vst [vmem:[#allocation387_spill] sm:$0xff] %v5810_v57  ;;  %v5818_v36 = vmul.f32 0.6931472, %v3441_v4  ;;  %v1234_v16 = vadd.f32 1.0, %v1233_v50  ;;  %v12561_v20 = vmov 0  ;;  %3454 = vlog2.f32 %v1257_v31  ;;  %v3445_v52 = vpop.eup %3444 }
 0x18e   :  { %v1245_v59 = vand.u32 2147483647, %v12543_v13  ;;  %vm5821_vm15 = vcmp.lt.f32.partialorder %v1227_v17, 0.0004427343  ;;  %v1243_v0 = vadd.f32 1.0, %v1242_v5  ;;  %v5829_v9 = vmul.f32 %v1225_v30, %v12535_v28  ;;  %v3447_v19 = vpop.eup %3446  ;;  %v12580_v46 = vld [vmem:[#allocation107_spill] sm:$0xff] }
 0x18f   :  { %12560 = vst [vmem:[#allocation388_spill] sm:$0xff] %v5818_v36  ;;  %v12562_v20 = vsel %vm5821_vm15, 4294967295, %v12561_v20  ;;  %v1254_v37 = vand.u32 2147483647, %v12551_v42  ;;  %v5826_v10 = vmul.f32 0.6931472, %v3443_v35  ;;  %v5847_v30 = vmul.f32 %v1234_v16, %v12541_v12 }
 0x190   :  { %12563 = vst [vmem:[#allocation389_spill] sm:$0xff] %v12562_v20  ;;  %12565 = vst [vmem:[#allocation391_spill] sm:$0xff] %v5829_v9  ;;  %v1260_v4 = vmul.f32 -0.5, %v12554_v44  ;;  %v1266_v50 = vadd.f32 1.0, %v12566_v41  ;;  %vm5837_vm12 = vcmp.lt.f32.partialorder %v1236_v49, 0.0004427343 }
 0x191   :  { %12564 = vst [vmem:[#allocation390_spill] sm:$0xff] %v5826_v10  ;;  %v12567_v5 = vmov 0  ;;  %v1252_v31 = vadd.f32 1.0, %v1251_v34  ;;  %v1275_v35 = vadd.f32 1.0, %v12570_v18  ;;  %12571 = vst [vmem:[#allocation105_spill] sm:$0xff] %v5847_v30  ;;  %v12572_v2 = vmov 0  ;;  %v3449_v36 = vpop.eup %3448 }
 0x192   :  { %v12568_v5 = vsel %vm5837_vm12, 4294967295, %v12567_v5  ;;  %vm5849_vm9 = vcmp.lt.f32.partialorder %v1245_v59, 0.0004427343  ;;  %v1269_v49 = vmul.f32 -0.5, %v12566_v41  ;;  %v5854_v17 = vmul.f32 0.6931472, %v3445_v52 }
 0x193   :  { %12569 = vst [vmem:[#allocation104_spill] sm:$0xff] %v12568_v5  ;;  %v12573_v2 = vsel %vm5849_vm9, 4294967295, %v12572_v2  ;;  %v5857_v34 = vmul.f32 %v1243_v0, %v12543_v13  ;;  %vm5859_vm11 = vcmp.lt.f32.partialorder %v1254_v37, 0.0004427343  ;;  %v12577_v57 = vmov 0  ;;  %v12583_v8 = vld [vmem:[#allocation108_spill] sm:$0xff] }
 0x194   :  { %12574 = vst [vmem:[#allocation392_spill] sm:$0xff] %v12573_v2  ;;  %12575 = vst [vmem:[#allocation393_spill] sm:$0xff] %v5854_v17  ;;  %v12578_v57 = vsel %vm5859_vm11, 4294967295, %v12577_v57  ;;  %v1284_v28 = vadd.f32 1.0, %v12580_v46  ;;  %v1261_v59 = vadd.f32 1.0, %v1260_v4  ;;  %3456 = vlog2.f32 %v1266_v50  ;;  %v12589_v10 = vld [vmem:[#allocation110_spill] sm:$0xff] }
 0x195   :  { %12576 = vst [vmem:[#allocation394_spill] sm:$0xff] %v5857_v34  ;;  %12579 = vst [vmem:[#allocation395_spill] sm:$0xff] %v12578_v57  ;;  %v1263_v16 = vand.u32 2147483647, %v12554_v44  ;;  %v5869_v52 = vmul.f32 0.6931472, %v3447_v19  ;;  %v5872_v13 = vmul.f32 %v1252_v31, %v12551_v42  ;;  %3458 = vlog2.f32 %v1275_v35  ;;  %v3451_v37 = vpop.eup %3450 }
 0x196   :  { %v1278_v0 = vmul.f32 -0.5, %v12570_v18  ;;  %v1270_v58 = vadd.f32 1.0, %v1269_v49  ;;  %v1272_v14 = vand.u32 2147483647, %v12566_v41  ;;  %v1287_v62 = vmul.f32 -0.5, %v12580_v46  ;;  %v3453_v4 = vpop.eup %3452  ;;  %v12608_v2 = vld [vmem:[#allocation114_spill] sm:$0xff] }
 0x197   :  { %12581 = vst [vmem:[#allocation107_spill] sm:$0xff] %v5869_v52  ;;  %12582 = vst [vmem:[#allocation396_spill] sm:$0xff] %v5872_v13  ;;  %v1293_v12 = vadd.f32 1.0, %v12583_v8  ;;  %v5882_v50 = vmul.f32 0.6931472, %v3449_v36  ;;  %3460 = vlog2.f32 %v1284_v28  ;;  %v5886_v31 = vmul.f32 %v1261_v59, %v12554_v44  ;;  %v3455_v32 = vpop.eup %3454 }
 0x198   :  { %v1281_v42 = vand.u32 2147483647, %v12570_v18  ;;  %vm5888_vm8 = vcmp.lt.f32.partialorder %v1263_v16, 0.0004427343  ;;  %v12586_v35 = vmov 0  ;;  %v1296_v49 = vmul.f32 -0.5, %v12583_v8 }
 0x199   :  { %12584 = vst [vmem:[#allocation108_spill] sm:$0xff] %v5882_v50  ;;  %12585 = vst [vmem:[#allocation397_spill] sm:$0xff] %v5886_v31  ;;  %v12587_v35 = vsel %vm5888_vm8, 4294967295, %v12586_v35  ;;  %v1302_v45 = vadd.f32 1.0, %v12589_v10  ;;  %v5898_v19 = vmul.f32 0.6931472, %v3451_v37  ;;  %v5904_v16 = vmul.f32 %v1270_v58, %v12566_v41 }
 0x19a   :  { %12588 = vst [vmem:[#allocation398_spill] sm:$0xff] %v12587_v35  ;;  %v1279_v28 = vadd.f32 1.0, %v1278_v0  ;;  %v1290_v44 = vand.u32 2147483647, %v12580_v46  ;;  %v5901_v59 = vmul.f32 0.6931472, %v3453_v4  ;;  %3462 = vlog2.f32 %v1293_v12 }
 0x19b   :  { %12590 = vst [vmem:[#allocation110_spill] sm:$0xff] %v5898_v19  ;;  %12592 = vst [vmem:[#allocation400_spill] sm:$0xff] %v5904_v16  ;;  %vm5906_vm13 = vcmp.lt.f32.partialorder %v1272_v14, 0.0004427343  ;;  %v12593_v17 = vmov 0  ;;  %v1288_v53 = vadd.f32 1.0, %v1287_v62  ;;  %3464 = vlog2.f32 %v1302_v45 }
 0x19c   :  { %12591 = vst [vmem:[#allocation399_spill] sm:$0xff] %v5901_v59  ;;  %v12594_v17 = vsel %vm5906_vm13, 4294967295, %v12593_v17  ;;  %vm5914_vm15 = vcmp.lt.f32.partialorder %v1281_v42, 0.0004427343  ;;  %v12596_v0 = vmov 0  ;;  %v1305_v58 = vmul.f32 -0.5, %v12589_v10 }
 0x19d   :  { %12595 = vst [vmem:[#allocation401_spill] sm:$0xff] %v12594_v17  ;;  %v12597_v0 = vsel %vm5914_vm15, 4294967295, %v12596_v0  ;;  %v1299_v4 = vand.u32 2147483647, %v12583_v8  ;;  %v12599_v41 = vld [vmem:[#allocation111_spill] sm:$0xff]  ;;  %v1297_v52 = vadd.f32 1.0, %v1296_v49  ;;  %v5929_v37 = vmul.f32 %v1279_v28, %v12570_v18 }
 0x19e   :  { %12598 = vst [vmem:[#allocation402_spill] sm:$0xff] %v12597_v0  ;;  %v1311_v14 = vadd.f32 1.0, %v12599_v41  ;;  %v5921_v36 = vmul.f32 0.6931472, %v3455_v32  ;;  %v12601_v62 = vld [vmem:[#allocation112_spill] sm:$0xff]  ;;  %v12603_v50 = vmov 0  ;;  %v3457_v32 = vpop.eup %3456  ;;  %v5941_v49 = vmul.f32 %v1288_v53, %v12580_v46 }
 0x19f   :  { %v1320_v12 = vadd.f32 1.0, %v12601_v62  ;;  %12602 = vst [vmem:[#allocation112_spill] sm:$0xff] %v5929_v37  ;;  %vm5931_vm12 = vcmp.lt.f32.partialorder %v1290_v44, 0.0004427343  ;;  %v1314_v30 = vmul.f32 -0.5, %v12599_v41  ;;  %v12607_v19 = vld [vmem:[#allocation113_spill] sm:$0xff]  ;;  %v3459_v28 = vpop.eup %3458  ;;  %v5952_v45 = vmul.f32 %v1297_v52, %v12583_v8 }
 0x1a0   :  { %12600 = vst [vmem:[#allocation111_spill] sm:$0xff] %v5921_v36  ;;  %v12604_v50 = vsel %vm5931_vm12, 4294967295, %v12603_v50  ;;  %12606 = vst [vmem:[#allocation404_spill] sm:$0xff] %v5941_v49  ;;  %v1308_v42 = vand.u32 2147483647, %v12589_v10  ;;  %v1329_v18 = vadd.f32 1.0, %v12607_v19  ;;  %3466 = vlog2.f32 %v1311_v14 }
 0x1a1   :  { %12605 = vst [vmem:[#allocation403_spill] sm:$0xff] %v12604_v50  ;;  %v1306_v44 = vadd.f32 1.0, %v1305_v58  ;;  %v1323_v34 = vmul.f32 -0.5, %v12601_v62  ;;  %v1338_v5 = vadd.f32 1.0, %v12608_v2  ;;  %12609 = vst [vmem:[#allocation113_spill] sm:$0xff] %v5952_v45  ;;  %v12610_v46 = vmov 0  ;;  %v3461_v53 = vpop.eup %3460 }
 0x1a2   :  { %vm5954_vm11 = vcmp.lt.f32.partialorder %v1299_v4, 0.0004427343  ;;  %3468 = vlog2.f32 %v1320_v12  ;;  %v5958_v58 = vmul.f32 0.6931472, %v3457_v32  ;;  %v1315_v14 = vadd.f32 1.0, %v1314_v30  ;;  %v12619_v12 = vld [vmem:[#allocation117_spill] sm:$0xff] }
 0x1a3   :  { %v12611_v46 = vsel %vm5954_vm11, 4294967295, %v12610_v46  ;;  %v1317_v59 = vand.u32 2147483647, %v12599_v41  ;;  %v1332_v13 = vmul.f32 -0.5, %v12607_v19  ;;  %v5962_v9 = vmul.f32 0.6931472, %v3459_v28 }
 0x1a4   :  { %12612 = vst [vmem:[#allocation114_spill] sm:$0xff] %v12611_v46  ;;  %12613 = vst [vmem:[#allocation405_spill] sm:$0xff] %v5958_v58  ;;  %vm5964_vm9 = vcmp.lt.f32.partialorder %v1308_v42, 0.0004427343  ;;  %v12615_v57 = vmov 0  ;;  %3470 = vlog2.f32 %v1329_v18  ;;  %v5970_v52 = vmul.f32 %v1306_v44, %v12589_v10  ;;  %v3463_v32 = vpop.eup %3462  ;;  %v12621_v31 = vld [vmem:[#allocation118_spill] sm:$0xff] }
 0x1a5   :  { %12614 = vst [vmem:[#allocation406_spill] sm:$0xff] %v5962_v9  ;;  %v12616_v57 = vsel %vm5964_vm9, 4294967295, %v12615_v57  ;;  %v1326_v8 = vand.u32 2147483647, %v12601_v62  ;;  %v1324_v4 = vadd.f32 1.0, %v1323_v34  ;;  %3472 = vlog2.f32 %v1338_v5  ;;  %v3465_v44 = vpop.eup %3464  ;;  %v12629_v58 = vld [vmem:[#allocation121_spill] sm:$0xff] }
 0x1a6   :  { %12617 = vst [vmem:[#allocation407_spill] sm:$0xff] %v12616_v57  ;;  %12618 = vst [vmem:[#allocation408_spill] sm:$0xff] %v5970_v52  ;;  %v1347_v30 = vadd.f32 1.0, %v12619_v12  ;;  %v5973_v36 = vmul.f32 0.6931472, %v3461_v53  ;;  %v1341_v42 = vmul.f32 -0.5, %v12608_v2  ;;  %v5983_v10 = vmul.f32 %v1315_v14, %v12599_v41 }
 0x1a7   :  { %v1335_v28 = vand.u32 2147483647, %v12607_v19  ;;  %v1356_v35 = vadd.f32 1.0, %v12621_v31  ;;  %vm5985_vm8 = vcmp.lt.f32.partialorder %v1317_v59, 0.0004427343  ;;  %v12623_v5 = vmov 0 }
 0x1a8   :  { %12620 = vst [vmem:[#allocation117_spill] sm:$0xff] %v5973_v36  ;;  %12622 = vst [vmem:[#allocation118_spill] sm:$0xff] %v5983_v10  ;;  %v12624_v5 = vsel %vm5985_vm8, 4294967295, %v12623_v5  ;;  %v1333_v34 = vadd.f32 1.0, %v1332_v13  ;;  %vm5993_vm14 = vcmp.lt.f32.partialorder %v1326_v8, 0.0004427343  ;;  %v6002_v59 = vmul.f32 %v1324_v4, %v12601_v62 }
 0x1a9   :  { %12625 = vst [vmem:[#allocation409_spill] sm:$0xff] %v12624_v5  ;;  %v12626_v20 = vmov 0  ;;  %v1350_v18 = vmul.f32 -0.5, %v12619_v12  ;;  %v1365_v41 = vadd.f32 1.0, %v12629_v58  ;;  %v5999_v14 = vmul.f32 0.6931472, %v3463_v32 }
 0x1aa   :  { %v12627_v20 = vsel %vm5993_vm14, 4294967295, %v12626_v20  ;;  %12631 = vst [vmem:[#allocation411_spill] sm:$0xff] %v6002_v59  ;;  %v1344_v13 = vand.u32 2147483647, %v12608_v2  ;;  %3474 = vlog2.f32 %v1347_v30  ;;  %vm6009_vm15 = vcmp.lt.f32.partialorder %v1335_v28, 0.0004427343  ;;  %v3467_v37 = vpop.eup %3466 }
 0x1ab   :  { %12628 = vst [vmem:[#allocation410_spill] sm:$0xff] %v12627_v20  ;;  %12630 = vst [vmem:[#allocation121_spill] sm:$0xff] %v5999_v14  ;;  %v12632_v53 = vmov 0  ;;  %v1342_v9 = vadd.f32 1.0, %v1341_v42  ;;  %3476 = vlog2.f32 %v1356_v35  ;;  %v6013_v32 = vmul.f32 0.6931472, %v3465_v44 }
 0x1ac   :  { %v12633_v53 = vsel %vm6009_vm15, 4294967295, %v12632_v53  ;;  %v6016_v62 = vmul.f32 %v1333_v34, %v12607_v19  ;;  %v1359_v4 = vmul.f32 -0.5, %v12621_v31  ;;  %v12637_v30 = vld [vmem:[#allocation122_spill] sm:$0xff]  ;;  %v3469_v16 = vpop.eup %3468  ;;  %v1351_v17 = vadd.f32 1.0, %v1350_v18  ;;  %v12641_v34 = vld [vmem:[#allocation123_spill] sm:$0xff]  ;;  %v12644_v50 = vld [vmem:[#allocation124_spill] sm:$0xff] }
 0x1ad   :  { %12634 = vst [vmem:[#allocation412_spill] sm:$0xff] %v12633_v53  ;;  %12635 = vst [vmem:[#allocation413_spill] sm:$0xff] %v6013_v32  ;;  %v1374_v0 = vadd.f32 1.0, %v12637_v30  ;;  %v1353_v8 = vand.u32 2147483647, %v12619_v12  ;;  %3478 = vlog2.f32 %v1365_v41  ;;  %v12638_v42 = vmov 0 }
 0x1ae   :  { %12636 = vst [vmem:[#allocation414_spill] sm:$0xff] %v6016_v62  ;;  %v1362_v28 = vand.u32 2147483647, %v12621_v31  ;;  %vm6026_vm12 = vcmp.lt.f32.partialorder %v1344_v13, 0.0004427343  ;;  %v1368_v19 = vmul.f32 -0.5, %v12629_v58  ;;  %v3471_v36 = vpop.eup %3470  ;;  %v6035_v49 = vmul.f32 %v1342_v9, %v12608_v2 }
 0x1af   :  { %v12639_v42 = vsel %vm6026_vm12, 4294967295, %v12638_v42  ;;  %v1383_v44 = vadd.f32 1.0, %v12641_v34  ;;  %v6032_v18 = vmul.f32 0.6931472, %v3467_v37  ;;  %v1377_v41 = vmul.f32 -0.5, %v12637_v30  ;;  %v3473_v46 = vpop.eup %3472 }
 0x1b0   :  { %12640 = vst [vmem:[#allocation122_spill] sm:$0xff] %v12639_v42  ;;  %12643 = vst [vmem:[#allocation415_spill] sm:$0xff] %v6035_v49  ;;  %v1392_v55 = vadd.f32 1.0, %v12644_v50  ;;  %v6043_v35 = vmul.f32 0.6931472, %v3469_v16  ;;  %v1360_v14 = vadd.f32 1.0, %v1359_v4  ;;  %3480 = vlog2.f32 %v1374_v0 }
 0x1b1   :  { %12642 = vst [vmem:[#allocation123_spill] sm:$0xff] %v6032_v18  ;;  %v6046_v37 = vmul.f32 %v1351_v17, %v12619_v12  ;;  %vm6048_vm11 = vcmp.lt.f32.partialorder %v1353_v8, 0.0004427343  ;;  %v12647_v9 = vmov 0  ;;  %vm6052_vm13 = vcmp.lt.f32.partialorder %v1362_v28, 0.0004427343 }
 0x1b2   :  { %12645 = vst [vmem:[#allocation124_spill] sm:$0xff] %v6043_v35  ;;  %v12648_v9 = vsel %vm6048_vm11, 4294967295, %v12647_v9  ;;  %v12650_v2 = vmov 0  ;;  %v1371_v45 = vand.u32 2147483647, %v12629_v58  ;;  %v1386_v57 = vmul.f32 -0.5, %v12641_v34 }
 0x1b3   :  { %12646 = vst [vmem:[#allocation416_spill] sm:$0xff] %v6046_v37  ;;  %12649 = vst [vmem:[#allocation417_spill] sm:$0xff] %v12648_v9  ;;  %v12651_v2 = vsel %vm6052_vm13, 4294967295, %v12650_v2  ;;  %v6058_v13 = vmul.f32 0.6931472, %v3471_v36  ;;  %v1369_v16 = vadd.f32 1.0, %v1368_v19  ;;  %3482 = vlog2.f32 %v1383_v44 }
 0x1b4   :  { %12652 = vst [vmem:[#allocation418_spill] sm:$0xff] %v12651_v2  ;;  %v1380_v0 = vand.u32 2147483647, %v12637_v30  ;;  %v6065_v12 = vmul.f32 0.6931472, %v3473_v46  ;;  %v1378_v8 = vadd.f32 1.0, %v1377_v41  ;;  %3484 = vlog2.f32 %v1392_v55  ;;  %v3475_v4 = vpop.eup %3474 }
 0x1b5   :  { %12653 = vst [vmem:[#allocation419_spill] sm:$0xff] %v6058_v13  ;;  %v6072_v28 = vmul.f32 %v1360_v14, %v12621_v31  ;;  %v1395_v19 = vmul.f32 -0.5, %v12644_v50  ;;  %v12656_v44 = vld [vmem:[#allocation125_spill] sm:$0xff]  ;;  %v3477_v52 = vpop.eup %3476  ;;  %vm6076_vm9 = vcmp.lt.f32.partialorder %v1371_v45, 0.0004427343  ;;  %v12657_v17 = vmov 0 }
 0x1b6   :  { %12654 = vst [vmem:[#allocation420_spill] sm:$0xff] %v6065_v12  ;;  %v1401_v32 = vadd.f32 1.0, %v12656_v44  ;;  %v12658_v17 = vsel %vm6076_vm9, 4294967295, %v12657_v17  ;;  %v1387_v46 = vadd.f32 1.0, %v1386_v57  ;;  %v1389_v55 = vand.u32 2147483647, %v12641_v34 }
 0x1b7   :  { %12655 = vst [vmem:[#allocation421_spill] sm:$0xff] %v6072_v28  ;;  %12659 = vst [vmem:[#allocation125_spill] sm:$0xff] %v12658_v17  ;;  %v12660_v41 = vld [vmem:[#allocation126_spill] sm:$0xff]  ;;  %v6087_v14 = vmul.f32 %v1369_v16, %v12629_v58  ;;  %vm6089_vm14 = vcmp.lt.f32.partialorder %v1380_v0, 0.0004427343  ;;  %v12662_v36 = vmov 0  ;;  %v3479_v35 = vpop.eup %3478  ;;  %v6099_v59 = vmul.f32 %v1378_v8, %v12637_v30 }
 0x1b8   :  { %v1410_v18 = vadd.f32 1.0, %v12660_v41  ;;  %v12663_v36 = vsel %vm6089_vm14, 4294967295, %v12662_v36  ;;  %v1404_v45 = vmul.f32 -0.5, %v12656_v44  ;;  %v1398_v31 = vand.u32 2147483647, %v12644_v50  ;;  %v12666_v13 = vld [vmem:[#allocation127_spill] sm:$0xff] }
 0x1b9   :  { %12661 = vst [vmem:[#allocation126_spill] sm:$0xff] %v6087_v14  ;;  %12664 = vst [vmem:[#allocation422_spill] sm:$0xff] %v12663_v36  ;;  %v1419_v58 = vadd.f32 1.0, %v12666_v13  ;;  %v6103_v16 = vmul.f32 0.6931472, %v3475_v4  ;;  %v1396_v62 = vadd.f32 1.0, %v1395_v19  ;;  %3486 = vlog2.f32 %v1401_v32 }
 0x1ba   :  { %12665 = vst [vmem:[#allocation423_spill] sm:$0xff] %v6099_v59  ;;  %v6105_v0 = vmul.f32 0.6931472, %v3477_v52  ;;  %v6108_v53 = vmul.f32 %v1387_v46, %v12641_v34  ;;  %vm6110_vm15 = vcmp.lt.f32.partialorder %v1389_v55, 0.0004427343  ;;  %v12670_v20 = vmov 0  ;;  %v3481_v12 = vpop.eup %3480 }
 0x1bb   :  { %12667 = vst [vmem:[#allocation127_spill] sm:$0xff] %v6103_v16  ;;  %v12671_v20 = vsel %vm6110_vm15, 4294967295, %v12670_v20  ;;  %3488 = vlog2.f32 %v1410_v18  ;;  %v1413_v30 = vmul.f32 -0.5, %v12660_v41  ;;  %v12673_v8 = vld [vmem:[#allocation128_spill] sm:$0xff]  ;;  %v6116_v49 = vmul.f32 0.6931472, %v3479_v35 }
 0x1bc   :  { %12668 = vst [vmem:[#allocation424_spill] sm:$0xff] %v6105_v0  ;;  %12669 = vst [vmem:[#allocation425_spill] sm:$0xff] %v6108_v53  ;;  %v1428_v57 = vadd.f32 1.0, %v12673_v8  ;;  %v1405_v4 = vadd.f32 1.0, %v1404_v45  ;;  %v1407_v52 = vand.u32 2147483647, %v12656_v44  ;;  %3490 = vlog2.f32 %v1419_v58 }
 0x1bd   :  { %12672 = vst [vmem:[#allocation426_spill] sm:$0xff] %v12671_v20  ;;  %12674 = vst [vmem:[#allocation128_spill] sm:$0xff] %v6116_v49  ;;  %v1422_v32 = vmul.f32 -0.5, %v12666_v13  ;;  %vm6120_vm12 = vcmp.lt.f32.partialorder %v1398_v31, 0.0004427343  ;;  %v12675_v34 = vmov 0  ;;  %v3483_v55 = vpop.eup %3482  ;;  %v6135_v31 = vmul.f32 %v1396_v62, %v12644_v50 }
 0x1be   :  { %v12676_v34 = vsel %vm6120_vm12, 4294967295, %v12675_v34  ;;  %v1416_v19 = vand.u32 2147483647, %v12660_v41  ;;  %v12678_v18 = vld [vmem:[#allocation129_spill] sm:$0xff]  ;;  %v1431_v42 = vmul.f32 -0.5, %v12673_v8  ;;  %v3485_v10 = vpop.eup %3484  ;;  %v1414_v5 = vadd.f32 1.0, %v1413_v30 }
 0x1bf   :  { %12677 = vst [vmem:[#allocation427_spill] sm:$0xff] %v12676_v34  ;;  %v1437_v46 = vadd.f32 1.0, %v12678_v18  ;;  %12679 = vst [vmem:[#allocation129_spill] sm:$0xff] %v6135_v31  ;;  %v6138_v58 = vmul.f32 0.6931472, %v3481_v12  ;;  %3492 = vlog2.f32 %v1428_v57  ;;  %v6146_v2 = vmul.f32 %v1405_v4, %v12656_v44  ;;  %v12688_v57 = vld [vmem:[#allocation130_spill] sm:$0xff] }
 0x1c0   :  { %v1425_v54 = vand.u32 2147483647, %v12666_v13  ;;  %vm6148_vm13 = vcmp.lt.f32.partialorder %v1407_v52, 0.0004427343  ;;  %v12682_v50 = vmov 0  ;;  %v1423_v62 = vadd.f32 1.0, %v1422_v32 }
 0x1c1   :  { %12680 = vst [vmem:[#allocation428_spill] sm:$0xff] %v6138_v58  ;;  %12681 = vst [vmem:[#allocation429_spill] sm:$0xff] %v6146_v2  ;;  %v12683_v50 = vsel %vm6148_vm13, 4294967295, %v12682_v50  ;;  %vm6152_vm11 = vcmp.lt.f32.partialorder %v1416_v19, 0.0004427343  ;;  %v12685_v12 = vmov 0  ;;  %3494 = vlog2.f32 %v1437_v46 }
 0x1c2   :  { %12684 = vst [vmem:[#allocation430_spill] sm:$0xff] %v12683_v50  ;;  %v12686_v12 = vsel %vm6152_vm11, 4294967295, %v12685_v12  ;;  %v1434_v30 = vand.u32 2147483647, %v12673_v8  ;;  %v1446_v45 = vadd.f32 1.0, %v12688_v57  ;;  %v1432_v44 = vadd.f32 1.0, %v1431_v42 }
 0x1c3   :  { %12687 = vst [vmem:[#allocation431_spill] sm:$0xff] %v12686_v12  ;;  %v6158_v0 = vmul.f32 0.6931472, %v3483_v55  ;;  %v6160_v35 = vmul.f32 0.6931472, %v3485_v10  ;;  %v1440_v4 = vmul.f32 -0.5, %v12678_v18  ;;  %v6168_v32 = vmul.f32 %v1414_v5, %v12660_v41  ;;  %v3487_v49 = vpop.eup %3486 }
 0x1c4   :  { %vm6170_vm9 = vcmp.lt.f32.partialorder %v1425_v54, 0.0004427343  ;;  %v12692_v19 = vmov 0  ;;  %v12695_v46 = vld [vmem:[#allocation131_spill] sm:$0xff]  ;;  %v6176_v10 = vmul.f32 %v1423_v62, %v12666_v13  ;;  %v1443_v42 = vand.u32 2147483647, %v12678_v18 }
 0x1c5   :  { %12689 = vst [vmem:[#allocation130_spill] sm:$0xff] %v6158_v0  ;;  %12690 = vst [vmem:[#allocation432_spill] sm:$0xff] %v6160_v35  ;;  %v12693_v19 = vsel %vm6170_vm9, 4294967295, %v12692_v19  ;;  %v1455_v55 = vadd.f32 1.0, %v12695_v46  ;;  %v1449_v14 = vmul.f32 -0.5, %v12688_v57  ;;  %v12697_v17 = vld [vmem:[#allocation132_spill] sm:$0xff]  ;;  %v3489_v52 = vpop.eup %3488  ;;  %3496 = vlog2.f32 %v1446_v45 }
 0x1c6   :  { %12691 = vst [vmem:[#allocation433_spill] sm:$0xff] %v6168_v32  ;;  %12694 = vst [vmem:[#allocation434_spill] sm:$0xff] %v12693_v19  ;;  %v1464_v36 = vadd.f32 1.0, %v12697_v17  ;;  %vm6181_vm14 = vcmp.lt.f32.partialorder %v1434_v30, 0.0004427343  ;;  %v12698_v5 = vmov 0  ;;  %v6196_v30 = vmul.f32 %v1432_v44, %v12673_v8  ;;  %v3491_v28 = vpop.eup %3490 }
 0x1c7   :  { %12696 = vst [vmem:[#allocation131_spill] sm:$0xff] %v6176_v10  ;;  %v12699_v5 = vsel %vm6181_vm14, 4294967295, %v12698_v5  ;;  %v1458_v54 = vmul.f32 -0.5, %v12695_v46  ;;  %v12701_v41 = vld [vmem:[#allocation133_spill] sm:$0xff]  ;;  %v1441_v59 = vadd.f32 1.0, %v1440_v4  ;;  %3498 = vlog2.f32 %v1455_v55  ;;  %v12710_v31 = vld [vmem:[#allocation135_spill] sm:$0xff] }
 0x1c8   :  { %12700 = vst [vmem:[#allocation132_spill] sm:$0xff] %v12699_v5  ;;  %v1473_v58 = vadd.f32 1.0, %v12701_v41  ;;  %12702 = vst [vmem:[#allocation133_spill] sm:$0xff] %v6196_v30  ;;  %v6198_v45 = vmul.f32 0.6931472, %v3487_v49  ;;  %v1467_v37 = vmul.f32 -0.5, %v12697_v17  ;;  %3500 = vlog2.f32 %v1464_v36 }
 0x1c9   :  { %v1452_v16 = vand.u32 2147483647, %v12688_v57  ;;  %v6202_v9 = vmul.f32 0.6931472, %v3489_v52  ;;  %vm6204_vm15 = vcmp.lt.f32.partialorder %v1443_v42, 0.0004427343  ;;  %v3493_v62 = vpop.eup %3492 }
 0x1ca   :  { %12703 = vst [vmem:[#allocation435_spill] sm:$0xff] %v6198_v45  ;;  %v12705_v13 = vmov 0  ;;  %v1450_v34 = vadd.f32 1.0, %v1449_v14  ;;  %v1459_v8 = vadd.f32 1.0, %v1458_v54  ;;  %v1461_v44 = vand.u32 2147483647, %v12695_v46 }
 0x1cb   :  { %12704 = vst [vmem:[#allocation436_spill] sm:$0xff] %v6202_v9  ;;  %v12706_v13 = vsel %vm6204_vm15, 4294967295, %v12705_v13  ;;  %3502 = vlog2.f32 %v1473_v58  ;;  %v12708_v49 = vld [vmem:[#allocation134_spill] sm:$0xff]  ;;  %v6210_v35 = vmul.f32 0.6931472, %v3491_v28  ;;  %v1476_v52 = vmul.f32 -0.5, %v12701_v41  ;;  %v3495_v0 = vpop.eup %3494 }
 0x1cc   :  { %12707 = vst [vmem:[#allocation437_spill] sm:$0xff] %v12706_v13  ;;  %v1482_v4 = vadd.f32 1.0, %v12708_v49  ;;  %v1470_v55 = vand.u32 2147483647, %v12697_v17  ;;  %v1491_v42 = vadd.f32 1.0, %v12710_v31  ;;  %v6220_v14 = vmul.f32 %v1441_v59, %v12678_v18  ;;  %v12721_v18 = vld [vmem:[#allocation136_spill] sm:$0xff] }
 0x1cd   :  { %12709 = vst [vmem:[#allocation134_spill] sm:$0xff] %v6210_v35  ;;  %vm6222_vm12 = vcmp.lt.f32.partialorder %v1452_v16, 0.0004427343  ;;  %v12712_v58 = vmov 0  ;;  %v1468_v28 = vadd.f32 1.0, %v1467_v37  ;;  %v6233_v20 = vmul.f32 %v1450_v34, %v12688_v57  ;;  %v12727_v9 = vld [vmem:[#allocation137_spill] sm:$0xff] }
 0x1ce   :  { %12711 = vst [vmem:[#allocation135_spill] sm:$0xff] %v6220_v14  ;;  %v12713_v58 = vsel %vm6222_vm12, 4294967295, %v12712_v58  ;;  %v6230_v53 = vmul.f32 0.6931472, %v3493_v62  ;;  %v1485_v36 = vmul.f32 -0.5, %v12708_v49  ;;  %v6237_v59 = vmul.f32 %v1459_v8, %v12695_v46  ;;  %v12731_v35 = vld [vmem:[#allocation138_spill] sm:$0xff] }
 0x1cf   :  { %12714 = vst [vmem:[#allocation438_spill] sm:$0xff] %v12713_v58  ;;  %12716 = vst [vmem:[#allocation440_spill] sm:$0xff] %v6233_v20  ;;  %vm6239_vm13 = vcmp.lt.f32.partialorder %v1461_v44, 0.0004427343  ;;  %v12718_v16 = vmov 0  ;;  %3504 = vlog2.f32 %v1482_v4  ;;  %v1500_v12 = vadd.f32 1.0, %v12721_v18  ;;  %v3497_v8 = vpop.eup %3496 }
 0x1d0   :  { %12715 = vst [vmem:[#allocation439_spill] sm:$0xff] %v6230_v53  ;;  %12717 = vst [vmem:[#allocation441_spill] sm:$0xff] %v6237_v59  ;;  %v12719_v16 = vsel %vm6239_vm13, 4294967295, %v12718_v16  ;;  %v1479_v37 = vand.u32 2147483647, %v12701_v41  ;;  %v12723_v62 = vmov 0  ;;  %3506 = vlog2.f32 %v1491_v42 }
 0x1d1   :  { %12720 = vst [vmem:[#allocation442_spill] sm:$0xff] %v12719_v16  ;;  %v6249_v57 = vmul.f32 0.6931472, %v3495_v0  ;;  %vm6251_vm11 = vcmp.lt.f32.partialorder %v1470_v55, 0.0004427343  ;;  %v1477_v46 = vadd.f32 1.0, %v1476_v52  ;;  %v6256_v44 = vmul.f32 %v1468_v28, %v12697_v17  ;;  %v3499_v42 = vpop.eup %3498 }
 0x1d2   :  { %v12724_v62 = vsel %vm6251_vm11, 4294967295, %v12723_v62  ;;  %v1488_v4 = vand.u32 2147483647, %v12708_v49  ;;  %v1494_v54 = vmul.f32 -0.5, %v12710_v31  ;;  %v1509_v32 = vadd.f32 1.0, %v12727_v9  ;;  %v3501_v19 = vpop.eup %3500  ;;  %v12763_v59 = vld [vmem:[#allocation144_spill] sm:$0xff] }
 0x1d3   :  { %12722 = vst [vmem:[#allocation136_spill] sm:$0xff] %v6249_v57  ;;  %12725 = vst [vmem:[#allocation443_spill] sm:$0xff] %v12724_v62  ;;  %v1486_v55 = vadd.f32 1.0, %v1485_v36  ;;  %v1497_v34 = vand.u32 2147483647, %v12710_v31  ;;  %v1503_v52 = vmul.f32 -0.5, %v12721_v18  ;;  %3508 = vlog2.f32 %v1500_v12 }
 0x1d4   :  { %12726 = vst [vmem:[#allocation444_spill] sm:$0xff] %v6256_v44  ;;  %vm6267_vm9 = vcmp.lt.f32.partialorder %v1479_v37, 0.0004427343  ;;  %v12728_v17 = vmov 0  ;;  %v1512_v28 = vmul.f32 -0.5, %v12727_v9  ;;  %v1518_v10 = vadd.f32 1.0, %v12731_v35 }
 0x1d5   :  { %v12729_v17 = vsel %vm6267_vm9, 4294967295, %v12728_v17  ;;  %v6277_v0 = vmul.f32 0.6931472, %v3497_v8  ;;  %v6280_v53 = vmul.f32 %v1477_v46, %v12701_v41  ;;  %v12734_v37 = vld [vmem:[#allocation139_spill] sm:$0xff]  ;;  %v3503_v5 = vpop.eup %3502  ;;  %vm6283_vm14 = vcmp.lt.f32.partialorder %v1488_v4, 0.0004427343 }
 0x1d6   :  { %12730 = vst [vmem:[#allocation137_spill] sm:$0xff] %v12729_v17  ;;  %v1527_v30 = vadd.f32 1.0, %v12734_v37  ;;  %v12735_v12 = vmov 0  ;;  %v1495_v45 = vadd.f32 1.0, %v1494_v54  ;;  %v1506_v2 = vand.u32 2147483647, %v12721_v18 }
 0x1d7   :  { %12732 = vst [vmem:[#allocation138_spill] sm:$0xff] %v6277_v0  ;;  %12733 = vst [vmem:[#allocation445_spill] sm:$0xff] %v6280_v53  ;;  %v12736_v12 = vsel %vm6283_vm14, 4294967295, %v12735_v12  ;;  %3510 = vlog2.f32 %v1509_v32  ;;  %v6288_v50 = vmul.f32 0.6931472, %v3499_v42  ;;  %v6291_v36 = vmul.f32 %v1486_v55, %v12708_v49 }
 0x1d8   :  { %12737 = vst [vmem:[#allocation139_spill] sm:$0xff] %v12736_v12  ;;  %vm6293_vm15 = vcmp.lt.f32.partialorder %v1497_v34, 0.0004427343  ;;  %v12740_v8 = vmov 0  ;;  %v1504_v41 = vadd.f32 1.0, %v1503_v52  ;;  %v1513_v4 = vadd.f32 1.0, %v1512_v28 }
 0x1d9   :  { %12738 = vst [vmem:[#allocation446_spill] sm:$0xff] %v6288_v50  ;;  %12739 = vst [vmem:[#allocation447_spill] sm:$0xff] %v6291_v36  ;;  %v12741_v8 = vsel %vm6293_vm15, 4294967295, %v12740_v8  ;;  %v6297_v46 = vmul.f32 0.6931472, %v3501_v19  ;;  %3512 = vlog2.f32 %v1518_v10  ;;  %v1521_v49 = vmul.f32 -0.5, %v12731_v35  ;;  %v3505_v34 = vpop.eup %3504 }
 0x1da   :  { %12742 = vst [vmem:[#allocation448_spill] sm:$0xff] %v12741_v8  ;;  %v1515_v57 = vand.u32 2147483647, %v12727_v9  ;;  %v6304_v54 = vmul.f32 0.6931472, %v3503_v5  ;;  %3514 = vlog2.f32 %v1527_v30  ;;  %v6308_v55 = vmul.f32 %v1495_v45, %v12710_v31  ;;  %v12749_v52 = vld [vmem:[#allocation140_spill] sm:$0xff]  ;;  %v3507_v28 = vpop.eup %3506 }
 0x1db   :  { %12743 = vst [vmem:[#allocation449_spill] sm:$0xff] %v6297_v46  ;;  %vm6310_vm8 = vcmp.lt.f32.partialorder %v1506_v2, 0.0004427343  ;;  %v12746_v19 = vmov 0  ;;  %v1530_v10 = vmul.f32 -0.5, %v12734_v37  ;;  %v1536_v42 = vadd.f32 1.0, %v12749_v52 }
 0x1dc   :  { %12744 = vst [vmem:[#allocation450_spill] sm:$0xff] %v6304_v54  ;;  %12745 = vst [vmem:[#allocation451_spill] sm:$0xff] %v6308_v55  ;;  %v12747_v19 = vsel %vm6310_vm8, 4294967295, %v12746_v19  ;;  %v6321_v30 = vmul.f32 %v1504_v41, %v12721_v18  ;;  %v1524_v31 = vand.u32 2147483647, %v12731_v35  ;;  %v12751_v45 = vld [vmem:[#allocation141_spill] sm:$0xff]  ;;  %v6330_v0 = vmul.f32 %v1513_v4, %v12727_v9 }
 0x1dd   :  { %12748 = vst [vmem:[#allocation452_spill] sm:$0xff] %v12747_v19  ;;  %v1545_v2 = vadd.f32 1.0, %v12751_v45  ;;  %vm6332_vm12 = vcmp.lt.f32.partialorder %v1515_v57, 0.0004427343  ;;  %v12753_v20 = vmov 0  ;;  %v1539_v5 = vmul.f32 -0.5, %v12749_v52  ;;  %v3509_v32 = vpop.eup %3508 }
 0x1de   :  { %12750 = vst [vmem:[#allocation140_spill] sm:$0xff] %v6321_v30  ;;  %12752 = vst [vmem:[#allocation141_spill] sm:$0xff] %v6330_v0  ;;  %v12754_v20 = vsel %vm6332_vm12, 4294967295, %v12753_v20  ;;  %v6341_v41 = vmul.f32 0.6931472, %v3505_v34  ;;  %v1522_v50 = vadd.f32 1.0, %v1521_v49  ;;  %3516 = vlog2.f32 %v1536_v42 }
 0x1df   :  { %12755 = vst [vmem:[#allocation453_spill] sm:$0xff] %v12754_v20  ;;  %v1533_v62 = vand.u32 2147483647, %v12734_v37  ;;  %v6344_v46 = vmul.f32 0.6931472, %v3507_v28  ;;  %v1531_v9 = vadd.f32 1.0, %v1530_v10  ;;  %3518 = vlog2.f32 %v1545_v2 }
 0x1e0   :  { %12756 = vst [vmem:[#allocation454_spill] sm:$0xff] %v6341_v41  ;;  %v12758_v57 = vld [vmem:[#allocation142_spill] sm:$0xff]  ;;  %vm6347_vm11 = vcmp.lt.f32.partialorder %v1524_v31, 0.0004427343  ;;  %v12759_v44 = vmov 0  ;;  %v1548_v17 = vmul.f32 -0.5, %v12751_v45  ;;  %v6363_v2 = vmul.f32 %v1522_v50, %v12731_v35 }
 0x1e1   :  { %12757 = vst [vmem:[#allocation455_spill] sm:$0xff] %v6344_v46  ;;  %v1554_v4 = vadd.f32 1.0, %v12758_v57  ;;  %v12760_v44 = vsel %vm6347_vm11, 4294967295, %v12759_v44  ;;  %v12762_v18 = vld [vmem:[#allocation143_spill] sm:$0xff]  ;;  %v3511_v54 = vpop.eup %3510  ;;  %v1540_v49 = vadd.f32 1.0, %v1539_v5  ;;  %v1557_v28 = vmul.f32 -0.5, %v12758_v57 }
 0x1e2   :  { %12761 = vst [vmem:[#allocation142_spill] sm:$0xff] %v12760_v44  ;;  %v1563_v34 = vadd.f32 1.0, %v12762_v18  ;;  %v1542_v53 = vand.u32 2147483647, %v12749_v52  ;;  %v1572_v10 = vadd.f32 1.0, %v12763_v59  ;;  %12765 = vst [vmem:[#allocation144_spill] sm:$0xff] %v6363_v2  ;;  %v6374_v14 = vmul.f32 %v1531_v9, %v12734_v37 }
 0x1e3   :  { %v6360_v31 = vmul.f32 0.6931472, %v3509_v32  ;;  %vm6365_vm9 = vcmp.lt.f32.partialorder %v1533_v62, 0.0004427343  ;;  %v12766_v16 = vmov 0  ;;  %v3513_v5 = vpop.eup %3512  ;;  %3520 = vlog2.f32 %v1554_v4  ;;  %v12776_v4 = vld [vmem:[#allocation145_spill] sm:$0xff] }
 0x1e4   :  { %v12767_v16 = vsel %vm6365_vm9, 4294967295, %v12766_v16  ;;  %12769 = vst [vmem:[#allocation457_spill] sm:$0xff] %v6374_v14  ;;  %v1566_v32 = vmul.f32 -0.5, %v12762_v18  ;;  %v3515_v42 = vpop.eup %3514  ;;  %v6377_v41 = vmul.f32 0.6931472, %v3511_v54  ;;  %v1549_v35 = vadd.f32 1.0, %v1548_v17 }
 0x1e5   :  { %12764 = vst [vmem:[#allocation143_spill] sm:$0xff] %v6360_v31  ;;  %12768 = vst [vmem:[#allocation456_spill] sm:$0xff] %v12767_v16  ;;  %v1551_v50 = vand.u32 2147483647, %v12751_v45  ;;  %3522 = vlog2.f32 %v1563_v34  ;;  %v6381_v62 = vmul.f32 %v1540_v49, %v12749_v52  ;;  %vm6383_vm14 = vcmp.lt.f32.partialorder %v1542_v53, 0.0004427343 }
 0x1e6   :  { %12770 = vst [vmem:[#allocation458_spill] sm:$0xff] %v6377_v41  ;;  %v12772_v36 = vmov 0  ;;  %v1558_v58 = vadd.f32 1.0, %v1557_v28  ;;  %v1560_v37 = vand.u32 2147483647, %v12758_v57  ;;  %3524 = vlog2.f32 %v1572_v10  ;;  %v12782_v31 = vld [vmem:[#allocation146_spill] sm:$0xff] }
 0x1e7   :  { %12771 = vst [vmem:[#allocation459_spill] sm:$0xff] %v6381_v62  ;;  %v12773_v36 = vsel %vm6383_vm14, 4294967295, %v12772_v36  ;;  %v6392_v17 = vmul.f32 0.6931472, %v3513_v5  ;;  %v1569_v9 = vand.u32 2147483647, %v12762_v18  ;;  %v6405_v54 = vmul.f32 %v1549_v35, %v12751_v45 }
 0x1e8   :  { %12774 = vst [vmem:[#allocation460_spill] sm:$0xff] %v12773_v36  ;;  %v1581_v52 = vadd.f32 1.0, %v12776_v4  ;;  %v6396_v34 = vmul.f32 0.6931472, %v3515_v42  ;;  %v1567_v53 = vadd.f32 1.0, %v1566_v32  ;;  %v1575_v49 = vmul.f32 -0.5, %v12763_v59  ;;  %v3517_v30 = vpop.eup %3516 }
 0x1e9   :  { %12775 = vst [vmem:[#allocation461_spill] sm:$0xff] %v6392_v17  ;;  %v1578_v28 = vand.u32 2147483647, %v12763_v59  ;;  %12778 = vst [vmem:[#allocation462_spill] sm:$0xff] %v6405_v54  ;;  %vm6407_vm8 = vcmp.lt.f32.partialorder %v1551_v50, 0.0004427343  ;;  %v6413_v32 = vmul.f32 %v1558_v58, %v12758_v57  ;;  %v3519_v45 = vpop.eup %3518 }
 0x1ea   :  { %12777 = vst [vmem:[#allocation145_spill] sm:$0xff] %v6396_v34  ;;  %v12779_v5 = vmov 0  ;;  %v1590_v42 = vadd.f32 1.0, %v12782_v31  ;;  %vm6415_vm15 = vcmp.lt.f32.partialorder %v1560_v37, 0.0004427343  ;;  %v12784_v19 = vmov 0 }
 0x1eb   :  { %v12780_v5 = vsel %vm6407_vm8, 4294967295, %v12779_v5  ;;  %12783 = vst [vmem:[#allocation146_spill] sm:$0xff] %v6413_v32  ;;  %v12785_v19 = vsel %vm6415_vm15, 4294967295, %v12784_v19  ;;  %v1584_v20 = vmul.f32 -0.5, %v12776_v4  ;;  %v12787_v10 = vld [vmem:[#allocation147_spill] sm:$0xff]  ;;  %3526 = vlog2.f32 %v1581_v52  ;;  %v12788_v0 = vld [vmem:[#allocation148_spill] sm:$0xff] }
 0x1ec   :  { %12781 = vst [vmem:[#allocation463_spill] sm:$0xff] %v12780_v5  ;;  %12786 = vst [vmem:[#allocation464_spill] sm:$0xff] %v12785_v19  ;;  %v1599_v41 = vadd.f32 1.0, %v12787_v10  ;;  %v1593_v50 = vmul.f32 -0.5, %v12782_v31  ;;  %v1608_v58 = vadd.f32 1.0, %v12788_v0  ;;  %v6432_v37 = vmul.f32 %v1567_v53, %v12762_v18  ;;  %v12797_v2 = vld [vmem:[#allocation149_spill] sm:$0xff] }
 0x1ed   :  { %vm6434_vm12 = vcmp.lt.f32.partialorder %v1569_v9, 0.0004427343  ;;  %v12790_v46 = vmov 0  ;;  %v1576_v55 = vadd.f32 1.0, %v1575_v49  ;;  %vm6438_vm13 = vcmp.lt.f32.partialorder %v1578_v28, 0.0004427343  ;;  %v3521_v57 = vpop.eup %3520 }
 0x1ee   :  { %12789 = vst [vmem:[#allocation147_spill] sm:$0xff] %v6432_v37  ;;  %v12791_v46 = vsel %vm6434_vm12, 4294967295, %v12790_v46  ;;  %v12793_v35 = vmov 0  ;;  %v6442_v52 = vmul.f32 0.6931472, %v3517_v30  ;;  %3528 = vlog2.f32 %v1590_v42  ;;  %v12800_v8 = vld [vmem:[#allocation150_spill] sm:$0xff] }
 0x1ef   :  { %12792 = vst [vmem:[#allocation148_spill] sm:$0xff] %v12791_v46  ;;  %v12794_v35 = vsel %vm6438_vm13, 4294967295, %v12793_v35  ;;  %v1602_v17 = vmul.f32 -0.5, %v12787_v10  ;;  %v1617_v16 = vadd.f32 1.0, %v12797_v2  ;;  %v6446_v34 = vmul.f32 0.6931472, %v3519_v45  ;;  %v3523_v53 = vpop.eup %3522 }
 0x1f0   :  { %12795 = vst [vmem:[#allocation465_spill] sm:$0xff] %v12794_v35  ;;  %12796 = vst [vmem:[#allocation466_spill] sm:$0xff] %v6442_v52  ;;  %v1585_v18 = vadd.f32 1.0, %v1584_v20  ;;  %v1587_v9 = vand.u32 2147483647, %v12776_v4  ;;  %3530 = vlog2.f32 %v1599_v41  ;;  %v1594_v49 = vadd.f32 1.0, %v1593_v50  ;;  %v3525_v14 = vpop.eup %3524 }
 0x1f1   :  { %12798 = vst [vmem:[#allocation149_spill] sm:$0xff] %v6446_v34  ;;  %v1596_v28 = vand.u32 2147483647, %v12782_v31  ;;  %3532 = vlog2.f32 %v1608_v58  ;;  %v1611_v30 = vmul.f32 -0.5, %v12788_v0  ;;  %v6452_v42 = vmul.f32 %v1576_v55, %v12763_v59  ;;  %v12821_v54 = vld [vmem:[#allocation153_spill] sm:$0xff]  ;;  %v12834_v35 = vld [vmem:[#allocation155_spill] sm:$0xff] }
 0x1f2   :  { %v1605_v44 = vand.u32 2147483647, %v12787_v10  ;;  %v1620_v45 = vmul.f32 -0.5, %v12797_v2  ;;  %v1626_v20 = vadd.f32 1.0, %v12800_v8  ;;  %v6461_v50 = vmul.f32 0.6931472, %v3521_v57 }
 0x1f3   :  { %12799 = vst [vmem:[#allocation467_spill] sm:$0xff] %v6452_v42  ;;  %v1603_v58 = vadd.f32 1.0, %v1602_v17  ;;  %3534 = vlog2.f32 %v1617_v16  ;;  %v6468_v55 = vmul.f32 %v1585_v18, %v12776_v4  ;;  %vm6470_vm9 = vcmp.lt.f32.partialorder %v1587_v9, 0.0004427343 }
 0x1f4   :  { %12801 = vst [vmem:[#allocation150_spill] sm:$0xff] %v6461_v50  ;;  %v12803_v12 = vmov 0  ;;  %v1614_v13 = vand.u32 2147483647, %v12788_v0  ;;  %v6475_v36 = vmul.f32 0.6931472, %v3523_v53  ;;  %v6480_v16 = vmul.f32 %v1594_v49, %v12782_v31 }
 0x1f5   :  { %12802 = vst [vmem:[#allocation468_spill] sm:$0xff] %v6468_v55  ;;  %v12804_v12 = vsel %vm6470_vm9, 4294967295, %v12803_v12  ;;  %v6477_v57 = vmul.f32 0.6931472, %v3525_v14  ;;  %vm6482_vm14 = vcmp.lt.f32.partialorder %v1596_v28, 0.0004427343  ;;  %3536 = vlog2.f32 %v1626_v20  ;;  %v3527_v14 = vpop.eup %3526 }
 0x1f6   :  { %12805 = vst [vmem:[#allocation469_spill] sm:$0xff] %v12804_v12  ;;  %12806 = vst [vmem:[#allocation470_spill] sm:$0xff] %v6475_v36  ;;  %v12809_v17 = vmov 0  ;;  %v1612_v59 = vadd.f32 1.0, %v1611_v30  ;;  %vm6486_vm8 = vcmp.lt.f32.partialorder %v1605_v44, 0.0004427343  ;;  %v6497_v49 = vmul.f32 %v1603_v58, %v12787_v10 }
 0x1f7   :  { %12807 = vst [vmem:[#allocation471_spill] sm:$0xff] %v6477_v57  ;;  %12808 = vst [vmem:[#allocation472_spill] sm:$0xff] %v6480_v16  ;;  %v12810_v17 = vsel %vm6482_vm14, 4294967295, %v12809_v17  ;;  %v12812_v4 = vmov 0  ;;  %v1621_v18 = vadd.f32 1.0, %v1620_v45  ;;  %v12815_v53 = vld [vmem:[#allocation151_spill] sm:$0xff] }
 0x1f8   :  { %12811 = vst [vmem:[#allocation473_spill] sm:$0xff] %v12810_v17  ;;  %v12813_v4 = vsel %vm6486_vm8, 4294967295, %v12812_v4  ;;  %v1623_v9 = vand.u32 2147483647, %v12797_v2  ;;  %v1635_v41 = vadd.f32 1.0, %v12815_v53  ;;  %12816 = vst [vmem:[#allocation151_spill] sm:$0xff] %v6497_v49  ;;  %v3529_v52 = vpop.eup %3528  ;;  %v6517_v58 = vmul.f32 %v1612_v59, %v12788_v0 }
 0x1f9   :  { %12814 = vst [vmem:[#allocation474_spill] sm:$0xff] %v12813_v4  ;;  %v1629_v44 = vmul.f32 -0.5, %v12800_v8  ;;  %v12817_v28 = vld [vmem:[#allocation152_spill] sm:$0xff]  ;;  %vm6501_vm11 = vcmp.lt.f32.partialorder %v1614_v13, 0.0004427343  ;;  %v12818_v45 = vmov 0  ;;  %v6523_v19 = vmul.f32 %v1621_v18, %v12797_v2 }
 0x1fa   :  { %v1644_v30 = vadd.f32 1.0, %v12817_v28  ;;  %v12819_v45 = vsel %vm6501_vm11, 4294967295, %v12818_v45  ;;  %v1632_v20 = vand.u32 2147483647, %v12800_v8  ;;  %v1638_v34 = vmul.f32 -0.5, %v12815_v53  ;;  %12822 = vst [vmem:[#allocation153_spill] sm:$0xff] %v6517_v58  ;;  %v3531_v50 = vpop.eup %3530 }
 0x1fb   :  { %12820 = vst [vmem:[#allocation152_spill] sm:$0xff] %v12819_v45  ;;  %v1653_v5 = vadd.f32 1.0, %v12821_v54  ;;  %v1647_v31 = vmul.f32 -0.5, %v12817_v28  ;;  %v6520_v32 = vmul.f32 0.6931472, %v3527_v14  ;;  %12824 = vst [vmem:[#allocation476_spill] sm:$0xff] %v6523_v19  ;;  %3538 = vlog2.f32 %v1635_v41  ;;  %v3533_v10 = vpop.eup %3532 }
 0x1fc   :  { %vm6525_vm15 = vcmp.lt.f32.partialorder %v1623_v9, 0.0004427343  ;;  %v12825_v62 = vmov 0  ;;  %v1630_v36 = vadd.f32 1.0, %v1629_v44  ;;  %v1641_v13 = vand.u32 2147483647, %v12815_v53 }
 0x1fd   :  { %12823 = vst [vmem:[#allocation475_spill] sm:$0xff] %v6520_v32  ;;  %v12826_v62 = vsel %vm6525_vm15, 4294967295, %v12825_v62  ;;  %3540 = vlog2.f32 %v1644_v30  ;;  %v12828_v0 = vld [vmem:[#allocation154_spill] sm:$0xff]  ;;  %v6531_v57 = vmul.f32 0.6931472, %v3529_v52  ;;  %v12830_v14 = vmov 0  ;;  %v3535_v9 = vpop.eup %3534 }
 0x1fe   :  { %12827 = vst [vmem:[#allocation477_spill] sm:$0xff] %v12826_v62  ;;  %v1662_v59 = vadd.f32 1.0, %v12828_v0  ;;  %vm6533_vm13 = vcmp.lt.f32.partialorder %v1632_v20, 0.0004427343  ;;  %v1639_v2 = vadd.f32 1.0, %v1638_v34  ;;  %3542 = vlog2.f32 %v1653_v5  ;;  %v12857_v45 = vld [vmem:[#allocation159_spill] sm:$0xff] }
 0x1ff   :  { %12829 = vst [vmem:[#allocation154_spill] sm:$0xff] %v6531_v57  ;;  %v12831_v14 = vsel %vm6533_vm13, 4294967295, %v12830_v14  ;;  %v1656_v18 = vmul.f32 -0.5, %v12821_v54  ;;  %v6538_v42 = vmul.f32 0.6931472, %v3531_v50  ;;  %v1648_v41 = vadd.f32 1.0, %v1647_v31  ;;  %v3537_v63 = vpop.eup %3536 }
 0x200   :  { %12832 = vst [vmem:[#allocation478_spill] sm:$0xff] %v12831_v14  ;;  %v1650_v44 = vand.u32 2147483647, %v12817_v28  ;;  %v1671_v30 = vadd.f32 1.0, %v12834_v35  ;;  %v6546_v20 = vmul.f32 0.6931472, %v3533_v10  ;;  %v6551_v37 = vmul.f32 %v1630_v36, %v12800_v8 }
 0x201   :  { %12833 = vst [vmem:[#allocation479_spill] sm:$0xff] %v6538_v42  ;;  %v1659_v34 = vand.u32 2147483647, %v12821_v54  ;;  %v1665_v5 = vmul.f32 -0.5, %v12828_v0  ;;  %3544 = vlog2.f32 %v1662_v59  ;;  %v1674_v50 = vmul.f32 -0.5, %v12834_v35  ;;  %v12837_v31 = vld [vmem:[#allocation156_spill] sm:$0xff] }
 0x202   :  { %12835 = vst [vmem:[#allocation155_spill] sm:$0xff] %v6546_v20  ;;  %12836 = vst [vmem:[#allocation480_spill] sm:$0xff] %v6551_v37  ;;  %v1680_v46 = vadd.f32 1.0, %v12837_v31  ;;  %v6559_v10 = vmul.f32 0.6931472, %v3535_v9  ;;  %v6562_v32 = vmul.f32 %v1639_v2, %v12815_v53  ;;  %v12840_v55 = vmov 0 }
 0x203   :  { %vm6564_vm9 = vcmp.lt.f32.partialorder %v1641_v13, 0.0004427343  ;;  %v1657_v36 = vadd.f32 1.0, %v1656_v18  ;;  %v6573_v59 = vmul.f32 %v1648_v41, %v12817_v28  ;;  %vm6575_vm12 = vcmp.lt.f32.partialorder %v1650_v44, 0.0004427343  ;;  %v12850_v9 = vld [vmem:[#allocation157_spill] sm:$0xff] }
 0x204   :  { %12838 = vst [vmem:[#allocation156_spill] sm:$0xff] %v6559_v10  ;;  %12839 = vst [vmem:[#allocation481_spill] sm:$0xff] %v6562_v32  ;;  %v12841_v55 = vsel %vm6564_vm9, 4294967295, %v12840_v55  ;;  %v12844_v52 = vmov 0  ;;  %v1668_v53 = vand.u32 2147483647, %v12828_v0  ;;  %3546 = vlog2.f32 %v1671_v30 }
 0x205   :  { %12842 = vst [vmem:[#allocation482_spill] sm:$0xff] %v12841_v55  ;;  %12843 = vst [vmem:[#allocation483_spill] sm:$0xff] %v6573_v59  ;;  %v12845_v52 = vsel %vm6575_vm12, 4294967295, %v12844_v52  ;;  %vm6584_vm14 = vcmp.lt.f32.partialorder %v1659_v34, 0.0004427343  ;;  %v12847_v2 = vmov 0  ;;  %3548 = vlog2.f32 %v1680_v46  ;;  %v3539_v42 = vpop.eup %3538 }
 0x206   :  { %12846 = vst [vmem:[#allocation484_spill] sm:$0xff] %v12845_v52  ;;  %v12848_v2 = vsel %vm6584_vm14, 4294967295, %v12847_v2  ;;  %v1666_v18 = vadd.f32 1.0, %v1665_v5  ;;  %v1689_v28 = vadd.f32 1.0, %v12850_v9  ;;  %v6589_v41 = vmul.f32 0.6931472, %v3537_v63 }
 0x207   :  { %12849 = vst [vmem:[#allocation485_spill] sm:$0xff] %v12848_v2  ;;  %v1675_v44 = vadd.f32 1.0, %v1674_v50  ;;  %v1677_v8 = vand.u32 2147483647, %v12834_v35  ;;  %v6597_v34 = vmul.f32 %v1657_v36, %v12821_v54  ;;  %v1683_v13 = vmul.f32 -0.5, %v12837_v31  ;;  %v12853_v5 = vld [vmem:[#allocation158_spill] sm:$0xff]  ;;  %v3541_v58 = vpop.eup %3540 }
 0x208   :  { %12851 = vst [vmem:[#allocation157_spill] sm:$0xff] %v6589_v41  ;;  %v1698_v20 = vadd.f32 1.0, %v12853_v5  ;;  %vm6601_vm11 = vcmp.lt.f32.partialorder %v1668_v53, 0.0004427343  ;;  %v12854_v63 = vmov 0  ;;  %v1692_v50 = vmul.f32 -0.5, %v12850_v9  ;;  %v3543_v62 = vpop.eup %3542 }
 0x209   :  { %12852 = vst [vmem:[#allocation486_spill] sm:$0xff] %v6597_v34  ;;  %v12855_v63 = vsel %vm6601_vm11, 4294967295, %v12854_v63  ;;  %v1686_v46 = vand.u32 2147483647, %v12837_v31  ;;  %v1707_v49 = vadd.f32 1.0, %v12857_v45  ;;  %v6609_v30 = vmul.f32 %v1666_v18, %v12828_v0  ;;  %v12859_v36 = vld [vmem:[#allocation160_spill] sm:$0xff] }
 0x20a   :  { %12856 = vst [vmem:[#allocation158_spill] sm:$0xff] %v12855_v63  ;;  %3550 = vlog2.f32 %v1689_v28  ;;  %v1701_v54 = vmul.f32 -0.5, %v12853_v5  ;;  %v1716_v10 = vadd.f32 1.0, %v12859_v36  ;;  %v6617_v19 = vmul.f32 0.6931472, %v3539_v42  ;;  %v12932_v14 = vld [vmem:[#allocation174_spill] sm:$0xff] }
 0x20b   :  { %12858 = vst [vmem:[#allocation159_spill] sm:$0xff] %v6609_v30  ;;  %v6620_v4 = vmul.f32 %v1675_v44, %v12834_v35  ;;  %vm6622_vm15 = vcmp.lt.f32.partialorder %v1677_v8, 0.0004427343  ;;  %v12862_v57 = vmov 0  ;;  %v6626_v0 = vmul.f32 0.6931472, %v3541_v58  ;;  %v3545_v16 = vpop.eup %3544 }
 0x20c   :  { %12860 = vst [vmem:[#allocation160_spill] sm:$0xff] %v6617_v19  ;;  %v12863_v57 = vsel %vm6622_vm15, 4294967295, %v12862_v57  ;;  %v1684_v18 = vadd.f32 1.0, %v1683_v13  ;;  %v1695_v28 = vand.u32 2147483647, %v12850_v9  ;;  %3552 = vlog2.f32 %v1698_v20 }
 0x20d   :  { %12861 = vst [vmem:[#allocation487_spill] sm:$0xff] %v6620_v4  ;;  %12864 = vst [vmem:[#allocation488_spill] sm:$0xff] %v12863_v57  ;;  %v6629_v17 = vmul.f32 0.6931472, %v3543_v62  ;;  %vm6631_vm8 = vcmp.lt.f32.partialorder %v1686_v46, 0.0004427343  ;;  %3554 = vlog2.f32 %v1707_v49 }
 0x20e   :  { %12865 = vst [vmem:[#allocation489_spill] sm:$0xff] %v6626_v0  ;;  %v12867_v53 = vmov 0  ;;  %v1693_v42 = vadd.f32 1.0, %v1692_v50  ;;  %v1702_v35 = vadd.f32 1.0, %v1701_v54  ;;  %v1704_v8 = vand.u32 2147483647, %v12853_v5  ;;  %v3547_v58 = vpop.eup %3546 }
 0x20f   :  { %12866 = vst [vmem:[#allocation490_spill] sm:$0xff] %v6629_v17  ;;  %v12868_v53 = vsel %vm6631_vm8, 4294967295, %v12867_v53  ;;  %v1710_v44 = vmul.f32 -0.5, %v12857_v45  ;;  %3556 = vlog2.f32 %v1716_v10  ;;  %v1713_v62 = vand.u32 2147483647, %v12857_v45  ;;  %v12870_v46 = vld [vmem:[#allocation161_spill] sm:$0xff]  ;;  %v3549_v20 = vpop.eup %3548 }
 0x210   :  { %12869 = vst [vmem:[#allocation491_spill] sm:$0xff] %v12868_v53  ;;  %v1719_v13 = vmul.f32 -0.5, %v12859_v36  ;;  %v1725_v41 = vadd.f32 1.0, %v12870_v46  ;;  %v6648_v50 = vmul.f32 0.6931472, %v3545_v16  ;;  %v6651_v10 = vmul.f32 %v1684_v18, %v12837_v31  ;;  %v12877_v16 = vld [vmem:[#allocation162_spill] sm:$0xff] }
 0x211   :  { %vm6653_vm13 = vcmp.lt.f32.partialorder %v1695_v28, 0.0004427343  ;;  %v12873_v54 = vmov 0  ;;  %v6662_v32 = vmul.f32 %v1693_v42, %v12850_v9  ;;  %v1728_v49 = vmul.f32 -0.5, %v12870_v46  ;;  %v12886_v42 = vld [vmem:[#allocation163_spill] sm:$0xff] }
 0x212   :  { %12871 = vst [vmem:[#allocation161_spill] sm:$0xff] %v6648_v50  ;;  %12872 = vst [vmem:[#allocation492_spill] sm:$0xff] %v6651_v10  ;;  %v12874_v54 = vsel %vm6653_vm13, 4294967295, %v12873_v54  ;;  %v1734_v0 = vadd.f32 1.0, %v12877_v16  ;;  %v6666_v59 = vmul.f32 0.6931472, %v3547_v58  ;;  %v6669_v31 = vmul.f32 %v1702_v35, %v12853_v5 }
 0x213   :  { %12875 = vst [vmem:[#allocation493_spill] sm:$0xff] %v12874_v54  ;;  %12876 = vst [vmem:[#allocation494_spill] sm:$0xff] %v6662_v32  ;;  %vm6671_vm12 = vcmp.lt.f32.partialorder %v1704_v8, 0.0004427343  ;;  %v12880_v18 = vmov 0  ;;  %v1711_v28 = vadd.f32 1.0, %v1710_v44  ;;  %3558 = vlog2.f32 %v1725_v41 }
 0x214   :  { %12878 = vst [vmem:[#allocation162_spill] sm:$0xff] %v6666_v59  ;;  %12879 = vst [vmem:[#allocation495_spill] sm:$0xff] %v6669_v31  ;;  %v12881_v18 = vsel %vm6671_vm12, 4294967295, %v12880_v18  ;;  %v1722_v2 = vand.u32 2147483647, %v12859_v36  ;;  %v12883_v19 = vmov 0  ;;  %v3551_v58 = vpop.eup %3550  ;;  %3560 = vlog2.f32 %v1734_v0 }
 0x215   :  { %12882 = vst [vmem:[#allocation496_spill] sm:$0xff] %v12881_v18  ;;  %vm6676_vm14 = vcmp.lt.f32.partialorder %v1713_v62, 0.0004427343  ;;  %v1720_v9 = vadd.f32 1.0, %v1719_v13  ;;  %v1743_v17 = vadd.f32 1.0, %v12886_v42  ;;  %v1737_v8 = vmul.f32 -0.5, %v12877_v16 }
 0x216   :  { %v12884_v19 = vsel %vm6676_vm14, 4294967295, %v12883_v19  ;;  %v6685_v35 = vmul.f32 0.6931472, %v3549_v20  ;;  %v12888_v44 = vld [vmem:[#allocation164_spill] sm:$0xff]  ;;  %v1729_v62 = vadd.f32 1.0, %v1728_v49  ;;  %v1746_v41 = vmul.f32 -0.5, %v12886_v42  ;;  %v3553_v13 = vpop.eup %3552 }
 0x217   :  { %12885 = vst [vmem:[#allocation497_spill] sm:$0xff] %v12884_v19  ;;  %v1752_v34 = vadd.f32 1.0, %v12888_v44  ;;  %v1731_v52 = vand.u32 2147483647, %v12870_v46  ;;  %v6696_v5 = vmul.f32 %v1711_v28, %v12857_v45  ;;  %vm6698_vm11 = vcmp.lt.f32.partialorder %v1722_v2, 0.0004427343  ;;  %v3555_v30 = vpop.eup %3554 }
 0x218   :  { %12887 = vst [vmem:[#allocation163_spill] sm:$0xff] %v6685_v35  ;;  %v12890_v20 = vmov 0  ;;  %v12893_v50 = vld [vmem:[#allocation165_spill] sm:$0xff]  ;;  %v6703_v63 = vmul.f32 0.6931472, %v3551_v58  ;;  %v6706_v0 = vmul.f32 %v1720_v9, %v12859_v36  ;;  %3562 = vlog2.f32 %v1743_v17 }
 0x219   :  { %12889 = vst [vmem:[#allocation164_spill] sm:$0xff] %v6696_v5  ;;  %v12891_v20 = vsel %vm6698_vm11, 4294967295, %v12890_v20  ;;  %v1761_v49 = vadd.f32 1.0, %v12893_v50  ;;  %v1755_v37 = vmul.f32 -0.5, %v12888_v44  ;;  %v3557_v57 = vpop.eup %3556  ;;  %v1738_v2 = vadd.f32 1.0, %v1737_v8  ;;  %v12902_v8 = vld [vmem:[#allocation166_spill] sm:$0xff] }
 0x21a   :  { %12892 = vst [vmem:[#allocation498_spill] sm:$0xff] %v12891_v20  ;;  %12894 = vst [vmem:[#allocation165_spill] sm:$0xff] %v6703_v63  ;;  %v1740_v28 = vand.u32 2147483647, %v12877_v16  ;;  %3564 = vlog2.f32 %v1752_v34  ;;  %v6714_v55 = vmul.f32 0.6931472, %v3553_v13  ;;  %v6717_v58 = vmul.f32 %v1729_v62, %v12870_v46 }
 0x21b   :  { %12895 = vst [vmem:[#allocation499_spill] sm:$0xff] %v6706_v0  ;;  %vm6719_vm15 = vcmp.lt.f32.partialorder %v1731_v52, 0.0004427343  ;;  %v12898_v36 = vmov 0  ;;  %v1747_v17 = vadd.f32 1.0, %v1746_v41  ;;  %3566 = vlog2.f32 %v1761_v49  ;;  %v12906_v49 = vld [vmem:[#allocation167_spill] sm:$0xff] }
 0x21c   :  { %12896 = vst [vmem:[#allocation500_spill] sm:$0xff] %v6714_v55  ;;  %12897 = vst [vmem:[#allocation501_spill] sm:$0xff] %v6717_v58  ;;  %v12899_v36 = vsel %vm6719_vm15, 4294967295, %v12898_v36  ;;  %v1749_v9 = vand.u32 2147483647, %v12886_v42  ;;  %v1770_v35 = vadd.f32 1.0, %v12902_v8  ;;  %v6736_v41 = vmul.f32 %v1738_v2, %v12877_v16 }
 0x21d   :  { %12900 = vst [vmem:[#allocation502_spill] sm:$0xff] %v12899_v36  ;;  %v6724_v59 = vmul.f32 0.6931472, %v3555_v30  ;;  %v1758_v45 = vand.u32 2147483647, %v12888_v44  ;;  %v1756_v52 = vadd.f32 1.0, %v1755_v37  ;;  %v3559_v53 = vpop.eup %3558  ;;  %v6749_v37 = vmul.f32 %v1747_v17, %v12886_v42 }
 0x21e   :  { %v6732_v46 = vmul.f32 0.6931472, %v3557_v57  ;;  %v1764_v62 = vmul.f32 -0.5, %v12893_v50  ;;  %vm6738_vm8 = vcmp.lt.f32.partialorder %v1740_v28, 0.0004427343  ;;  %v1779_v10 = vadd.f32 1.0, %v12906_v49  ;;  %v3561_v17 = vpop.eup %3560 }
 0x21f   :  { %12901 = vst [vmem:[#allocation503_spill] sm:$0xff] %v6724_v59  ;;  %v1767_v13 = vand.u32 2147483647, %v12893_v50  ;;  %vm6751_vm13 = vcmp.lt.f32.partialorder %v1749_v9, 0.0004427343  ;;  %v1773_v2 = vmul.f32 -0.5, %v12902_v8  ;;  %3568 = vlog2.f32 %v1770_v35 }
 0x220   :  { %12903 = vst [vmem:[#allocation166_spill] sm:$0xff] %v6732_v46  ;;  %v12909_v28 = vld [vmem:[#allocation168_spill] sm:$0xff]  ;;  %vm6761_vm9 = vcmp.lt.f32.partialorder %v1758_v45, 0.0004427343  ;;  %v1782_v42 = vmul.f32 -0.5, %v12906_v49  ;;  %v6771_v57 = vmul.f32 %v1756_v52, %v12888_v44  ;;  %v1765_v55 = vadd.f32 1.0, %v1764_v62 }
 0x221   :  { %v1788_v34 = vadd.f32 1.0, %v12909_v28  ;;  %v12912_v31 = vld [vmem:[#allocation169_spill] sm:$0xff]  ;;  %v6774_v63 = vmul.f32 0.6931472, %v3559_v53  ;;  %vm6776_vm14 = vcmp.lt.f32.partialorder %v1767_v13, 0.0004427343  ;;  %3570 = vlog2.f32 %v1779_v10 }
 0x222   :  { %v1797_v19 = vadd.f32 1.0, %v12912_v31  ;;  %v1776_v35 = vand.u32 2147483647, %v12902_v8  ;;  %v3563_v59 = vpop.eup %3562  ;;  %v1774_v5 = vadd.f32 1.0, %v1773_v2  ;;  %v1791_v9 = vmul.f32 -0.5, %v12909_v28  ;;  %v12916_v46 = vld [vmem:[#allocation170_spill] sm:$0xff] }
 0x223   :  { %12913 = vst [vmem:[#allocation167_spill] sm:$0xff] %v6774_v63  ;;  %3572 = vlog2.f32 %v1788_v34  ;;  %v1806_v44 = vadd.f32 1.0, %v12916_v46  ;;  %v6783_v62 = vmul.f32 0.6931472, %v3561_v17  ;;  %v1783_v0 = vadd.f32 1.0, %v1782_v42  ;;  %v12917_v2 = vld [vmem:[#allocation171_spill] sm:$0xff] }
 0x224   :  { %v3565_v52 = vpop.eup %3564  ;;  %v1785_v53 = vand.u32 2147483647, %v12906_v49  ;;  %v1800_v13 = vmul.f32 -0.5, %v12912_v31  ;;  %v6788_v20 = vmul.f32 %v1765_v55, %v12893_v50  ;;  %v1794_v10 = vand.u32 2147483647, %v12909_v28 }
 0x225   :  { %3574 = vlog2.f32 %v1797_v19  ;;  %v1815_v34 = vadd.f32 1.0, %v12917_v2  ;;  %v3567_v18 = vpop.eup %3566  ;;  %v6796_v54 = vmul.f32 0.6931472, %v3563_v59  ;;  %vm6798_vm11 = vcmp.lt.f32.partialorder %v1776_v35, 0.0004427343 }
 0x226   :  { %v12918_v42 = vmov 0  ;;  %v1809_v55 = vmul.f32 -0.5, %v12916_v46  ;;  %v6803_v50 = vmul.f32 0.6931472, %v3565_v52  ;;  %v6806_v19 = vmul.f32 %v1774_v5, %v12902_v8 }
 0x227   :  { %v12919_v42 = vsel %vm6798_vm11, 4294967295, %v12918_v42  ;;  %v1792_v4 = vadd.f32 1.0, %v1791_v9  ;;  %3576 = vlog2.f32 %v1806_v44  ;;  %v6813_v59 = vmul.f32 %v1783_v0, %v12906_v49  ;;  %v12929_v9 = vld [vmem:[#allocation172_spill] sm:$0xff] }
 0x228   :  { %12920 = vst [vmem:[#allocation168_spill] sm:$0xff] %v12919_v42  ;;  %12921 = vst [vmem:[#allocation169_spill] sm:$0xff] %v6806_v19  ;;  %vm6815_vm15 = vcmp.lt.f32.partialorder %v1785_v53, 0.0004427343  ;;  %v12923_v35 = vmov 0  ;;  %v1801_v63 = vadd.f32 1.0, %v1800_v13  ;;  %3578 = vlog2.f32 %v1815_v34 }
 0x229   :  { %12922 = vst [vmem:[#allocation170_spill] sm:$0xff] %v6813_v59  ;;  %v12924_v35 = vsel %vm6815_vm15, 4294967295, %v12923_v35  ;;  %v1803_v52 = vand.u32 2147483647, %v12912_v31  ;;  %v6820_v58 = vmul.f32 0.6931472, %v3567_v18  ;;  %v3569_v0 = vpop.eup %3568  ;;  %v6839_v34 = vmul.f32 %v1792_v4, %v12909_v28 }
 0x22a   :  { %12925 = vst [vmem:[#allocation171_spill] sm:$0xff] %v12924_v35  ;;  %vm6822_vm12 = vcmp.lt.f32.partialorder %v1794_v10, 0.0004427343  ;;  %v12926_v5 = vmov 0  ;;  %v1812_v8 = vand.u32 2147483647, %v12916_v46  ;;  %v6844_v49 = vmul.f32 %v1801_v63, %v12912_v31 }
 0x22b   :  { %v12927_v5 = vsel %vm6822_vm12, 4294967295, %v12926_v5  ;;  %v1824_v44 = vadd.f32 1.0, %v12929_v9  ;;  %v1810_v53 = vadd.f32 1.0, %v1809_v55  ;;  %v1818_v13 = vmul.f32 -0.5, %v12917_v2  ;;  %v12930_v18 = vld [vmem:[#allocation173_spill] sm:$0xff]  ;;  %12931 = vst [vmem:[#allocation172_spill] sm:$0xff] %v6839_v34  ;;  %v3571_v56 = vpop.eup %3570 }
 0x22c   :  { %12928 = vst [vmem:[#allocation504_spill] sm:$0xff] %v12927_v5  ;;  %v1833_v17 = vadd.f32 1.0, %v12930_v18  ;;  %v1827_v36 = vmul.f32 -0.5, %v12929_v9  ;;  %v1842_v12 = vadd.f32 1.0, %v12932_v14  ;;  %12933 = vst [vmem:[#allocation173_spill] sm:$0xff] %v6844_v49  ;;  %v12934_v55 = vmov 0 }
 0x22d   :  { %vm6846_vm10 = vcmp.lt.f32.partialorder %v1803_v52, 0.0004427343  ;;  %v1821_v22 = vand.u32 2147483647, %v12917_v2  ;;  %v1836_v29 = vmul.f32 -0.5, %v12930_v18  ;;  %v3573_v10 = vpop.eup %3572  ;;  %v12938_v23 = vmov 0 }
 0x22e   :  { %v12935_v55 = vsel %vm6846_vm10, 4294967295, %v12934_v55  ;;  %v6856_v28 = vmul.f32 0.6931472, %v3569_v0  ;;  %vm6858_vm7 = vcmp.lt.f32.partialorder %v1812_v8, 0.0004427343  ;;  %3580 = vlog2.f32 %v1824_v44  ;;  %v12943_v4 = vld [vmem:[#allocation176_spill] sm:$0xff] }
 0x22f   :  { %12936 = vst [vmem:[#allocation174_spill] sm:$0xff] %v12935_v55  ;;  %v12939_v23 = vsel %vm6858_vm7, 4294967295, %v12938_v23  ;;  %v6863_v63 = vmul.f32 %v1810_v53, %v12916_v46  ;;  %v1819_v31 = vadd.f32 1.0, %v1818_v13  ;;  %v1830_v52 = vand.u32 2147483647, %v12929_v9  ;;  %v3575_v1 = vpop.eup %3574  ;;  %v12987_v19 = vld [vmem:[#allocation187_spill] sm:$0xff] }
 0x230   :  { %12937 = vst [vmem:[#allocation505_spill] sm:$0xff] %v6856_v28  ;;  %12940 = vst [vmem:[#allocation506_spill] sm:$0xff] %v12939_v23  ;;  %3582 = vlog2.f32 %v1833_v17  ;;  %v6866_v47 = vmul.f32 0.6931472, %v3571_v56  ;;  %v1828_v6 = vadd.f32 1.0, %v1827_v36  ;;  %v1851_v0 = vadd.f32 1.0, %v12943_v4 }
 0x231   :  { %12941 = vst [vmem:[#allocation507_spill] sm:$0xff] %v6863_v63  ;;  %3584 = vlog2.f32 %v1842_v12  ;;  %v6869_v21 = vmul.f32 0.6931472, %v3573_v10  ;;  %vm6871_vm6 = vcmp.lt.f32.partialorder %v1821_v22, 0.0004427343  ;;  %v12945_v8 = vmov 0  ;;  %v3577_v53 = vpop.eup %3576 }
 0x232   :  { %12942 = vst [vmem:[#allocation508_spill] sm:$0xff] %v6866_v47  ;;  %v12946_v8 = vsel %vm6871_vm6, 4294967295, %v12945_v8  ;;  %v1837_v44 = vadd.f32 1.0, %v1836_v29  ;;  %v1845_v46 = vmul.f32 -0.5, %v12932_v14  ;;  %v1839_v36 = vand.u32 2147483647, %v12930_v18  ;;  %v3579_v3 = vpop.eup %3578 }
 0x233   :  { %12944 = vst [vmem:[#allocation176_spill] sm:$0xff] %v6869_v21  ;;  %12947 = vst [vmem:[#allocation509_spill] sm:$0xff] %v12946_v8  ;;  %v1854_v12 = vmul.f32 -0.5, %v12943_v4  ;;  %v12948_v17 = vld [vmem:[#allocation177_spill] sm:$0xff]  ;;  %v6883_v10 = vmul.f32 0.6931472, %v3575_v1  ;;  %v6886_v22 = vmul.f32 %v1819_v31, %v12917_v2  ;;  %v6895_v25 = vmul.f32 %v1828_v6, %v12929_v9 }
 0x234   :  { %v1860_v13 = vadd.f32 1.0, %v12948_v17  ;;  %v1863_v29 = vmul.f32 -0.5, %v12948_v17  ;;  %v1869_v15 = vadd.f32 1.0, %v12951_v61  ;;  %vm6897_vm5 = vcmp.lt.f32.partialorder %v1830_v52, 0.0004427343  ;;  %v12973_v23 = vld [vmem:[#allocation183_spill] sm:$0xff] }
 0x235   :  { %12949 = vst [vmem:[#allocation177_spill] sm:$0xff] %v6883_v10  ;;  %12950 = vst [vmem:[#allocation510_spill] sm:$0xff] %v6886_v22  ;;  %v12953_v28 = vmov 0  ;;  %v1848_v1 = vand.u32 2147483647, %v12932_v14  ;;  %3586 = vlog2.f32 %v1851_v0  ;;  %v6909_v35 = vmul.f32 %v1837_v44, %v12930_v18  ;;  %v12961_v0 = vld [vmem:[#allocation179_spill] sm:$0xff] }
 0x236   :  { %12952 = vst [vmem:[#allocation178_spill] sm:$0xff] %v6895_v25  ;;  %v12954_v28 = vsel %vm6897_vm5, 4294967295, %v12953_v28  ;;  %v6906_v31 = vmul.f32 0.6931472, %v3577_v53  ;;  %v1846_v56 = vadd.f32 1.0, %v1845_v46  ;;  %v12958_v6 = vmov 0 }
 0x237   :  { %12955 = vst [vmem:[#allocation511_spill] sm:$0xff] %v12954_v28  ;;  %12957 = vst [vmem:[#allocation513_spill] sm:$0xff] %v6909_v35  ;;  %vm6911_vm15 = vcmp.lt.f32.partialorder %v1839_v36, 0.0004427343  ;;  %v1855_v9 = vadd.f32 1.0, %v1854_v12  ;;  %3588 = vlog2.f32 %v1860_v13  ;;  %v1878_v47 = vadd.f32 1.0, %v12961_v0 }
 0x238   :  { %12956 = vst [vmem:[#allocation512_spill] sm:$0xff] %v6906_v31  ;;  %v12959_v6 = vsel %vm6911_vm15, 4294967295, %v12958_v6  ;;  %v1857_v52 = vand.u32 2147483647, %v12943_v4  ;;  %v6921_v2 = vmul.f32 0.6931472, %v3579_v3  ;;  %3590 = vlog2.f32 %v1869_v15  ;;  %v3581_v44 = vpop.eup %3580 }
 0x239   :  { %12960 = vst [vmem:[#allocation514_spill] sm:$0xff] %v12959_v6  ;;  %v1864_v18 = vadd.f32 1.0, %v1863_v29  ;;  %vm6923_vm12 = vcmp.lt.f32.partialorder %v1848_v1, 0.0004427343  ;;  %v12963_v46 = vmov 0  ;;  %v1872_v12 = vmul.f32 -0.5, %v12951_v61 }
 0x23a   :  { %12962 = vst [vmem:[#allocation179_spill] sm:$0xff] %v6921_v2  ;;  %v12964_v46 = vsel %vm6923_vm12, 4294967295, %v12963_v46  ;;  %v1866_v36 = vand.u32 2147483647, %v12948_v17  ;;  %v12966_v13 = vld [vmem:[#allocation180_spill] sm:$0xff]  ;;  %v3583_v34 = vpop.eup %3582  ;;  %v6935_v29 = vmul.f32 %v1846_v56, %v12932_v14  ;;  %v1881_v15 = vmul.f32 -0.5, %v12961_v0 }
 0x23b   :  { %12965 = vst [vmem:[#allocation515_spill] sm:$0xff] %v12964_v46  ;;  %v1887_v21 = vadd.f32 1.0, %v12966_v13  ;;  %v12968_v1 = vld [vmem:[#allocation181_spill] sm:$0xff]  ;;  %v3585_v10 = vpop.eup %3584  ;;  %v6940_v49 = vmul.f32 %v1855_v9, %v12943_v4  ;;  %vm6942_vm10 = vcmp.lt.f32.partialorder %v1857_v52, 0.0004427343  ;;  %v12970_v55 = vmov 0 }
 0x23c   :  { %12967 = vst [vmem:[#allocation180_spill] sm:$0xff] %v6935_v29  ;;  %v1896_v53 = vadd.f32 1.0, %v12968_v1  ;;  %v12971_v55 = vsel %vm6942_vm10, 4294967295, %v12970_v55  ;;  %3592 = vlog2.f32 %v1878_v47  ;;  %v1890_v5 = vmul.f32 -0.5, %v12966_v13  ;;  %v13631_v45 = vld [vmem:[#allocation505_spill] sm:$0xff] }
 0x23d   :  { %12969 = vst [vmem:[#allocation181_spill] sm:$0xff] %v6940_v49  ;;  %12972 = vst [vmem:[#allocation516_spill] sm:$0xff] %v12971_v55  ;;  %v1905_v3 = vadd.f32 1.0, %v12973_v23  ;;  %v6952_v56 = vmul.f32 0.6931472, %v3581_v44  ;;  %v6955_v31 = vmul.f32 %v1864_v18, %v12948_v17  ;;  %v12977_v47 = vmov 0 }
 0x23e   :  { %v1875_v4 = vand.u32 2147483647, %v12951_v61  ;;  %v6958_v9 = vmul.f32 0.6931472, %v3583_v34  ;;  %vm6960_vm7 = vcmp.lt.f32.partialorder %v1866_v36, 0.0004427343  ;;  %3594 = vlog2.f32 %v1887_v21 }
 0x23f   :  { %12974 = vst [vmem:[#allocation183_spill] sm:$0xff] %v6952_v56  ;;  %12975 = vst [vmem:[#allocation517_spill] sm:$0xff] %v6955_v31  ;;  %v12978_v47 = vsel %vm6960_vm7, 4294967295, %v12977_v47  ;;  %v1873_v52 = vadd.f32 1.0, %v1872_v12  ;;  %v1884_v63 = vand.u32 2147483647, %v12961_v0  ;;  %3596 = vlog2.f32 %v1896_v53  ;;  %v3587_v17 = vpop.eup %3586 }
 0x240   :  { %12976 = vst [vmem:[#allocation518_spill] sm:$0xff] %v6958_v9  ;;  %12979 = vst [vmem:[#allocation519_spill] sm:$0xff] %v12978_v47  ;;  %v6965_v59 = vmul.f32 0.6931472, %v3585_v10  ;;  %v1882_v14 = vadd.f32 1.0, %v1881_v15  ;;  %v1891_v18 = vadd.f32 1.0, %v1890_v5  ;;  %3598 = vlog2.f32 %v1905_v3 }
 0x241   :  { %v1893_v44 = vand.u32 2147483647, %v12966_v13  ;;  %v1899_v2 = vmul.f32 -0.5, %v12968_v1  ;;  %v12981_v34 = vld [vmem:[#allocation184_spill] sm:$0xff]  ;;  %v1902_v21 = vand.u32 2147483647, %v12968_v1  ;;  %v3589_v8 = vpop.eup %3588  ;;  %v6978_v53 = vmul.f32 %v1873_v52, %v12951_v61 }
 0x242   :  { %12980 = vst [vmem:[#allocation520_spill] sm:$0xff] %v6965_v59  ;;  %v1914_v36 = vadd.f32 1.0, %v12981_v34  ;;  %v1908_v10 = vmul.f32 -0.5, %v12973_v23  ;;  %v12982_v15 = vld [vmem:[#allocation185_spill] sm:$0xff]  ;;  %vm6980_vm6 = vcmp.lt.f32.partialorder %v1875_v4, 0.0004427343  ;;  %v3591_v28 = vpop.eup %3590  ;;  %v6993_v25 = vmul.f32 %v1882_v14, %v12961_v0 }
 0x243   :  { %v1923_v22 = vadd.f32 1.0, %v12982_v15  ;;  %12983 = vst [vmem:[#allocation184_spill] sm:$0xff] %v6978_v53  ;;  %v12984_v5 = vmov 0  ;;  %v1917_v3 = vmul.f32 -0.5, %v12981_v34  ;;  %v1932_v42 = vadd.f32 1.0, %v12987_v19 }
 0x244   :  { %v12985_v5 = vsel %vm6980_vm6, 4294967295, %v12984_v5  ;;  %v6990_v56 = vmul.f32 0.6931472, %v3587_v17  ;;  %12989 = vst [vmem:[#allocation521_spill] sm:$0xff] %v6993_v25  ;;  %vm6995_vm5 = vcmp.lt.f32.partialorder %v1884_v63, 0.0004427343  ;;  %v7004_v52 = vmul.f32 %v1891_v18, %v12966_v13 }
 0x245   :  { %12986 = vst [vmem:[#allocation185_spill] sm:$0xff] %v12985_v5  ;;  %v12990_v61 = vmov 0  ;;  %vm7006_vm4 = vcmp.lt.f32.partialorder %v1893_v44, 0.0004427343  ;;  %v12994_v6 = vmov 0  ;;  %v1900_v17 = vadd.f32 1.0, %v1899_v2 }
 0x246   :  { %12988 = vst [vmem:[#allocation187_spill] sm:$0xff] %v6990_v56  ;;  %v12991_v61 = vsel %vm6995_vm5, 4294967295, %v12990_v61  ;;  %12993 = vst [vmem:[#allocation523_spill] sm:$0xff] %v7004_v52  ;;  %v12995_v6 = vsel %vm7006_vm4, 4294967295, %v12994_v6  ;;  %3600 = vlog2.f32 %v1914_v36  ;;  %v7010_v0 = vmul.f32 0.6931472, %v3589_v8  ;;  %v3593_v4 = vpop.eup %3592 }
 0x247   :  { %12992 = vst [vmem:[#allocation522_spill] sm:$0xff] %v12991_v61  ;;  %12996 = vst [vmem:[#allocation524_spill] sm:$0xff] %v12995_v6  ;;  %vm7012_vm15 = vcmp.lt.f32.partialorder %v1902_v21, 0.0004427343  ;;  %v12998_v63 = vmov 0  ;;  %v1909_v14 = vadd.f32 1.0, %v1908_v10  ;;  %3602 = vlog2.f32 %v1923_v22 }
 0x248   :  { %12997 = vst [vmem:[#allocation525_spill] sm:$0xff] %v7010_v0  ;;  %v12999_v63 = vsel %vm7012_vm15, 4294967295, %v12998_v63  ;;  %v1911_v12 = vand.u32 2147483647, %v12973_v23  ;;  %v7017_v59 = vmul.f32 0.6931472, %v3591_v28  ;;  %3604 = vlog2.f32 %v1932_v42  ;;  %v3595_v10 = vpop.eup %3594 }
 0x249   :  { %13000 = vst [vmem:[#allocation526_spill] sm:$0xff] %v12999_v63  ;;  %v1918_v13 = vadd.f32 1.0, %v1917_v3  ;;  %v1926_v44 = vmul.f32 -0.5, %v12982_v15  ;;  %v1920_v2 = vand.u32 2147483647, %v12981_v34  ;;  %v1935_v18 = vmul.f32 -0.5, %v12987_v19  ;;  %v3597_v46 = vpop.eup %3596 }
 0x24a   :  { %13001 = vst [vmem:[#allocation527_spill] sm:$0xff] %v7017_v59  ;;  %v13002_v36 = vld [vmem:[#allocation188_spill] sm:$0xff]  ;;  %v7028_v22 = vmul.f32 %v1900_v17, %v12968_v1  ;;  %v1929_v28 = vand.u32 2147483647, %v12982_v15  ;;  %v13004_v42 = vld [vmem:[#allocation189_spill] sm:$0xff]  ;;  %v7040_v49 = vmul.f32 %v1909_v14, %v12973_v23  ;;  %v13007_v1 = vmov 0  ;;  %v3599_v17 = vpop.eup %3598 }
 0x24b   :  { %v1941_v21 = vadd.f32 1.0, %v13002_v36  ;;  %v1944_v3 = vmul.f32 -0.5, %v13002_v36  ;;  %v1950_v29 = vadd.f32 1.0, %v13004_v42  ;;  %v7037_v56 = vmul.f32 0.6931472, %v3593_v4  ;;  %v13015_v14 = vld [vmem:[#allocation31_spill] sm:$0xff] }
 0x24c   :  { %13003 = vst [vmem:[#allocation188_spill] sm:$0xff] %v7028_v22  ;;  %13006 = vst [vmem:[#allocation528_spill] sm:$0xff] %v7040_v49  ;;  %vm7042_vm10 = vcmp.lt.f32.partialorder %v1911_v12, 0.0004427343  ;;  %v7051_v9 = vmul.f32 %v1918_v13, %v12981_v34  ;;  %v1927_v47 = vadd.f32 1.0, %v1926_v44  ;;  %v13012_v23 = vmov 0 }
 0x24d   :  { %13005 = vst [vmem:[#allocation189_spill] sm:$0xff] %v7037_v56  ;;  %v13008_v1 = vsel %vm7042_vm10, 4294967295, %v13007_v1  ;;  %v1938_v4 = vand.u32 2147483647, %v12987_v19  ;;  %v7054_v8 = vmul.f32 0.6931472, %v3595_v10  ;;  %3606 = vlog2.f32 %v1941_v21 }
 0x24e   :  { %13009 = vst [vmem:[#allocation529_spill] sm:$0xff] %v13008_v1  ;;  %13010 = vst [vmem:[#allocation530_spill] sm:$0xff] %v7051_v9  ;;  %vm7056_vm7 = vcmp.lt.f32.partialorder %v1920_v2, 0.0004427343  ;;  %v1936_v12 = vadd.f32 1.0, %v1935_v18  ;;  %v1959_v0 = vadd.f32 1.0, %v13015_v14  ;;  %3608 = vlog2.f32 %v1950_v29 }
 0x24f   :  { %13011 = vst [vmem:[#allocation531_spill] sm:$0xff] %v7054_v8  ;;  %v13013_v23 = vsel %vm7056_vm7, 4294967295, %v13012_v23  ;;  %v7061_v31 = vmul.f32 0.6931472, %v3597_v46  ;;  %vm7063_vm12 = vcmp.lt.f32.partialorder %v1929_v28, 0.0004427343  ;;  %v7077_v28 = vmul.f32 %v1927_v47, %v12982_v15 }
 0x250   :  { %13014 = vst [vmem:[#allocation532_spill] sm:$0xff] %v13013_v23  ;;  %v13017_v55 = vmov 0  ;;  %v1945_v34 = vadd.f32 1.0, %v1944_v3  ;;  %v1953_v13 = vmul.f32 -0.5, %v13004_v42  ;;  %v7072_v2 = vmul.f32 0.6931472, %v3599_v17  ;;  %v3601_v10 = vpop.eup %3600 }
 0x251   :  { %13016 = vst [vmem:[#allocation31_spill] sm:$0xff] %v7061_v31  ;;  %v13018_v55 = vsel %vm7063_vm12, 4294967295, %v13017_v55  ;;  %v1947_v18 = vand.u32 2147483647, %v13002_v36  ;;  %v13021_v21 = vld [vmem:[#allocation190_spill] sm:$0xff]  ;;  %v13023_v3 = vmov 0  ;;  %v3603_v61 = vpop.eup %3602  ;;  %v7090_v44 = vmul.f32 %v1936_v12, %v12987_v19 }
 0x252   :  { %13019 = vst [vmem:[#allocation533_spill] sm:$0xff] %v13018_v55  ;;  %13020 = vst [vmem:[#allocation534_spill] sm:$0xff] %v7072_v2  ;;  %v1968_v46 = vadd.f32 1.0, %v13021_v21  ;;  %vm7079_vm6 = vcmp.lt.f32.partialorder %v1938_v4, 0.0004427343  ;;  %v1962_v29 = vmul.f32 -0.5, %v13015_v14  ;;  %3610 = vlog2.f32 %v1959_v0  ;;  %v3605_v15 = vpop.eup %3604 }
 0x253   :  { %13022 = vst [vmem:[#allocation190_spill] sm:$0xff] %v7077_v28  ;;  %v13024_v3 = vsel %vm7079_vm6, 4294967295, %v13023_v3  ;;  %v13026_v59 = vld [vmem:[#allocation191_spill] sm:$0xff]  ;;  %v1971_v47 = vmul.f32 -0.5, %v13021_v21  ;;  %v7098_v56 = vmul.f32 %v1945_v34, %v13002_v36  ;;  %v1954_v25 = vadd.f32 1.0, %v1953_v13 }
 0x254   :  { %13025 = vst [vmem:[#allocation535_spill] sm:$0xff] %v13024_v3  ;;  %v1977_v53 = vadd.f32 1.0, %v13026_v59  ;;  %13027 = vst [vmem:[#allocation191_spill] sm:$0xff] %v7090_v44  ;;  %v1956_v5 = vand.u32 2147483647, %v13004_v42  ;;  %v13029_v0 = vmov 0  ;;  %3612 = vlog2.f32 %v1968_v46 }
 0x255   :  { %13028 = vst [vmem:[#allocation536_spill] sm:$0xff] %v7098_v56  ;;  %vm7105_vm4 = vcmp.lt.f32.partialorder %v1947_v18, 0.0004427343  ;;  %v1965_v12 = vand.u32 2147483647, %v13015_v14  ;;  %v13032_v17 = vld [vmem:[#allocation35_spill] sm:$0xff]  ;;  %v7120_v2 = vmul.f32 %v1954_v25, %v13004_v42  ;;  %v13621_v30 = vsel %vm4803_vm1, %v4390_v24, %v4790_v43 }
 0x256   :  { %v13030_v0 = vsel %vm7105_vm4, 4294967295, %v13029_v0  ;;  %v1986_v4 = vadd.f32 1.0, %v13032_v17  ;;  %v7111_v31 = vmul.f32 0.6931472, %v3601_v10  ;;  %v1963_v36 = vadd.f32 1.0, %v1962_v29  ;;  %v13040_v29 = vld [vmem:[#allocation192_spill] sm:$0xff] }
 0x257   :  { %13031 = vst [vmem:[#allocation537_spill] sm:$0xff] %v13030_v0  ;;  %v1974_v34 = vand.u32 2147483647, %v13021_v21  ;;  %3614 = vlog2.f32 %v1977_v53  ;;  %v7114_v13 = vmul.f32 0.6931472, %v3603_v61  ;;  %v1972_v19 = vadd.f32 1.0, %v1971_v47  ;;  %v3607_v1 = vpop.eup %3606 }
 0x258   :  { %13033 = vst [vmem:[#allocation35_spill] sm:$0xff] %v7111_v31  ;;  %v7116_v22 = vmul.f32 0.6931472, %v3605_v15  ;;  %v1980_v18 = vmul.f32 -0.5, %v13026_v59  ;;  %13036 = vst [vmem:[#allocation540_spill] sm:$0xff] %v7120_v2  ;;  %v13037_v46 = vmov 0  ;;  %3616 = vlog2.f32 %v1986_v4  ;;  %v3609_v25 = vpop.eup %3608 }
 0x259   :  { %13034 = vst [vmem:[#allocation538_spill] sm:$0xff] %v7114_v13  ;;  %vm7122_vm10 = vcmp.lt.f32.partialorder %v1956_v5, 0.0004427343  ;;  %v1989_v10 = vmul.f32 -0.5, %v13032_v17  ;;  %v1995_v49 = vadd.f32 1.0, %v13040_v29  ;;  %v13041_v53 = vmov 0 }
 0x25a   :  { %13035 = vst [vmem:[#allocation539_spill] sm:$0xff] %v7116_v22  ;;  %v13038_v46 = vsel %vm7122_vm10, 4294967295, %v13037_v46  ;;  %vm7128_vm15 = vcmp.lt.f32.partialorder %v1965_v12, 0.0004427343  ;;  %v1998_v61 = vmul.f32 -0.5, %v13040_v29  ;;  %v13044_v47 = vld [vmem:[#allocation193_spill] sm:$0xff]  ;;  %v7139_v42 = vmul.f32 %v1963_v36, %v13015_v14 }
 0x25b   :  { %13039 = vst [vmem:[#allocation541_spill] sm:$0xff] %v13038_v46  ;;  %v13042_v53 = vsel %vm7128_vm15, 4294967295, %v13041_v53  ;;  %v2004_v15 = vadd.f32 1.0, %v13044_v47  ;;  %v1983_v63 = vand.u32 2147483647, %v13026_v59  ;;  %v13046_v12 = vld [vmem:[#allocation34_spill] sm:$0xff]  ;;  %v7152_v23 = vmul.f32 %v1972_v19, %v13021_v21 }
 0x25c   :  { %13043 = vst [vmem:[#allocation192_spill] sm:$0xff] %v13042_v53  ;;  %13045 = vst [vmem:[#allocation193_spill] sm:$0xff] %v7139_v42  ;;  %v2013_v8 = vadd.f32 1.0, %v13046_v12  ;;  %vm7154_vm7 = vcmp.lt.f32.partialorder %v1974_v34, 0.0004427343  ;;  %v13048_v14 = vmov 0  ;;  %3618 = vlog2.f32 %v1995_v49  ;;  %v3611_v4 = vpop.eup %3610 }
 0x25d   :  { %13047 = vst [vmem:[#allocation34_spill] sm:$0xff] %v7152_v23  ;;  %v13049_v14 = vsel %vm7154_vm7, 4294967295, %v13048_v14  ;;  %v1981_v36 = vadd.f32 1.0, %v1980_v18  ;;  %v7158_v5 = vmul.f32 0.6931472, %v3607_v1  ;;  %v1990_v31 = vadd.f32 1.0, %v1989_v10 }
 0x25e   :  { %13050 = vst [vmem:[#allocation542_spill] sm:$0xff] %v13049_v14  ;;  %v1992_v9 = vand.u32 2147483647, %v13032_v17  ;;  %v7161_v13 = vmul.f32 0.6931472, %v3609_v25  ;;  %v1999_v28 = vadd.f32 1.0, %v1998_v61  ;;  %3620 = vlog2.f32 %v2004_v15  ;;  %v3613_v18 = vpop.eup %3612 }
 0x25f   :  { %13051 = vst [vmem:[#allocation543_spill] sm:$0xff] %v7158_v5  ;;  %v2007_v52 = vmul.f32 -0.5, %v13044_v47  ;;  %vm7164_vm6 = vcmp.lt.f32.partialorder %v1983_v63, 0.0004427343  ;;  %v13053_v21 = vmov 0  ;;  %3622 = vlog2.f32 %v2013_v8  ;;  %v13056_v1 = vld [vmem:[#allocation194_spill] sm:$0xff] }
 0x260   :  { %13052 = vst [vmem:[#allocation544_spill] sm:$0xff] %v7161_v13  ;;  %v13054_v21 = vsel %vm7164_vm6, 4294967295, %v13053_v21  ;;  %v2001_v19 = vand.u32 2147483647, %v13040_v29  ;;  %v2022_v34 = vadd.f32 1.0, %v13056_v1  ;;  %v7171_v10 = vmul.f32 %v1981_v36, %v13026_v59  ;;  %v13058_v15 = vld [vmem:[#allocation195_spill] sm:$0xff] }
 0x261   :  { %13055 = vst [vmem:[#allocation545_spill] sm:$0xff] %v13054_v21  ;;  %v2010_v49 = vand.u32 2147483647, %v13044_v47  ;;  %v2016_v61 = vmul.f32 -0.5, %v13046_v12  ;;  %v2031_v25 = vadd.f32 1.0, %v13058_v15  ;;  %v3615_v22 = vpop.eup %3614  ;;  %v13060_v8 = vmov 0 }
 0x262   :  { %13057 = vst [vmem:[#allocation194_spill] sm:$0xff] %v7171_v10  ;;  %v7180_v44 = vmul.f32 0.6931472, %v3611_v4  ;;  %vm7182_vm12 = vcmp.lt.f32.partialorder %v1992_v9, 0.0004427343  ;;  %v2025_v59 = vmul.f32 -0.5, %v13056_v1  ;;  %v7192_v3 = vmul.f32 %v1990_v31, %v13032_v17  ;;  %v3617_v46 = vpop.eup %3616 }
 0x263   :  { %v13061_v8 = vsel %vm7182_vm12, 4294967295, %v13060_v8  ;;  %v7195_v55 = vmul.f32 %v1999_v28, %v13040_v29  ;;  %v2008_v63 = vadd.f32 1.0, %v2007_v52  ;;  %v7197_v4 = vmul.f32 0.6931472, %v3613_v18  ;;  %v13073_v52 = vld [vmem:[#allocation38_spill] sm:$0xff]  ;;  %v13074_v18 = vld [vmem:[#allocation196_spill] sm:$0xff] }
 0x264   :  { %13059 = vst [vmem:[#allocation195_spill] sm:$0xff] %v7180_v44  ;;  %13062 = vst [vmem:[#allocation546_spill] sm:$0xff] %v13061_v8  ;;  %vm7199_vm4 = vcmp.lt.f32.partialorder %v2001_v19, 0.0004427343  ;;  %v13066_v9 = vmov 0  ;;  %3624 = vlog2.f32 %v2022_v34  ;;  %v2034_v56 = vmul.f32 -0.5, %v13058_v15 }
 0x265   :  { %13063 = vst [vmem:[#allocation547_spill] sm:$0xff] %v7192_v3  ;;  %13064 = vst [vmem:[#allocation548_spill] sm:$0xff] %v7195_v55  ;;  %v13067_v9 = vsel %vm7199_vm4, 4294967295, %v13066_v9  ;;  %v2019_v5 = vand.u32 2147483647, %v13046_v12  ;;  %v13070_v31 = vmov 0  ;;  %3626 = vlog2.f32 %v2031_v25 }
 0x266   :  { %13065 = vst [vmem:[#allocation549_spill] sm:$0xff] %v7197_v4  ;;  %13068 = vst [vmem:[#allocation550_spill] sm:$0xff] %v13067_v9  ;;  %v7205_v36 = vmul.f32 0.6931472, %v3615_v22  ;;  %vm7207_vm10 = vcmp.lt.f32.partialorder %v2010_v49, 0.0004427343  ;;  %v7219_v22 = vmul.f32 %v2008_v63, %v13044_v47  ;;  %v3619_v0 = vpop.eup %3618  ;;  %v13626_v24 = vsel %vm6776_vm14, %v6788_v20, %v6820_v58 }
 0x267   :  { %v13071_v31 = vsel %vm7207_vm10, 4294967295, %v13070_v31  ;;  %v2017_v28 = vadd.f32 1.0, %v2016_v61  ;;  %v2040_v17 = vadd.f32 1.0, %v13073_v52  ;;  %v2026_v19 = vadd.f32 1.0, %v2025_v59  ;;  %v13076_v25 = vld [vmem:[#allocation197_spill] sm:$0xff]  ;;  %v13086_v47 = vld [vmem:[#allocation198_spill] sm:$0xff] }
 0x268   :  { %13069 = vst [vmem:[#allocation551_spill] sm:$0xff] %v7205_v36  ;;  %13072 = vst [vmem:[#allocation552_spill] sm:$0xff] %v13071_v31  ;;  %v2028_v34 = vand.u32 2147483647, %v13056_v1  ;;  %v2049_v13 = vadd.f32 1.0, %v13074_v18  ;;  %v2043_v61 = vmul.f32 -0.5, %v13073_v52  ;;  %v3621_v53 = vpop.eup %3620 }
 0x269   :  { %13075 = vst [vmem:[#allocation38_spill] sm:$0xff] %v7219_v22  ;;  %v2037_v49 = vand.u32 2147483647, %v13058_v15  ;;  %v2058_v2 = vadd.f32 1.0, %v13076_v25  ;;  %v7228_v59 = vmul.f32 0.6931472, %v3617_v46  ;;  %v7236_v63 = vmul.f32 %v2017_v28, %v13046_v12  ;;  %v3623_v29 = vpop.eup %3622 }
 0x26a   :  { %v2035_v44 = vadd.f32 1.0, %v2034_v56  ;;  %v2052_v42 = vmul.f32 -0.5, %v13074_v18  ;;  %vm7238_vm15 = vcmp.lt.f32.partialorder %v2019_v5, 0.0004427343  ;;  %v13079_v6 = vmov 0  ;;  %v13100_v9 = vld [vmem:[#allocation201_spill] sm:$0xff] }
 0x26b   :  { %13077 = vst [vmem:[#allocation196_spill] sm:$0xff] %v7228_v59  ;;  %13078 = vst [vmem:[#allocation197_spill] sm:$0xff] %v7236_v63  ;;  %v13080_v6 = vsel %vm7238_vm15, 4294967295, %v13079_v6  ;;  %3628 = vlog2.f32 %v2040_v17  ;;  %v7243_v46 = vmul.f32 %v2026_v19, %v13056_v1  ;;  %vm7245_vm7 = vcmp.lt.f32.partialorder %v2028_v34, 0.0004427343  ;;  %v13627_v43 = vld [vmem:[#allocation275_spill] sm:$0xff] }
 0x26c   :  { %13081 = vst [vmem:[#allocation553_spill] sm:$0xff] %v13080_v6  ;;  %v13083_v56 = vmov 0  ;;  %v2046_v4 = vand.u32 2147483647, %v13073_v52  ;;  %3630 = vlog2.f32 %v2049_v13  ;;  %v2067_v36 = vadd.f32 1.0, %v13086_v47  ;;  %v13635_v20 = vld [vmem:[#allocation182_spill] sm:$0xff] }
 0x26d   :  { %13082 = vst [vmem:[#allocation554_spill] sm:$0xff] %v7243_v46  ;;  %v13084_v56 = vsel %vm7245_vm7, 4294967295, %v13083_v56  ;;  %v7251_v12 = vmul.f32 0.6931472, %v3619_v0  ;;  %vm7253_vm6 = vcmp.lt.f32.partialorder %v2037_v49, 0.0004427343  ;;  %3632 = vlog2.f32 %v2058_v2 }
 0x26e   :  { %13085 = vst [vmem:[#allocation555_spill] sm:$0xff] %v13084_v56  ;;  %v13088_v5 = vmov 0  ;;  %v2044_v28 = vadd.f32 1.0, %v2043_v61  ;;  %v2061_v1 = vmul.f32 -0.5, %v13076_v25  ;;  %v7262_v19 = vmul.f32 0.6931472, %v3621_v53  ;;  %v3625_v21 = vpop.eup %3624 }
 0x26f   :  { %13087 = vst [vmem:[#allocation198_spill] sm:$0xff] %v7251_v12  ;;  %v13089_v5 = vsel %vm7253_vm6, 4294967295, %v13088_v5  ;;  %v7265_v13 = vmul.f32 %v2035_v44, %v13058_v15  ;;  %v2053_v0 = vadd.f32 1.0, %v2052_v42  ;;  %v7267_v34 = vmul.f32 0.6931472, %v3623_v29  ;;  %v13094_v2 = vld [vmem:[#allocation199_spill] sm:$0xff]  ;;  %v3627_v3 = vpop.eup %3626 }
 0x270   :  { %13090 = vst [vmem:[#allocation556_spill] sm:$0xff] %v13089_v5  ;;  %13091 = vst [vmem:[#allocation557_spill] sm:$0xff] %v7262_v19  ;;  %v2055_v49 = vand.u32 2147483647, %v13074_v18  ;;  %v2070_v61 = vmul.f32 -0.5, %v13086_v47  ;;  %v2076_v10 = vadd.f32 1.0, %v13094_v2  ;;  %3634 = vlog2.f32 %v2067_v36 }
 0x271   :  { %13092 = vst [vmem:[#allocation558_spill] sm:$0xff] %v7265_v13  ;;  %13093 = vst [vmem:[#allocation559_spill] sm:$0xff] %v7267_v34  ;;  %v2064_v23 = vand.u32 2147483647, %v13076_v25  ;;  %v2079_v17 = vmul.f32 -0.5, %v13094_v2  ;;  %v13095_v53 = vld [vmem:[#allocation200_spill] sm:$0xff]  ;;  %v7280_v42 = vmul.f32 %v2044_v28, %v13073_v52  ;;  %v7291_v8 = vmul.f32 %v2053_v0, %v13074_v18 }
 0x272   :  { %v2085_v59 = vadd.f32 1.0, %v13095_v53  ;;  %vm7282_vm12 = vcmp.lt.f32.partialorder %v2046_v4, 0.0004427343  ;;  %v13096_v15 = vmov 0  ;;  %v2062_v29 = vadd.f32 1.0, %v2061_v1  ;;  %v13110_v4 = vld [vmem:[#allocation202_spill] sm:$0xff] }
 0x273   :  { %v13097_v15 = vsel %vm7282_vm12, 4294967295, %v13096_v15  ;;  %13099 = vst [vmem:[#allocation200_spill] sm:$0xff] %v7291_v8  ;;  %v2073_v14 = vand.u32 2147483647, %v13086_v47  ;;  %v2094_v44 = vadd.f32 1.0, %v13100_v9  ;;  %v13102_v28 = vmov 0 }
 0x274   :  { %13098 = vst [vmem:[#allocation199_spill] sm:$0xff] %v13097_v15  ;;  %v7299_v52 = vmul.f32 0.6931472, %v3625_v21  ;;  %vm7301_vm4 = vcmp.lt.f32.partialorder %v2055_v49, 0.0004427343  ;;  %v2071_v1 = vadd.f32 1.0, %v2070_v61  ;;  %3636 = vlog2.f32 %v2076_v10 }
 0x275   :  { %v13103_v28 = vsel %vm7301_vm4, 4294967295, %v13102_v28  ;;  %v7305_v36 = vmul.f32 0.6931472, %v3627_v3  ;;  %vm7307_vm10 = vcmp.lt.f32.partialorder %v2064_v23, 0.0004427343  ;;  %v13106_v18 = vmov 0  ;;  %v3629_v19 = vpop.eup %3628 }
 0x276   :  { %13101 = vst [vmem:[#allocation201_spill] sm:$0xff] %v7299_v52  ;;  %13104 = vst [vmem:[#allocation560_spill] sm:$0xff] %v13103_v28  ;;  %v13107_v18 = vsel %vm7307_vm10, 4294967295, %v13106_v18  ;;  %v2080_v0 = vadd.f32 1.0, %v2079_v17  ;;  %3638 = vlog2.f32 %v2085_v59  ;;  %v7312_v6 = vmul.f32 %v2062_v29, %v13076_v25  ;;  %v3631_v61 = vpop.eup %3630  ;;  %v13114_v10 = vld [vmem:[#allocation203_spill] sm:$0xff] }
 0x277   :  { %13105 = vst [vmem:[#allocation561_spill] sm:$0xff] %v7305_v36  ;;  %13108 = vst [vmem:[#allocation562_spill] sm:$0xff] %v13107_v18  ;;  %v2082_v21 = vand.u32 2147483647, %v13094_v2  ;;  %v2088_v49 = vmul.f32 -0.5, %v13095_v53  ;;  %v2103_v34 = vadd.f32 1.0, %v13110_v4  ;;  %3640 = vlog2.f32 %v2094_v44  ;;  %v3633_v17 = vpop.eup %3632 }
 0x278   :  { %13109 = vst [vmem:[#allocation563_spill] sm:$0xff] %v7312_v6  ;;  %vm7317_vm15 = vcmp.lt.f32.partialorder %v2073_v14, 0.0004427343  ;;  %v13111_v3 = vmov 0  ;;  %v2097_v23 = vmul.f32 -0.5, %v13100_v9  ;;  %v2112_v59 = vadd.f32 1.0, %v13114_v10 }
 0x279   :  { %v13112_v3 = vsel %vm7317_vm15, 4294967295, %v13111_v3  ;;  %v7328_v29 = vmul.f32 %v2071_v1, %v13086_v47  ;;  %v2106_v63 = vmul.f32 -0.5, %v13110_v4  ;;  %v13116_v14 = vld [vmem:[#allocation43_spill] sm:$0xff]  ;;  %v7336_v31 = vmul.f32 0.6931472, %v3629_v19  ;;  %v13125_v36 = vld [vmem:[#allocation205_spill] sm:$0xff] }
 0x27a   :  { %13113 = vst [vmem:[#allocation202_spill] sm:$0xff] %v13112_v3  ;;  %v2121_v22 = vadd.f32 1.0, %v13116_v14  ;;  %v7339_v12 = vmul.f32 %v2080_v0, %v13094_v2  ;;  %v2091_v56 = vand.u32 2147483647, %v13095_v53  ;;  %v7342_v25 = vmul.f32 0.6931472, %v3631_v61  ;;  %v3635_v46 = vpop.eup %3634 }
 0x27b   :  { %13115 = vst [vmem:[#allocation203_spill] sm:$0xff] %v7328_v29  ;;  %13117 = vst [vmem:[#allocation43_spill] sm:$0xff] %v7336_v31  ;;  %vm7344_vm7 = vcmp.lt.f32.partialorder %v2082_v21, 0.0004427343  ;;  %v13120_v47 = vmov 0  ;;  %v2089_v1 = vadd.f32 1.0, %v2088_v49  ;;  %3642 = vlog2.f32 %v2103_v34 }
 0x27c   :  { %13118 = vst [vmem:[#allocation564_spill] sm:$0xff] %v7339_v12  ;;  %13119 = vst [vmem:[#allocation565_spill] sm:$0xff] %v7342_v25  ;;  %v13121_v47 = vsel %vm7344_vm7, 4294967295, %v13120_v47  ;;  %v2100_v52 = vand.u32 2147483647, %v13100_v9  ;;  %v2098_v19 = vadd.f32 1.0, %v2097_v23  ;;  %3644 = vlog2.f32 %v2112_v59 }
 0x27d   :  { %13122 = vst [vmem:[#allocation566_spill] sm:$0xff] %v13121_v47  ;;  %v7349_v5 = vmul.f32 0.6931472, %v3633_v17  ;;  %v2109_v44 = vand.u32 2147483647, %v13110_v4  ;;  %v2107_v2 = vadd.f32 1.0, %v2106_v63  ;;  %3646 = vlog2.f32 %v2121_v22 }
 0x27e   :  { %v2115_v0 = vmul.f32 -0.5, %v13114_v10  ;;  %v13124_v61 = vld [vmem:[#allocation204_spill] sm:$0xff]  ;;  %v2118_v34 = vand.u32 2147483647, %v13114_v10  ;;  %v2124_v17 = vmul.f32 -0.5, %v13116_v14  ;;  %v2139_v23 = vadd.f32 1.0, %v13125_v36  ;;  %v3637_v13 = vpop.eup %3636 }
 0x27f   :  { %13123 = vst [vmem:[#allocation567_spill] sm:$0xff] %v7349_v5  ;;  %v2130_v21 = vadd.f32 1.0, %v13124_v61  ;;  %v7361_v55 = vmul.f32 0.6931472, %v3635_v46  ;;  %v7364_v63 = vmul.f32 %v2089_v1, %v13095_v53  ;;  %vm7366_vm6 = vcmp.lt.f32.partialorder %v2091_v56, 0.0004427343 }
 0x280   :  { %v13128_v22 = vmov 0  ;;  %v13131_v59 = vld [vmem:[#allocation46_spill] sm:$0xff]  ;;  %v3639_v15 = vpop.eup %3638  ;;  %v7376_v31 = vmul.f32 %v2098_v19, %v13100_v9  ;;  %vm7378_vm12 = vcmp.lt.f32.partialorder %v2100_v52, 0.0004427343  ;;  %v13133_v46 = vmov 0  ;;  %v13153_v47 = vld [vmem:[#allocation208_spill] sm:$0xff] }
 0x281   :  { %13126 = vst [vmem:[#allocation204_spill] sm:$0xff] %v7361_v55  ;;  %13127 = vst [vmem:[#allocation205_spill] sm:$0xff] %v7364_v63  ;;  %v13129_v22 = vsel %vm7366_vm6, 4294967295, %v13128_v22  ;;  %v2148_v35 = vadd.f32 1.0, %v13131_v59  ;;  %v13134_v46 = vsel %vm7378_vm12, 4294967295, %v13133_v46  ;;  %v2133_v56 = vmul.f32 -0.5, %v13124_v61  ;;  %v3641_v52 = vpop.eup %3640 }
 0x282   :  { %13130 = vst [vmem:[#allocation568_spill] sm:$0xff] %v13129_v22  ;;  %13132 = vst [vmem:[#allocation46_spill] sm:$0xff] %v7376_v31  ;;  %v7388_v1 = vmul.f32 %v2107_v2, %v13110_v4  ;;  %vm7390_vm5 = vcmp.lt.f32.partialorder %v2109_v44, 0.0004427343  ;;  %v13137_v28 = vmov 0  ;;  %v2116_v9 = vadd.f32 1.0, %v2115_v0 }
 0x283   :  { %13135 = vst [vmem:[#allocation569_spill] sm:$0xff] %v13134_v46  ;;  %v13138_v28 = vsel %vm7390_vm5, 4294967295, %v13137_v28  ;;  %3648 = vlog2.f32 %v2130_v21  ;;  %v7394_v19 = vmul.f32 0.6931472, %v3637_v13  ;;  %vm7396_vm4 = vcmp.lt.f32.partialorder %v2118_v34, 0.0004427343 }
 0x284   :  { %13136 = vst [vmem:[#allocation570_spill] sm:$0xff] %v7388_v1  ;;  %13139 = vst [vmem:[#allocation571_spill] sm:$0xff] %v13138_v28  ;;  %v13141_v49 = vmov 0  ;;  %v2125_v25 = vadd.f32 1.0, %v2124_v17  ;;  %v2127_v18 = vand.u32 2147483647, %v13116_v14  ;;  %3650 = vlog2.f32 %v2139_v23 }
 0x285   :  { %13140 = vst [vmem:[#allocation572_spill] sm:$0xff] %v7394_v19  ;;  %v13142_v49 = vsel %vm7396_vm4, 4294967295, %v13141_v49  ;;  %v7405_v44 = vmul.f32 0.6931472, %v3639_v15  ;;  %v2142_v2 = vmul.f32 -0.5, %v13125_v36  ;;  %3652 = vlog2.f32 %v2148_v35  ;;  %v13145_v34 = vld [vmem:[#allocation206_spill] sm:$0xff]  ;;  %v3643_v53 = vpop.eup %3642 }
 0x286   :  { %13143 = vst [vmem:[#allocation573_spill] sm:$0xff] %v13142_v49  ;;  %v2134_v13 = vadd.f32 1.0, %v2133_v56  ;;  %v2136_v0 = vand.u32 2147483647, %v13124_v61  ;;  %v2151_v21 = vmul.f32 -0.5, %v13131_v59  ;;  %v2157_v17 = vadd.f32 1.0, %v13145_v34  ;;  %v3645_v29 = vpop.eup %3644 }
 0x287   :  { %13144 = vst [vmem:[#allocation574_spill] sm:$0xff] %v7405_v44  ;;  %v7411_v5 = vmul.f32 0.6931472, %v3641_v52  ;;  %v7414_v23 = vmul.f32 %v2116_v9, %v13114_v10  ;;  %v2145_v4 = vand.u32 2147483647, %v13125_v36  ;;  %v13148_v15 = vld [vmem:[#allocation207_spill] sm:$0xff]  ;;  %v7423_v56 = vmul.f32 %v2125_v25, %v13116_v14  ;;  %v3647_v9 = vpop.eup %3646 }
 0x288   :  { %v2166_v55 = vadd.f32 1.0, %v13148_v15  ;;  %vm7425_vm15 = vcmp.lt.f32.partialorder %v2127_v18, 0.0004427343  ;;  %v13150_v3 = vmov 0  ;;  %v2160_v10 = vmul.f32 -0.5, %v13145_v34  ;;  %v13175_v49 = vld [vmem:[#allocation211_spill] sm:$0xff] }
 0x289   :  { %13146 = vst [vmem:[#allocation206_spill] sm:$0xff] %v7411_v5  ;;  %13147 = vst [vmem:[#allocation575_spill] sm:$0xff] %v7414_v23  ;;  %v13151_v3 = vsel %vm7425_vm15, 4294967295, %v13150_v3  ;;  %v2143_v6 = vadd.f32 1.0, %v2142_v2  ;;  %v2154_v8 = vand.u32 2147483647, %v13131_v59  ;;  %v7439_v18 = vmul.f32 %v2134_v13, %v13124_v61 }
 0x28a   :  { %13149 = vst [vmem:[#allocation207_spill] sm:$0xff] %v7423_v56  ;;  %13152 = vst [vmem:[#allocation576_spill] sm:$0xff] %v13151_v3  ;;  %v2175_v35 = vadd.f32 1.0, %v13153_v47  ;;  %v7436_v19 = vmul.f32 0.6931472, %v3643_v53  ;;  %v13156_v25 = vmov 0  ;;  %3654 = vlog2.f32 %v2157_v17 }
 0x28b   :  { %13155 = vst [vmem:[#allocation577_spill] sm:$0xff] %v7439_v18  ;;  %vm7441_vm7 = vcmp.lt.f32.partialorder %v2136_v0, 0.0004427343  ;;  %v2152_v14 = vadd.f32 1.0, %v2151_v21  ;;  %v7449_v52 = vmul.f32 0.6931472, %v3645_v29  ;;  %3656 = vlog2.f32 %v2166_v55 }
 0x28c   :  { %13154 = vst [vmem:[#allocation208_spill] sm:$0xff] %v7436_v19  ;;  %v13157_v25 = vsel %vm7441_vm7, 4294967295, %v13156_v25  ;;  %vm7451_vm6 = vcmp.lt.f32.partialorder %v2145_v4, 0.0004427343  ;;  %v13160_v44 = vmov 0  ;;  %v2169_v61 = vmul.f32 -0.5, %v13148_v15 }
 0x28d   :  { %13158 = vst [vmem:[#allocation578_spill] sm:$0xff] %v13157_v25  ;;  %13159 = vst [vmem:[#allocation579_spill] sm:$0xff] %v7449_v52  ;;  %v13161_v44 = vsel %vm7451_vm6, 4294967295, %v13160_v44  ;;  %v7456_v53 = vmul.f32 0.6931472, %v3647_v9  ;;  %v2161_v13 = vadd.f32 1.0, %v2160_v10  ;;  %v3649_v63 = vpop.eup %3648  ;;  %v7461_v46 = vmul.f32 %v2143_v6, %v13125_v36 }
 0x28e   :  { %13162 = vst [vmem:[#allocation580_spill] sm:$0xff] %v13161_v44  ;;  %v2163_v0 = vand.u32 2147483647, %v13145_v34  ;;  %v13164_v21 = vld [vmem:[#allocation209_spill] sm:$0xff]  ;;  %vm7463_vm12 = vcmp.lt.f32.partialorder %v2154_v8, 0.0004427343  ;;  %3658 = vlog2.f32 %v2175_v35  ;;  %v3651_v4 = vpop.eup %3650  ;;  %v7473_v9 = vmul.f32 %v2152_v14, %v13131_v59 }
 0x28f   :  { %13163 = vst [vmem:[#allocation581_spill] sm:$0xff] %v7456_v53  ;;  %v2184_v17 = vadd.f32 1.0, %v13164_v21  ;;  %13165 = vst [vmem:[#allocation209_spill] sm:$0xff] %v7461_v46  ;;  %v13166_v29 = vmov 0  ;;  %v2178_v55 = vmul.f32 -0.5, %v13153_v47  ;;  %v2187_v2 = vmul.f32 -0.5, %v13164_v21  ;;  %v3653_v8 = vpop.eup %3652 }
 0x290   :  { %v13167_v29 = vsel %vm7463_vm12, 4294967295, %v13166_v29  ;;  %13169 = vst [vmem:[#allocation583_spill] sm:$0xff] %v7473_v9  ;;  %v13170_v6 = vld [vmem:[#allocation210_spill] sm:$0xff]  ;;  %v2170_v5 = vadd.f32 1.0, %v2169_v61  ;;  %v2172_v31 = vand.u32 2147483647, %v13148_v15  ;;  %v7488_v14 = vmul.f32 %v2161_v13, %v13145_v34 }
 0x291   :  { %13168 = vst [vmem:[#allocation582_spill] sm:$0xff] %v13167_v29  ;;  %v2193_v36 = vadd.f32 1.0, %v13170_v6  ;;  %v2181_v22 = vand.u32 2147483647, %v13153_v47  ;;  %vm7490_vm5 = vcmp.lt.f32.partialorder %v2163_v0, 0.0004427343  ;;  %3660 = vlog2.f32 %v2184_v17 }
 0x292   :  { %13171 = vst [vmem:[#allocation210_spill] sm:$0xff] %v7488_v14  ;;  %v13172_v10 = vmov 0  ;;  %v2202_v35 = vadd.f32 1.0, %v13175_v49  ;;  %v7495_v61 = vmul.f32 0.6931472, %v3649_v63  ;;  %v2179_v52 = vadd.f32 1.0, %v2178_v55 }
 0x293   :  { %v13173_v10 = vsel %vm7490_vm5, 4294967295, %v13172_v10  ;;  %v2190_v23 = vand.u32 2147483647, %v13164_v21  ;;  %v2196_v19 = vmul.f32 -0.5, %v13170_v6  ;;  %v7499_v1 = vmul.f32 0.6931472, %v3651_v4 }
 0x294   :  { %13174 = vst [vmem:[#allocation584_spill] sm:$0xff] %v13173_v10  ;;  %13176 = vst [vmem:[#allocation211_spill] sm:$0xff] %v7495_v61  ;;  %v7501_v59 = vmul.f32 0.6931472, %v3653_v8  ;;  %v2188_v34 = vadd.f32 1.0, %v2187_v2  ;;  %3662 = vlog2.f32 %v2193_v36  ;;  %v7504_v13 = vmul.f32 %v2170_v5, %v13148_v15  ;;  %v13186_v17 = vld [vmem:[#allocation212_spill] sm:$0xff]  ;;  %v3655_v53 = vpop.eup %3654 }
 0x295   :  { %13177 = vst [vmem:[#allocation585_spill] sm:$0xff] %v7499_v1  ;;  %vm7506_vm15 = vcmp.lt.f32.partialorder %v2172_v31, 0.0004427343  ;;  %v13180_v0 = vmov 0  ;;  %vm7510_vm4 = vcmp.lt.f32.partialorder %v2181_v22, 0.0004427343  ;;  %3664 = vlog2.f32 %v2202_v35  ;;  %v3657_v5 = vpop.eup %3656 }
 0x296   :  { %13178 = vst [vmem:[#allocation586_spill] sm:$0xff] %v7501_v59  ;;  %13179 = vst [vmem:[#allocation587_spill] sm:$0xff] %v7504_v13  ;;  %v13181_v0 = vsel %vm7506_vm15, 4294967295, %v13180_v0  ;;  %v13183_v63 = vmov 0  ;;  %v2211_v55 = vadd.f32 1.0, %v13186_v17  ;;  %v2205_v2 = vmul.f32 -0.5, %v13175_v49 }
 0x297   :  { %13182 = vst [vmem:[#allocation588_spill] sm:$0xff] %v13181_v0  ;;  %v13184_v63 = vsel %vm7510_vm4, 4294967295, %v13183_v63  ;;  %v2199_v4 = vand.u32 2147483647, %v13170_v6  ;;  %v13187_v36 = vld [vmem:[#allocation213_spill] sm:$0xff]  ;;  %v7523_v22 = vmul.f32 %v2179_v52, %v13153_v47  ;;  %v2197_v15 = vadd.f32 1.0, %v2196_v19 }
 0x298   :  { %13185 = vst [vmem:[#allocation589_spill] sm:$0xff] %v13184_v63  ;;  %v2220_v8 = vadd.f32 1.0, %v13187_v36  ;;  %v2214_v56 = vmul.f32 -0.5, %v13186_v17  ;;  %v7535_v28 = vmul.f32 %v2188_v34, %v13164_v21  ;;  %vm7537_vm7 = vcmp.lt.f32.partialorder %v2190_v23, 0.0004427343  ;;  %v13193_v47 = vld [vmem:[#allocation51_spill] sm:$0xff]  ;;  %v3659_v52 = vpop.eup %3658 }
 0x299   :  { %13188 = vst [vmem:[#allocation212_spill] sm:$0xff] %v7523_v22  ;;  %v13190_v31 = vmov 0  ;;  %v2229_v19 = vadd.f32 1.0, %v13193_v47  ;;  %v7542_v61 = vmul.f32 0.6931472, %v3655_v53  ;;  %3666 = vlog2.f32 %v2211_v55  ;;  %v13207_v10 = vld [vmem:[#allocation54_spill] sm:$0xff] }
 0x29a   :  { %13189 = vst [vmem:[#allocation213_spill] sm:$0xff] %v7535_v28  ;;  %v13191_v31 = vsel %vm7537_vm7, 4294967295, %v13190_v31  ;;  %v2208_v44 = vand.u32 2147483647, %v13175_v49  ;;  %v2223_v35 = vmul.f32 -0.5, %v13187_v36  ;;  %v13196_v3 = vmov 0 }
 0x29b   :  { %13192 = vst [vmem:[#allocation590_spill] sm:$0xff] %v13191_v31  ;;  %13194 = vst [vmem:[#allocation51_spill] sm:$0xff] %v7542_v61  ;;  %v7546_v1 = vmul.f32 0.6931472, %v3657_v5  ;;  %vm7548_vm12 = vcmp.lt.f32.partialorder %v2199_v4, 0.0004427343  ;;  %3668 = vlog2.f32 %v2220_v8  ;;  %v7553_v21 = vmul.f32 %v2197_v15, %v13170_v6  ;;  %v3661_v9 = vpop.eup %3660 }
 0x29c   :  { %v13197_v3 = vsel %vm7548_vm12, 4294967295, %v13196_v3  ;;  %v2206_v23 = vadd.f32 1.0, %v2205_v2  ;;  %v2215_v34 = vadd.f32 1.0, %v2214_v56  ;;  %v2217_v53 = vand.u32 2147483647, %v13186_v17  ;;  %v13201_v4 = vld [vmem:[#allocation214_spill] sm:$0xff] }
 0x29d   :  { %13195 = vst [vmem:[#allocation591_spill] sm:$0xff] %v7546_v1  ;;  %13198 = vst [vmem:[#allocation592_spill] sm:$0xff] %v13197_v3  ;;  %v2226_v59 = vand.u32 2147483647, %v13187_v36  ;;  %v7557_v55 = vmul.f32 0.6931472, %v3659_v52  ;;  %3670 = vlog2.f32 %v2229_v19  ;;  %v13628_v32 = vsel %vm4821_vm3, %v4414_v26, %v13627_v43 }
 0x29e   :  { %13199 = vst [vmem:[#allocation593_spill] sm:$0xff] %v7553_v21  ;;  %v2232_v5 = vmul.f32 -0.5, %v13193_v47  ;;  %v2238_v29 = vadd.f32 1.0, %v13201_v4  ;;  %vm7565_vm6 = vcmp.lt.f32.partialorder %v2208_v44, 0.0004427343  ;;  %v13202_v6 = vmov 0  ;;  %v3663_v46 = vpop.eup %3662 }
 0x29f   :  { %13200 = vst [vmem:[#allocation594_spill] sm:$0xff] %v7557_v55  ;;  %v13203_v6 = vsel %vm7565_vm6, 4294967295, %v13202_v6  ;;  %v2224_v56 = vadd.f32 1.0, %v2223_v35  ;;  %v13205_v8 = vld [vmem:[#allocation215_spill] sm:$0xff]  ;;  %v7575_v52 = vmul.f32 %v2206_v23, %v13175_v49  ;;  %v2241_v18 = vmul.f32 -0.5, %v13201_v4  ;;  %v3665_v1 = vpop.eup %3664  ;;  %v13224_v55 = vld [vmem:[#allocation217_spill] sm:$0xff] }
 0x2a0   :  { %13204 = vst [vmem:[#allocation214_spill] sm:$0xff] %v13203_v6  ;;  %v2247_v15 = vadd.f32 1.0, %v13205_v8  ;;  %v2256_v2 = vadd.f32 1.0, %v13207_v10  ;;  %v7579_v44 = vmul.f32 0.6931472, %v3661_v9  ;;  %v7582_v61 = vmul.f32 %v2215_v34, %v13186_v17  ;;  %v13638_v26 = vld [vmem:[#allocation171_spill] sm:$0xff] }
 0x2a1   :  { %13206 = vst [vmem:[#allocation215_spill] sm:$0xff] %v7575_v52  ;;  %vm7584_vm5 = vcmp.lt.f32.partialorder %v2217_v53, 0.0004427343  ;;  %v13210_v35 = vmov 0  ;;  %v2235_v14 = vand.u32 2147483647, %v13193_v47  ;;  %3672 = vlog2.f32 %v2238_v29 }
 0x2a2   :  { %13208 = vst [vmem:[#allocation54_spill] sm:$0xff] %v7579_v44  ;;  %13209 = vst [vmem:[#allocation595_spill] sm:$0xff] %v7582_v61  ;;  %v13211_v35 = vsel %vm7584_vm5, 4294967295, %v13210_v35  ;;  %v2250_v19 = vmul.f32 -0.5, %v13205_v8  ;;  %vm7594_vm15 = vcmp.lt.f32.partialorder %v2226_v59, 0.0004427343  ;;  %v7601_v34 = vmul.f32 %v2224_v56, %v13187_v36 }
 0x2a3   :  { %13212 = vst [vmem:[#allocation596_spill] sm:$0xff] %v13211_v35  ;;  %v13213_v9 = vmov 0  ;;  %v2233_v17 = vadd.f32 1.0, %v2232_v5  ;;  %v7598_v23 = vmul.f32 0.6931472, %v3663_v46  ;;  %3674 = vlog2.f32 %v2247_v15  ;;  %v13218_v53 = vld [vmem:[#allocation216_spill] sm:$0xff]  ;;  %v3667_v59 = vpop.eup %3666 }
 0x2a4   :  { %v13214_v9 = vsel %vm7594_vm15, 4294967295, %v13213_v9  ;;  %13217 = vst [vmem:[#allocation599_spill] sm:$0xff] %v7601_v34  ;;  %v2265_v13 = vadd.f32 1.0, %v13218_v53  ;;  %v2242_v0 = vadd.f32 1.0, %v2241_v18  ;;  %v2244_v25 = vand.u32 2147483647, %v13201_v4 }
 0x2a5   :  { %13215 = vst [vmem:[#allocation597_spill] sm:$0xff] %v13214_v9  ;;  %13216 = vst [vmem:[#allocation598_spill] sm:$0xff] %v7598_v23  ;;  %3676 = vlog2.f32 %v2256_v2  ;;  %v2259_v49 = vmul.f32 -0.5, %v13207_v10  ;;  %v7610_v46 = vmul.f32 0.6931472, %v3665_v1  ;;  %v13220_v36 = vmov 0  ;;  %v3669_v56 = vpop.eup %3668 }
 0x2a6   :  { %vm7612_vm4 = vcmp.lt.f32.partialorder %v2235_v14, 0.0004427343  ;;  %v2251_v5 = vadd.f32 1.0, %v2250_v19  ;;  %v7617_v18 = vmul.f32 %v2233_v17, %v13193_v47  ;;  %v2253_v2 = vand.u32 2147483647, %v13205_v8  ;;  %v13225_v29 = vld [vmem:[#allocation219_spill] sm:$0xff] }
 0x2a7   :  { %13219 = vst [vmem:[#allocation216_spill] sm:$0xff] %v7610_v46  ;;  %v13221_v36 = vsel %vm7612_vm4, 4294967295, %v13220_v36  ;;  %v2262_v15 = vand.u32 2147483647, %v13207_v10  ;;  %v2274_v22 = vadd.f32 1.0, %v13224_v55  ;;  %3678 = vlog2.f32 %v2265_v13  ;;  %v3671_v44 = vpop.eup %3670  ;;  %v13252_v9 = vld [vmem:[#allocation223_spill] sm:$0xff] }
 0x2a8   :  { %13222 = vst [vmem:[#allocation600_spill] sm:$0xff] %v13221_v36  ;;  %13223 = vst [vmem:[#allocation601_spill] sm:$0xff] %v7617_v18  ;;  %v2268_v14 = vmul.f32 -0.5, %v13218_v53  ;;  %v2283_v19 = vadd.f32 1.0, %v13225_v29  ;;  %v7628_v28 = vmul.f32 0.6931472, %v3667_v59  ;;  %v7631_v47 = vmul.f32 %v2242_v0, %v13201_v4 }
 0x2a9   :  { %vm7633_vm7 = vcmp.lt.f32.partialorder %v2244_v25, 0.0004427343  ;;  %v13228_v17 = vmov 0  ;;  %v2260_v31 = vadd.f32 1.0, %v2259_v49  ;;  %v7641_v1 = vmul.f32 0.6931472, %v3669_v56 }
 0x2aa   :  { %13226 = vst [vmem:[#allocation217_spill] sm:$0xff] %v7628_v28  ;;  %13227 = vst [vmem:[#allocation219_spill] sm:$0xff] %v7631_v47  ;;  %v13229_v17 = vsel %vm7633_vm7, 4294967295, %v13228_v17  ;;  %v7644_v23 = vmul.f32 %v2251_v5, %v13205_v8  ;;  %v2277_v59 = vmul.f32 -0.5, %v13224_v55  ;;  %vm7647_vm12 = vcmp.lt.f32.partialorder %v2253_v2, 0.0004427343 }
 0x2ab   :  { %13230 = vst [vmem:[#allocation602_spill] sm:$0xff] %v13229_v17  ;;  %13231 = vst [vmem:[#allocation603_spill] sm:$0xff] %v7641_v1  ;;  %v13233_v0 = vmov 0  ;;  %vm7651_vm10 = vcmp.lt.f32.partialorder %v2262_v15, 0.0004427343  ;;  %v13236_v25 = vmov 0  ;;  %3680 = vlog2.f32 %v2274_v22  ;;  %v3673_v5 = vpop.eup %3672 }
 0x2ac   :  { %13232 = vst [vmem:[#allocation604_spill] sm:$0xff] %v7644_v23  ;;  %v13234_v0 = vsel %vm7647_vm12, 4294967295, %v13233_v0  ;;  %v13237_v25 = vsel %vm7651_vm10, 4294967295, %v13236_v25  ;;  %v2271_v4 = vand.u32 2147483647, %v13218_v53  ;;  %v13239_v49 = vld [vmem:[#allocation220_spill] sm:$0xff]  ;;  %3682 = vlog2.f32 %v2283_v19 }
 0x2ad   :  { %13235 = vst [vmem:[#allocation605_spill] sm:$0xff] %v13234_v0  ;;  %13238 = vst [vmem:[#allocation606_spill] sm:$0xff] %v13237_v25  ;;  %v2292_v13 = vadd.f32 1.0, %v13239_v49  ;;  %v7657_v56 = vmul.f32 0.6931472, %v3671_v44  ;;  %v2269_v46 = vadd.f32 1.0, %v2268_v14  ;;  %v7665_v15 = vmul.f32 %v2260_v31, %v13207_v10  ;;  %v3675_v21 = vpop.eup %3674 }
 0x2ae   :  { %v2286_v8 = vmul.f32 -0.5, %v13225_v29  ;;  %v2280_v52 = vand.u32 2147483647, %v13224_v55  ;;  %v13242_v22 = vld [vmem:[#allocation221_spill] sm:$0xff]  ;;  %v2278_v14 = vadd.f32 1.0, %v2277_v59  ;;  %v2295_v3 = vmul.f32 -0.5, %v13239_v49 }
 0x2af   :  { %13240 = vst [vmem:[#allocation220_spill] sm:$0xff] %v7657_v56  ;;  %13241 = vst [vmem:[#allocation607_spill] sm:$0xff] %v7665_v15  ;;  %v2301_v6 = vadd.f32 1.0, %v13242_v22  ;;  %v2289_v19 = vand.u32 2147483647, %v13225_v29  ;;  %v3677_v35 = vpop.eup %3676  ;;  %v13243_v2 = vmov 0  ;;  %3684 = vlog2.f32 %v2292_v13 }
 0x2b0   :  { %vm7675_vm5 = vcmp.lt.f32.partialorder %v2271_v4, 0.0004427343  ;;  %v2304_v10 = vmul.f32 -0.5, %v13242_v22  ;;  %v13246_v31 = vld [vmem:[#allocation222_spill] sm:$0xff]  ;;  %v7685_v59 = vmul.f32 0.6931472, %v3673_v5  ;;  %v7688_v1 = vmul.f32 %v2269_v46, %v13218_v53 }
 0x2b1   :  { %v13244_v2 = vsel %vm7675_vm5, 4294967295, %v13243_v2  ;;  %v2310_v28 = vadd.f32 1.0, %v13246_v31  ;;  %v2287_v34 = vadd.f32 1.0, %v2286_v8  ;;  %vm7690_vm15 = vcmp.lt.f32.partialorder %v2280_v52, 0.0004427343  ;;  %v3679_v63 = vpop.eup %3678 }
 0x2b2   :  { %13245 = vst [vmem:[#allocation221_spill] sm:$0xff] %v13244_v2  ;;  %13247 = vst [vmem:[#allocation222_spill] sm:$0xff] %v7685_v59  ;;  %v13249_v4 = vmov 0  ;;  %v2298_v13 = vand.u32 2147483647, %v13239_v49  ;;  %3686 = vlog2.f32 %v2301_v6  ;;  %v2319_v61 = vadd.f32 1.0, %v13252_v9 }
 0x2b3   :  { %13248 = vst [vmem:[#allocation608_spill] sm:$0xff] %v7688_v1  ;;  %v13250_v4 = vsel %vm7690_vm15, 4294967295, %v13249_v4  ;;  %v7696_v12 = vmul.f32 0.6931472, %v3675_v21  ;;  %v7698_v36 = vmul.f32 0.6931472, %v3677_v35  ;;  %v7701_v5 = vmul.f32 %v2278_v14, %v13224_v55 }
 0x2b4   :  { %13251 = vst [vmem:[#allocation609_spill] sm:$0xff] %v13250_v4  ;;  %vm7703_vm4 = vcmp.lt.f32.partialorder %v2289_v19, 0.0004427343  ;;  %v13256_v53 = vmov 0  ;;  %v2296_v52 = vadd.f32 1.0, %v2295_v3  ;;  %v2305_v46 = vadd.f32 1.0, %v2304_v10 }
 0x2b5   :  { %13253 = vst [vmem:[#allocation223_spill] sm:$0xff] %v7696_v12  ;;  %13254 = vst [vmem:[#allocation610_spill] sm:$0xff] %v7698_v36  ;;  %v13257_v53 = vsel %vm7703_vm4, 4294967295, %v13256_v53  ;;  %v2307_v8 = vand.u32 2147483647, %v13242_v22  ;;  %3688 = vlog2.f32 %v2310_v28  ;;  %v2313_v6 = vmul.f32 -0.5, %v13246_v31  ;;  %v3681_v44 = vpop.eup %3680 }
 0x2b6   :  { %13255 = vst [vmem:[#allocation611_spill] sm:$0xff] %v7701_v5  ;;  %13258 = vst [vmem:[#allocation612_spill] sm:$0xff] %v13257_v53  ;;  %v7714_v35 = vmul.f32 %v2287_v34, %v13225_v29  ;;  %v2322_v55 = vmul.f32 -0.5, %v13252_v9  ;;  %v13260_v14 = vld [vmem:[#allocation224_spill] sm:$0xff]  ;;  %v7718_v3 = vmul.f32 0.6931472, %v3679_v63  ;;  %3690 = vlog2.f32 %v2319_v61  ;;  %v3683_v56 = vpop.eup %3682 }
 0x2b7   :  { %v2328_v19 = vadd.f32 1.0, %v13260_v14  ;;  %vm7720_vm6 = vcmp.lt.f32.partialorder %v2298_v13, 0.0004427343  ;;  %v13262_v10 = vmov 0  ;;  %v2316_v28 = vand.u32 2147483647, %v13246_v31 }
 0x2b8   :  { %13259 = vst [vmem:[#allocation613_spill] sm:$0xff] %v7714_v35  ;;  %13261 = vst [vmem:[#allocation224_spill] sm:$0xff] %v7718_v3  ;;  %v13263_v10 = vsel %vm7720_vm6, 4294967295, %v13262_v10  ;;  %v7734_v63 = vmul.f32 %v2296_v52, %v13239_v49  ;;  %v13266_v13 = vld [vmem:[#allocation225_spill] sm:$0xff]  ;;  %v7738_v59 = vmul.f32 %v2305_v46, %v13242_v22  ;;  %vm7740_vm7 = vcmp.lt.f32.partialorder %v2307_v8, 0.0004427343 }
 0x2b9   :  { %13264 = vst [vmem:[#allocation614_spill] sm:$0xff] %v13263_v10  ;;  %v2337_v21 = vadd.f32 1.0, %v13266_v13  ;;  %v13268_v61 = vmov 0  ;;  %v2314_v47 = vadd.f32 1.0, %v2313_v6  ;;  %v2325_v34 = vand.u32 2147483647, %v13252_v9  ;;  %v3685_v49 = vpop.eup %3684 }
 0x2ba   :  { %13265 = vst [vmem:[#allocation615_spill] sm:$0xff] %v7734_v63  ;;  %13267 = vst [vmem:[#allocation225_spill] sm:$0xff] %v7738_v59  ;;  %v13269_v61 = vsel %vm7740_vm7, 4294967295, %v13268_v61  ;;  %v7745_v12 = vmul.f32 0.6931472, %v3681_v44  ;;  %v2323_v23 = vadd.f32 1.0, %v2322_v55  ;;  %3692 = vlog2.f32 %v2328_v19 }
 0x2bb   :  { %13270 = vst [vmem:[#allocation616_spill] sm:$0xff] %v13269_v61  ;;  %v2331_v29 = vmul.f32 -0.5, %v13260_v14  ;;  %v7752_v52 = vmul.f32 0.6931472, %v3683_v56  ;;  %vm7754_vm10 = vcmp.lt.f32.partialorder %v2316_v28, 0.0004427343  ;;  %3694 = vlog2.f32 %v2337_v21 }
 0x2bc   :  { %13271 = vst [vmem:[#allocation617_spill] sm:$0xff] %v7745_v12  ;;  %v13273_v46 = vmov 0  ;;  %v13276_v8 = vld [vmem:[#allocation226_spill] sm:$0xff]  ;;  %v2334_v44 = vand.u32 2147483647, %v13260_v14  ;;  %v2340_v55 = vmul.f32 -0.5, %v13266_v13  ;;  %v3687_v15 = vpop.eup %3686  ;;  %v7763_v25 = vmul.f32 %v2314_v47, %v13246_v31 }
 0x2bd   :  { %13272 = vst [vmem:[#allocation618_spill] sm:$0xff] %v7752_v52  ;;  %v13274_v46 = vsel %vm7754_vm10, 4294967295, %v13273_v46  ;;  %v2346_v6 = vadd.f32 1.0, %v13276_v8  ;;  %v13277_v19 = vld [vmem:[#allocation227_spill] sm:$0xff]  ;;  %vm7765_vm5 = vcmp.lt.f32.partialorder %v2325_v34, 0.0004427343  ;;  %v7778_v2 = vmul.f32 %v2323_v23, %v13252_v9 }
 0x2be   :  { %13275 = vst [vmem:[#allocation619_spill] sm:$0xff] %v13274_v46  ;;  %v2355_v36 = vadd.f32 1.0, %v13277_v19  ;;  %13278 = vst [vmem:[#allocation226_spill] sm:$0xff] %v7763_v25  ;;  %v13279_v56 = vmov 0  ;;  %v2349_v28 = vmul.f32 -0.5, %v13276_v8  ;;  %v13282_v22 = vld [vmem:[#allocation62_spill] sm:$0xff]  ;;  %v8809_v16 = vsub.f32 %v13628_v32, %v13626_v24 }
 0x2bf   :  { %v13280_v56 = vsel %vm7765_vm5, 4294967295, %v13279_v56  ;;  %v2364_v3 = vadd.f32 1.0, %v13282_v22  ;;  %v7775_v1 = vmul.f32 0.6931472, %v3685_v49  ;;  %13284 = vst [vmem:[#allocation620_spill] sm:$0xff] %v7778_v2  ;;  %v2332_v47 = vadd.f32 1.0, %v2331_v29  ;;  %v3689_v31 = vpop.eup %3688 }
 0x2c0   :  { %13281 = vst [vmem:[#allocation227_spill] sm:$0xff] %v13280_v56  ;;  %v2343_v0 = vand.u32 2147483647, %v13266_v13  ;;  %3696 = vlog2.f32 %v2346_v6  ;;  %v2358_v17 = vmul.f32 -0.5, %v13277_v19  ;;  %v7786_v18 = vmul.f32 0.6931472, %v3687_v15  ;;  %v3691_v29 = vpop.eup %3690 }
 0x2c1   :  { %13283 = vst [vmem:[#allocation62_spill] sm:$0xff] %v7775_v1  ;;  %vm7788_vm15 = vcmp.lt.f32.partialorder %v2334_v44, 0.0004427343  ;;  %v13286_v49 = vmov 0  ;;  %v2341_v9 = vadd.f32 1.0, %v2340_v55  ;;  %3698 = vlog2.f32 %v2355_v36  ;;  %v13289_v52 = vld [vmem:[#allocation228_spill] sm:$0xff] }
 0x2c2   :  { %13285 = vst [vmem:[#allocation621_spill] sm:$0xff] %v7786_v18  ;;  %v13287_v49 = vsel %vm7788_vm15, 4294967295, %v13286_v49  ;;  %v2352_v23 = vand.u32 2147483647, %v13276_v8  ;;  %v2350_v21 = vadd.f32 1.0, %v2349_v28  ;;  %3700 = vlog2.f32 %v2364_v3  ;;  %v13295_v53 = vld [vmem:[#allocation229_spill] sm:$0xff] }
 0x2c3   :  { %13288 = vst [vmem:[#allocation622_spill] sm:$0xff] %v13287_v49  ;;  %v2367_v34 = vmul.f32 -0.5, %v13282_v22  ;;  %v2373_v35 = vadd.f32 1.0, %v13289_v52  ;;  %v7799_v6 = vmul.f32 0.6931472, %v3689_v31  ;;  %v7802_v44 = vmul.f32 %v2332_v47, %v13260_v14  ;;  %v13302_v63 = vld [vmem:[#allocation231_spill] sm:$0xff] }
 0x2c4   :  { %v2361_v55 = vand.u32 2147483647, %v13277_v19  ;;  %vm7805_vm4 = vcmp.lt.f32.partialorder %v2343_v0, 0.0004427343  ;;  %v13292_v36 = vmov 0  ;;  %v2359_v3 = vadd.f32 1.0, %v2358_v17  ;;  %v3693_v5 = vpop.eup %3692 }
 0x2c5   :  { %13290 = vst [vmem:[#allocation228_spill] sm:$0xff] %v7799_v6  ;;  %13291 = vst [vmem:[#allocation623_spill] sm:$0xff] %v7802_v44  ;;  %v13293_v36 = vsel %vm7805_vm4, 4294967295, %v13292_v36  ;;  %v2370_v28 = vand.u32 2147483647, %v13282_v22  ;;  %v2382_v12 = vadd.f32 1.0, %v13295_v53  ;;  %v7818_v14 = vmul.f32 %v2341_v9, %v13266_v13  ;;  %v3695_v61 = vpop.eup %3694 }
 0x2c6   :  { %13294 = vst [vmem:[#allocation624_spill] sm:$0xff] %v13293_v36  ;;  %v7815_v15 = vmul.f32 0.6931472, %v3691_v29  ;;  %v2376_v0 = vmul.f32 -0.5, %v13289_v52  ;;  %v7822_v47 = vmul.f32 %v2350_v21, %v13276_v8  ;;  %vm7824_vm6 = vcmp.lt.f32.partialorder %v2352_v23, 0.0004427343 }
 0x2c7   :  { %13297 = vst [vmem:[#allocation625_spill] sm:$0xff] %v7818_v14  ;;  %v13299_v17 = vmov 0  ;;  %v2368_v1 = vadd.f32 1.0, %v2367_v34  ;;  %3702 = vlog2.f32 %v2373_v35  ;;  %v2391_v10 = vadd.f32 1.0, %v13302_v63  ;;  %v13306_v21 = vld [vmem:[#allocation232_spill] sm:$0xff]  ;;  %v13346_v36 = vld [vmem:[#allocation239_spill] sm:$0xff] }
 0x2c8   :  { %13296 = vst [vmem:[#allocation229_spill] sm:$0xff] %v7815_v15  ;;  %13298 = vst [vmem:[#allocation626_spill] sm:$0xff] %v7822_v47  ;;  %v13300_v17 = vsel %vm7824_vm6, 4294967295, %v13299_v17  ;;  %vm7833_vm7 = vcmp.lt.f32.partialorder %v2361_v55, 0.0004427343  ;;  %v13303_v9 = vmov 0  ;;  %v7842_v35 = vmul.f32 %v2359_v3, %v13277_v19 }
 0x2c9   :  { %13301 = vst [vmem:[#allocation627_spill] sm:$0xff] %v13300_v17  ;;  %v13304_v9 = vsel %vm7833_vm7, 4294967295, %v13303_v9  ;;  %v2385_v8 = vmul.f32 -0.5, %v13295_v53  ;;  %v2400_v23 = vadd.f32 1.0, %v13306_v21  ;;  %v7839_v29 = vmul.f32 0.6931472, %v3693_v5 }
 0x2ca   :  { %13305 = vst [vmem:[#allocation231_spill] sm:$0xff] %v13304_v9  ;;  %13308 = vst [vmem:[#allocation628_spill] sm:$0xff] %v7842_v35  ;;  %vm7844_vm12 = vcmp.lt.f32.partialorder %v2370_v28, 0.0004427343  ;;  %v13309_v34 = vmov 0  ;;  %3704 = vlog2.f32 %v2382_v12  ;;  %v2377_v13 = vadd.f32 1.0, %v2376_v0  ;;  %v3697_v5 = vpop.eup %3696 }
 0x2cb   :  { %13307 = vst [vmem:[#allocation232_spill] sm:$0xff] %v7839_v29  ;;  %v13310_v34 = vsel %vm7844_vm12, 4294967295, %v13309_v34  ;;  %v2379_v31 = vand.u32 2147483647, %v13289_v52  ;;  %v2394_v6 = vmul.f32 -0.5, %v13302_v63  ;;  %v7857_v19 = vmul.f32 %v2368_v1, %v13282_v22  ;;  %v13314_v3 = vld [vmem:[#allocation233_spill] sm:$0xff]  ;;  %v3699_v12 = vpop.eup %3698 }
 0x2cc   :  { %13311 = vst [vmem:[#allocation629_spill] sm:$0xff] %v13310_v34  ;;  %v7854_v25 = vmul.f32 0.6931472, %v3695_v61  ;;  %3706 = vlog2.f32 %v2391_v10  ;;  %v2409_v28 = vadd.f32 1.0, %v13314_v3  ;;  %v2386_v46 = vadd.f32 1.0, %v2385_v8  ;;  %v3701_v55 = vpop.eup %3700  ;;  %v13315_v10 = vld [vmem:[#allocation234_spill] sm:$0xff] }
 0x2cd   :  { %13313 = vst [vmem:[#allocation631_spill] sm:$0xff] %v7857_v19  ;;  %v2388_v18 = vand.u32 2147483647, %v13295_v53  ;;  %3708 = vlog2.f32 %v2400_v23  ;;  %v2403_v0 = vmul.f32 -0.5, %v13306_v21  ;;  %v2397_v15 = vand.u32 2147483647, %v13302_v63 }
 0x2ce   :  { %13312 = vst [vmem:[#allocation630_spill] sm:$0xff] %v7854_v25  ;;  %v2412_v1 = vmul.f32 -0.5, %v13314_v3  ;;  %v2418_v22 = vadd.f32 1.0, %v13315_v10  ;;  %v7869_v2 = vmul.f32 0.6931472, %v3697_v5  ;;  %v7872_v8 = vmul.f32 %v2377_v13, %v13289_v52  ;;  %v13651_v24 = vld [vmem:[#allocation176_spill] sm:$0xff] }
 0x2cf   :  { %vm7874_vm5 = vcmp.lt.f32.partialorder %v2379_v31, 0.0004427343  ;;  %v13318_v23 = vmov 0  ;;  %v2395_v56 = vadd.f32 1.0, %v2394_v6  ;;  %v7882_v29 = vmul.f32 0.6931472, %v3699_v12 }
 0x2d0   :  { %13316 = vst [vmem:[#allocation233_spill] sm:$0xff] %v7869_v2  ;;  %13317 = vst [vmem:[#allocation234_spill] sm:$0xff] %v7872_v8  ;;  %v13319_v23 = vsel %vm7874_vm5, 4294967295, %v13318_v23  ;;  %v2406_v44 = vand.u32 2147483647, %v13306_v21  ;;  %3710 = vlog2.f32 %v2409_v28  ;;  %v7888_v52 = vmul.f32 %v2386_v46, %v13295_v53  ;;  %v13330_v28 = vld [vmem:[#allocation235_spill] sm:$0xff] }
 0x2d1   :  { %13320 = vst [vmem:[#allocation632_spill] sm:$0xff] %v13319_v23  ;;  %13321 = vst [vmem:[#allocation633_spill] sm:$0xff] %v7882_v29  ;;  %v7885_v5 = vmul.f32 0.6931472, %v3701_v55  ;;  %vm7890_vm15 = vcmp.lt.f32.partialorder %v2388_v18, 0.0004427343  ;;  %v3703_v13 = vpop.eup %3702  ;;  %3712 = vlog2.f32 %v2418_v22  ;;  %v7905_v53 = vmul.f32 %v2395_v56, %v13302_v63 }
 0x2d2   :  { %13323 = vst [vmem:[#allocation635_spill] sm:$0xff] %v7888_v52  ;;  %v13324_v31 = vmov 0  ;;  %v2404_v6 = vadd.f32 1.0, %v2403_v0  ;;  %vm7894_vm10 = vcmp.lt.f32.partialorder %v2397_v15, 0.0004427343  ;;  %v13327_v49 = vmov 0 }
 0x2d3   :  { %13322 = vst [vmem:[#allocation634_spill] sm:$0xff] %v7885_v5  ;;  %v13325_v31 = vsel %vm7890_vm15, 4294967295, %v13324_v31  ;;  %v13328_v49 = vsel %vm7894_vm10, 4294967295, %v13327_v49  ;;  %v2413_v12 = vadd.f32 1.0, %v2412_v1  ;;  %v2415_v61 = vand.u32 2147483647, %v13314_v3 }
 0x2d4   :  { %13326 = vst [vmem:[#allocation636_spill] sm:$0xff] %v13325_v31  ;;  %13329 = vst [vmem:[#allocation637_spill] sm:$0xff] %v13328_v49  ;;  %v2427_v55 = vadd.f32 1.0, %v13330_v28  ;;  %v2421_v46 = vmul.f32 -0.5, %v13315_v10  ;;  %v13332_v15 = vld [vmem:[#allocation236_spill] sm:$0xff]  ;;  %v3705_v25 = vpop.eup %3704  ;;  %v13333_v22 = vmov 0  ;;  %v7926_v47 = vmul.f32 %v2404_v6, %v13306_v21 }
 0x2d5   :  { %13331 = vst [vmem:[#allocation235_spill] sm:$0xff] %v7905_v53  ;;  %v2436_v0 = vadd.f32 1.0, %v13332_v15  ;;  %vm7913_vm4 = vcmp.lt.f32.partialorder %v2406_v44, 0.0004427343  ;;  %v2430_v17 = vmul.f32 -0.5, %v13330_v28  ;;  %v13336_v18 = vld [vmem:[#allocation237_spill] sm:$0xff]  ;;  %v7930_v29 = vmul.f32 %v2413_v12, %v13314_v3 }
 0x2d6   :  { %v13334_v22 = vsel %vm7913_vm4, 4294967295, %v13333_v22  ;;  %v2445_v2 = vadd.f32 1.0, %v13336_v18  ;;  %v7923_v56 = vmul.f32 0.6931472, %v3703_v13  ;;  %13338 = vst [vmem:[#allocation638_spill] sm:$0xff] %v7926_v47  ;;  %v2439_v1 = vmul.f32 -0.5, %v13332_v15  ;;  %v3707_v44 = vpop.eup %3706 }
 0x2d7   :  { %13335 = vst [vmem:[#allocation236_spill] sm:$0xff] %v13334_v22  ;;  %13339 = vst [vmem:[#allocation639_spill] sm:$0xff] %v7930_v29  ;;  %vm7932_vm7 = vcmp.lt.f32.partialorder %v2415_v61, 0.0004427343  ;;  %v13340_v35 = vmov 0  ;;  %3714 = vlog2.f32 %v2427_v55  ;;  %v3709_v34 = vpop.eup %3708  ;;  %v2422_v13 = vadd.f32 1.0, %v2421_v46 }
 0x2d8   :  { %13337 = vst [vmem:[#allocation237_spill] sm:$0xff] %v7923_v56  ;;  %v13341_v35 = vsel %vm7932_vm7, 4294967295, %v13340_v35  ;;  %v2424_v9 = vand.u32 2147483647, %v13315_v10  ;;  %v7937_v63 = vmul.f32 0.6931472, %v3705_v25  ;;  %3716 = vlog2.f32 %v2436_v0 }
 0x2d9   :  { %13342 = vst [vmem:[#allocation640_spill] sm:$0xff] %v13341_v35  ;;  %v2433_v21 = vand.u32 2147483647, %v13330_v28  ;;  %v2431_v6 = vadd.f32 1.0, %v2430_v17  ;;  %3718 = vlog2.f32 %v2445_v2  ;;  %v2448_v5 = vmul.f32 -0.5, %v13336_v18  ;;  %v13344_v3 = vld [vmem:[#allocation238_spill] sm:$0xff] }
 0x2da   :  { %13343 = vst [vmem:[#allocation641_spill] sm:$0xff] %v7937_v63  ;;  %v2454_v12 = vadd.f32 1.0, %v13344_v3  ;;  %v7942_v61 = vmul.f32 0.6931472, %v3707_v44  ;;  %v2440_v19 = vadd.f32 1.0, %v2439_v1  ;;  %v2463_v55 = vadd.f32 1.0, %v13346_v36  ;;  %v3711_v59 = vpop.eup %3710 }
 0x2db   :  { %v2442_v14 = vand.u32 2147483647, %v13332_v15  ;;  %v7950_v46 = vmul.f32 0.6931472, %v3709_v34  ;;  %vm7952_vm12 = vcmp.lt.f32.partialorder %v2424_v9, 0.0004427343  ;;  %v7962_v1 = vmul.f32 %v2422_v13, %v13315_v10  ;;  %v3713_v34 = vpop.eup %3712 }
 0x2dc   :  { %13345 = vst [vmem:[#allocation238_spill] sm:$0xff] %v7942_v61  ;;  %v13348_v2 = vmov 0  ;;  %v2457_v17 = vmul.f32 -0.5, %v13344_v3  ;;  %v2466_v44 = vmul.f32 -0.5, %v13346_v36  ;;  %v13352_v23 = vld [vmem:[#allocation70_spill] sm:$0xff]  ;;  %v7967_v9 = vmul.f32 %v2431_v6, %v13330_v28  ;;  %v13374_v63 = vld [vmem:[#allocation244_spill] sm:$0xff] }
 0x2dd   :  { %13347 = vst [vmem:[#allocation239_spill] sm:$0xff] %v7950_v46  ;;  %v13349_v2 = vsel %vm7952_vm12, 4294967295, %v13348_v2  ;;  %13351 = vst [vmem:[#allocation643_spill] sm:$0xff] %v7962_v1  ;;  %v2472_v25 = vadd.f32 1.0, %v13352_v23  ;;  %vm7969_vm5 = vcmp.lt.f32.partialorder %v2433_v21, 0.0004427343  ;;  %3720 = vlog2.f32 %v2454_v12 }
 0x2de   :  { %13350 = vst [vmem:[#allocation642_spill] sm:$0xff] %v13349_v2  ;;  %13353 = vst [vmem:[#allocation70_spill] sm:$0xff] %v7967_v9  ;;  %v13354_v56 = vmov 0  ;;  %v2449_v8 = vadd.f32 1.0, %v2448_v5  ;;  %v2451_v4 = vand.u32 2147483647, %v13336_v18  ;;  %v7981_v0 = vmul.f32 %v2440_v19, %v13332_v15 }
 0x2df   :  { %v13355_v56 = vsel %vm7969_vm5, 4294967295, %v13354_v56  ;;  %v7978_v13 = vmul.f32 0.6931472, %v3711_v59  ;;  %vm7983_vm15 = vcmp.lt.f32.partialorder %v2442_v14, 0.0004427343  ;;  %v13359_v28 = vmov 0 }
 0x2e0   :  { %13356 = vst [vmem:[#allocation644_spill] sm:$0xff] %v13355_v56  ;;  %13358 = vst [vmem:[#allocation646_spill] sm:$0xff] %v7981_v0  ;;  %v13360_v28 = vsel %vm7983_vm15, 4294967295, %v13359_v28  ;;  %3722 = vlog2.f32 %v2463_v55  ;;  %v2458_v21 = vadd.f32 1.0, %v2457_v17  ;;  %v2460_v6 = vand.u32 2147483647, %v13344_v3 }
 0x2e1   :  { %13357 = vst [vmem:[#allocation645_spill] sm:$0xff] %v7978_v13  ;;  %13361 = vst [vmem:[#allocation647_spill] sm:$0xff] %v13360_v28  ;;  %v13362_v12 = vld [vmem:[#allocation240_spill] sm:$0xff]  ;;  %v7993_v59 = vmul.f32 0.6931472, %v3713_v34  ;;  %v2467_v61 = vadd.f32 1.0, %v2466_v44  ;;  %3724 = vlog2.f32 %v2472_v25  ;;  %v3715_v14 = vpop.eup %3714  ;;  %v7997_v15 = vmul.f32 %v2449_v8, %v13336_v18 }
 0x2e2   :  { %v2481_v10 = vadd.f32 1.0, %v13362_v12  ;;  %v2469_v19 = vand.u32 2147483647, %v13346_v36  ;;  %vm7999_vm10 = vcmp.lt.f32.partialorder %v2451_v4, 0.0004427343  ;;  %v13365_v55 = vmov 0  ;;  %v3717_v47 = vpop.eup %3716 }
 0x2e3   :  { %13363 = vst [vmem:[#allocation240_spill] sm:$0xff] %v7993_v59  ;;  %13364 = vst [vmem:[#allocation648_spill] sm:$0xff] %v7997_v15  ;;  %v13366_v55 = vsel %vm7999_vm10, 4294967295, %v13365_v55  ;;  %v2475_v17 = vmul.f32 -0.5, %v13352_v23  ;;  %v13368_v5 = vld [vmem:[#allocation241_spill] sm:$0xff]  ;;  %v2484_v34 = vmul.f32 -0.5, %v13362_v12  ;;  %v3719_v4 = vpop.eup %3718  ;;  %v8013_v22 = vmul.f32 %v2458_v21, %v13344_v3 }
 0x2e4   :  { %13367 = vst [vmem:[#allocation649_spill] sm:$0xff] %v13366_v55  ;;  %v2490_v46 = vadd.f32 1.0, %v13368_v5  ;;  %v2478_v25 = vand.u32 2147483647, %v13352_v23  ;;  %v13369_v8 = vld [vmem:[#allocation243_spill] sm:$0xff]  ;;  %v13371_v53 = vmov 0  ;;  %3726 = vlog2.f32 %v2481_v10 }
 0x2e5   :  { %v2499_v18 = vadd.f32 1.0, %v13369_v8  ;;  %13370 = vst [vmem:[#allocation241_spill] sm:$0xff] %v8013_v22  ;;  %vm8015_vm4 = vcmp.lt.f32.partialorder %v2460_v6, 0.0004427343  ;;  %v2493_v49 = vmul.f32 -0.5, %v13368_v5  ;;  %v2508_v35 = vadd.f32 1.0, %v13374_v63 }
 0x2e6   :  { %v13372_v53 = vsel %vm8015_vm4, 4294967295, %v13371_v53  ;;  %v8025_v13 = vmul.f32 0.6931472, %v3715_v14  ;;  %v8028_v29 = vmul.f32 %v2467_v61, %v13346_v36  ;;  %vm8030_vm7 = vcmp.lt.f32.partialorder %v2469_v19, 0.0004427343  ;;  %v13390_v56 = vld [vmem:[#allocation246_spill] sm:$0xff] }
 0x2e7   :  { %13373 = vst [vmem:[#allocation243_spill] sm:$0xff] %v13372_v53  ;;  %v13377_v3 = vmov 0  ;;  %v8034_v21 = vmul.f32 0.6931472, %v3717_v47  ;;  %v2476_v10 = vadd.f32 1.0, %v2475_v17  ;;  %3728 = vlog2.f32 %v2490_v46  ;;  %v3721_v36 = vpop.eup %3720  ;;  %v13408_v53 = vld [vmem:[#allocation249_spill] sm:$0xff] }
 0x2e8   :  { %13375 = vst [vmem:[#allocation244_spill] sm:$0xff] %v8025_v13  ;;  %13376 = vst [vmem:[#allocation650_spill] sm:$0xff] %v8028_v29  ;;  %v13378_v3 = vsel %vm8030_vm7, 4294967295, %v13377_v3  ;;  %v2487_v6 = vand.u32 2147483647, %v13362_v12  ;;  %v13382_v2 = vmov 0  ;;  %3730 = vlog2.f32 %v2499_v18 }
 0x2e9   :  { %13379 = vst [vmem:[#allocation651_spill] sm:$0xff] %v13378_v3  ;;  %13380 = vst [vmem:[#allocation652_spill] sm:$0xff] %v8034_v21  ;;  %v8037_v52 = vmul.f32 0.6931472, %v3719_v4  ;;  %vm8039_vm6 = vcmp.lt.f32.partialorder %v2478_v25, 0.0004427343  ;;  %3732 = vlog2.f32 %v2508_v35  ;;  %v8057_v18 = vmul.f32 %v2476_v10, %v13352_v23 }
 0x2ea   :  { %v13383_v2 = vsel %vm8039_vm6, 4294967295, %v13382_v2  ;;  %v2485_v14 = vadd.f32 1.0, %v2484_v34  ;;  %v2494_v61 = vadd.f32 1.0, %v2493_v49  ;;  %v2496_v19 = vand.u32 2147483647, %v13368_v5  ;;  %v3723_v47 = vpop.eup %3722  ;;  %v13385_v4 = vld [vmem:[#allocation245_spill] sm:$0xff] }
 0x2eb   :  { %13381 = vst [vmem:[#allocation653_spill] sm:$0xff] %v8037_v52  ;;  %13384 = vst [vmem:[#allocation654_spill] sm:$0xff] %v13383_v2  ;;  %v2502_v44 = vmul.f32 -0.5, %v13369_v8  ;;  %v2505_v17 = vand.u32 2147483647, %v13369_v8  ;;  %v2511_v25 = vmul.f32 -0.5, %v13374_v63  ;;  %v3725_v13 = vpop.eup %3724  ;;  %vm13639_vm1 = vnez %v13638_v26 }
 0x2ec   :  { %v2517_v34 = vadd.f32 1.0, %v13385_v4  ;;  %13386 = vst [vmem:[#allocation245_spill] sm:$0xff] %v8057_v18  ;;  %vm8059_vm12 = vcmp.lt.f32.partialorder %v2487_v6, 0.0004427343  ;;  %v13387_v35 = vmov 0  ;;  %v2526_v46 = vadd.f32 1.0, %v13390_v56 }
 0x2ed   :  { %v13388_v35 = vsel %vm8059_vm12, 4294967295, %v13387_v35  ;;  %v8068_v59 = vmul.f32 0.6931472, %v3721_v36  ;;  %v8071_v28 = vmul.f32 %v2485_v14, %v13362_v12  ;;  %v2520_v23 = vmul.f32 -0.5, %v13385_v4  ;;  %v13401_v14 = vld [vmem:[#allocation247_spill] sm:$0xff]  ;;  %v13653_v32 = vld [vmem:[#allocation278_spill] sm:$0xff] }
 0x2ee   :  { %13389 = vst [vmem:[#allocation655_spill] sm:$0xff] %v13388_v35  ;;  %v8074_v10 = vmul.f32 0.6931472, %v3723_v47  ;;  %v8077_v6 = vmul.f32 %v2494_v61, %v13368_v5  ;;  %vm8079_vm15 = vcmp.lt.f32.partialorder %v2496_v19, 0.0004427343  ;;  %v13395_v49 = vmov 0  ;;  %v3727_v47 = vpop.eup %3726 }
 0x2ef   :  { %13391 = vst [vmem:[#allocation246_spill] sm:$0xff] %v8068_v59  ;;  %13392 = vst [vmem:[#allocation656_spill] sm:$0xff] %v8071_v28  ;;  %v13396_v49 = vsel %vm8079_vm15, 4294967295, %v13395_v49  ;;  %v2503_v21 = vadd.f32 1.0, %v2502_v44  ;;  %v2514_v55 = vand.u32 2147483647, %v13374_v63  ;;  %3734 = vlog2.f32 %v2517_v34 }
 0x2f0   :  { %13393 = vst [vmem:[#allocation657_spill] sm:$0xff] %v8074_v10  ;;  %13394 = vst [vmem:[#allocation658_spill] sm:$0xff] %v8077_v6  ;;  %vm8084_vm10 = vcmp.lt.f32.partialorder %v2505_v17, 0.0004427343  ;;  %v13398_v36 = vmov 0  ;;  %v2512_v12 = vadd.f32 1.0, %v2511_v25  ;;  %3736 = vlog2.f32 %v2526_v46 }
 0x2f1   :  { %13397 = vst [vmem:[#allocation659_spill] sm:$0xff] %v13396_v49  ;;  %v13399_v36 = vsel %vm8084_vm10, 4294967295, %v13398_v36  ;;  %v2535_v9 = vadd.f32 1.0, %v13401_v14  ;;  %v8089_v52 = vmul.f32 0.6931472, %v3725_v13  ;;  %v2529_v5 = vmul.f32 -0.5, %v13390_v56  ;;  %v3729_v34 = vpop.eup %3728 }
 0x2f2   :  { %13400 = vst [vmem:[#allocation660_spill] sm:$0xff] %v13399_v36  ;;  %v13403_v61 = vld [vmem:[#allocation248_spill] sm:$0xff]  ;;  %v2521_v17 = vadd.f32 1.0, %v2520_v23  ;;  %v2523_v15 = vand.u32 2147483647, %v13385_v4  ;;  %v2538_v25 = vmul.f32 -0.5, %v13401_v14  ;;  %v8104_v46 = vmul.f32 %v2503_v21, %v13369_v8  ;;  %v3731_v23 = vpop.eup %3730 }
 0x2f3   :  { %13402 = vst [vmem:[#allocation247_spill] sm:$0xff] %v8089_v52  ;;  %v2544_v19 = vadd.f32 1.0, %v13403_v61  ;;  %vm8106_vm5 = vcmp.lt.f32.partialorder %v2514_v55, 0.0004427343  ;;  %v13405_v0 = vmov 0  ;;  %v2553_v44 = vadd.f32 1.0, %v13408_v53  ;;  %v3733_v3 = vpop.eup %3732 }
 0x2f4   :  { %13404 = vst [vmem:[#allocation248_spill] sm:$0xff] %v8104_v46  ;;  %v13406_v0 = vsel %vm8106_vm5, 4294967295, %v13405_v0  ;;  %v8111_v59 = vmul.f32 0.6931472, %v3727_v47  ;;  %v8114_v22 = vmul.f32 %v2512_v12, %v13374_v63  ;;  %3738 = vlog2.f32 %v2535_v9 }
 0x2f5   :  { %13407 = vst [vmem:[#allocation661_spill] sm:$0xff] %v13406_v0  ;;  %v2547_v1 = vmul.f32 -0.5, %v13403_v61  ;;  %v2530_v8 = vadd.f32 1.0, %v2529_v5  ;;  %v2532_v21 = vand.u32 2147483647, %v13390_v56  ;;  %3740 = vlog2.f32 %v2544_v19  ;;  %v13417_v5 = vld [vmem:[#allocation250_spill] sm:$0xff] }
 0x2f6   :  { %13409 = vst [vmem:[#allocation249_spill] sm:$0xff] %v8111_v59  ;;  %13410 = vst [vmem:[#allocation662_spill] sm:$0xff] %v8114_v22  ;;  %v8122_v13 = vmul.f32 0.6931472, %v3729_v34  ;;  %v8125_v47 = vmul.f32 %v2521_v17, %v13385_v4  ;;  %vm8127_vm7 = vcmp.lt.f32.partialorder %v2523_v15, 0.0004427343  ;;  %3742 = vlog2.f32 %v2553_v44 }
 0x2f7   :  { %v13413_v63 = vmov 0  ;;  %v2539_v9 = vadd.f32 1.0, %v2538_v25  ;;  %v2541_v12 = vand.u32 2147483647, %v13401_v14  ;;  %v8132_v10 = vmul.f32 0.6931472, %v3731_v23 }
 0x2f8   :  { %13411 = vst [vmem:[#allocation663_spill] sm:$0xff] %v8122_v13  ;;  %13412 = vst [vmem:[#allocation664_spill] sm:$0xff] %v8125_v47  ;;  %v13414_v63 = vsel %vm8127_vm7, 4294967295, %v13413_v63  ;;  %v2550_v55 = vand.u32 2147483647, %v13403_v61  ;;  %v2562_v52 = vadd.f32 1.0, %v13417_v5  ;;  %v8144_v25 = vmul.f32 %v2530_v8, %v13390_v56 }
 0x2f9   :  { %13415 = vst [vmem:[#allocation665_spill] sm:$0xff] %v13414_v63  ;;  %13416 = vst [vmem:[#allocation666_spill] sm:$0xff] %v8132_v10  ;;  %v8140_v19 = vmul.f32 0.6931472, %v3733_v3  ;;  %v2548_v15 = vadd.f32 1.0, %v2547_v1  ;;  %v2556_v17 = vmul.f32 -0.5, %v13408_v53  ;;  %v3735_v2 = vpop.eup %3734  ;;  %v8157_v1 = vmul.f32 %v2539_v9, %v13401_v14 }
 0x2fa   :  { %13419 = vst [vmem:[#allocation667_spill] sm:$0xff] %v8144_v25  ;;  %vm8146_vm6 = vcmp.lt.f32.partialorder %v2532_v21, 0.0004427343  ;;  %v13420_v34 = vmov 0  ;;  %v2565_v44 = vmul.f32 -0.5, %v13417_v5  ;;  %v13423_v23 = vld [vmem:[#allocation251_spill] sm:$0xff]  ;;  %v3737_v59 = vpop.eup %3736  ;;  %3744 = vlog2.f32 %v2562_v52 }
 0x2fb   :  { %13418 = vst [vmem:[#allocation250_spill] sm:$0xff] %v8140_v19  ;;  %v13421_v34 = vsel %vm8146_vm6, 4294967295, %v13420_v34  ;;  %v2571_v18 = vadd.f32 1.0, %v13423_v23  ;;  %13424 = vst [vmem:[#allocation251_spill] sm:$0xff] %v8157_v1  ;;  %vm8159_vm12 = vcmp.lt.f32.partialorder %v2541_v12, 0.0004427343  ;;  %v8179_v12 = vmul.f32 %v2548_v15, %v13403_v61 }
 0x2fc   :  { %13422 = vst [vmem:[#allocation668_spill] sm:$0xff] %v13421_v34  ;;  %v13425_v56 = vmov 0  ;;  %v2559_v8 = vand.u32 2147483647, %v13408_v53  ;;  %v13428_v21 = vld [vmem:[#allocation78_spill] sm:$0xff]  ;;  %v13429_v49 = vmov 0 }
 0x2fd   :  { %v13426_v56 = vsel %vm8159_vm12, 4294967295, %v13425_v56  ;;  %v2580_v4 = vadd.f32 1.0, %v13428_v21  ;;  %vm8169_vm4 = vcmp.lt.f32.partialorder %v2550_v55, 0.0004427343  ;;  %v2574_v14 = vmul.f32 -0.5, %v13423_v23  ;;  %13432 = vst [vmem:[#allocation670_spill] sm:$0xff] %v8179_v12 }
 0x2fe   :  { %13427 = vst [vmem:[#allocation669_spill] sm:$0xff] %v13426_v56  ;;  %v13430_v49 = vsel %vm8169_vm4, 4294967295, %v13429_v49  ;;  %v2557_v3 = vadd.f32 1.0, %v2556_v17  ;;  %v13433_v13 = vld [vmem:[#allocation252_spill] sm:$0xff]  ;;  %v8182_v36 = vmul.f32 0.6931472, %v3735_v2  ;;  %3746 = vlog2.f32 %v2571_v18  ;;  %v3739_v52 = vpop.eup %3738 }
 0x2ff   :  { %13431 = vst [vmem:[#allocation78_spill] sm:$0xff] %v13430_v49  ;;  %v2589_v6 = vadd.f32 1.0, %v13433_v13  ;;  %v2566_v55 = vadd.f32 1.0, %v2565_v44  ;;  %v2568_v28 = vand.u32 2147483647, %v13417_v5  ;;  %v13436_v46 = vmov 0  ;;  %v3741_v15 = vpop.eup %3740 }
 0x300   :  { %13434 = vst [vmem:[#allocation252_spill] sm:$0xff] %v8182_v36  ;;  %v8185_v10 = vmul.f32 0.6931472, %v3737_v59  ;;  %vm8187_vm10 = vcmp.lt.f32.partialorder %v2559_v8, 0.0004427343  ;;  %3748 = vlog2.f32 %v2580_v4  ;;  %v2583_v61 = vmul.f32 -0.5, %v13428_v21  ;;  %v3743_v0 = vpop.eup %3742 }
 0x301   :  { %v13437_v46 = vsel %vm8187_vm10, 4294967295, %v13436_v46  ;;  %v2575_v17 = vadd.f32 1.0, %v2574_v14  ;;  %v2577_v9 = vand.u32 2147483647, %v13423_v23  ;;  %v2592_v2 = vmul.f32 -0.5, %v13433_v13  ;;  %v13439_v44 = vld [vmem:[#allocation253_spill] sm:$0xff] }
 0x302   :  { %13435 = vst [vmem:[#allocation671_spill] sm:$0xff] %v8185_v10  ;;  %13438 = vst [vmem:[#allocation672_spill] sm:$0xff] %v13437_v46  ;;  %v2598_v19 = vadd.f32 1.0, %v13439_v44  ;;  %v8196_v18 = vmul.f32 %v2557_v3, %v13408_v53  ;;  %v2586_v59 = vand.u32 2147483647, %v13428_v21  ;;  %3750 = vlog2.f32 %v2589_v6  ;;  %v13441_v8 = vld [vmem:[#allocation255_spill] sm:$0xff] }
 0x303   :  { %v2607_v22 = vadd.f32 1.0, %v13441_v8  ;;  %v8204_v14 = vmul.f32 0.6931472, %v3739_v52  ;;  %v8207_v35 = vmul.f32 %v2566_v55, %v13417_v5  ;;  %vm8209_vm5 = vcmp.lt.f32.partialorder %v2568_v28, 0.0004427343  ;;  %v13463_v56 = vld [vmem:[#allocation258_spill] sm:$0xff] }
 0x304   :  { %13440 = vst [vmem:[#allocation253_spill] sm:$0xff] %v8196_v18  ;;  %v13444_v29 = vmov 0  ;;  %v8217_v6 = vmul.f32 0.6931472, %v3741_v15  ;;  %v2584_v3 = vadd.f32 1.0, %v2583_v61  ;;  %v2601_v63 = vmul.f32 -0.5, %v13439_v44  ;;  %v3745_v10 = vpop.eup %3744 }
 0x305   :  { %13442 = vst [vmem:[#allocation255_spill] sm:$0xff] %v8204_v14  ;;  %13443 = vst [vmem:[#allocation673_spill] sm:$0xff] %v8207_v35  ;;  %v13445_v29 = vsel %vm8209_vm5, 4294967295, %v13444_v29  ;;  %v8221_v52 = vmul.f32 %v2575_v17, %v13423_v23  ;;  %vm8223_vm7 = vcmp.lt.f32.partialorder %v2577_v9, 0.0004427343  ;;  %v13449_v5 = vmov 0 }
 0x306   :  { %13446 = vst [vmem:[#allocation674_spill] sm:$0xff] %v13445_v29  ;;  %13447 = vst [vmem:[#allocation675_spill] sm:$0xff] %v8217_v6  ;;  %v13450_v5 = vsel %vm8223_vm7, 4294967295, %v13449_v5  ;;  %v2593_v28 = vadd.f32 1.0, %v2592_v2  ;;  %v2595_v55 = vand.u32 2147483647, %v13433_v13  ;;  %3752 = vlog2.f32 %v2598_v19 }
 0x307   :  { %13448 = vst [vmem:[#allocation676_spill] sm:$0xff] %v8221_v52  ;;  %13451 = vst [vmem:[#allocation677_spill] sm:$0xff] %v13450_v5  ;;  %v8228_v4 = vmul.f32 0.6931472, %v3743_v0  ;;  %vm8230_vm15 = vcmp.lt.f32.partialorder %v2586_v59, 0.0004427343  ;;  %3754 = vlog2.f32 %v2607_v22  ;;  %v8247_v22 = vmul.f32 %v2584_v3, %v13428_v21 }
 0x308   :  { %v13453_v53 = vmov 0  ;;  %v13456_v61 = vld [vmem:[#allocation256_spill] sm:$0xff]  ;;  %v2604_v9 = vand.u32 2147483647, %v13439_v44  ;;  %v2610_v17 = vmul.f32 -0.5, %v13441_v8  ;;  %v13457_v19 = vld [vmem:[#allocation257_spill] sm:$0xff]  ;;  %v3747_v34 = vpop.eup %3746  ;;  %v8251_v23 = vmul.f32 %v2593_v28, %v13433_v13 }
 0x309   :  { %13452 = vst [vmem:[#allocation678_spill] sm:$0xff] %v8228_v4  ;;  %v13454_v53 = vsel %vm8230_vm15, 4294967295, %v13453_v53  ;;  %v2616_v15 = vadd.f32 1.0, %v13456_v61  ;;  %v2625_v0 = vadd.f32 1.0, %v13457_v19  ;;  %13458 = vst [vmem:[#allocation256_spill] sm:$0xff] %v8247_v22  ;;  %v2602_v59 = vadd.f32 1.0, %v2601_v63 }
 0x30a   :  { %13455 = vst [vmem:[#allocation679_spill] sm:$0xff] %v13454_v53  ;;  %v2619_v25 = vmul.f32 -0.5, %v13456_v61  ;;  %13459 = vst [vmem:[#allocation257_spill] sm:$0xff] %v8251_v23  ;;  %vm8253_vm12 = vcmp.lt.f32.partialorder %v2595_v55, 0.0004427343  ;;  %v13460_v14 = vmov 0  ;;  %v3749_v49 = vpop.eup %3748 }
 0x30b   :  { %v13461_v14 = vsel %vm8253_vm12, 4294967295, %v13460_v14  ;;  %v2628_v1 = vmul.f32 -0.5, %v13457_v19  ;;  %v2634_v36 = vadd.f32 1.0, %v13463_v56  ;;  %v8263_v21 = vmul.f32 0.6931472, %v3745_v10  ;;  %v13468_v55 = vld [vmem:[#allocation259_spill] sm:$0xff] }
 0x30c   :  { %13462 = vst [vmem:[#allocation680_spill] sm:$0xff] %v13461_v14  ;;  %v2613_v3 = vand.u32 2147483647, %v13441_v8  ;;  %3756 = vlog2.f32 %v2616_v15  ;;  %vm8266_vm4 = vcmp.lt.f32.partialorder %v2604_v9, 0.0004427343  ;;  %v13465_v13 = vmov 0  ;;  %v3751_v6 = vpop.eup %3750 }
 0x30d   :  { %13464 = vst [vmem:[#allocation258_spill] sm:$0xff] %v8263_v21  ;;  %v13466_v13 = vsel %vm8266_vm4, 4294967295, %v13465_v13  ;;  %v2611_v28 = vadd.f32 1.0, %v2610_v17  ;;  %3758 = vlog2.f32 %v2625_v0  ;;  %v2643_v2 = vadd.f32 1.0, %v13468_v55 }
 0x30e   :  { %13467 = vst [vmem:[#allocation681_spill] sm:$0xff] %v13466_v13  ;;  %v8271_v12 = vmul.f32 0.6931472, %v3747_v34  ;;  %v8274_v47 = vmul.f32 %v2602_v59, %v13439_v44  ;;  %v2620_v63 = vadd.f32 1.0, %v2619_v25  ;;  %v2622_v10 = vand.u32 2147483647, %v13456_v61 }
 0x30f   :  { %v8277_v4 = vmul.f32 0.6931472, %v3749_v49  ;;  %v2629_v15 = vadd.f32 1.0, %v2628_v1  ;;  %v2631_v9 = vand.u32 2147483647, %v13457_v19  ;;  %3760 = vlog2.f32 %v2634_v36  ;;  %v13477_v36 = vld [vmem:[#allocation260_spill] sm:$0xff] }
 0x310   :  { %13469 = vst [vmem:[#allocation259_spill] sm:$0xff] %v8271_v12  ;;  %13470 = vst [vmem:[#allocation682_spill] sm:$0xff] %v8274_v47  ;;  %vm8284_vm10 = vcmp.lt.f32.partialorder %v2613_v3, 0.0004427343  ;;  %v13472_v34 = vmov 0  ;;  %v2637_v44 = vmul.f32 -0.5, %v13463_v56  ;;  %v3753_v0 = vpop.eup %3752  ;;  %v8293_v1 = vmul.f32 %v2611_v28, %v13441_v8 }
 0x311   :  { %13471 = vst [vmem:[#allocation683_spill] sm:$0xff] %v8277_v4  ;;  %v13473_v34 = vsel %vm8284_vm10, 4294967295, %v13472_v34  ;;  %v2646_v25 = vmul.f32 -0.5, %v13468_v55  ;;  %v8290_v49 = vmul.f32 0.6931472, %v3751_v6  ;;  %3762 = vlog2.f32 %v2643_v2  ;;  %v3755_v18 = vpop.eup %3754  ;;  %v13482_v8 = vld [vmem:[#allocation262_spill] sm:$0xff] }
 0x312   :  { %13474 = vst [vmem:[#allocation684_spill] sm:$0xff] %v13473_v34  ;;  %13476 = vst [vmem:[#allocation686_spill] sm:$0xff] %v8293_v1  ;;  %v2652_v59 = vadd.f32 1.0, %v13477_v36  ;;  %v8301_v17 = vmul.f32 %v2620_v63, %v13456_v61  ;;  %vm8303_vm5 = vcmp.lt.f32.partialorder %v2622_v10, 0.0004427343  ;;  %v13479_v21 = vmov 0 }
 0x313   :  { %13475 = vst [vmem:[#allocation685_spill] sm:$0xff] %v8290_v49  ;;  %v13480_v21 = vsel %vm8303_vm5, 4294967295, %v13479_v21  ;;  %v2640_v6 = vand.u32 2147483647, %v13463_v56  ;;  %v2661_v28 = vadd.f32 1.0, %v13482_v8  ;;  %v8314_v35 = vmul.f32 %v2629_v15, %v13457_v19  ;;  %v13489_v19 = vld [vmem:[#allocation263_spill] sm:$0xff] }
 0x314   :  { %13478 = vst [vmem:[#allocation260_spill] sm:$0xff] %v8301_v17  ;;  %13481 = vst [vmem:[#allocation687_spill] sm:$0xff] %v13480_v21  ;;  %vm8316_vm7 = vcmp.lt.f32.partialorder %v2631_v9, 0.0004427343  ;;  %v13484_v3 = vmov 0  ;;  %v2655_v61 = vmul.f32 -0.5, %v13477_v36  ;;  %3764 = vlog2.f32 %v2652_v59 }
 0x315   :  { %13483 = vst [vmem:[#allocation262_spill] sm:$0xff] %v8314_v35  ;;  %v13485_v3 = vsel %vm8316_vm7, 4294967295, %v13484_v3  ;;  %v8321_v63 = vmul.f32 0.6931472, %v3753_v0  ;;  %v2638_v10 = vadd.f32 1.0, %v2637_v44  ;;  %v2647_v12 = vadd.f32 1.0, %v2646_v25 }
 0x316   :  { %13486 = vst [vmem:[#allocation688_spill] sm:$0xff] %v13485_v3  ;;  %v2649_v52 = vand.u32 2147483647, %v13468_v55  ;;  %v8328_v4 = vmul.f32 0.6931472, %v3755_v18  ;;  %v2670_v15 = vadd.f32 1.0, %v13489_v19  ;;  %v3757_v9 = vpop.eup %3756  ;;  %3766 = vlog2.f32 %v2661_v28 }
 0x317   :  { %13487 = vst [vmem:[#allocation689_spill] sm:$0xff] %v8321_v63  ;;  %vm8331_vm15 = vcmp.lt.f32.partialorder %v2640_v6, 0.0004427343  ;;  %v13490_v22 = vmov 0  ;;  %v2664_v44 = vmul.f32 -0.5, %v13482_v8  ;;  %v13493_v25 = vld [vmem:[#allocation264_spill] sm:$0xff]  ;;  %v3759_v53 = vpop.eup %3758  ;;  %v8345_v49 = vmul.f32 %v2638_v10, %v13463_v56 }
 0x318   :  { %13488 = vst [vmem:[#allocation690_spill] sm:$0xff] %v8328_v4  ;;  %v13491_v22 = vsel %vm8331_vm15, 4294967295, %v13490_v22  ;;  %v2679_v0 = vadd.f32 1.0, %v13493_v25  ;;  %v2656_v5 = vadd.f32 1.0, %v2655_v61  ;;  %v2658_v14 = vand.u32 2147483647, %v13477_v36 }
 0x319   :  { %13492 = vst [vmem:[#allocation263_spill] sm:$0xff] %v13491_v22  ;;  %v2673_v18 = vmul.f32 -0.5, %v13489_v19  ;;  %v13494_v2 = vld [vmem:[#allocation86_spill] sm:$0xff]  ;;  %13495 = vst [vmem:[#allocation264_spill] sm:$0xff] %v8345_v49  ;;  %v8348_v28 = vmul.f32 %v2647_v12, %v13468_v55  ;;  %vm8350_vm12 = vcmp.lt.f32.partialorder %v2649_v52, 0.0004427343  ;;  %v3761_v61 = vpop.eup %3760  ;;  %3768 = vlog2.f32 %v2670_v15 }
 0x31a   :  { %v2688_v59 = vadd.f32 1.0, %v13494_v2  ;;  %v13497_v23 = vmov 0  ;;  %v8358_v46 = vmul.f32 0.6931472, %v3757_v9  ;;  %v2682_v6 = vmul.f32 -0.5, %v13493_v25  ;;  %v13506_v4 = vld [vmem:[#allocation265_spill] sm:$0xff] }
 0x31b   :  { %13496 = vst [vmem:[#allocation86_spill] sm:$0xff] %v8348_v28  ;;  %v13498_v23 = vsel %vm8350_vm12, 4294967295, %v13497_v23  ;;  %v8361_v56 = vmul.f32 0.6931472, %v3759_v53  ;;  %v2665_v10 = vadd.f32 1.0, %v2664_v44  ;;  %3770 = vlog2.f32 %v2679_v0  ;;  %v3763_v52 = vpop.eup %3762  ;;  %v13527_v17 = vld [vmem:[#allocation93_spill] sm:$0xff] }
 0x31c   :  { %13499 = vst [vmem:[#allocation691_spill] sm:$0xff] %v13498_v23  ;;  %13500 = vst [vmem:[#allocation692_spill] sm:$0xff] %v8358_v46  ;;  %v2667_v12 = vand.u32 2147483647, %v13482_v8  ;;  %v8365_v55 = vmul.f32 %v2656_v5, %v13477_v36  ;;  %vm8367_vm4 = vcmp.lt.f32.partialorder %v2658_v14, 0.0004427343  ;;  %3772 = vlog2.f32 %v2688_v59 }
 0x31d   :  { %13501 = vst [vmem:[#allocation693_spill] sm:$0xff] %v8361_v56  ;;  %v13503_v63 = vmov 0  ;;  %v2674_v29 = vadd.f32 1.0, %v2673_v18  ;;  %v2676_v9 = vand.u32 2147483647, %v13489_v19  ;;  %v2691_v44 = vmul.f32 -0.5, %v13494_v2 }
 0x31e   :  { %13502 = vst [vmem:[#allocation694_spill] sm:$0xff] %v8365_v55  ;;  %v13504_v63 = vsel %vm8367_vm4, 4294967295, %v13503_v63  ;;  %v8372_v15 = vmul.f32 0.6931472, %v3761_v61  ;;  %v2685_v53 = vand.u32 2147483647, %v13493_v25  ;;  %v8390_v34 = vmul.f32 %v2665_v10, %v13482_v8  ;;  %v3765_v14 = vpop.eup %3764 }
 0x31f   :  { %v2697_v0 = vadd.f32 1.0, %v13506_v4  ;;  %v2683_v5 = vadd.f32 1.0, %v2682_v6  ;;  %v2694_v36 = vand.u32 2147483647, %v13494_v2  ;;  %v13507_v18 = vld [vmem:[#allocation266_spill] sm:$0xff]  ;;  %v13509_v47 = vmov 0 }
 0x320   :  { %13505 = vst [vmem:[#allocation695_spill] sm:$0xff] %v8372_v15  ;;  %v2706_v1 = vadd.f32 1.0, %v13507_v18  ;;  %v8387_v61 = vmul.f32 0.6931472, %v3763_v52  ;;  %vm8392_vm10 = vcmp.lt.f32.partialorder %v2667_v12, 0.0004427343  ;;  %v8397_v6 = vmul.f32 %v2674_v29, %v13489_v19  ;;  %v3767_v59 = vpop.eup %3766 }
 0x321   :  { %v13510_v47 = vsel %vm8392_vm10, 4294967295, %v13509_v47  ;;  %vm8399_vm5 = vcmp.lt.f32.partialorder %v2676_v9, 0.0004427343  ;;  %v13513_v46 = vmov 0  ;;  %v2700_v3 = vmul.f32 -0.5, %v13506_v4  ;;  %v13519_v19 = vld [vmem:[#allocation89_spill] sm:$0xff] }
 0x322   :  { %13508 = vst [vmem:[#allocation265_spill] sm:$0xff] %v8387_v61  ;;  %13511 = vst [vmem:[#allocation266_spill] sm:$0xff] %v13510_v47  ;;  %v13514_v46 = vsel %vm8399_vm5, 4294967295, %v13513_v46  ;;  %v2715_v52 = vadd.f32 1.0, %v4716_v27  ;;  %vm8409_vm7 = vcmp.lt.f32.partialorder %v2685_v53, 0.0004427343  ;;  %3774 = vlog2.f32 %v2697_v0 }
 0x323   :  { %13512 = vst [vmem:[#allocation696_spill] sm:$0xff] %v8397_v6  ;;  %13515 = vst [vmem:[#allocation697_spill] sm:$0xff] %v13514_v46  ;;  %v13516_v10 = vmov 0  ;;  %v2692_v29 = vadd.f32 1.0, %v2691_v44  ;;  %v2724_v12 = vadd.f32 1.0, %v13519_v19  ;;  %v8415_v9 = vmul.f32 %v2683_v5, %v13493_v25  ;;  %v3769_v25 = vpop.eup %3768  ;;  %v13525_v15 = vld [vmem:[#allocation267_spill] sm:$0xff] }
 0x324   :  { %v13517_v10 = vsel %vm8409_vm7, 4294967295, %v13516_v10  ;;  %vm8417_vm6 = vcmp.lt.f32.partialorder %v2694_v36, 0.0004427343  ;;  %v13521_v56 = vmov 0  ;;  %3776 = vlog2.f32 %v2706_v1 }
 0x325   :  { %13518 = vst [vmem:[#allocation698_spill] sm:$0xff] %v13517_v10  ;;  %13520 = vst [vmem:[#allocation89_spill] sm:$0xff] %v8415_v9  ;;  %v13522_v56 = vsel %vm8417_vm6, 4294967295, %v13521_v56  ;;  %v2709_v35 = vmul.f32 -0.5, %v13507_v18  ;;  %v8426_v8 = vmul.f32 0.6931472, %v3765_v14  ;;  %3778 = vlog2.f32 %v2715_v52  ;;  %v3771_v49 = vpop.eup %3770 }
 0x326   :  { %13523 = vst [vmem:[#allocation699_spill] sm:$0xff] %v13522_v56  ;;  %v2703_v44 = vand.u32 2147483647, %v13506_v4  ;;  %v2718_v0 = vmul.f32 -0.5, %v4716_v27  ;;  %v8430_v5 = vmul.f32 0.6931472, %v3767_v59  ;;  %v8434_v22 = vmul.f32 %v2692_v29, %v13494_v2  ;;  %v3773_v53 = vpop.eup %3772 }
 0x327   :  { %13524 = vst [vmem:[#allocation700_spill] sm:$0xff] %v8426_v8  ;;  %v2701_v36 = vadd.f32 1.0, %v2700_v3  ;;  %v2733_v1 = vadd.f32 1.0, %v13525_v15  ;;  %v2712_v23 = vand.u32 2147483647, %v13507_v18  ;;  %3780 = vlog2.f32 %v2724_v12  ;;  %v13538_v52 = vld [vmem:[#allocation268_spill] sm:$0xff] }
 0x328   :  { %13526 = vst [vmem:[#allocation267_spill] sm:$0xff] %v8434_v22  ;;  %v2727_v14 = vmul.f32 -0.5, %v13519_v19  ;;  %v2710_v61 = vadd.f32 1.0, %v2709_v35  ;;  %v2721_v28 = vand.u32 2147483647, %v4716_v27  ;;  %v2736_v59 = vmul.f32 -0.5, %v13525_v15 }
 0x329   :  { %v2742_v3 = vadd.f32 1.0, %v13527_v17  ;;  %v8445_v2 = vmul.f32 0.6931472, %v3769_v25  ;;  %vm8447_vm12 = vcmp.lt.f32.partialorder %v2703_v44, 0.0004427343  ;;  %v13529_v29 = vmov 0 }
 0x32a   :  { %v13530_v29 = vsel %vm8447_vm12, 4294967295, %v13529_v29  ;;  %v2719_v12 = vadd.f32 1.0, %v2718_v0  ;;  %v2730_v35 = vand.u32 2147483647, %v13519_v19  ;;  %v8456_v13 = vmul.f32 0.6931472, %v3771_v49 }
 0x32b   :  { %13528 = vst [vmem:[#allocation93_spill] sm:$0xff] %v8445_v2  ;;  %13531 = vst [vmem:[#allocation701_spill] sm:$0xff] %v13530_v29  ;;  %v8459_v31 = vmul.f32 %v2701_v36, %v13506_v4  ;;  %3782 = vlog2.f32 %v2733_v1  ;;  %v8461_v25 = vmul.f32 0.6931472, %v3773_v53  ;;  %vm8463_vm4 = vcmp.lt.f32.partialorder %v2712_v23, 0.0004427343 }
 0x32c   :  { %13532 = vst [vmem:[#allocation702_spill] sm:$0xff] %v8456_v13  ;;  %v13535_v44 = vmov 0  ;;  %v2728_v0 = vadd.f32 1.0, %v2727_v14  ;;  %v2751_v8 = vadd.f32 1.0, %v13538_v52  ;;  %v8469_v55 = vmul.f32 %v2710_v61, %v13507_v18  ;;  %v3775_v21 = vpop.eup %3774 }
 0x32d   :  { %13533 = vst [vmem:[#allocation703_spill] sm:$0xff] %v8459_v31  ;;  %13534 = vst [vmem:[#allocation704_spill] sm:$0xff] %v8461_v25  ;;  %v13536_v44 = vsel %vm8463_vm4, 4294967295, %v13535_v44  ;;  %v2737_v47 = vadd.f32 1.0, %v2736_v59  ;;  %v2739_v49 = vand.u32 2147483647, %v13525_v15  ;;  %3784 = vlog2.f32 %v2742_v3 }
 0x32e   :  { %13537 = vst [vmem:[#allocation705_spill] sm:$0xff] %v13536_v44  ;;  %13539 = vst [vmem:[#allocation268_spill] sm:$0xff] %v8469_v55  ;;  %v8477_v23 = vmul.f32 %v2719_v12, %v4716_v27  ;;  %vm8479_vm10 = vcmp.lt.f32.partialorder %v2721_v28, 0.0004427343  ;;  %v13541_v53 = vmov 0  ;;  %v13544_v18 = vmov 0  ;;  %v3777_v36 = vpop.eup %3776 }
 0x32f   :  { %v13542_v53 = vsel %vm8479_vm10, 4294967295, %v13541_v53  ;;  %vm8483_vm15 = vcmp.lt.f32.partialorder %v2730_v35, 0.0004427343  ;;  %v2745_v61 = vmul.f32 -0.5, %v13527_v17  ;;  %v2748_v14 = vand.u32 2147483647, %v13527_v17  ;;  %v3779_v4 = vpop.eup %3778 }
 0x330   :  { %13540 = vst [vmem:[#allocation706_spill] sm:$0xff] %v8477_v23  ;;  %13543 = vst [vmem:[#allocation707_spill] sm:$0xff] %v13542_v53  ;;  %v13545_v18 = vsel %vm8483_vm15, 4294967295, %v13544_v18  ;;  %v2754_v27 = vmul.f32 -0.5, %v13538_v52  ;;  %v13547_v28 = vld [vmem:[#allocation269_spill] sm:$0xff]  ;;  %v8500_v12 = vmul.f32 %v2728_v0, %v13519_v19  ;;  %3786 = vlog2.f32 %v2751_v8  ;;  %v13583_v53 = vld [vmem:[#allocation271_spill] sm:$0xff] }
 0x331   :  { %13546 = vst [vmem:[#allocation708_spill] sm:$0xff] %v13545_v18  ;;  %v2760_v59 = vadd.f32 1.0, %v13547_v28  ;;  %v2769_v35 = vadd.f32 1.0, %v4735_v60  ;;  %v8503_v10 = vmul.f32 0.6931472, %v3775_v21  ;;  %v8506_v1 = vmul.f32 %v2737_v47, %v13525_v15  ;;  %v3781_v56 = vpop.eup %3780 }
 0x332   :  { %13548 = vst [vmem:[#allocation269_spill] sm:$0xff] %v8500_v12  ;;  %vm8508_vm7 = vcmp.lt.f32.partialorder %v2739_v49, 0.0004427343  ;;  %v13551_v13 = vmov 0  ;;  %v2763_v9 = vmul.f32 -0.5, %v13547_v28  ;;  %v2746_v19 = vadd.f32 1.0, %v2745_v61 }
 0x333   :  { %13549 = vst [vmem:[#allocation709_spill] sm:$0xff] %v8503_v10  ;;  %13550 = vst [vmem:[#allocation710_spill] sm:$0xff] %v8506_v1  ;;  %v13552_v13 = vsel %vm8508_vm7, 4294967295, %v13551_v13  ;;  %v8513_v3 = vmul.f32 0.6931472, %v3777_v36  ;;  %v2778_v0 = vadd.f32 1.0, %v4737_v39  ;;  %3788 = vlog2.f32 %v2760_v59 }
 0x334   :  { %13553 = vst [vmem:[#allocation711_spill] sm:$0xff] %v13552_v13  ;;  %v2757_v8 = vand.u32 2147483647, %v13538_v52  ;;  %vm8517_vm6 = vcmp.lt.f32.partialorder %v2748_v14, 0.0004427343  ;;  %v13555_v21 = vmov 0  ;;  %3790 = vlog2.f32 %v2769_v35 }
 0x335   :  { %13554 = vst [vmem:[#allocation712_spill] sm:$0xff] %v8513_v3  ;;  %v13556_v21 = vsel %vm8517_vm6, 4294967295, %v13555_v21  ;;  %v2755_v47 = vadd.f32 1.0, %v2754_v27  ;;  %v2772_v15 = vmul.f32 -0.5, %v4735_v60  ;;  %v2766_v49 = vand.u32 2147483647, %v13547_v28  ;;  %v3783_v61 = vpop.eup %3782 }
 0x336   :  { %13557 = vst [vmem:[#allocation713_spill] sm:$0xff] %v13556_v21  ;;  %v2781_v25 = vmul.f32 -0.5, %v4737_v39  ;;  %v13558_v36 = vld [vmem:[#allocation92_spill] sm:$0xff]  ;;  %v8529_v2 = vmul.f32 0.6931472, %v3779_v4  ;;  %v2764_v27 = vadd.f32 1.0, %v2763_v9  ;;  %v8538_v35 = vmul.f32 %v2746_v19, %v13527_v17 }
 0x337   :  { %v2787_v22 = vadd.f32 1.0, %v13558_v36  ;;  %v8531_v6 = vmul.f32 0.6931472, %v3781_v56  ;;  %vm8540_vm5 = vcmp.lt.f32.partialorder %v2757_v8, 0.0004427343  ;;  %v13562_v46 = vmov 0  ;;  %v3785_v29 = vpop.eup %3784 }
 0x338   :  { %13559 = vst [vmem:[#allocation92_spill] sm:$0xff] %v8529_v2  ;;  %13561 = vst [vmem:[#allocation715_spill] sm:$0xff] %v8538_v35  ;;  %v13563_v46 = vsel %vm8540_vm5, 4294967295, %v13562_v46  ;;  %3792 = vlog2.f32 %v2778_v0  ;;  %v8545_v4 = vmul.f32 %v2755_v47, %v13538_v52  ;;  %v2773_v56 = vadd.f32 1.0, %v2772_v15  ;;  %v13571_v19 = vld [vmem:[#allocation96_spill] sm:$0xff] }
 0x339   :  { %13560 = vst [vmem:[#allocation714_spill] sm:$0xff] %v8531_v6  ;;  %v2775_v9 = vand.u32 2147483647, %v4735_v60  ;;  %v2790_v14 = vmul.f32 -0.5, %v13558_v36  ;;  %v8549_v10 = vmul.f32 0.6931472, %v3783_v61  ;;  %3794 = vlog2.f32 %v2787_v22 }
 0x33a   :  { %13564 = vst [vmem:[#allocation716_spill] sm:$0xff] %v8545_v4  ;;  %v2782_v59 = vadd.f32 1.0, %v2781_v25  ;;  %v2784_v17 = vand.u32 2147483647, %v4737_v39  ;;  %v8561_v8 = vmul.f32 %v2764_v27, %v13547_v28  ;;  %vm8563_vm4 = vcmp.lt.f32.partialorder %v2766_v49, 0.0004427343  ;;  %v3787_v22 = vpop.eup %3786 }
 0x33b   :  { %13565 = vst [vmem:[#allocation717_spill] sm:$0xff] %v8549_v10  ;;  %v13567_v0 = vmov 0  ;;  %v2796_v25 = vadd.f32 1.0, %v4742_v40  ;;  %v8568_v47 = vmul.f32 0.6931472, %v3785_v29  ;;  %v2799_v61 = vmul.f32 -0.5, %v4742_v40 }
 0x33c   :  { %13566 = vst [vmem:[#allocation718_spill] sm:$0xff] %v8561_v8  ;;  %v13568_v0 = vsel %vm8563_vm4, 4294967295, %v13567_v0  ;;  %v2793_v15 = vand.u32 2147483647, %v13558_v36  ;;  %v2805_v2 = vadd.f32 1.0, %v13571_v19  ;;  %v8574_v52 = vmul.f32 %v2773_v56, %v4735_v60  ;;  %v13576_v27 = vld [vmem:[#allocation270_spill] sm:$0xff] }
 0x33d   :  { %13569 = vst [vmem:[#allocation719_spill] sm:$0xff] %v13568_v0  ;;  %13570 = vst [vmem:[#allocation720_spill] sm:$0xff] %v8568_v47  ;;  %vm8576_vm15 = vcmp.lt.f32.partialorder %v2775_v9, 0.0004427343  ;;  %v13573_v28 = vmov 0  ;;  %v2791_v49 = vadd.f32 1.0, %v2790_v14  ;;  %v8586_v12 = vmul.f32 %v2782_v59, %v4737_v39  ;;  %v3789_v9 = vpop.eup %3788 }
 0x33e   :  { %13572 = vst [vmem:[#allocation96_spill] sm:$0xff] %v8574_v52  ;;  %v13574_v28 = vsel %vm8576_vm15, 4294967295, %v13573_v28  ;;  %v2814_v6 = vadd.f32 1.0, %v13576_v27  ;;  %vm8588_vm10 = vcmp.lt.f32.partialorder %v2784_v17, 0.0004427343  ;;  %v13578_v18 = vmov 0  ;;  %v3791_v55 = vpop.eup %3790 }
 0x33f   :  { %13575 = vst [vmem:[#allocation721_spill] sm:$0xff] %v13574_v28  ;;  %13577 = vst [vmem:[#allocation270_spill] sm:$0xff] %v8586_v12  ;;  %v13579_v18 = vsel %vm8588_vm10, 4294967295, %v13578_v18  ;;  %v13581_v60 = vld [vmem:[#allocation99_spill] sm:$0xff]  ;;  %v8593_v23 = vmul.f32 0.6931472, %v3787_v22  ;;  %3796 = vlog2.f32 %v2796_v25  ;;  %v8607_v25 = vmul.f32 %v2791_v49, %v13558_v36 }
 0x340   :  { %13580 = vst [vmem:[#allocation722_spill] sm:$0xff] %v13579_v18  ;;  %v2823_v56 = vadd.f32 1.0, %v13581_v60  ;;  %v2808_v14 = vmul.f32 -0.5, %v13571_v19  ;;  %v2832_v3 = vadd.f32 1.0, %v13583_v53  ;;  %vm8601_vm7 = vcmp.lt.f32.partialorder %v2793_v15, 0.0004427343 }
 0x341   :  { %13582 = vst [vmem:[#allocation99_spill] sm:$0xff] %v8593_v23  ;;  %v13584_v59 = vmov 0  ;;  %v2800_v17 = vadd.f32 1.0, %v2799_v61  ;;  %v2802_v29 = vand.u32 2147483647, %v4742_v40  ;;  %3798 = vlog2.f32 %v2805_v2  ;;  %13587 = vst [vmem:[#allocation723_spill] sm:$0xff] %v8607_v25 }
 0x342   :  { %v13585_v59 = vsel %vm8601_vm7, 4294967295, %v13584_v59  ;;  %3800 = vlog2.f32 %v2814_v6  ;;  %v2817_v22 = vmul.f32 -0.5, %v13576_v27  ;;  %v13588_v10 = vld [vmem:[#allocation272_spill] sm:$0xff]  ;;  %v3793_v13 = vpop.eup %3792  ;;  %v8611_v44 = vmul.f32 0.6931472, %v3789_v9 }
 0x343   :  { %13586 = vst [vmem:[#allocation271_spill] sm:$0xff] %v13585_v59  ;;  %v2841_v1 = vadd.f32 1.0, %v13588_v10  ;;  %v2811_v15 = vand.u32 2147483647, %v13571_v19  ;;  %3802 = vlog2.f32 %v2823_v56  ;;  %v2826_v39 = vmul.f32 -0.5, %v13581_v60  ;;  %v3795_v61 = vpop.eup %3794  ;;  %v13591_v56 = vld [vmem:[#allocation100_spill] sm:$0xff] }
 0x344   :  { %13589 = vst [vmem:[#allocation272_spill] sm:$0xff] %v8611_v44  ;;  %v8619_v36 = vmul.f32 0.6931472, %v3791_v55  ;;  %v2809_v6 = vadd.f32 1.0, %v2808_v14  ;;  %3804 = vlog2.f32 %v2832_v3  ;;  %v8622_v49 = vmul.f32 %v2800_v17, %v4742_v40 }
 0x345   :  { %v2820_v9 = vand.u32 2147483647, %v13576_v27  ;;  %v2835_v47 = vmul.f32 -0.5, %v13583_v53  ;;  %v2850_v35 = vadd.f32 1.0, %v13591_v56  ;;  %v8627_v21 = vmul.f32 0.6931472, %v3793_v13 }
 0x346   :  { %13590 = vst [vmem:[#allocation724_spill] sm:$0xff] %v8619_v36  ;;  %vm8629_vm6 = vcmp.lt.f32.partialorder %v2802_v29, 0.0004427343  ;;  %v13593_v31 = vmov 0  ;;  %v2818_v55 = vadd.f32 1.0, %v2817_v22  ;;  %3806 = vlog2.f32 %v2841_v1  ;;  %v13597_v13 = vld [vmem:[#allocation103_spill] sm:$0xff] }
 0x347   :  { %13592 = vst [vmem:[#allocation100_spill] sm:$0xff] %v8627_v21  ;;  %v13594_v31 = vsel %vm8629_vm6, 4294967295, %v13593_v31  ;;  %v2829_v14 = vand.u32 2147483647, %v13581_v60  ;;  %vm8638_vm5 = vcmp.lt.f32.partialorder %v2811_v15, 0.0004427343  ;;  %v8650_v1 = vmul.f32 %v2809_v6, %v13571_v19 }
 0x348   :  { %v13595_v3 = vmov 0  ;;  %v2827_v17 = vadd.f32 1.0, %v2826_v39  ;;  %v2859_v2 = vadd.f32 1.0, %v13597_v13  ;;  %v8647_v22 = vmul.f32 0.6931472, %v3795_v61  ;;  %v13601_v39 = vld [vmem:[#allocation273_spill] sm:$0xff] }
 0x349   :  { %v13596_v3 = vsel %vm8638_vm5, 4294967295, %v13595_v3  ;;  %v2838_v0 = vand.u32 2147483647, %v13583_v53  ;;  %vm8653_vm4 = vcmp.lt.f32.partialorder %v2820_v9, 0.0004427343  ;;  %v13599_v15 = vmov 0  ;;  %v3797_v8 = vpop.eup %3796 }
 0x34a   :  { %13598 = vst [vmem:[#allocation103_spill] sm:$0xff] %v8647_v22  ;;  %v13600_v15 = vsel %vm8653_vm4, 4294967295, %v13599_v15  ;;  %v2836_v40 = vadd.f32 1.0, %v2835_v47  ;;  %3808 = vlog2.f32 %v2850_v35  ;;  %v2868_v44 = vadd.f32 1.0, %v13601_v39  ;;  %v13604_v36 = vld [vmem:[#allocation106_spill] sm:$0xff] }
 0x34b   :  { %v8663_v29 = vmul.f32 %v2818_v55, %v13576_v27  ;;  %vm8665_vm15 = vcmp.lt.f32.partialorder %v2829_v14, 0.0004427343  ;;  %v2844_v6 = vmul.f32 -0.5, %v13588_v10  ;;  %v3799_v9 = vpop.eup %3798  ;;  %v8671_v35 = vmul.f32 %v2827_v17, %v13581_v60 }
 0x34c   :  { %v2853_v47 = vmul.f32 -0.5, %v13591_v56  ;;  %3810 = vlog2.f32 %v2859_v2  ;;  %v2877_v52 = vadd.f32 1.0, %v13604_v36  ;;  %v3801_v18 = vpop.eup %3800  ;;  %vm8679_vm10 = vcmp.lt.f32.partialorder %v2838_v0, 0.0004427343 }
 0x34d   :  { %v2862_v14 = vmul.f32 -0.5, %v13597_v13  ;;  %v2871_v60 = vmul.f32 -0.5, %v13601_v39  ;;  %v3803_v17 = vpop.eup %3802  ;;  %v8685_v61 = vmul.f32 0.6931472, %v3797_v8  ;;  %v8688_v2 = vmul.f32 %v2836_v40, %v13583_v53 }
 0x34e   :  { %v2847_v21 = vand.u32 2147483647, %v13588_v10  ;;  %3812 = vlog2.f32 %v2868_v44  ;;  %v3805_v12 = vpop.eup %3804  ;;  %v8691_v59 = vmul.f32 0.6931472, %v3799_v9  ;;  %v2845_v0 = vadd.f32 1.0, %v2844_v6 }
 0x34f   :  { %13607 = vst [vmem:[#allocation273_spill] sm:$0xff] %v8685_v61  ;;  %v2856_v27 = vand.u32 2147483647, %v13591_v56  ;;  %v2880_v22 = vmul.f32 -0.5, %v13604_v36  ;;  %v8695_v25 = vmul.f32 0.6931472, %v3801_v18  ;;  %3814 = vlog2.f32 %v2877_v52 }
 0x350   :  { %v2854_v28 = vadd.f32 1.0, %v2853_v47  ;;  %v2865_v8 = vand.u32 2147483647, %v13597_v13  ;;  %v3807_v23 = vpop.eup %3806  ;;  %v8698_v53 = vmul.f32 0.6931472, %v3803_v17  ;;  %v2863_v40 = vadd.f32 1.0, %v2862_v14 }
 0x351   :  { %v2872_v4 = vadd.f32 1.0, %v2871_v60  ;;  %v2874_v44 = vand.u32 2147483647, %v13601_v39  ;;  %v8705_v9 = vmul.f32 0.6931472, %v3805_v12  ;;  %v8717_v14 = vmul.f32 %v2845_v0, %v13588_v10 }
 0x352   :  { %vm8707_vm7 = vcmp.lt.f32.partialorder %v2847_v21, 0.0004427343  ;;  %v2883_v52 = vand.u32 2147483647, %v13604_v36  ;;  %vm8719_vm12 = vcmp.lt.f32.partialorder %v2856_v27, 0.0004427343  ;;  %v8730_v61 = vmul.f32 %v2854_v28, %v13591_v56 }
 0x353   :  { %v2881_v12 = vadd.f32 1.0, %v2880_v22  ;;  %v8727_v6 = vmul.f32 0.6931472, %v3807_v23  ;;  %vm8732_vm5 = vcmp.lt.f32.partialorder %v2865_v8, 0.0004427343  ;;  %v8741_v22 = vmul.f32 %v2863_v40, %v13597_v13  ;;  %v13749_v21 = vld [vmem:[#allocation21_spill] sm:$0xff] }
 0x354   :  { %v3809_v17 = vpop.eup %3808  ;;  %v8744_v27 = vmul.f32 %v2872_v4, %v13601_v39  ;;  %vm8746_vm4 = vcmp.lt.f32.partialorder %v2874_v44, 0.0004427343  ;;  %vm8754_vm6 = vcmp.lt.f32.partialorder %v2883_v52, 0.0004427343  ;;  %v13618_v4 = vsel %vm6738_vm8, %v6736_v41, %v6783_v62  ;;  %v13633_v44 = vld [vmem:[#allocation119_spill] sm:$0xff]  ;;  %v14922_v23 = vld [vmem:[#allocation501_spill] sm:$0xff] }
 0x355   :  { %v13619_v13 = vsel %vm4799_vm0, %v4380_v38, %v4780_v7  ;;  %v13620_v8 = vsel %vm6751_vm13, %v6749_v37, %v6796_v54  ;;  %v8782_v41 = vmul.f32 0.6931472, %v3809_v17  ;;  %v8785_v51 = vmul.f32 %v2881_v12, %v13604_v36  ;;  %v13623_v7 = vld [vmem:[#allocation175_spill] sm:$0xff]  ;;  %v13624_v54 = vld [vmem:[#allocation274_spill] sm:$0xff]  ;;  %v13641_v17 = vld [vmem:[#allocation508_spill] sm:$0xff] }
 0x356   :  { %v3811_v28 = vpop.eup %3810  ;;  %v8768_v39 = vsub.f32 %v13619_v13, %v13618_v4  ;;  %v8780_v40 = vsub.f32 %v13621_v30, %v13620_v8  ;;  %v13622_v38 = vsel %vm6761_vm9, %v6771_v57, %v6803_v50  ;;  %v13625_v11 = vsel %vm4814_vm2, %v13623_v7, %v13624_v54  ;;  %v13630_v50 = vld [vmem:[#allocation169_spill] sm:$0xff]  ;;  %v13640_v12 = vld [vmem:[#allocation170_spill] sm:$0xff]  ;;  %v13646_v30 = vld [vmem:[#allocation116_spill] sm:$0xff] }
 0x357   :  { %v8797_v37 = vsub.f32 %v13625_v11, %v13622_v38  ;;  %v13632_v36 = vsel %vm6798_vm11, %v13630_v50, %v13631_v45  ;;  %vm13634_vm0 = vnez %v13633_v44  ;;  %v13642_v4 = vsel %vm13639_vm1, %v13640_v12, %v13641_v17  ;;  %v13643_v13 = vld [vmem:[#allocation277_spill] sm:$0xff]  ;;  %v13645_v8 = vld [vmem:[#allocation186_spill] sm:$0xff]  ;;  %v13648_v54 = vld [vmem:[#allocation504_spill] sm:$0xff] }
 0x358   :  { %v3813_v57 = vpop.eup %3812  ;;  %v13637_v58 = vsel %vm13634_vm0, %v13635_v20, %v13636_v48  ;;  %vm13644_vm2 = vnez %v13643_v13  ;;  %vm13649_vm3 = vnez %v13648_v54  ;;  %v13650_v11 = vld [vmem:[#allocation172_spill] sm:$0xff]  ;;  %vm13654_vm8 = vnez %v13653_v32  ;;  %v13655_v62 = vld [vmem:[#allocation11_spill] sm:$0xff]  ;;  %v13658_v20 = vld [vmem:[#allocation174_spill] sm:$0xff] }
 0x359   :  { %v8825_v52 = vsub.f32 %v13637_v58, %v13632_v36  ;;  %v13647_v38 = vsel %vm13644_vm2, %v13645_v8, %v13646_v30  ;;  %v13652_v43 = vsel %vm13649_vm3, %v13650_v11, %v13651_v24  ;;  %v13656_v50 = vld [vmem:[#allocation32_spill] sm:$0xff]  ;;  %v8851_v44 = vmul.f32 0.6931472, %v3811_v28  ;;  %v13660_v48 = vld [vmem:[#allocation173_spill] sm:$0xff]  ;;  %v13663_v12 = vld [vmem:[#allocation279_spill] sm:$0xff] }
 0x35a   :  { %v8837_v7 = vsub.f32 %v13647_v38, %v13642_v4  ;;  %v13657_v45 = vsel %vm13654_vm8, %v13655_v62, %v13656_v50  ;;  %vm13659_vm9 = vnez %v13658_v20  ;;  %v13661_v58 = vld [vmem:[#allocation177_spill] sm:$0xff]  ;;  %vm13664_vm11 = vnez %v13663_v12  ;;  %v13665_v17 = vld [vmem:[#allocation12_spill] sm:$0xff]  ;;  %v13668_v30 = vld [vmem:[#allocation506_spill] sm:$0xff] }
 0x35b   :  { %v8849_v36 = vsub.f32 %v13657_v45, %v13652_v43  ;;  %v13662_v26 = vsel %vm13659_vm9, %v13660_v48, %v13661_v58  ;;  %v13666_v4 = vld [vmem:[#allocation276_spill] sm:$0xff]  ;;  %vm13669_vm13 = vnez %v13668_v30  ;;  %v13670_v38 = vld [vmem:[#allocation507_spill] sm:$0xff]  ;;  %v13673_v24 = vld [vmem:[#allocation281_spill] sm:$0xff]  ;;  %v3018_v18 = vmul.f32 %v8825_v52, %v8825_v52 }
 0x35c   :  { %v13667_v13 = vsel %vm13664_vm11, %v13665_v17, %v13666_v4  ;;  %v13671_v54 = vld [vmem:[#allocation512_spill] sm:$0xff]  ;;  %vm13674_vm14 = vnez %v13673_v24  ;;  %v13675_v28 = vld [vmem:[#allocation13_spill] sm:$0xff]  ;;  %v13680_v45 = vld [vmem:[#allocation510_spill] sm:$0xff] }
 0x35d   :  { %v8863_v8 = vsub.f32 %v13667_v13, %v13662_v26  ;;  %v13672_v11 = vsel %vm13669_vm13, %v13670_v38, %v13671_v54  ;;  %v13676_v43 = vld [vmem:[#allocation280_spill] sm:$0xff]  ;;  %v13678_v50 = vld [vmem:[#allocation509_spill] sm:$0xff]  ;;  %v13681_v20 = vld [vmem:[#allocation179_spill] sm:$0xff]  ;;  %v3815_v13 = vpop.eup %3814 }
 0x35e   :  { %v13677_v32 = vsel %vm13674_vm14, %v13675_v28, %v13676_v43  ;;  %vm13679_vm0 = vnez %v13678_v50  ;;  %v13683_v58 = vld [vmem:[#allocation284_spill] sm:$0xff]  ;;  %v13685_v26 = vld [vmem:[#allocation14_spill] sm:$0xff]  ;;  %v13688_v30 = vld [vmem:[#allocation511_spill] sm:$0xff] }
 0x35f   :  { %v8875_v62 = vsub.f32 %v13677_v32, %v13672_v11  ;;  %v13682_v48 = vsel %vm13679_vm0, %v13680_v45, %v13681_v20  ;;  %vm13684_vm1 = vnez %v13683_v58  ;;  %v13686_v12 = vld [vmem:[#allocation282_spill] sm:$0xff]  ;;  %vm13689_vm2 = vnez %v13688_v30  ;;  %v13691_v54 = vld [vmem:[#allocation183_spill] sm:$0xff]  ;;  %v13693_v11 = vld [vmem:[#allocation17_spill] sm:$0xff] }
 0x360   :  { %v13687_v17 = vsel %vm13684_vm1, %v13685_v26, %v13686_v12  ;;  %v13690_v38 = vld [vmem:[#allocation178_spill] sm:$0xff]  ;;  %vm13694_vm3 = vnez %v13693_v11  ;;  %v13695_v28 = vld [vmem:[#allocation15_spill] sm:$0xff]  ;;  %v13700_v20 = vld [vmem:[#allocation513_spill] sm:$0xff] }
 0x361   :  { %v8887_v4 = vsub.f32 %v13687_v17, %v13682_v48  ;;  %v13692_v24 = vsel %vm13689_vm2, %v13690_v38, %v13691_v54  ;;  %v13696_v43 = vld [vmem:[#allocation283_spill] sm:$0xff]  ;;  %v13698_v45 = vld [vmem:[#allocation514_spill] sm:$0xff]  ;;  %v13705_v12 = vld [vmem:[#allocation16_spill] sm:$0xff] }
 0x362   :  { %v13697_v32 = vsel %vm13694_vm3, %v13695_v28, %v13696_v43  ;;  %vm13699_vm8 = vnez %v13698_v45  ;;  %v13701_v58 = vld [vmem:[#allocation518_spill] sm:$0xff]  ;;  %v13706_v17 = vld [vmem:[#allocation285_spill] sm:$0xff]  ;;  %v13708_v38 = vld [vmem:[#allocation515_spill] sm:$0xff] }
 0x363   :  { %v8899_v50 = vsub.f32 %v13697_v32, %v13692_v24  ;;  %v13702_v26 = vsel %vm13699_vm8, %v13700_v20, %v13701_v58  ;;  %v13703_v48 = vld [vmem:[#allocation18_spill] sm:$0xff]  ;;  %vm13709_vm11 = vnez %v13708_v38  ;;  %v13710_v54 = vld [vmem:[#allocation180_spill] sm:$0xff]  ;;  %v13721_v58 = vld [vmem:[#allocation181_spill] sm:$0xff] }
 0x364   :  { %vm13704_vm9 = vnez %v13703_v48  ;;  %v13711_v11 = vld [vmem:[#allocation520_spill] sm:$0xff]  ;;  %v13715_v24 = vld [vmem:[#allocation218_spill] sm:$0xff]  ;;  %v13722_v48 = vld [vmem:[#allocation187_spill] sm:$0xff] }
 0x365   :  { %v13707_v30 = vsel %vm13704_vm9, %v13705_v12, %v13706_v17  ;;  %v13712_v56 = vsel %vm13709_vm11, %v13710_v54, %v13711_v11  ;;  %v13713_v28 = vld [vmem:[#allocation20_spill] sm:$0xff]  ;;  %v13716_v43 = vld [vmem:[#allocation286_spill] sm:$0xff]  ;;  %v13727_v17 = vld [vmem:[#allocation287_spill] sm:$0xff]  ;;  %v8941_v11 = vmul.f32 0.6931472, %v3813_v57 }
 0x366   :  { %v8911_v33 = vsub.f32 %v13707_v30, %v13702_v26  ;;  %vm13714_vm13 = vnez %v13713_v28  ;;  %v13719_v20 = vld [vmem:[#allocation516_spill] sm:$0xff]  ;;  %v13724_v12 = vld [vmem:[#allocation22_spill] sm:$0xff]  ;;  %v13726_v26 = vld [vmem:[#allocation59_spill] sm:$0xff] }
 0x367   :  { %v13717_v32 = vsel %vm13714_vm13, %v13715_v24, %v13716_v43  ;;  %vm13720_vm14 = vnez %v13719_v20  ;;  %vm13725_vm0 = vnez %v13724_v12  ;;  %v13732_v28 = vld [vmem:[#allocation517_spill] sm:$0xff]  ;;  %v13737_v20 = vld [vmem:[#allocation230_spill] sm:$0xff]  ;;  %v13746_v54 = vld [vmem:[#allocation24_spill] sm:$0xff] }
 0x368   :  { %v8923_v45 = vsub.f32 %v13717_v32, %v13712_v56  ;;  %v13723_v10 = vsel %vm13720_vm14, %v13721_v58, %v13722_v48  ;;  %v13728_v30 = vsel %vm13725_vm0, %v13726_v26, %v13727_v17  ;;  %v13730_v56 = vld [vmem:[#allocation519_spill] sm:$0xff]  ;;  %v13733_v24 = vld [vmem:[#allocation525_spill] sm:$0xff]  ;;  %v13743_v26 = vld [vmem:[#allocation184_spill] sm:$0xff]  ;;  %vm13747_vm8 = vnez %v13746_v54 }
 0x369   :  { %v8935_v38 = vsub.f32 %v13728_v30, %v13723_v10  ;;  %vm13731_vm1 = vnez %v13730_v56  ;;  %v13735_v32 = vld [vmem:[#allocation23_spill] sm:$0xff]  ;;  %v13741_v10 = vld [vmem:[#allocation185_spill] sm:$0xff] }
 0x36a   :  { %13718 = vst [vmem:[#allocation106_spill] sm:$0xff] %v8923_v45  ;;  %v13734_v43 = vsel %vm13731_vm1, %v13732_v28, %v13733_v24  ;;  %vm13736_vm2 = vnez %v13735_v32  ;;  %v13738_v58 = vld [vmem:[#allocation19_spill] sm:$0xff]  ;;  %vm13742_vm3 = vnez %v13741_v10  ;;  %v13752_v28 = vld [vmem:[#allocation522_spill] sm:$0xff]  ;;  %v13754_v24 = vld [vmem:[#allocation521_spill] sm:$0xff] }
 0x36b   :  { %13729 = vst [vmem:[#allocation175_spill] sm:$0xff] %v8935_v38  ;;  %v13739_v48 = vsel %vm13736_vm2, %v13737_v20, %v13738_v58  ;;  %v13744_v17 = vld [vmem:[#allocation527_spill] sm:$0xff]  ;;  %vm13753_vm9 = vnez %v13752_v28  ;;  %v13755_v32 = vld [vmem:[#allocation189_spill] sm:$0xff] }
 0x36c   :  { %v8953_v12 = vsub.f32 %v13739_v48, %v13734_v43  ;;  %v13745_v30 = vsel %vm13742_vm3, %v13743_v26, %v13744_v17  ;;  %v13748_v57 = vld [vmem:[#allocation67_spill] sm:$0xff]  ;;  %v13756_v45 = vsel %vm13753_vm9, %v13754_v24, %v13755_v32  ;;  %v13757_v20 = vld [vmem:[#allocation289_spill] sm:$0xff]  ;;  %v13759_v43 = vld [vmem:[#allocation242_spill] sm:$0xff] }
 0x36d   :  { %v13750_v56 = vsel %vm13747_vm8, %v13748_v57, %v13749_v21  ;;  %vm13758_vm11 = vnez %v13757_v20  ;;  %v13760_v58 = vld [vmem:[#allocation261_spill] sm:$0xff]  ;;  %v13763_v26 = vld [vmem:[#allocation524_spill] sm:$0xff]  ;;  %v13765_v54 = vld [vmem:[#allocation523_spill] sm:$0xff] }
 0x36e   :  { %13740 = vst [vmem:[#allocation274_spill] sm:$0xff] %v8953_v12  ;;  %v8965_v38 = vsub.f32 %v13750_v56, %v13745_v30  ;;  %v13761_v48 = vsel %vm13758_vm11, %v13759_v43, %v13760_v58  ;;  %vm13764_vm13 = vnez %v13763_v26  ;;  %v13766_v17 = vld [vmem:[#allocation531_spill] sm:$0xff]  ;;  %v13768_v21 = vld [vmem:[#allocation290_spill] sm:$0xff]  ;;  %v13771_v57 = vld [vmem:[#allocation288_spill] sm:$0xff] }
 0x36f   :  { %v8977_v10 = vsub.f32 %v13761_v48, %v13756_v45  ;;  %v13767_v12 = vsel %vm13764_vm13, %v13765_v54, %v13766_v17  ;;  %vm13769_vm14 = vnez %v13768_v21  ;;  %v13770_v30 = vld [vmem:[#allocation75_spill] sm:$0xff]  ;;  %v13774_v24 = vld [vmem:[#allocation526_spill] sm:$0xff]  ;;  %v13776_v32 = vld [vmem:[#allocation188_spill] sm:$0xff] }
 0x370   :  { %13751 = vst [vmem:[#allocation275_spill] sm:$0xff] %v8965_v38  ;;  %v13772_v56 = vsel %vm13769_vm14, %v13770_v30, %v13771_v57  ;;  %vm13775_vm0 = vnez %v13774_v24  ;;  %v13777_v20 = vld [vmem:[#allocation31_spill] sm:$0xff]  ;;  %v13779_v43 = vld [vmem:[#allocation292_spill] sm:$0xff]  ;;  %v13781_v45 = vld [vmem:[#allocation254_spill] sm:$0xff] }
 0x371   :  { %13762 = vst [vmem:[#allocation168_spill] sm:$0xff] %v8977_v10  ;;  %v8989_v28 = vsub.f32 %v13772_v56, %v13767_v12  ;;  %v13778_v38 = vsel %vm13775_vm0, %v13776_v32, %v13777_v20  ;;  %vm13780_vm1 = vnez %v13779_v43  ;;  %v13782_v58 = vld [vmem:[#allocation291_spill] sm:$0xff]  ;;  %v13785_v54 = vld [vmem:[#allocation529_spill] sm:$0xff]  ;;  %v13787_v17 = vld [vmem:[#allocation528_spill] sm:$0xff]  ;;  %v9019_v20 = vmul.f32 0.6931472, %v3815_v13 }
 0x372   :  { %v13783_v48 = vsel %vm13780_vm1, %v13781_v45, %v13782_v58  ;;  %vm13786_vm2 = vnez %v13785_v54  ;;  %v13788_v21 = vld [vmem:[#allocation534_spill] sm:$0xff]  ;;  %v13792_v12 = vld [vmem:[#allocation83_spill] sm:$0xff]  ;;  %v13793_v57 = vld [vmem:[#allocation293_spill] sm:$0xff] }
 0x373   :  { %13773 = vst [vmem:[#allocation169_spill] sm:$0xff] %v8989_v28  ;;  %v9001_v26 = vsub.f32 %v13783_v48, %v13778_v38  ;;  %v13789_v10 = vsel %vm13786_vm2, %v13787_v17, %v13788_v21  ;;  %v13790_v30 = vld [vmem:[#allocation294_spill] sm:$0xff]  ;;  %v13796_v38 = vld [vmem:[#allocation532_spill] sm:$0xff]  ;;  %v13799_v45 = vld [vmem:[#allocation35_spill] sm:$0xff] }
 0x374   :  { %vm13791_vm3 = vnez %v13790_v30  ;;  %vm13797_vm8 = vnez %v13796_v38  ;;  %v13798_v43 = vld [vmem:[#allocation530_spill] sm:$0xff]  ;;  %v13801_v48 = vld [vmem:[#allocation296_spill] sm:$0xff]  ;;  %v13803_v54 = vld [vmem:[#allocation25_spill] sm:$0xff] }
 0x375   :  { %13784 = vst [vmem:[#allocation505_spill] sm:$0xff] %v9001_v26  ;;  %v13794_v56 = vsel %vm13791_vm3, %v13792_v12, %v13793_v57  ;;  %v13800_v58 = vsel %vm13797_vm8, %v13798_v43, %v13799_v45  ;;  %vm13802_vm9 = vnez %v13801_v48  ;;  %v13804_v17 = vld [vmem:[#allocation295_spill] sm:$0xff]  ;;  %v13809_v12 = vld [vmem:[#allocation190_spill] sm:$0xff] }
 0x376   :  { %v9013_v24 = vsub.f32 %v13794_v56, %v13789_v10  ;;  %v13805_v21 = vsel %vm13802_vm9, %v13803_v54, %v13804_v17  ;;  %v13807_v10 = vld [vmem:[#allocation533_spill] sm:$0xff]  ;;  %v13810_v57 = vld [vmem:[#allocation538_spill] sm:$0xff]  ;;  %v13812_v32 = vld [vmem:[#allocation299_spill] sm:$0xff] }
 0x377   :  { %v9031_v30 = vsub.f32 %v13805_v21, %v13800_v58  ;;  %vm13808_vm11 = vnez %v13807_v10  ;;  %vm13813_vm13 = vnez %v13812_v32  ;;  %v13814_v13 = vld [vmem:[#allocation26_spill] sm:$0xff]  ;;  %v13818_v43 = vld [vmem:[#allocation535_spill] sm:$0xff]  ;;  %v13823_v54 = vld [vmem:[#allocation301_spill] sm:$0xff] }
 0x378   :  { %13795 = vst [vmem:[#allocation119_spill] sm:$0xff] %v9013_v24  ;;  %v13811_v56 = vsel %vm13808_vm11, %v13809_v12, %v13810_v57  ;;  %v13815_v24 = vld [vmem:[#allocation297_spill] sm:$0xff]  ;;  %vm13819_vm14 = vnez %v13818_v43  ;;  %v13820_v45 = vld [vmem:[#allocation191_spill] sm:$0xff]  ;;  %vm13824_vm0 = vnez %v13823_v54  ;;  %v13826_v17 = vld [vmem:[#allocation298_spill] sm:$0xff] }
 0x379   :  { %13806 = vst [vmem:[#allocation182_spill] sm:$0xff] %v9031_v30  ;;  %v13816_v38 = vsel %vm13813_vm13, %v13814_v13, %v13815_v24  ;;  %v13821_v48 = vld [vmem:[#allocation539_spill] sm:$0xff]  ;;  %v13829_v12 = vld [vmem:[#allocation537_spill] sm:$0xff]  ;;  %v13831_v32 = vld [vmem:[#allocation536_spill] sm:$0xff] }
 0x37a   :  { %v9043_v26 = vsub.f32 %v13816_v38, %v13811_v56  ;;  %v13822_v28 = vsel %vm13819_vm14, %v13820_v45, %v13821_v48  ;;  %v13825_v58 = vld [vmem:[#allocation27_spill] sm:$0xff]  ;;  %vm13830_vm1 = vnez %v13829_v12  ;;  %v13834_v24 = vld [vmem:[#allocation37_spill] sm:$0xff]  ;;  %v13836_v56 = vld [vmem:[#allocation28_spill] sm:$0xff] }
 0x37b   :  { %v13827_v21 = vsel %vm13824_vm0, %v13825_v58, %v13826_v17  ;;  %v13832_v57 = vld [vmem:[#allocation543_spill] sm:$0xff]  ;;  %vm13835_vm2 = vnez %v13834_v24  ;;  %v13837_v13 = vld [vmem:[#allocation300_spill] sm:$0xff]  ;;  %v13840_v45 = vld [vmem:[#allocation541_spill] sm:$0xff] }
 0x37c   :  { %13817 = vst [vmem:[#allocation30_spill] sm:$0xff] %v9043_v26  ;;  %v9055_v10 = vsub.f32 %v13827_v21, %v13822_v28  ;;  %v13833_v30 = vsel %vm13830_vm1, %v13831_v32, %v13832_v57  ;;  %v13838_v38 = vsel %vm13835_vm2, %v13836_v56, %v13837_v13  ;;  %vm13841_vm3 = vnez %v13840_v45  ;;  %v13842_v48 = vld [vmem:[#allocation540_spill] sm:$0xff]  ;;  %v13845_v58 = vld [vmem:[#allocation33_spill] sm:$0xff]  ;;  %v13854_v24 = vld [vmem:[#allocation195_spill] sm:$0xff] }
 0x37d   :  { %v9067_v43 = vsub.f32 %v13838_v38, %v13833_v30  ;;  %v13843_v54 = vld [vmem:[#allocation544_spill] sm:$0xff]  ;;  %vm13846_vm8 = vnez %v13845_v58  ;;  %v13847_v28 = vld [vmem:[#allocation29_spill] sm:$0xff]  ;;  %v13856_v56 = vld [vmem:[#allocation303_spill] sm:$0xff] }
 0x37e   :  { %13828 = vst [vmem:[#allocation171_spill] sm:$0xff] %v9055_v10  ;;  %v13844_v26 = vsel %vm13841_vm3, %v13842_v48, %v13843_v54  ;;  %v13848_v17 = vld [vmem:[#allocation36_spill] sm:$0xff]  ;;  %v13853_v57 = vld [vmem:[#allocation193_spill] sm:$0xff]  ;;  %vm13857_vm11 = vnez %v13856_v56  ;;  %v13862_v54 = vld [vmem:[#allocation542_spill] sm:$0xff] }
 0x37f   :  { %13839 = vst [vmem:[#allocation170_spill] sm:$0xff] %v9067_v43  ;;  %v13849_v21 = vsel %vm13846_vm8, %v13847_v28, %v13848_v17  ;;  %v13851_v32 = vld [vmem:[#allocation192_spill] sm:$0xff]  ;;  %v13858_v30 = vld [vmem:[#allocation109_spill] sm:$0xff]  ;;  %vm13863_vm13 = vnez %v13862_v54  ;;  %v14904_v52 = vld [vmem:[#allocation495_spill] sm:$0xff] }
 0x380   :  { %v9079_v12 = vsub.f32 %v13849_v21, %v13844_v26  ;;  %vm13852_vm9 = vnez %v13851_v32  ;;  %v13859_v13 = vld [vmem:[#allocation120_spill] sm:$0xff]  ;;  %v13864_v26 = vld [vmem:[#allocation34_spill] sm:$0xff]  ;;  %v13865_v58 = vld [vmem:[#allocation549_spill] sm:$0xff] }
 0x381   :  { %v13855_v10 = vsel %vm13852_vm9, %v13853_v57, %v13854_v24  ;;  %v13860_v38 = vsel %vm13857_vm11, %v13858_v30, %v13859_v13  ;;  %v13866_v28 = vsel %vm13863_vm13, %v13864_v26, %v13865_v58  ;;  %v13867_v17 = vld [vmem:[#allocation304_spill] sm:$0xff]  ;;  %v13869_v21 = vld [vmem:[#allocation115_spill] sm:$0xff]  ;;  %v13873_v56 = vld [vmem:[#allocation545_spill] sm:$0xff] }
 0x382   :  { %13850 = vst [vmem:[#allocation508_spill] sm:$0xff] %v9079_v12  ;;  %v9091_v45 = vsub.f32 %v13860_v38, %v13855_v10  ;;  %vm13868_vm14 = vnez %v13867_v17  ;;  %v13870_v32 = vld [vmem:[#allocation39_spill] sm:$0xff]  ;;  %vm13874_vm0 = vnez %v13873_v56  ;;  %v13875_v10 = vld [vmem:[#allocation194_spill] sm:$0xff]  ;;  %v13880_v48 = vld [vmem:[#allocation305_spill] sm:$0xff] }
 0x383   :  { %v13871_v57 = vsel %vm13868_vm14, %v13869_v21, %v13870_v32  ;;  %v13876_v30 = vld [vmem:[#allocation551_spill] sm:$0xff]  ;;  %v13878_v38 = vld [vmem:[#allocation306_spill] sm:$0xff]  ;;  %v13887_v17 = vld [vmem:[#allocation196_spill] sm:$0xff] }
 0x384   :  { %13861 = vst [vmem:[#allocation277_spill] sm:$0xff] %v9091_v45  ;;  %v9107_v24 = vsub.f32 %v13871_v57, %v13866_v28  ;;  %v13877_v13 = vsel %vm13874_vm0, %v13875_v10, %v13876_v30  ;;  %vm13879_vm1 = vnez %v13878_v38  ;;  %v13881_v45 = vld [vmem:[#allocation302_spill] sm:$0xff]  ;;  %v13886_v58 = vld [vmem:[#allocation547_spill] sm:$0xff]  ;;  %v13889_v21 = vld [vmem:[#allocation40_spill] sm:$0xff] }
 0x385   :  { %v13882_v54 = vsel %vm13879_vm1, %v13880_v48, %v13881_v45  ;;  %v13884_v26 = vld [vmem:[#allocation546_spill] sm:$0xff]  ;;  %vm13890_vm3 = vnez %v13889_v21  ;;  %v13891_v28 = vld [vmem:[#allocation41_spill] sm:$0xff]  ;;  %v13892_v32 = vld [vmem:[#allocation48_spill] sm:$0xff] }
 0x386   :  { %13872 = vst [vmem:[#allocation186_spill] sm:$0xff] %v9107_v24  ;;  %v9119_v12 = vsub.f32 %v13882_v54, %v13877_v13  ;;  %vm13885_vm2 = vnez %v13884_v26  ;;  %v13893_v57 = vsel %vm13890_vm3, %v13891_v28, %v13892_v32  ;;  %v13895_v10 = vld [vmem:[#allocation550_spill] sm:$0xff]  ;;  %v13897_v30 = vld [vmem:[#allocation548_spill] sm:$0xff]  ;;  %v13903_v13 = vld [vmem:[#allocation309_spill] sm:$0xff] }
 0x387   :  { %v13888_v43 = vsel %vm13885_vm2, %v13886_v58, %v13887_v17  ;;  %vm13896_vm8 = vnez %v13895_v10  ;;  %v13898_v38 = vld [vmem:[#allocation198_spill] sm:$0xff]  ;;  %v13900_v45 = vld [vmem:[#allocation44_spill] sm:$0xff]  ;;  %v13909_v21 = vld [vmem:[#allocation557_spill] sm:$0xff] }
 0x388   :  { %13883 = vst [vmem:[#allocation116_spill] sm:$0xff] %v9119_v12  ;;  %v9131_v56 = vsub.f32 %v13893_v57, %v13888_v43  ;;  %v13899_v24 = vsel %vm13896_vm8, %v13897_v30, %v13898_v38  ;;  %vm13901_vm9 = vnez %v13900_v45  ;;  %v13902_v48 = vld [vmem:[#allocation42_spill] sm:$0xff]  ;;  %v13906_v58 = vld [vmem:[#allocation552_spill] sm:$0xff]  ;;  %v13911_v28 = vld [vmem:[#allocation47_spill] sm:$0xff] }
 0x389   :  { %v13904_v54 = vsel %vm13901_vm9, %v13902_v48, %v13903_v13  ;;  %vm13907_vm11 = vnez %v13906_v58  ;;  %v13908_v17 = vld [vmem:[#allocation38_spill] sm:$0xff]  ;;  %vm13912_vm13 = vnez %v13911_v28  ;;  %v13913_v43 = vld [vmem:[#allocation45_spill] sm:$0xff]  ;;  %v13914_v32 = vld [vmem:[#allocation311_spill] sm:$0xff] }
 0x38a   :  { %13894 = vst [vmem:[#allocation504_spill] sm:$0xff] %v9131_v56  ;;  %v9143_v26 = vsub.f32 %v13904_v54, %v13899_v24  ;;  %v13910_v12 = vsel %vm13907_vm11, %v13908_v17, %v13909_v21  ;;  %v13915_v57 = vsel %vm13912_vm13, %v13913_v43, %v13914_v32  ;;  %v13916_v30 = vld [vmem:[#allocation553_spill] sm:$0xff]  ;;  %v13919_v45 = vld [vmem:[#allocation559_spill] sm:$0xff]  ;;  %v13921_v48 = vld [vmem:[#allocation308_spill] sm:$0xff] }
 0x38b   :  { %v9155_v10 = vsub.f32 %v13915_v57, %v13910_v12  ;;  %vm13917_vm14 = vnez %v13916_v30  ;;  %v13918_v38 = vld [vmem:[#allocation197_spill] sm:$0xff]  ;;  %vm13922_vm0 = vnez %v13921_v48  ;;  %v13923_v24 = vld [vmem:[#allocation307_spill] sm:$0xff]  ;;  %v13924_v13 = vld [vmem:[#allocation50_spill] sm:$0xff] }
 0x38c   :  { %13905 = vst [vmem:[#allocation172_spill] sm:$0xff] %v9143_v26  ;;  %v13920_v56 = vsel %vm13917_vm14, %v13918_v38, %v13919_v45  ;;  %v13925_v54 = vsel %vm13922_vm0, %v13923_v24, %v13924_v13  ;;  %v13927_v17 = vld [vmem:[#allocation555_spill] sm:$0xff]  ;;  %v13929_v21 = vld [vmem:[#allocation554_spill] sm:$0xff]  ;;  %v13930_v28 = vld [vmem:[#allocation201_spill] sm:$0xff] }
 0x38d   :  { %v9167_v58 = vsub.f32 %v13925_v54, %v13920_v56  ;;  %vm13928_vm1 = vnez %v13927_v17  ;;  %v13932_v43 = vld [vmem:[#allocation310_spill] sm:$0xff]  ;;  %v13934_v12 = vld [vmem:[#allocation312_spill] sm:$0xff]  ;;  %v13941_v48 = vld [vmem:[#allocation561_spill] sm:$0xff] }
 0x38e   :  { %v13931_v26 = vsel %vm13928_vm1, %v13929_v21, %v13930_v28  ;;  %vm13933_vm2 = vnez %v13932_v43  ;;  %v13935_v32 = vld [vmem:[#allocation52_spill] sm:$0xff]  ;;  %v13940_v56 = vld [vmem:[#allocation558_spill] sm:$0xff]  ;;  %v13943_v13 = vld [vmem:[#allocation313_spill] sm:$0xff] }
 0x38f   :  { %13926 = vst [vmem:[#allocation176_spill] sm:$0xff] %v9167_v58  ;;  %v13936_v57 = vsel %vm13933_vm2, %v13934_v12, %v13935_v32  ;;  %v13938_v45 = vld [vmem:[#allocation556_spill] sm:$0xff]  ;;  %vm13944_vm8 = vnez %v13943_v13  ;;  %v13945_v54 = vld [vmem:[#allocation49_spill] sm:$0xff]  ;;  %v13946_v17 = vld [vmem:[#allocation318_spill] sm:$0xff] }
 0x390   :  { %v9179_v30 = vsub.f32 %v13936_v57, %v13931_v26  ;;  %vm13939_vm3 = vnez %v13938_v45  ;;  %v13947_v21 = vsel %vm13944_vm8, %v13945_v54, %v13946_v17  ;;  %v13949_v43 = vld [vmem:[#allocation199_spill] sm:$0xff]  ;;  %v13953_v32 = vld [vmem:[#allocation314_spill] sm:$0xff]  ;;  %v13962_v13 = vld [vmem:[#allocation565_spill] sm:$0xff] }
 0x391   :  { %v13942_v24 = vsel %vm13939_vm3, %v13940_v56, %v13941_v48  ;;  %vm13950_vm9 = vnez %v13949_v43  ;;  %v13951_v26 = vld [vmem:[#allocation43_spill] sm:$0xff]  ;;  %vm13954_vm11 = vnez %v13953_v32  ;;  %v13959_v56 = vld [vmem:[#allocation560_spill] sm:$0xff]  ;;  %v13964_v54 = vld [vmem:[#allocation317_spill] sm:$0xff] }
 0x392   :  { %13937 = vst [vmem:[#allocation278_spill] sm:$0xff] %v9179_v30  ;;  %v9195_v28 = vsub.f32 %v13947_v21, %v13942_v24  ;;  %v13952_v12 = vsel %vm13950_vm9, %v7280_v42, %v13951_v26  ;;  %v13955_v57 = vld [vmem:[#allocation315_spill] sm:$0xff]  ;;  %vm13960_vm13 = vnez %v13959_v56  ;;  %v13961_v48 = vld [vmem:[#allocation200_spill] sm:$0xff]  ;;  %vm13965_vm14 = vnez %v13964_v54  ;;  %v13967_v17 = vld [vmem:[#allocation322_spill] sm:$0xff] }
 0x393   :  { %v13956_v38 = vld [vmem:[#allocation319_spill] sm:$0xff]  ;;  %v13963_v58 = vsel %vm13960_vm13, %v13961_v48, %v13962_v13  ;;  %v13966_v24 = vld [vmem:[#allocation316_spill] sm:$0xff]  ;;  %v13970_v42 = vld [vmem:[#allocation562_spill] sm:$0xff] }
 0x394   :  { %13948 = vst [vmem:[#allocation11_spill] sm:$0xff] %v9195_v28  ;;  %v13957_v45 = vsel %vm13954_vm11, %v13955_v57, %v13956_v38  ;;  %v13968_v21 = vsel %vm13965_vm14, %v13966_v24, %v13967_v17  ;;  %vm13971_vm0 = vnez %v13970_v42  ;;  %v13972_v26 = vld [vmem:[#allocation563_spill] sm:$0xff]  ;;  %v13975_v38 = vld [vmem:[#allocation321_spill] sm:$0xff]  ;;  %v13978_v57 = vld [vmem:[#allocation324_spill] sm:$0xff] }
 0x395   :  { %v9207_v30 = vsub.f32 %v13957_v45, %v13952_v12  ;;  %v9219_v43 = vsub.f32 %v13968_v21, %v13963_v58  ;;  %v13973_v32 = vld [vmem:[#allocation567_spill] sm:$0xff]  ;;  %vm13976_vm1 = vnez %v13975_v38  ;;  %v13977_v12 = vld [vmem:[#allocation320_spill] sm:$0xff]  ;;  %v13981_v48 = vld [vmem:[#allocation202_spill] sm:$0xff] }
 0x396   :  { %v13974_v28 = vsel %vm13971_vm0, %v13972_v26, %v13973_v32  ;;  %v13979_v45 = vsel %vm13976_vm1, %v13977_v12, %v13978_v57  ;;  %vm13982_vm2 = vnez %v13981_v48  ;;  %v13983_v13 = vld [vmem:[#allocation203_spill] sm:$0xff]  ;;  %v13984_v54 = vld [vmem:[#allocation204_spill] sm:$0xff]  ;;  %v13986_v24 = vld [vmem:[#allocation53_spill] sm:$0xff] }
 0x397   :  { %13958 = vst [vmem:[#allocation32_spill] sm:$0xff] %v9207_v30  ;;  %13969 = vst [vmem:[#allocation174_spill] sm:$0xff] %v9219_v43  ;;  %v9231_v56 = vsub.f32 %v13979_v45, %v13974_v28  ;;  %v13985_v30 = vsel %vm13982_vm2, %v13983_v13, %v13984_v54  ;;  %vm13987_vm3 = vnez %v13986_v24  ;;  %v13988_v58 = vld [vmem:[#allocation55_spill] sm:$0xff]  ;;  %v13989_v17 = vld [vmem:[#allocation56_spill] sm:$0xff] }
 0x398   :  { %v13990_v21 = vsel %vm13987_vm3, %v13988_v58, %v13989_v17  ;;  %v13992_v26 = vld [vmem:[#allocation566_spill] sm:$0xff]  ;;  %v13994_v32 = vld [vmem:[#allocation564_spill] sm:$0xff]  ;;  %v13997_v12 = vld [vmem:[#allocation323_spill] sm:$0xff] }
 0x399   :  { %13980 = vst [vmem:[#allocation173_spill] sm:$0xff] %v9231_v56  ;;  %v9243_v42 = vsub.f32 %v13990_v21, %v13985_v30  ;;  %vm13993_vm8 = vnez %v13992_v26  ;;  %v13995_v38 = vld [vmem:[#allocation572_spill] sm:$0xff]  ;;  %vm13998_vm9 = vnez %v13997_v12  ;;  %v13999_v28 = vld [vmem:[#allocation325_spill] sm:$0xff]  ;;  %v14006_v24 = vld [vmem:[#allocation574_spill] sm:$0xff] }
 0x39a   :  { %v13996_v43 = vsel %vm13993_vm8, %v13994_v32, %v13995_v38  ;;  %v14000_v57 = vld [vmem:[#allocation328_spill] sm:$0xff]  ;;  %v14005_v54 = vld [vmem:[#allocation205_spill] sm:$0xff]  ;;  %v14008_v58 = vld [vmem:[#allocation326_spill] sm:$0xff] }
 0x39b   :  { %13991 = vst [vmem:[#allocation177_spill] sm:$0xff] %v9243_v42  ;;  %v14001_v45 = vsel %vm13998_vm9, %v13999_v28, %v14000_v57  ;;  %v14003_v13 = vld [vmem:[#allocation568_spill] sm:$0xff]  ;;  %vm14009_vm13 = vnez %v14008_v58  ;;  %v14010_v30 = vld [vmem:[#allocation327_spill] sm:$0xff]  ;;  %v14014_v32 = vld [vmem:[#allocation569_spill] sm:$0xff] }
 0x39c   :  { %v9255_v48 = vsub.f32 %v14001_v45, %v13996_v43  ;;  %vm14004_vm11 = vnez %v14003_v13  ;;  %v14011_v17 = vld [vmem:[#allocation60_spill] sm:$0xff]  ;;  %vm14015_vm14 = vnez %v14014_v32  ;;  %v14016_v38 = vld [vmem:[#allocation46_spill] sm:$0xff]  ;;  %v14019_v28 = vld [vmem:[#allocation57_spill] sm:$0xff] }
 0x39d   :  { %v14007_v56 = vsel %vm14004_vm11, %v14005_v54, %v14006_v24  ;;  %v14012_v21 = vsel %vm14009_vm13, %v14010_v30, %v14011_v17  ;;  %v14017_v12 = vld [vmem:[#allocation206_spill] sm:$0xff]  ;;  %vm14020_vm0 = vnez %v14019_v28  ;;  %v14022_v57 = vld [vmem:[#allocation61_spill] sm:$0xff]  ;;  %v14025_v54 = vld [vmem:[#allocation571_spill] sm:$0xff] }
 0x39e   :  { %14002 = vst [vmem:[#allocation279_spill] sm:$0xff] %v9255_v48  ;;  %v9267_v26 = vsub.f32 %v14012_v21, %v14007_v56  ;;  %v14018_v42 = vsel %vm14015_vm14, %v14016_v38, %v14017_v12  ;;  %v14021_v43 = vld [vmem:[#allocation58_spill] sm:$0xff]  ;;  %vm14026_vm1 = vnez %v14025_v54  ;;  %v14028_v58 = vld [vmem:[#allocation208_spill] sm:$0xff]  ;;  %v14030_v30 = vld [vmem:[#allocation329_spill] sm:$0xff] }
 0x39f   :  { %v14023_v45 = vsel %vm14020_vm0, %v14021_v43, %v14022_v57  ;;  %v14027_v24 = vld [vmem:[#allocation570_spill] sm:$0xff]  ;;  %vm14031_vm2 = vnez %v14030_v30  ;;  %v14033_v17 = vld [vmem:[#allocation63_spill] sm:$0xff]  ;;  %v14036_v38 = vld [vmem:[#allocation573_spill] sm:$0xff] }
 0x3a0   :  { %14013 = vst [vmem:[#allocation12_spill] sm:$0xff] %v9267_v26  ;;  %v9279_v13 = vsub.f32 %v14023_v45, %v14018_v42  ;;  %v14029_v48 = vsel %vm14026_vm1, %v14027_v24, %v14028_v58  ;;  %v14032_v56 = vld [vmem:[#allocation330_spill] sm:$0xff]  ;;  %vm14037_vm3 = vnez %v14036_v38  ;;  %v14038_v12 = vld [vmem:[#allocation575_spill] sm:$0xff]  ;;  %v14041_v43 = vld [vmem:[#allocation332_spill] sm:$0xff] }
 0x3a1   :  { %v14034_v21 = vsel %vm14031_vm2, %v14032_v56, %v14033_v17  ;;  %v14039_v28 = vld [vmem:[#allocation579_spill] sm:$0xff]  ;;  %vm14042_vm8 = vnez %v14041_v43  ;;  %v14044_v57 = vld [vmem:[#allocation64_spill] sm:$0xff]  ;;  %v14050_v30 = vld [vmem:[#allocation581_spill] sm:$0xff] }
 0x3a2   :  { %14024 = vst [vmem:[#allocation276_spill] sm:$0xff] %v9279_v13  ;;  %v9291_v32 = vsub.f32 %v14034_v21, %v14029_v48  ;;  %v14040_v26 = vsel %vm14037_vm3, %v14038_v12, %v14039_v28  ;;  %v14043_v42 = vld [vmem:[#allocation331_spill] sm:$0xff]  ;;  %v14047_v24 = vld [vmem:[#allocation576_spill] sm:$0xff]  ;;  %v14052_v56 = vld [vmem:[#allocation334_spill] sm:$0xff] }
 0x3a3   :  { %v14045_v45 = vsel %vm14042_vm8, %v14043_v42, %v14044_v57  ;;  %vm14048_vm9 = vnez %v14047_v24  ;;  %v14049_v58 = vld [vmem:[#allocation207_spill] sm:$0xff]  ;;  %vm14053_vm11 = vnez %v14052_v56  ;;  %v14054_v48 = vld [vmem:[#allocation333_spill] sm:$0xff]  ;;  %v14055_v17 = vld [vmem:[#allocation66_spill] sm:$0xff] }
 0x3a4   :  { %14035 = vst [vmem:[#allocation506_spill] sm:$0xff] %v9291_v32  ;;  %v9303_v54 = vsub.f32 %v14045_v45, %v14040_v26  ;;  %v14051_v13 = vsel %vm14048_vm9, %v14049_v58, %v14050_v30  ;;  %v14056_v21 = vsel %vm14053_vm11, %v14054_v48, %v14055_v17  ;;  %v14058_v12 = vld [vmem:[#allocation578_spill] sm:$0xff]  ;;  %v14060_v28 = vld [vmem:[#allocation577_spill] sm:$0xff]  ;;  %v14061_v43 = vld [vmem:[#allocation211_spill] sm:$0xff] }
 0x3a5   :  { %v9315_v38 = vsub.f32 %v14056_v21, %v14051_v13  ;;  %vm14059_vm13 = vnez %v14058_v12  ;;  %v14063_v42 = vld [vmem:[#allocation335_spill] sm:$0xff]  ;;  %v14065_v26 = vld [vmem:[#allocation336_spill] sm:$0xff]  ;;  %v14066_v57 = vld [vmem:[#allocation341_spill] sm:$0xff] }
 0x3a6   :  { %14046 = vst [vmem:[#allocation507_spill] sm:$0xff] %v9303_v54  ;;  %v14062_v32 = vsel %vm14059_vm13, %v14060_v28, %v14061_v43  ;;  %vm14064_vm14 = vnez %v14063_v42  ;;  %v14069_v58 = vld [vmem:[#allocation580_spill] sm:$0xff]  ;;  %v14071_v30 = vld [vmem:[#allocation209_spill] sm:$0xff]  ;;  %v14077_v17 = vld [vmem:[#allocation343_spill] sm:$0xff] }
 0x3a7   :  { %14057 = vst [vmem:[#allocation512_spill] sm:$0xff] %v9315_v38  ;;  %v14067_v45 = vsel %vm14064_vm14, %v14065_v26, %v14066_v57  ;;  %vm14070_vm0 = vnez %v14069_v58  ;;  %v14072_v56 = vld [vmem:[#allocation585_spill] sm:$0xff]  ;;  %v14080_v28 = vld [vmem:[#allocation582_spill] sm:$0xff]  ;;  %v14082_v43 = vld [vmem:[#allocation583_spill] sm:$0xff] }
 0x3a8   :  { %v9327_v24 = vsub.f32 %v14067_v45, %v14062_v32  ;;  %v14073_v54 = vsel %vm14070_vm0, %v14071_v30, %v14072_v56  ;;  %v14074_v48 = vld [vmem:[#allocation337_spill] sm:$0xff]  ;;  %vm14081_vm2 = vnez %v14080_v28  ;;  %v14083_v42 = vld [vmem:[#allocation586_spill] sm:$0xff]  ;;  %v14087_v32 = vld [vmem:[#allocation339_spill] sm:$0xff] }
 0x3a9   :  { %vm14075_vm1 = vnez %v14074_v48  ;;  %v14076_v13 = vld [vmem:[#allocation65_spill] sm:$0xff]  ;;  %v14084_v38 = vsel %vm14081_vm2, %v14082_v43, %v14083_v42  ;;  %v14085_v26 = vld [vmem:[#allocation338_spill] sm:$0xff]  ;;  %v14088_v57 = vld [vmem:[#allocation71_spill] sm:$0xff] }
 0x3aa   :  { %14068 = vst [vmem:[#allocation281_spill] sm:$0xff] %v9327_v24  ;;  %v14078_v21 = vsel %vm14075_vm1, %v14076_v13, %v14077_v17  ;;  %vm14086_vm3 = vnez %v14085_v26  ;;  %v14091_v30 = vld [vmem:[#allocation584_spill] sm:$0xff]  ;;  %v14093_v56 = vld [vmem:[#allocation210_spill] sm:$0xff]  ;;  %v14094_v48 = vld [vmem:[#allocation51_spill] sm:$0xff] }
 0x3ab   :  { %v9339_v12 = vsub.f32 %v14078_v21, %v14073_v54  ;;  %v14089_v45 = vsel %vm14086_vm3, %v14087_v32, %v14088_v57  ;;  %vm14092_vm8 = vnez %v14091_v30  ;;  %v14096_v13 = vld [vmem:[#allocation340_spill] sm:$0xff]  ;;  %v14098_v54 = vld [vmem:[#allocation342_spill] sm:$0xff]  ;;  %v14099_v17 = vld [vmem:[#allocation347_spill] sm:$0xff] }
 0x3ac   :  { %v9351_v58 = vsub.f32 %v14089_v45, %v14084_v38  ;;  %v14095_v24 = vsel %vm14092_vm8, %v14093_v56, %v14094_v48  ;;  %vm14097_vm9 = vnez %v14096_v13  ;;  %v14102_v43 = vld [vmem:[#allocation588_spill] sm:$0xff]  ;;  %v14104_v42 = vld [vmem:[#allocation587_spill] sm:$0xff]  ;;  %v14109_v38 = vld [vmem:[#allocation69_spill] sm:$0xff] }
 0x3ad   :  { %14079 = vst [vmem:[#allocation13_spill] sm:$0xff] %v9339_v12  ;;  %v14100_v21 = vsel %vm14097_vm9, %v14098_v54, %v14099_v17  ;;  %vm14103_vm11 = vnez %v14102_v43  ;;  %v14105_v26 = vld [vmem:[#allocation591_spill] sm:$0xff]  ;;  %v14107_v32 = vld [vmem:[#allocation68_spill] sm:$0xff]  ;;  %v14113_v56 = vld [vmem:[#allocation589_spill] sm:$0xff] }
 0x3ae   :  { %14090 = vst [vmem:[#allocation280_spill] sm:$0xff] %v9351_v58  ;;  %v9363_v28 = vsub.f32 %v14100_v21, %v14095_v24  ;;  %v14106_v12 = vsel %vm14103_vm11, %v14104_v42, %v14105_v26  ;;  %vm14108_vm13 = vnez %v14107_v32  ;;  %v14110_v57 = vld [vmem:[#allocation72_spill] sm:$0xff]  ;;  %vm14114_vm14 = vnez %v14113_v56  ;;  %v14116_v13 = vld [vmem:[#allocation594_spill] sm:$0xff]  ;;  %v14120_v24 = vld [vmem:[#allocation345_spill] sm:$0xff] }
 0x3af   :  { %v14111_v45 = vsel %vm14108_vm13, %v14109_v38, %v14110_v57  ;;  %v14115_v48 = vld [vmem:[#allocation212_spill] sm:$0xff]  ;;  %v14121_v17 = vld [vmem:[#allocation73_spill] sm:$0xff]  ;;  %v14124_v42 = vld [vmem:[#allocation590_spill] sm:$0xff] }
 0x3b0   :  { %14101 = vst [vmem:[#allocation509_spill] sm:$0xff] %v9363_v28  ;;  %v9375_v30 = vsub.f32 %v14111_v45, %v14106_v12  ;;  %v14117_v58 = vsel %vm14114_vm14, %v14115_v48, %v14116_v13  ;;  %v14118_v54 = vld [vmem:[#allocation344_spill] sm:$0xff]  ;;  %vm14125_vm1 = vnez %v14124_v42  ;;  %v14126_v26 = vld [vmem:[#allocation213_spill] sm:$0xff]  ;;  %v14127_v32 = vld [vmem:[#allocation54_spill] sm:$0xff] }
 0x3b1   :  { %vm14119_vm0 = vnez %v14118_v54  ;;  %v14128_v28 = vsel %vm14125_vm1, %v14126_v26, %v14127_v32  ;;  %v14129_v38 = vld [vmem:[#allocation346_spill] sm:$0xff]  ;;  %v14131_v12 = vld [vmem:[#allocation348_spill] sm:$0xff]  ;;  %v14137_v13 = vld [vmem:[#allocation593_spill] sm:$0xff] }
 0x3b2   :  { %14112 = vst [vmem:[#allocation510_spill] sm:$0xff] %v9375_v30  ;;  %v14122_v21 = vsel %vm14119_vm0, %v14120_v24, %v14121_v17  ;;  %vm14130_vm2 = vnez %v14129_v38  ;;  %v14132_v57 = vld [vmem:[#allocation74_spill] sm:$0xff]  ;;  %v14135_v48 = vld [vmem:[#allocation592_spill] sm:$0xff]  ;;  %v14140_v24 = vld [vmem:[#allocation349_spill] sm:$0xff] }
 0x3b3   :  { %v9387_v43 = vsub.f32 %v14122_v21, %v14117_v58  ;;  %v14133_v45 = vsel %vm14130_vm2, %v14131_v12, %v14132_v57  ;;  %vm14136_vm3 = vnez %v14135_v48  ;;  %v14138_v54 = vld [vmem:[#allocation598_spill] sm:$0xff]  ;;  %vm14141_vm8 = vnez %v14140_v24  ;;  %v14148_v32 = vld [vmem:[#allocation215_spill] sm:$0xff]  ;;  %v14149_v38 = vld [vmem:[#allocation216_spill] sm:$0xff] }
 0x3b4   :  { %v9399_v56 = vsub.f32 %v14133_v45, %v14128_v28  ;;  %v14139_v30 = vsel %vm14136_vm3, %v14137_v13, %v14138_v54  ;;  %v14142_v58 = vld [vmem:[#allocation350_spill] sm:$0xff]  ;;  %v14151_v12 = vld [vmem:[#allocation352_spill] sm:$0xff]  ;;  %v14153_v28 = vld [vmem:[#allocation351_spill] sm:$0xff] }
 0x3b5   :  { %14123 = vst [vmem:[#allocation179_spill] sm:$0xff] %v9387_v43  ;;  %v14143_v17 = vld [vmem:[#allocation354_spill] sm:$0xff]  ;;  %vm14152_vm11 = vnez %v14151_v12  ;;  %v14154_v57 = vld [vmem:[#allocation79_spill] sm:$0xff]  ;;  %v14157_v13 = vld [vmem:[#allocation596_spill] sm:$0xff] }
 0x3b6   :  { %14134 = vst [vmem:[#allocation284_spill] sm:$0xff] %v9399_v56  ;;  %v14144_v21 = vsel %vm14141_vm8, %v14142_v58, %v14143_v17  ;;  %v14146_v26 = vld [vmem:[#allocation214_spill] sm:$0xff]  ;;  %v14155_v45 = vsel %vm14152_vm11, %v14153_v28, %v14154_v57  ;;  %vm14158_vm13 = vnez %v14157_v13  ;;  %v14159_v54 = vld [vmem:[#allocation595_spill] sm:$0xff]  ;;  %v14160_v24 = vld [vmem:[#allocation217_spill] sm:$0xff] }
 0x3b7   :  { %v9411_v42 = vsub.f32 %v14144_v21, %v14139_v30  ;;  %vm14147_vm9 = vnez %v14146_v26  ;;  %v14161_v56 = vsel %vm14158_vm13, %v14159_v54, %v14160_v24  ;;  %v14162_v58 = vld [vmem:[#allocation353_spill] sm:$0xff]  ;;  %v14164_v30 = vld [vmem:[#allocation76_spill] sm:$0xff]  ;;  %v14165_v17 = vld [vmem:[#allocation358_spill] sm:$0xff] }
 0x3b8   :  { %v14150_v43 = vsel %vm14147_vm9, %v14148_v32, %v14149_v38  ;;  %vm14163_vm14 = vnez %v14162_v58  ;;  %v14168_v32 = vld [vmem:[#allocation597_spill] sm:$0xff]  ;;  %v14170_v38 = vld [vmem:[#allocation599_spill] sm:$0xff]  ;;  %v14179_v54 = vld [vmem:[#allocation600_spill] sm:$0xff] }
 0x3b9   :  { %14145 = vst [vmem:[#allocation14_spill] sm:$0xff] %v9411_v42  ;;  %v9423_v48 = vsub.f32 %v14155_v45, %v14150_v43  ;;  %v14166_v21 = vsel %vm14163_vm14, %v14164_v30, %v14165_v17  ;;  %vm14169_vm0 = vnez %v14168_v32  ;;  %v14171_v12 = vld [vmem:[#allocation603_spill] sm:$0xff]  ;;  %v14175_v43 = vld [vmem:[#allocation356_spill] sm:$0xff]  ;;  %vm14180_vm2 = vnez %v14179_v54  ;;  %v14181_v24 = vld [vmem:[#allocation601_spill] sm:$0xff] }
 0x3ba   :  { %v9435_v26 = vsub.f32 %v14166_v21, %v14161_v56  ;;  %v14172_v42 = vsel %vm14169_vm0, %v14170_v38, %v14171_v12  ;;  %v14173_v28 = vld [vmem:[#allocation355_spill] sm:$0xff]  ;;  %v14182_v58 = vld [vmem:[#allocation220_spill] sm:$0xff]  ;;  %v14184_v30 = vld [vmem:[#allocation357_spill] sm:$0xff] }
 0x3bb   :  { %14156 = vst [vmem:[#allocation282_spill] sm:$0xff] %v9423_v48  ;;  %vm14174_vm1 = vnez %v14173_v28  ;;  %v14176_v57 = vld [vmem:[#allocation359_spill] sm:$0xff]  ;;  %v14183_v48 = vsel %vm14180_vm2, %v14181_v24, %v14182_v58  ;;  %vm14185_vm3 = vnez %v14184_v30  ;;  %v14186_v56 = vld [vmem:[#allocation77_spill] sm:$0xff]  ;;  %v14187_v17 = vld [vmem:[#allocation82_spill] sm:$0xff] }
 0x3bc   :  { %14167 = vst [vmem:[#allocation511_spill] sm:$0xff] %v9435_v26  ;;  %v14177_v45 = vsel %vm14174_vm1, %v14175_v43, %v14176_v57  ;;  %v14188_v21 = vsel %vm14185_vm3, %v14186_v56, %v14187_v17  ;;  %v14190_v38 = vld [vmem:[#allocation602_spill] sm:$0xff]  ;;  %v14192_v12 = vld [vmem:[#allocation219_spill] sm:$0xff]  ;;  %v14195_v43 = vld [vmem:[#allocation361_spill] sm:$0xff] }
 0x3bd   :  { %v9447_v13 = vsub.f32 %v14177_v45, %v14172_v42  ;;  %v9459_v32 = vsub.f32 %v14188_v21, %v14183_v48  ;;  %vm14191_vm8 = vnez %v14190_v38  ;;  %v14193_v28 = vld [vmem:[#allocation222_spill] sm:$0xff]  ;;  %vm14196_vm9 = vnez %v14195_v43  ;;  %v14197_v42 = vld [vmem:[#allocation360_spill] sm:$0xff]  ;;  %v14198_v57 = vld [vmem:[#allocation365_spill] sm:$0xff] }
 0x3be   :  { %v14194_v26 = vsel %vm14191_vm8, %v14192_v12, %v14193_v28  ;;  %v14199_v45 = vsel %vm14196_vm9, %v14197_v42, %v14198_v57  ;;  %v14201_v24 = vld [vmem:[#allocation605_spill] sm:$0xff]  ;;  %v14203_v58 = vld [vmem:[#allocation604_spill] sm:$0xff]  ;;  %v14204_v30 = vld [vmem:[#allocation223_spill] sm:$0xff] }
 0x3bf   :  { %14178 = vst [vmem:[#allocation178_spill] sm:$0xff] %v9447_v13  ;;  %14189 = vst [vmem:[#allocation183_spill] sm:$0xff] %v9459_v32  ;;  %v9471_v54 = vsub.f32 %v14199_v45, %v14194_v26  ;;  %vm14202_vm11 = vnez %v14201_v24  ;;  %v14206_v56 = vld [vmem:[#allocation80_spill] sm:$0xff]  ;;  %v14208_v48 = vld [vmem:[#allocation81_spill] sm:$0xff] }
 0x3c0   :  { %v14205_v13 = vsel %vm14202_vm11, %v14203_v58, %v14204_v30  ;;  %vm14207_vm13 = vnez %v14206_v56  ;;  %v14209_v17 = vld [vmem:[#allocation84_spill] sm:$0xff]  ;;  %v14212_v12 = vld [vmem:[#allocation606_spill] sm:$0xff]  ;;  %v14214_v28 = vld [vmem:[#allocation607_spill] sm:$0xff] }
 0x3c1   :  { %14200 = vst [vmem:[#allocation17_spill] sm:$0xff] %v9471_v54  ;;  %v14210_v21 = vsel %vm14207_vm13, %v14208_v48, %v14209_v17  ;;  %vm14213_vm14 = vnez %v14212_v12  ;;  %v14215_v43 = vld [vmem:[#allocation610_spill] sm:$0xff]  ;;  %v14219_v26 = vld [vmem:[#allocation363_spill] sm:$0xff]  ;;  %v14223_v58 = vld [vmem:[#allocation221_spill] sm:$0xff] }
 0x3c2   :  { %v9483_v38 = vsub.f32 %v14210_v21, %v14205_v13  ;;  %v14216_v32 = vsel %vm14213_vm14, %v14214_v28, %v14215_v43  ;;  %v14217_v42 = vld [vmem:[#allocation362_spill] sm:$0xff]  ;;  %vm14224_vm1 = vnez %v14223_v58  ;;  %v14225_v30 = vld [vmem:[#allocation608_spill] sm:$0xff]  ;;  %v14230_v13 = vld [vmem:[#allocation85_spill] sm:$0xff] }
 0x3c3   :  { %vm14218_vm0 = vnez %v14217_v42  ;;  %v14220_v57 = vld [vmem:[#allocation366_spill] sm:$0xff]  ;;  %v14226_v56 = vld [vmem:[#allocation224_spill] sm:$0xff]  ;;  %v14231_v17 = vld [vmem:[#allocation371_spill] sm:$0xff] }
 0x3c4   :  { %14211 = vst [vmem:[#allocation15_spill] sm:$0xff] %v9483_v38  ;;  %v14221_v45 = vsel %vm14218_vm0, %v14219_v26, %v14220_v57  ;;  %v14227_v54 = vsel %vm14224_vm1, %v14225_v30, %v14226_v56  ;;  %v14228_v48 = vld [vmem:[#allocation364_spill] sm:$0xff]  ;;  %v14234_v28 = vld [vmem:[#allocation609_spill] sm:$0xff]  ;;  %v14236_v43 = vld [vmem:[#allocation611_spill] sm:$0xff] }
 0x3c5   :  { %v9495_v24 = vsub.f32 %v14221_v45, %v14216_v32  ;;  %vm14229_vm2 = vnez %v14228_v48  ;;  %vm14235_vm3 = vnez %v14234_v28  ;;  %v14237_v42 = vld [vmem:[#allocation617_spill] sm:$0xff]  ;;  %v14239_v26 = vld [vmem:[#allocation368_spill] sm:$0xff]  ;;  %v14241_v32 = vld [vmem:[#allocation367_spill] sm:$0xff] }
 0x3c6   :  { %v14232_v21 = vsel %vm14229_vm2, %v14230_v13, %v14231_v17  ;;  %v14238_v38 = vsel %vm14235_vm3, %v14236_v43, %v14237_v42  ;;  %vm14240_vm8 = vnez %v14239_v26  ;;  %v14242_v57 = vld [vmem:[#allocation88_spill] sm:$0xff]  ;;  %v14247_v56 = vld [vmem:[#allocation613_spill] sm:$0xff]  ;;  %v14248_v48 = vld [vmem:[#allocation618_spill] sm:$0xff] }
 0x3c7   :  { %14222 = vst [vmem:[#allocation283_spill] sm:$0xff] %v9495_v24  ;;  %v9507_v12 = vsub.f32 %v14232_v21, %v14227_v54  ;;  %v14243_v45 = vsel %vm14240_vm8, %v14241_v32, %v14242_v57  ;;  %v14245_v30 = vld [vmem:[#allocation612_spill] sm:$0xff]  ;;  %v14250_v13 = vld [vmem:[#allocation370_spill] sm:$0xff]  ;;  %v14252_v54 = vld [vmem:[#allocation369_spill] sm:$0xff] }
 0x3c8   :  { %v9519_v58 = vsub.f32 %v14243_v45, %v14238_v38  ;;  %vm14246_vm9 = vnez %v14245_v30  ;;  %vm14251_vm11 = vnez %v14250_v13  ;;  %v14253_v17 = vld [vmem:[#allocation91_spill] sm:$0xff]  ;;  %v14256_v43 = vld [vmem:[#allocation614_spill] sm:$0xff]  ;;  %v14263_v38 = vld [vmem:[#allocation372_spill] sm:$0xff] }
 0x3c9   :  { %14233 = vst [vmem:[#allocation514_spill] sm:$0xff] %v9507_v12  ;;  %v14249_v24 = vsel %vm14246_vm9, %v14247_v56, %v14248_v48  ;;  %v14254_v21 = vsel %vm14251_vm11, %v14252_v54, %v14253_v17  ;;  %vm14257_vm13 = vnez %v14256_v43  ;;  %v14258_v42 = vld [vmem:[#allocation615_spill] sm:$0xff]  ;;  %v14259_v26 = vld [vmem:[#allocation62_spill] sm:$0xff]  ;;  %v14264_v57 = vld [vmem:[#allocation376_spill] sm:$0xff] }
 0x3ca   :  { %14244 = vst [vmem:[#allocation513_spill] sm:$0xff] %v9519_v58  ;;  %v9531_v28 = vsub.f32 %v14254_v21, %v14249_v24  ;;  %v14260_v12 = vsel %vm14257_vm13, %v14258_v42, %v14259_v26  ;;  %v14261_v32 = vld [vmem:[#allocation87_spill] sm:$0xff]  ;;  %v14267_v56 = vld [vmem:[#allocation616_spill] sm:$0xff]  ;;  %v14269_v48 = vld [vmem:[#allocation225_spill] sm:$0xff] }
 0x3cb   :  { %vm14262_vm14 = vnez %v14261_v32  ;;  %vm14268_vm0 = vnez %v14267_v56  ;;  %v14270_v13 = vld [vmem:[#allocation621_spill] sm:$0xff]  ;;  %v14274_v24 = vld [vmem:[#allocation90_spill] sm:$0xff]  ;;  %v14278_v42 = vld [vmem:[#allocation619_spill] sm:$0xff] }
 0x3cc   :  { %14255 = vst [vmem:[#allocation518_spill] sm:$0xff] %v9531_v28  ;;  %v14265_v45 = vsel %vm14262_vm14, %v14263_v38, %v14264_v57  ;;  %v14271_v58 = vsel %vm14268_vm0, %v14269_v48, %v14270_v13  ;;  %v14272_v54 = vld [vmem:[#allocation373_spill] sm:$0xff]  ;;  %v14275_v17 = vld [vmem:[#allocation94_spill] sm:$0xff]  ;;  %vm14279_vm2 = vnez %v14278_v42  ;;  %v14281_v32 = vld [vmem:[#allocation228_spill] sm:$0xff] }
 0x3cd   :  { %v9543_v30 = vsub.f32 %v14265_v45, %v14260_v12  ;;  %vm14273_vm1 = vnez %v14272_v54  ;;  %v14280_v26 = vld [vmem:[#allocation226_spill] sm:$0xff]  ;;  %v14285_v12 = vld [vmem:[#allocation375_spill] sm:$0xff]  ;;  %v14291_v13 = vld [vmem:[#allocation620_spill] sm:$0xff] }
 0x3ce   :  { %v14276_v21 = vsel %vm14273_vm1, %v14274_v24, %v14275_v17  ;;  %v14282_v28 = vsel %vm14279_vm2, %v14280_v26, %v14281_v32  ;;  %v14283_v38 = vld [vmem:[#allocation374_spill] sm:$0xff]  ;;  %v14286_v57 = vld [vmem:[#allocation95_spill] sm:$0xff]  ;;  %v14292_v54 = vld [vmem:[#allocation229_spill] sm:$0xff] }
 0x3cf   :  { %14266 = vst [vmem:[#allocation18_spill] sm:$0xff] %v9543_v30  ;;  %v9555_v43 = vsub.f32 %v14276_v21, %v14271_v58  ;;  %vm14284_vm3 = vnez %v14283_v38  ;;  %v14289_v48 = vld [vmem:[#allocation227_spill] sm:$0xff]  ;;  %v14294_v24 = vld [vmem:[#allocation377_spill] sm:$0xff]  ;;  %v14296_v58 = vld [vmem:[#allocation378_spill] sm:$0xff] }
 0x3d0   :  { %v14287_v45 = vsel %vm14284_vm3, %v14285_v12, %v14286_v57  ;;  %vm14290_vm8 = vnez %v14289_v48  ;;  %vm14295_vm9 = vnez %v14294_v24  ;;  %v14297_v17 = vld [vmem:[#allocation97_spill] sm:$0xff]  ;;  %v14300_v26 = vld [vmem:[#allocation622_spill] sm:$0xff]  ;;  %v14302_v32 = vld [vmem:[#allocation623_spill] sm:$0xff] }
 0x3d1   :  { %14277 = vst [vmem:[#allocation16_spill] sm:$0xff] %v9555_v43  ;;  %v9567_v56 = vsub.f32 %v14287_v45, %v14282_v28  ;;  %v14293_v30 = vsel %vm14290_vm8, %v14291_v13, %v14292_v54  ;;  %v14298_v21 = vsel %vm14295_vm9, %v14296_v58, %v14297_v17  ;;  %vm14301_vm11 = vnez %v14300_v26  ;;  %v14303_v38 = vld [vmem:[#allocation232_spill] sm:$0xff]  ;;  %v14305_v12 = vld [vmem:[#allocation379_spill] sm:$0xff]  ;;  %v14308_v57 = vld [vmem:[#allocation101_spill] sm:$0xff] }
 0x3d2   :  { %v9579_v42 = vsub.f32 %v14298_v21, %v14293_v30  ;;  %v14304_v43 = vsel %vm14301_vm11, %v14302_v32, %v14303_v38  ;;  %vm14306_vm13 = vnez %v14305_v12  ;;  %v14307_v28 = vld [vmem:[#allocation380_spill] sm:$0xff]  ;;  %v14313_v54 = vld [vmem:[#allocation625_spill] sm:$0xff]  ;;  %v14314_v24 = vld [vmem:[#allocation630_spill] sm:$0xff] }
 0x3d3   :  { %14288 = vst [vmem:[#allocation285_spill] sm:$0xff] %v9567_v56  ;;  %v14309_v45 = vsel %vm14306_vm13, %v14307_v28, %v14308_v57  ;;  %v14311_v13 = vld [vmem:[#allocation624_spill] sm:$0xff]  ;;  %v14316_v58 = vld [vmem:[#allocation382_spill] sm:$0xff]  ;;  %v14318_v30 = vld [vmem:[#allocation381_spill] sm:$0xff] }
 0x3d4   :  { %14299 = vst [vmem:[#allocation515_spill] sm:$0xff] %v9579_v42  ;;  %v9591_v48 = vsub.f32 %v14309_v45, %v14304_v43  ;;  %vm14312_vm14 = vnez %v14311_v13  ;;  %vm14317_vm0 = vnez %v14316_v58  ;;  %v14319_v17 = vld [vmem:[#allocation387_spill] sm:$0xff]  ;;  %v14324_v38 = vld [vmem:[#allocation626_spill] sm:$0xff]  ;;  %v14325_v12 = vld [vmem:[#allocation233_spill] sm:$0xff] }
 0x3d5   :  { %v14315_v56 = vsel %vm14312_vm14, %v14313_v54, %v14314_v24  ;;  %v14320_v21 = vsel %vm14317_vm0, %v14318_v30, %v14319_v17  ;;  %v14322_v32 = vld [vmem:[#allocation627_spill] sm:$0xff]  ;;  %v14329_v43 = vld [vmem:[#allocation98_spill] sm:$0xff]  ;;  %v14330_v57 = vld [vmem:[#allocation388_spill] sm:$0xff] }
 0x3d6   :  { %14310 = vst [vmem:[#allocation180_spill] sm:$0xff] %v9591_v48  ;;  %v9603_v26 = vsub.f32 %v14320_v21, %v14315_v56  ;;  %vm14323_vm1 = vnez %v14322_v32  ;;  %v14327_v28 = vld [vmem:[#allocation383_spill] sm:$0xff]  ;;  %v14335_v24 = vld [vmem:[#allocation628_spill] sm:$0xff]  ;;  %v14336_v58 = vld [vmem:[#allocation633_spill] sm:$0xff] }
 0x3d7   :  { %v14326_v42 = vsel %vm14323_vm1, %v14324_v38, %v14325_v12  ;;  %vm14328_vm2 = vnez %v14327_v28  ;;  %v14333_v54 = vld [vmem:[#allocation231_spill] sm:$0xff]  ;;  %v14338_v30 = vld [vmem:[#allocation384_spill] sm:$0xff]  ;;  %v14340_v56 = vld [vmem:[#allocation385_spill] sm:$0xff] }
 0x3d8   :  { %14321 = vst [vmem:[#allocation520_spill] sm:$0xff] %v9603_v26  ;;  %v14331_v45 = vsel %vm14328_vm2, %v14329_v43, %v14330_v57  ;;  %vm14334_vm3 = vnez %v14333_v54  ;;  %vm14339_vm8 = vnez %v14338_v30  ;;  %v14341_v17 = vld [vmem:[#allocation390_spill] sm:$0xff]  ;;  %v14344_v38 = vld [vmem:[#allocation629_spill] sm:$0xff]  ;;  %v14346_v12 = vld [vmem:[#allocation631_spill] sm:$0xff] }
 0x3d9   :  { %v9615_v13 = vsub.f32 %v14331_v45, %v14326_v42  ;;  %v14337_v48 = vsel %vm14334_vm3, %v14335_v24, %v14336_v58  ;;  %v14342_v21 = vsel %vm14339_vm8, %v14340_v56, %v14341_v17  ;;  %vm14345_vm9 = vnez %v14344_v38  ;;  %v14347_v28 = vld [vmem:[#allocation634_spill] sm:$0xff]  ;;  %v14352_v57 = vld [vmem:[#allocation393_spill] sm:$0xff]  ;;  %v14355_v24 = vld [vmem:[#allocation632_spill] sm:$0xff] }
 0x3da   :  { %v9627_v32 = vsub.f32 %v14342_v21, %v14337_v48  ;;  %v14348_v26 = vsel %vm14345_vm9, %v14346_v12, %v14347_v28  ;;  %v14349_v43 = vld [vmem:[#allocation386_spill] sm:$0xff]  ;;  %vm14356_vm13 = vnez %v14355_v24  ;;  %v14358_v30 = vld [vmem:[#allocation237_spill] sm:$0xff]  ;;  %v14362_v48 = vld [vmem:[#allocation391_spill] sm:$0xff] }
 0x3db   :  { %14332 = vst [vmem:[#allocation20_spill] sm:$0xff] %v9615_v13  ;;  %vm14350_vm11 = vnez %v14349_v43  ;;  %v14351_v42 = vld [vmem:[#allocation102_spill] sm:$0xff]  ;;  %v14360_v56 = vld [vmem:[#allocation389_spill] sm:$0xff]  ;;  %v14363_v17 = vld [vmem:[#allocation107_spill] sm:$0xff] }
 0x3dc   :  { %14343 = vst [vmem:[#allocation218_spill] sm:$0xff] %v9627_v32  ;;  %v14353_v45 = vsel %vm14350_vm11, %v14351_v42, %v14352_v57  ;;  %v14357_v58 = vld [vmem:[#allocation234_spill] sm:$0xff]  ;;  %vm14361_vm14 = vnez %v14360_v56  ;;  %v14366_v12 = vld [vmem:[#allocation636_spill] sm:$0xff]  ;;  %v14368_v28 = vld [vmem:[#allocation635_spill] sm:$0xff] }
 0x3dd   :  { %v9639_v54 = vsub.f32 %v14353_v45, %v14348_v26  ;;  %v14359_v13 = vsel %vm14356_vm13, %v14357_v58, %v14358_v30  ;;  %v14364_v21 = vsel %vm14361_vm14, %v14362_v48, %v14363_v17  ;;  %vm14367_vm0 = vnez %v14366_v12  ;;  %v14369_v43 = vld [vmem:[#allocation641_spill] sm:$0xff]  ;;  %v14371_v42 = vld [vmem:[#allocation104_spill] sm:$0xff]  ;;  %v14379_v30 = vld [vmem:[#allocation235_spill] sm:$0xff] }
 0x3de   :  { %v9651_v38 = vsub.f32 %v14364_v21, %v14359_v13  ;;  %v14370_v32 = vsel %vm14367_vm0, %v14368_v28, %v14369_v43  ;;  %vm14372_vm1 = vnez %v14371_v42  ;;  %v14373_v26 = vld [vmem:[#allocation105_spill] sm:$0xff]  ;;  %v14374_v57 = vld [vmem:[#allocation108_spill] sm:$0xff]  ;;  %v14380_v56 = vld [vmem:[#allocation238_spill] sm:$0xff] }
 0x3df   :  { %14354 = vst [vmem:[#allocation286_spill] sm:$0xff] %v9639_v54  ;;  %v14375_v45 = vsel %vm14372_vm1, %v14373_v26, %v14374_v57  ;;  %v14377_v58 = vld [vmem:[#allocation637_spill] sm:$0xff]  ;;  %v14382_v48 = vld [vmem:[#allocation392_spill] sm:$0xff]  ;;  %v14384_v13 = vld [vmem:[#allocation394_spill] sm:$0xff] }
 0x3e0   :  { %14365 = vst [vmem:[#allocation516_spill] sm:$0xff] %v9651_v38  ;;  %v9663_v24 = vsub.f32 %v14375_v45, %v14370_v32  ;;  %vm14378_vm2 = vnez %v14377_v58  ;;  %vm14383_vm3 = vnez %v14382_v48  ;;  %v14385_v17 = vld [vmem:[#allocation110_spill] sm:$0xff]  ;;  %v14388_v28 = vld [vmem:[#allocation236_spill] sm:$0xff]  ;;  %v14391_v42 = vld [vmem:[#allocation239_spill] sm:$0xff] }
 0x3e1   :  { %v14381_v54 = vsel %vm14378_vm2, %v14379_v30, %v14380_v56  ;;  %v14386_v21 = vsel %vm14383_vm3, %v14384_v13, %v14385_v17  ;;  %vm14389_vm8 = vnez %v14388_v28  ;;  %v14390_v43 = vld [vmem:[#allocation638_spill] sm:$0xff]  ;;  %v14393_v26 = vld [vmem:[#allocation395_spill] sm:$0xff]  ;;  %v14395_v32 = vld [vmem:[#allocation396_spill] sm:$0xff] }
 0x3e2   :  { %14376 = vst [vmem:[#allocation181_spill] sm:$0xff] %v9663_v24  ;;  %v9675_v12 = vsub.f32 %v14386_v21, %v14381_v54  ;;  %v14392_v38 = vsel %vm14389_vm8, %v14390_v43, %v14391_v42  ;;  %vm14394_vm9 = vnez %v14393_v26  ;;  %v14396_v57 = vld [vmem:[#allocation399_spill] sm:$0xff]  ;;  %v14399_v30 = vld [vmem:[#allocation640_spill] sm:$0xff]  ;;  %v14402_v48 = vld [vmem:[#allocation645_spill] sm:$0xff] }
 0x3e3   :  { %v14397_v45 = vsel %vm14394_vm9, %v14395_v32, %v14396_v57  ;;  %vm14400_vm11 = vnez %v14399_v30  ;;  %v14401_v56 = vld [vmem:[#allocation639_spill] sm:$0xff]  ;;  %v14404_v13 = vld [vmem:[#allocation398_spill] sm:$0xff]  ;;  %v14406_v54 = vld [vmem:[#allocation397_spill] sm:$0xff] }
 0x3e4   :  { %14387 = vst [vmem:[#allocation187_spill] sm:$0xff] %v9675_v12  ;;  %v9687_v58 = vsub.f32 %v14397_v45, %v14392_v38  ;;  %v14403_v24 = vsel %vm14400_vm11, %v14401_v56, %v14402_v48  ;;  %vm14405_vm13 = vnez %v14404_v13  ;;  %v14407_v17 = vld [vmem:[#allocation111_spill] sm:$0xff]  ;;  %v14410_v43 = vld [vmem:[#allocation642_spill] sm:$0xff]  ;;  %v14413_v26 = vld [vmem:[#allocation240_spill] sm:$0xff] }
 0x3e5   :  { %v14408_v21 = vsel %vm14405_vm13, %v14406_v54, %v14407_v17  ;;  %vm14411_vm14 = vnez %v14410_v43  ;;  %v14412_v42 = vld [vmem:[#allocation643_spill] sm:$0xff]  ;;  %v14415_v32 = vld [vmem:[#allocation401_spill] sm:$0xff]  ;;  %v14417_v38 = vld [vmem:[#allocation400_spill] sm:$0xff] }
 0x3e6   :  { %14398 = vst [vmem:[#allocation22_spill] sm:$0xff] %v9687_v58  ;;  %v9699_v28 = vsub.f32 %v14408_v21, %v14403_v24  ;;  %v14414_v12 = vsel %vm14411_vm14, %v14412_v42, %v14413_v26  ;;  %vm14416_vm0 = vnez %v14415_v32  ;;  %v14418_v57 = vld [vmem:[#allocation405_spill] sm:$0xff]  ;;  %v14421_v56 = vld [vmem:[#allocation644_spill] sm:$0xff]  ;;  %v14423_v48 = vld [vmem:[#allocation70_spill] sm:$0xff] }
 0x3e7   :  { %v14419_v45 = vsel %vm14416_vm0, %v14417_v38, %v14418_v57  ;;  %vm14422_vm1 = vnez %v14421_v56  ;;  %v14424_v13 = vld [vmem:[#allocation244_spill] sm:$0xff]  ;;  %v14426_v54 = vld [vmem:[#allocation402_spill] sm:$0xff]  ;;  %v14432_v42 = vld [vmem:[#allocation647_spill] sm:$0xff] }
 0x3e8   :  { %14409 = vst [vmem:[#allocation59_spill] sm:$0xff] %v9699_v28  ;;  %v9711_v30 = vsub.f32 %v14419_v45, %v14414_v12  ;;  %v14425_v58 = vsel %vm14422_vm1, %v14423_v48, %v14424_v13  ;;  %vm14427_vm2 = vnez %v14426_v54  ;;  %v14428_v24 = vld [vmem:[#allocation112_spill] sm:$0xff]  ;;  %v14429_v17 = vld [vmem:[#allocation406_spill] sm:$0xff]  ;;  %vm14433_vm3 = vnez %v14432_v42  ;;  %v14437_v38 = vld [vmem:[#allocation403_spill] sm:$0xff] }
 0x3e9   :  { %v14430_v21 = vsel %vm14427_vm2, %v14428_v24, %v14429_v17  ;;  %v14434_v26 = vld [vmem:[#allocation646_spill] sm:$0xff]  ;;  %v14435_v32 = vld [vmem:[#allocation652_spill] sm:$0xff]  ;;  %vm14438_vm8 = vnez %v14437_v38  ;;  %v14440_v57 = vld [vmem:[#allocation117_spill] sm:$0xff] }
 0x3ea   :  { %14420 = vst [vmem:[#allocation287_spill] sm:$0xff] %v9711_v30  ;;  %v9723_v43 = vsub.f32 %v14430_v21, %v14425_v58  ;;  %v14436_v28 = vsel %vm14433_vm3, %v14434_v26, %v14435_v32  ;;  %v14439_v12 = vld [vmem:[#allocation404_spill] sm:$0xff]  ;;  %v14443_v48 = vld [vmem:[#allocation649_spill] sm:$0xff]  ;;  %v14448_v24 = vld [vmem:[#allocation114_spill] sm:$0xff] }
 0x3eb   :  { %v14441_v45 = vsel %vm14438_vm8, %v14439_v12, %v14440_v57  ;;  %vm14444_vm9 = vnez %v14443_v48  ;;  %v14445_v13 = vld [vmem:[#allocation648_spill] sm:$0xff]  ;;  %v14446_v54 = vld [vmem:[#allocation653_spill] sm:$0xff]  ;;  %vm14449_vm11 = vnez %v14448_v24  ;;  %v14454_v26 = vld [vmem:[#allocation243_spill] sm:$0xff] }
 0x3ec   :  { %14431 = vst [vmem:[#allocation519_spill] sm:$0xff] %v9723_v43  ;;  %v9735_v56 = vsub.f32 %v14441_v45, %v14436_v28  ;;  %v14447_v30 = vsel %vm14444_vm9, %v14445_v13, %v14446_v54  ;;  %v14450_v58 = vld [vmem:[#allocation113_spill] sm:$0xff]  ;;  %vm14455_vm13 = vnez %v14454_v26  ;;  %v14457_v38 = vld [vmem:[#allocation246_spill] sm:$0xff]  ;;  %v14459_v12 = vld [vmem:[#allocation407_spill] sm:$0xff] }
 0x3ed   :  { %v14451_v17 = vld [vmem:[#allocation121_spill] sm:$0xff]  ;;  %vm14460_vm14 = vnez %v14459_v12  ;;  %v14461_v28 = vld [vmem:[#allocation408_spill] sm:$0xff]  ;;  %v14465_v13 = vld [vmem:[#allocation651_spill] sm:$0xff] }
 0x3ee   :  { %14442 = vst [vmem:[#allocation517_spill] sm:$0xff] %v9735_v56  ;;  %v14452_v21 = vsel %vm14449_vm11, %v14450_v58, %v14451_v17  ;;  %v14456_v32 = vld [vmem:[#allocation241_spill] sm:$0xff]  ;;  %vm14466_vm0 = vnez %v14465_v13  ;;  %v14467_v54 = vld [vmem:[#allocation650_spill] sm:$0xff]  ;;  %v14473_v17 = vld [vmem:[#allocation123_spill] sm:$0xff] }
 0x3ef   :  { %v9747_v42 = vsub.f32 %v14452_v21, %v14447_v30  ;;  %v14458_v43 = vsel %vm14455_vm13, %v14456_v32, %v14457_v38  ;;  %v14462_v57 = vld [vmem:[#allocation413_spill] sm:$0xff]  ;;  %v14472_v30 = vld [vmem:[#allocation118_spill] sm:$0xff]  ;;  %v14479_v12 = vld [vmem:[#allocation247_spill] sm:$0xff] }
 0x3f0   :  { %v14463_v45 = vsel %vm14460_vm14, %v14461_v28, %v14462_v57  ;;  %v14468_v24 = vld [vmem:[#allocation657_spill] sm:$0xff]  ;;  %v14476_v32 = vld [vmem:[#allocation654_spill] sm:$0xff]  ;;  %v14484_v57 = vld [vmem:[#allocation124_spill] sm:$0xff] }
 0x3f1   :  { %14453 = vst [vmem:[#allocation525_spill] sm:$0xff] %v9747_v42  ;;  %v9759_v48 = vsub.f32 %v14463_v45, %v14458_v43  ;;  %v14469_v56 = vsel %vm14466_vm0, %v14467_v54, %v14468_v24  ;;  %v14470_v58 = vld [vmem:[#allocation409_spill] sm:$0xff]  ;;  %vm14477_vm2 = vnez %v14476_v32  ;;  %v14481_v28 = vld [vmem:[#allocation410_spill] sm:$0xff]  ;;  %v14483_v43 = vld [vmem:[#allocation411_spill] sm:$0xff] }
 0x3f2   :  { %vm14471_vm1 = vnez %v14470_v58  ;;  %v14478_v38 = vld [vmem:[#allocation245_spill] sm:$0xff]  ;;  %vm14482_vm3 = vnez %v14481_v28  ;;  %v14487_v54 = vld [vmem:[#allocation655_spill] sm:$0xff]  ;;  %v14489_v24 = vld [vmem:[#allocation656_spill] sm:$0xff] }
 0x3f3   :  { %14464 = vst [vmem:[#allocation23_spill] sm:$0xff] %v9759_v48  ;;  %v14474_v21 = vsel %vm14471_vm1, %v14472_v30, %v14473_v17  ;;  %v14480_v42 = vsel %vm14477_vm2, %v14478_v38, %v14479_v12  ;;  %v14485_v45 = vsel %vm14482_vm3, %v14483_v43, %v14484_v57  ;;  %vm14488_vm8 = vnez %v14487_v54  ;;  %v14490_v58 = vld [vmem:[#allocation249_spill] sm:$0xff]  ;;  %v14492_v30 = vld [vmem:[#allocation412_spill] sm:$0xff]  ;;  %v14495_v17 = vld [vmem:[#allocation419_spill] sm:$0xff] }
 0x3f4   :  { %v9771_v26 = vsub.f32 %v14474_v21, %v14469_v56  ;;  %v9783_v13 = vsub.f32 %v14485_v45, %v14480_v42  ;;  %v14491_v48 = vsel %vm14488_vm8, %v14489_v24, %v14490_v58  ;;  %vm14493_vm9 = vnez %v14492_v30  ;;  %v14494_v56 = vld [vmem:[#allocation414_spill] sm:$0xff]  ;;  %v14498_v38 = vld [vmem:[#allocation659_spill] sm:$0xff]  ;;  %v14506_v57 = vld [vmem:[#allocation420_spill] sm:$0xff] }
 0x3f5   :  { %v14496_v21 = vsel %vm14493_vm9, %v14494_v56, %v14495_v17  ;;  %vm14499_vm11 = vnez %v14498_v38  ;;  %v14500_v12 = vld [vmem:[#allocation658_spill] sm:$0xff]  ;;  %v14501_v28 = vld [vmem:[#allocation663_spill] sm:$0xff]  ;;  %v14509_v24 = vld [vmem:[#allocation660_spill] sm:$0xff] }
 0x3f6   :  { %14475 = vst [vmem:[#allocation230_spill] sm:$0xff] %v9771_v26  ;;  %14486 = vst [vmem:[#allocation19_spill] sm:$0xff] %v9783_v13  ;;  %v9795_v32 = vsub.f32 %v14496_v21, %v14491_v48  ;;  %v14502_v26 = vsel %vm14499_vm11, %v14500_v12, %v14501_v28  ;;  %v14503_v43 = vld [vmem:[#allocation122_spill] sm:$0xff]  ;;  %v14505_v42 = vld [vmem:[#allocation415_spill] sm:$0xff]  ;;  %vm14510_vm14 = vnez %v14509_v24 }
 0x3f7   :  { %vm14504_vm13 = vnez %v14503_v43  ;;  %v14511_v58 = vld [vmem:[#allocation248_spill] sm:$0xff]  ;;  %v14512_v30 = vld [vmem:[#allocation666_spill] sm:$0xff]  ;;  %v14514_v56 = vld [vmem:[#allocation417_spill] sm:$0xff] }
 0x3f8   :  { %14497 = vst [vmem:[#allocation185_spill] sm:$0xff] %v9795_v32  ;;  %v14507_v45 = vsel %vm14504_vm13, %v14505_v42, %v14506_v57  ;;  %v14513_v13 = vsel %vm14510_vm14, %v14511_v58, %v14512_v30  ;;  %vm14515_vm0 = vnez %v14514_v56  ;;  %v14516_v48 = vld [vmem:[#allocation416_spill] sm:$0xff]  ;;  %v14517_v17 = vld [vmem:[#allocation127_spill] sm:$0xff]  ;;  %v14520_v12 = vld [vmem:[#allocation661_spill] sm:$0xff] }
 0x3f9   :  { %v9807_v54 = vsub.f32 %v14507_v45, %v14502_v26  ;;  %v14518_v21 = vsel %vm14515_vm0, %v14516_v48, %v14517_v17  ;;  %vm14521_vm1 = vnez %v14520_v12  ;;  %v14522_v28 = vld [vmem:[#allocation662_spill] sm:$0xff]  ;;  %v14527_v26 = vld [vmem:[#allocation421_spill] sm:$0xff]  ;;  %v14528_v57 = vld [vmem:[#allocation424_spill] sm:$0xff] }
 0x3fa   :  { %v9819_v38 = vsub.f32 %v14518_v21, %v14513_v13  ;;  %v14523_v43 = vld [vmem:[#allocation250_spill] sm:$0xff]  ;;  %v14531_v58 = vld [vmem:[#allocation665_spill] sm:$0xff]  ;;  %v14533_v30 = vld [vmem:[#allocation664_spill] sm:$0xff] }
 0x3fb   :  { %14508 = vst [vmem:[#allocation184_spill] sm:$0xff] %v9807_v54  ;;  %v14524_v32 = vsel %vm14521_vm1, %v14522_v28, %v14523_v43  ;;  %v14525_v42 = vld [vmem:[#allocation418_spill] sm:$0xff]  ;;  %vm14532_vm3 = vnez %v14531_v58  ;;  %v14534_v56 = vld [vmem:[#allocation252_spill] sm:$0xff]  ;;  %v14536_v48 = vld [vmem:[#allocation125_spill] sm:$0xff] }
 0x3fc   :  { %14519 = vst [vmem:[#allocation527_spill] sm:$0xff] %v9819_v38  ;;  %vm14526_vm2 = vnez %v14525_v42  ;;  %v14535_v54 = vsel %vm14532_vm3, %v14533_v30, %v14534_v56  ;;  %vm14537_vm8 = vnez %v14536_v48  ;;  %v14538_v13 = vld [vmem:[#allocation126_spill] sm:$0xff]  ;;  %v14539_v17 = vld [vmem:[#allocation128_spill] sm:$0xff]  ;;  %v14544_v43 = vld [vmem:[#allocation667_spill] sm:$0xff] }
 0x3fd   :  { %v14529_v45 = vsel %vm14526_vm2, %v14527_v26, %v14528_v57  ;;  %v14540_v21 = vsel %vm14537_vm8, %v14538_v13, %v14539_v17  ;;  %v14542_v28 = vld [vmem:[#allocation668_spill] sm:$0xff]  ;;  %v14545_v42 = vld [vmem:[#allocation671_spill] sm:$0xff]  ;;  %v14547_v26 = vld [vmem:[#allocation422_spill] sm:$0xff] }
 0x3fe   :  { %v9831_v24 = vsub.f32 %v14529_v45, %v14524_v32  ;;  %v9843_v12 = vsub.f32 %v14540_v21, %v14535_v54  ;;  %vm14543_vm9 = vnez %v14542_v28  ;;  %vm14548_vm11 = vnez %v14547_v26  ;;  %v14549_v32 = vld [vmem:[#allocation423_spill] sm:$0xff]  ;;  %v14550_v57 = vld [vmem:[#allocation428_spill] sm:$0xff]  ;;  %v14553_v30 = vld [vmem:[#allocation669_spill] sm:$0xff] }
 0x3ff   :  { %v14546_v38 = vsel %vm14543_vm9, %v14544_v43, %v14545_v42  ;;  %v14551_v45 = vsel %vm14548_vm11, %v14549_v32, %v14550_v57  ;;  %vm14554_vm13 = vnez %v14553_v30  ;;  %v14555_v56 = vld [vmem:[#allocation251_spill] sm:$0xff]  ;;  %v14558_v13 = vld [vmem:[#allocation426_spill] sm:$0xff]  ;;  %v14560_v54 = vld [vmem:[#allocation425_spill] sm:$0xff] }
 0x400   :  { %14530 = vst [vmem:[#allocation24_spill] sm:$0xff] %v9831_v24  ;;  %14541 = vst [vmem:[#allocation67_spill] sm:$0xff] %v9843_v12  ;;  %v9855_v58 = vsub.f32 %v14551_v45, %v14546_v38  ;;  %v14556_v48 = vld [vmem:[#allocation255_spill] sm:$0xff]  ;;  %vm14559_vm14 = vnez %v14558_v13  ;;  %v14561_v17 = vld [vmem:[#allocation130_spill] sm:$0xff] }
 0x401   :  { %v14557_v24 = vsel %vm14554_vm13, %v14555_v56, %v14556_v48  ;;  %v14562_v21 = vsel %vm14559_vm14, %v14560_v54, %v14561_v17  ;;  %v14564_v43 = vld [vmem:[#allocation78_spill] sm:$0xff]  ;;  %v14567_v26 = vld [vmem:[#allocation675_spill] sm:$0xff]  ;;  %v14571_v38 = vld [vmem:[#allocation129_spill] sm:$0xff] }
 0x402   :  { %14552 = vst [vmem:[#allocation21_spill] sm:$0xff] %v9855_v58  ;;  %v9867_v28 = vsub.f32 %v14562_v21, %v14557_v24  ;;  %vm14565_vm0 = vnez %v14564_v43  ;;  %v14566_v42 = vld [vmem:[#allocation670_spill] sm:$0xff]  ;;  %v14569_v32 = vld [vmem:[#allocation427_spill] sm:$0xff]  ;;  %v14572_v57 = vld [vmem:[#allocation432_spill] sm:$0xff] }
 0x403   :  { %v14568_v12 = vsel %vm14565_vm0, %v14566_v42, %v14567_v26  ;;  %vm14570_vm1 = vnez %v14569_v32  ;;  %v14575_v56 = vld [vmem:[#allocation672_spill] sm:$0xff]  ;;  %v14577_v48 = vld [vmem:[#allocation253_spill] sm:$0xff]  ;;  %v14578_v13 = vld [vmem:[#allocation678_spill] sm:$0xff] }
 0x404   :  { %14563 = vst [vmem:[#allocation522_spill] sm:$0xff] %v9867_v28  ;;  %v14573_v45 = vsel %vm14570_vm1, %v14571_v38, %v14572_v57  ;;  %vm14576_vm2 = vnez %v14575_v56  ;;  %v14580_v54 = vld [vmem:[#allocation430_spill] sm:$0xff]  ;;  %v14582_v24 = vld [vmem:[#allocation429_spill] sm:$0xff]  ;;  %v14583_v17 = vld [vmem:[#allocation435_spill] sm:$0xff] }
 0x405   :  { %v9879_v30 = vsub.f32 %v14573_v45, %v14568_v12  ;;  %v14579_v58 = vsel %vm14576_vm2, %v14577_v48, %v14578_v13  ;;  %vm14581_vm3 = vnez %v14580_v54  ;;  %v14586_v42 = vld [vmem:[#allocation674_spill] sm:$0xff]  ;;  %v14588_v26 = vld [vmem:[#allocation673_spill] sm:$0xff]  ;;  %v14591_v38 = vld [vmem:[#allocation431_spill] sm:$0xff] }
 0x406   :  { %v14584_v21 = vsel %vm14581_vm3, %v14582_v24, %v14583_v17  ;;  %vm14587_vm8 = vnez %v14586_v42  ;;  %v14589_v32 = vld [vmem:[#allocation258_spill] sm:$0xff]  ;;  %vm14592_vm9 = vnez %v14591_v38  ;;  %v14593_v12 = vld [vmem:[#allocation433_spill] sm:$0xff]  ;;  %v14594_v57 = vld [vmem:[#allocation436_spill] sm:$0xff] }
 0x407   :  { %14574 = vst [vmem:[#allocation521_spill] sm:$0xff] %v9879_v30  ;;  %v9891_v43 = vsub.f32 %v14584_v21, %v14579_v58  ;;  %v14590_v28 = vsel %vm14587_vm8, %v14588_v26, %v14589_v32  ;;  %v14595_v45 = vsel %vm14592_vm9, %v14593_v12, %v14594_v57  ;;  %v14597_v48 = vld [vmem:[#allocation677_spill] sm:$0xff]  ;;  %v14599_v13 = vld [vmem:[#allocation676_spill] sm:$0xff]  ;;  %v14600_v54 = vld [vmem:[#allocation259_spill] sm:$0xff] }
 0x408   :  { %v9903_v56 = vsub.f32 %v14595_v45, %v14590_v28  ;;  %vm14598_vm11 = vnez %v14597_v48  ;;  %v14602_v24 = vld [vmem:[#allocation434_spill] sm:$0xff]  ;;  %v14604_v58 = vld [vmem:[#allocation131_spill] sm:$0xff]  ;;  %v14610_v32 = vld [vmem:[#allocation256_spill] sm:$0xff] }
 0x409   :  { %14585 = vst [vmem:[#allocation189_spill] sm:$0xff] %v9891_v43  ;;  %v14601_v30 = vsel %vm14598_vm11, %v14599_v13, %v14600_v54  ;;  %vm14603_vm13 = vnez %v14602_v24  ;;  %v14605_v17 = vld [vmem:[#allocation134_spill] sm:$0xff]  ;;  %v14608_v26 = vld [vmem:[#allocation679_spill] sm:$0xff]  ;;  %v14613_v12 = vld [vmem:[#allocation132_spill] sm:$0xff] }
 0x40a   :  { %14596 = vst [vmem:[#allocation289_spill] sm:$0xff] %v9903_v56  ;;  %v14606_v21 = vsel %vm14603_vm13, %v14604_v58, %v14605_v17  ;;  %vm14609_vm14 = vnez %v14608_v26  ;;  %v14611_v38 = vld [vmem:[#allocation683_spill] sm:$0xff]  ;;  %vm14614_vm0 = vnez %v14613_v12  ;;  %v14615_v28 = vld [vmem:[#allocation133_spill] sm:$0xff]  ;;  %v14619_v13 = vld [vmem:[#allocation680_spill] sm:$0xff] }
 0x40b   :  { %v9915_v42 = vsub.f32 %v14606_v21, %v14601_v30  ;;  %v14612_v43 = vsel %vm14609_vm14, %v14610_v32, %v14611_v38  ;;  %v14616_v57 = vld [vmem:[#allocation439_spill] sm:$0xff]  ;;  %vm14620_vm1 = vnez %v14619_v13  ;;  %v14621_v54 = vld [vmem:[#allocation257_spill] sm:$0xff]  ;;  %v14627_v17 = vld [vmem:[#allocation136_spill] sm:$0xff] }
 0x40c   :  { %v14617_v45 = vsel %vm14614_vm0, %v14615_v28, %v14616_v57  ;;  %v14622_v24 = vld [vmem:[#allocation685_spill] sm:$0xff]  ;;  %v14626_v30 = vld [vmem:[#allocation135_spill] sm:$0xff]  ;;  %v14632_v38 = vld [vmem:[#allocation682_spill] sm:$0xff] }
 0x40d   :  { %14607 = vst [vmem:[#allocation242_spill] sm:$0xff] %v9915_v42  ;;  %v9927_v48 = vsub.f32 %v14617_v45, %v14612_v43  ;;  %v14623_v56 = vsel %vm14620_vm1, %v14621_v54, %v14622_v24  ;;  %v14624_v58 = vld [vmem:[#allocation437_spill] sm:$0xff]  ;;  %v14635_v28 = vld [vmem:[#allocation438_spill] sm:$0xff]  ;;  %v14637_v43 = vld [vmem:[#allocation440_spill] sm:$0xff] }
 0x40e   :  { %vm14625_vm2 = vnez %v14624_v58  ;;  %v14630_v32 = vld [vmem:[#allocation681_spill] sm:$0xff]  ;;  %vm14636_vm8 = vnez %v14635_v28  ;;  %v14638_v57 = vld [vmem:[#allocation138_spill] sm:$0xff]  ;;  %v14641_v54 = vld [vmem:[#allocation684_spill] sm:$0xff] }
 0x40f   :  { %14618 = vst [vmem:[#allocation261_spill] sm:$0xff] %v9927_v48  ;;  %v14628_v21 = vsel %vm14625_vm2, %v14626_v30, %v14627_v17  ;;  %vm14631_vm3 = vnez %v14630_v32  ;;  %v14633_v12 = vld [vmem:[#allocation689_spill] sm:$0xff]  ;;  %v14639_v45 = vsel %vm14636_vm8, %v14637_v43, %v14638_v57  ;;  %vm14642_vm9 = vnez %v14641_v54  ;;  %v14643_v24 = vld [vmem:[#allocation686_spill] sm:$0xff]  ;;  %v14655_v28 = vld [vmem:[#allocation692_spill] sm:$0xff] }
 0x410   :  { %v9939_v26 = vsub.f32 %v14628_v21, %v14623_v56  ;;  %v14634_v42 = vsel %vm14631_vm3, %v14632_v38, %v14633_v12  ;;  %v14644_v58 = vld [vmem:[#allocation690_spill] sm:$0xff]  ;;  %v14648_v56 = vld [vmem:[#allocation441_spill] sm:$0xff]  ;;  %v14652_v38 = vld [vmem:[#allocation687_spill] sm:$0xff] }
 0x411   :  { %v9951_v13 = vsub.f32 %v14639_v45, %v14634_v42  ;;  %v14645_v48 = vsel %vm14642_vm9, %v14643_v24, %v14644_v58  ;;  %v14646_v30 = vld [vmem:[#allocation442_spill] sm:$0xff]  ;;  %vm14653_vm13 = vnez %v14652_v38  ;;  %v14654_v12 = vld [vmem:[#allocation260_spill] sm:$0xff]  ;;  %v14657_v43 = vld [vmem:[#allocation443_spill] sm:$0xff] }
 0x412   :  { %14629 = vst [vmem:[#allocation524_spill] sm:$0xff] %v9939_v26  ;;  %vm14647_vm11 = vnez %v14646_v30  ;;  %v14649_v17 = vld [vmem:[#allocation446_spill] sm:$0xff]  ;;  %v14656_v26 = vsel %vm14653_vm13, %v14654_v12, %v14655_v28  ;;  %vm14658_vm14 = vnez %v14657_v43  ;;  %v14659_v42 = vld [vmem:[#allocation444_spill] sm:$0xff]  ;;  %v14660_v57 = vld [vmem:[#allocation449_spill] sm:$0xff] }
 0x413   :  { %14640 = vst [vmem:[#allocation523_spill] sm:$0xff] %v9951_v13  ;;  %v14650_v21 = vsel %vm14647_vm11, %v14648_v56, %v14649_v17  ;;  %v14661_v45 = vsel %vm14658_vm14, %v14659_v42, %v14660_v57  ;;  %v14663_v24 = vld [vmem:[#allocation688_spill] sm:$0xff]  ;;  %v14665_v58 = vld [vmem:[#allocation262_spill] sm:$0xff]  ;;  %v14666_v30 = vld [vmem:[#allocation693_spill] sm:$0xff]  ;;  %vm14693_vm11 = vnez %v13504_v63 }
 0x414   :  { %v9963_v32 = vsub.f32 %v14650_v21, %v14645_v48  ;;  %v9975_v54 = vsub.f32 %v14661_v45, %v14656_v26  ;;  %vm14664_vm0 = vnez %v14663_v24  ;;  %v14668_v56 = vld [vmem:[#allocation137_spill] sm:$0xff]  ;;  %v14671_v17 = vld [vmem:[#allocation450_spill] sm:$0xff]  ;;  %v14673_v12 = vld [vmem:[#allocation263_spill] sm:$0xff] }
 0x415   :  { %v14667_v13 = vsel %vm14664_vm0, %v14665_v58, %v14666_v30  ;;  %vm14669_vm1 = vnez %v14668_v56  ;;  %v14670_v48 = vld [vmem:[#allocation445_spill] sm:$0xff]  ;;  %vm14674_vm2 = vnez %v14673_v12  ;;  %v14675_v28 = vld [vmem:[#allocation264_spill] sm:$0xff]  ;;  %v14676_v43 = vld [vmem:[#allocation695_spill] sm:$0xff] }
 0x416   :  { %14651 = vst [vmem:[#allocation531_spill] sm:$0xff] %v9963_v32  ;;  %14662 = vst [vmem:[#allocation290_spill] sm:$0xff] %v9975_v54  ;;  %v14672_v21 = vsel %vm14669_vm1, %v14670_v48, %v14671_v17  ;;  %v14677_v32 = vsel %vm14674_vm2, %v14675_v28, %v14676_v43  ;;  %v14678_v42 = vld [vmem:[#allocation139_spill] sm:$0xff]  ;;  %v14681_v57 = vld [vmem:[#allocation454_spill] sm:$0xff] }
 0x417   :  { %v9987_v38 = vsub.f32 %v14672_v21, %v14667_v13  ;;  %vm14679_vm3 = vnez %v14678_v42  ;;  %v14680_v26 = vld [vmem:[#allocation447_spill] sm:$0xff]  ;;  %v14685_v30 = vld [vmem:[#allocation86_spill] sm:$0xff]  ;;  %v14686_v56 = vld [vmem:[#allocation265_spill] sm:$0xff] }
 0x418   :  { %v14682_v45 = vsel %vm14679_vm3, %v14680_v26, %v14681_v57  ;;  %v14683_v58 = vld [vmem:[#allocation691_spill] sm:$0xff]  ;;  %v14688_v48 = vld [vmem:[#allocation448_spill] sm:$0xff]  ;;  %v14694_v28 = vld [vmem:[#allocation694_spill] sm:$0xff] }
 0x419   :  { %v9999_v24 = vsub.f32 %v14682_v45, %v14677_v32  ;;  %vm14684_vm8 = vnez %v14683_v58  ;;  %vm14689_vm9 = vnez %v14688_v48  ;;  %v14690_v13 = vld [vmem:[#allocation451_spill] sm:$0xff]  ;;  %v14695_v43 = vld [vmem:[#allocation700_spill] sm:$0xff]  ;;  %v14706_v48 = vld [vmem:[#allocation453_spill] sm:$0xff] }
 0x41a   :  { %v14687_v54 = vsel %vm14684_vm8, %v14685_v30, %v14686_v56  ;;  %v14691_v17 = vld [vmem:[#allocation455_spill] sm:$0xff]  ;;  %v14696_v42 = vsel %vm14693_vm11, %v14694_v28, %v14695_v43  ;;  %v14697_v26 = vld [vmem:[#allocation452_spill] sm:$0xff]  ;;  %v14703_v30 = vld [vmem:[#allocation266_spill] sm:$0xff]  ;;  %vm14707_vm0 = vnez %v14706_v48 }
 0x41b   :  { %v14692_v21 = vsel %vm14689_vm9, %v14690_v13, %v14691_v17  ;;  %vm14698_vm13 = vnez %v14697_v26  ;;  %v14699_v32 = vld [vmem:[#allocation140_spill] sm:$0xff]  ;;  %v14700_v57 = vld [vmem:[#allocation143_spill] sm:$0xff]  ;;  %vm14704_vm14 = vnez %v14703_v30  ;;  %v14709_v13 = vld [vmem:[#allocation458_spill] sm:$0xff] }
 0x41c   :  { %v10011_v12 = vsub.f32 %v14692_v21, %v14687_v54  ;;  %v14701_v45 = vsel %vm14698_vm13, %v14699_v32, %v14700_v57  ;;  %v14705_v56 = vsel %vm14704_vm14, %v8390_v34, %v8430_v5  ;;  %v14708_v54 = vld [vmem:[#allocation141_spill] sm:$0xff]  ;;  %v14714_v28 = vld [vmem:[#allocation696_spill] sm:$0xff]  ;;  %v14717_v32 = vld [vmem:[#allocation142_spill] sm:$0xff] }
 0x41d   :  { %v10023_v58 = vsub.f32 %v14701_v45, %v14696_v42  ;;  %v14710_v63 = vsel %vm14707_vm0, %v14708_v54, %v14709_v13  ;;  %v14712_v21 = vld [vmem:[#allocation697_spill] sm:$0xff]  ;;  %vm14718_vm2 = vnez %v14717_v32  ;;  %v14719_v42 = vld [vmem:[#allocation144_spill] sm:$0xff]  ;;  %v14723_v34 = vld [vmem:[#allocation698_spill] sm:$0xff] }
 0x41e   :  { %v10035_v17 = vsub.f32 %v14710_v63, %v14705_v56  ;;  %vm14713_vm1 = vnez %v14712_v21  ;;  %v14715_v43 = vld [vmem:[#allocation93_spill] sm:$0xff]  ;;  %vm14724_vm3 = vnez %v14723_v34  ;;  %v14726_v48 = vld [vmem:[#allocation702_spill] sm:$0xff]  ;;  %v14728_v54 = vld [vmem:[#allocation456_spill] sm:$0xff] }
 0x41f   :  { %14702 = vst [vmem:[#allocation75_spill] sm:$0xff] %v10023_v58  ;;  %v14716_v26 = vsel %vm14713_vm1, %v14714_v28, %v14715_v43  ;;  %v14720_v57 = vld [vmem:[#allocation461_spill] sm:$0xff]  ;;  %vm14729_vm8 = vnez %v14728_v54  ;;  %v14734_v28 = vld [vmem:[#allocation699_spill] sm:$0xff]  ;;  %v14737_v32 = vld [vmem:[#allocation704_spill] sm:$0xff] }
 0x420   :  { %14711 = vst [vmem:[#allocation288_spill] sm:$0xff] %v10035_v17  ;;  %v14721_v45 = vsel %vm14718_vm2, %v14719_v42, %v14720_v57  ;;  %v14725_v5 = vld [vmem:[#allocation89_spill] sm:$0xff]  ;;  %vm14735_vm9 = vnez %v14734_v28  ;;  %v14736_v43 = vld [vmem:[#allocation267_spill] sm:$0xff]  ;;  %v14739_v42 = vld [vmem:[#allocation460_spill] sm:$0xff] }
 0x421   :  { %v10047_v30 = vsub.f32 %v14721_v45, %v14716_v26  ;;  %v14727_v58 = vsel %vm14724_vm3, %v14725_v5, %v14726_v48  ;;  %v14730_v56 = vld [vmem:[#allocation457_spill] sm:$0xff]  ;;  %v14738_v17 = vsel %vm14735_vm9, %v14736_v43, %v14737_v32  ;;  %vm14740_vm11 = vnez %v14739_v42  ;;  %v14741_v26 = vld [vmem:[#allocation459_spill] sm:$0xff]  ;;  %v14742_v57 = vld [vmem:[#allocation466_spill] sm:$0xff] }
 0x422   :  { %v14731_v13 = vld [vmem:[#allocation145_spill] sm:$0xff]  ;;  %v14743_v45 = vsel %vm14740_vm11, %v14741_v26, %v14742_v57  ;;  %v14747_v48 = vld [vmem:[#allocation703_spill] sm:$0xff]  ;;  %v14758_v32 = vld [vmem:[#allocation268_spill] sm:$0xff] }
 0x423   :  { %14722 = vst [vmem:[#allocation526_spill] sm:$0xff] %v10047_v30  ;;  %v14732_v63 = vsel %vm14729_vm8, %v14730_v56, %v14731_v13  ;;  %v10071_v34 = vsub.f32 %v14743_v45, %v14738_v17  ;;  %v14745_v5 = vld [vmem:[#allocation701_spill] sm:$0xff]  ;;  %v14750_v56 = vld [vmem:[#allocation463_spill] sm:$0xff]  ;;  %v14759_v42 = vld [vmem:[#allocation712_spill] sm:$0xff] }
 0x424   :  { %v10059_v21 = vsub.f32 %v14732_v63, %v14727_v58  ;;  %vm14746_vm13 = vnez %v14745_v5  ;;  %v14748_v54 = vld [vmem:[#allocation709_spill] sm:$0xff]  ;;  %vm14751_vm14 = vnez %v14750_v56  ;;  %v14752_v58 = vld [vmem:[#allocation462_spill] sm:$0xff]  ;;  %v14761_v26 = vld [vmem:[#allocation464_spill] sm:$0xff] }
 0x425   :  { %14744 = vst [vmem:[#allocation31_spill] sm:$0xff] %v10071_v34  ;;  %v14749_v30 = vsel %vm14746_vm13, %v14747_v48, %v14748_v54  ;;  %v14753_v13 = vld [vmem:[#allocation149_spill] sm:$0xff]  ;;  %vm14762_vm1 = vnez %v14761_v26  ;;  %v14763_v17 = vld [vmem:[#allocation146_spill] sm:$0xff]  ;;  %v14767_v48 = vld [vmem:[#allocation707_spill] sm:$0xff] }
 0x426   :  { %14733 = vst [vmem:[#allocation188_spill] sm:$0xff] %v10059_v21  ;;  %v14754_v63 = vsel %vm14751_vm14, %v14752_v58, %v14753_v13  ;;  %v14756_v43 = vld [vmem:[#allocation705_spill] sm:$0xff]  ;;  %v14764_v57 = vld [vmem:[#allocation150_spill] sm:$0xff]  ;;  %vm14768_vm2 = vnez %v14767_v48  ;;  %v14770_v56 = vld [vmem:[#allocation92_spill] sm:$0xff] }
 0x427   :  { %v10083_v28 = vsub.f32 %v14754_v63, %v14749_v30  ;;  %vm14757_vm0 = vnez %v14756_v43  ;;  %v14765_v45 = vsel %vm14762_vm1, %v14763_v17, %v14764_v57  ;;  %v14769_v54 = vld [vmem:[#allocation706_spill] sm:$0xff]  ;;  %v14772_v58 = vld [vmem:[#allocation148_spill] sm:$0xff]  ;;  %v14774_v30 = vld [vmem:[#allocation147_spill] sm:$0xff]  ;;  %vm14810_vm1 = vnez %v13563_v46 }
 0x428   :  { %v14760_v21 = vsel %vm14757_vm0, %v14758_v32, %v14759_v42  ;;  %v14771_v34 = vsel %vm14768_vm2, %v14769_v54, %v14770_v56  ;;  %vm14773_vm3 = vnez %v14772_v58  ;;  %v14775_v13 = vld [vmem:[#allocation470_spill] sm:$0xff]  ;;  %v14778_v32 = vld [vmem:[#allocation708_spill] sm:$0xff]  ;;  %v14780_v42 = vld [vmem:[#allocation269_spill] sm:$0xff] }
 0x429   :  { %14755 = vst [vmem:[#allocation292_spill] sm:$0xff] %v10083_v28  ;;  %v10095_v5 = vsub.f32 %v14765_v45, %v14760_v21  ;;  %v14776_v63 = vsel %vm14773_vm3, %v14774_v30, %v14775_v13  ;;  %vm14779_vm8 = vnez %v14778_v32  ;;  %v14781_v26 = vld [vmem:[#allocation714_spill] sm:$0xff]  ;;  %v14783_v17 = vld [vmem:[#allocation465_spill] sm:$0xff]  ;;  %v14785_v21 = vld [vmem:[#allocation467_spill] sm:$0xff] }
 0x42a   :  { %v10107_v43 = vsub.f32 %v14776_v63, %v14771_v34  ;;  %v14782_v28 = vsel %vm14779_vm8, %v14780_v42, %v14781_v26  ;;  %vm14784_vm9 = vnez %v14783_v17  ;;  %v14786_v57 = vld [vmem:[#allocation471_spill] sm:$0xff]  ;;  %v14790_v56 = vld [vmem:[#allocation710_spill] sm:$0xff]  ;;  %v14791_v58 = vld [vmem:[#allocation717_spill] sm:$0xff] }
 0x42b   :  { %14766 = vst [vmem:[#allocation254_spill] sm:$0xff] %v10095_v5  ;;  %v14787_v45 = vsel %vm14784_vm9, %v14785_v21, %v14786_v57  ;;  %v14788_v54 = vld [vmem:[#allocation711_spill] sm:$0xff]  ;;  %v14793_v30 = vld [vmem:[#allocation469_spill] sm:$0xff]  ;;  %v14795_v34 = vld [vmem:[#allocation468_spill] sm:$0xff] }
 0x42c   :  { %14777 = vst [vmem:[#allocation291_spill] sm:$0xff] %v10107_v43  ;;  %v10119_v48 = vsub.f32 %v14787_v45, %v14782_v28  ;;  %vm14789_vm11 = vnez %v14788_v54  ;;  %vm14794_vm13 = vnez %v14793_v30  ;;  %v14796_v13 = vld [vmem:[#allocation475_spill] sm:$0xff]  ;;  %v14799_v42 = vld [vmem:[#allocation713_spill] sm:$0xff]  ;;  %v14802_v17 = vld [vmem:[#allocation720_spill] sm:$0xff] }
 0x42d   :  { %v14792_v5 = vsel %vm14789_vm11, %v14790_v56, %v14791_v58  ;;  %v14797_v63 = vsel %vm14794_vm13, %v14795_v34, %v14796_v13  ;;  %vm14800_vm14 = vnez %v14799_v42  ;;  %v14801_v26 = vld [vmem:[#allocation715_spill] sm:$0xff]  ;;  %v14804_v21 = vld [vmem:[#allocation473_spill] sm:$0xff]  ;;  %v14806_v28 = vld [vmem:[#allocation472_spill] sm:$0xff] }
 0x42e   :  { %v10131_v32 = vsub.f32 %v14797_v63, %v14792_v5  ;;  %v14803_v43 = vsel %vm14800_vm14, %v14801_v26, %v14802_v17  ;;  %vm14805_vm0 = vnez %v14804_v21  ;;  %v14807_v57 = vld [vmem:[#allocation154_spill] sm:$0xff]  ;;  %v14811_v56 = vld [vmem:[#allocation716_spill] sm:$0xff]  ;;  %v14812_v58 = vld [vmem:[#allocation99_spill] sm:$0xff] }
 0x42f   :  { %v14808_v45 = vsel %vm14805_vm0, %v14806_v28, %v14807_v57  ;;  %v14813_v30 = vsel %vm14810_vm1, %v14811_v56, %v14812_v58  ;;  %v14814_v34 = vld [vmem:[#allocation474_spill] sm:$0xff]  ;;  %v14816_v5 = vld [vmem:[#allocation151_spill] sm:$0xff]  ;;  %v14823_v21 = vld [vmem:[#allocation272_spill] sm:$0xff] }
 0x430   :  { %14798 = vst [vmem:[#allocation529_spill] sm:$0xff] %v10131_v32  ;;  %v10143_v54 = vsub.f32 %v14808_v45, %v14803_v43  ;;  %vm14815_vm2 = vnez %v14814_v34  ;;  %v14817_v13 = vld [vmem:[#allocation479_spill] sm:$0xff]  ;;  %v14822_v17 = vld [vmem:[#allocation718_spill] sm:$0xff]  ;;  %v14825_v28 = vld [vmem:[#allocation152_spill] sm:$0xff] }
 0x431   :  { %v14818_v63 = vsel %vm14815_vm2, %v14816_v5, %v14817_v13  ;;  %v14820_v26 = vld [vmem:[#allocation719_spill] sm:$0xff]  ;;  %vm14826_vm8 = vnez %v14825_v28  ;;  %v14827_v43 = vld [vmem:[#allocation153_spill] sm:$0xff]  ;;  %v14833_v58 = vld [vmem:[#allocation96_spill] sm:$0xff]  ;;  %vm14861_vm2 = vnez %v13594_v31 }
 0x432   :  { %14809 = vst [vmem:[#allocation528_spill] sm:$0xff] %v10143_v54  ;;  %v10155_v42 = vsub.f32 %v14818_v63, %v14813_v30  ;;  %vm14821_vm3 = vnez %v14820_v26  ;;  %v14828_v57 = vld [vmem:[#allocation155_spill] sm:$0xff]  ;;  %v14831_v56 = vld [vmem:[#allocation721_spill] sm:$0xff]  ;;  %v14834_v34 = vld [vmem:[#allocation724_spill] sm:$0xff] }
 0x433   :  { %v14824_v32 = vsel %vm14821_vm3, %v14822_v17, %v14823_v21  ;;  %v14829_v46 = vsel %vm14826_vm8, %v14827_v43, %v14828_v57  ;;  %vm14832_vm9 = vnez %v14831_v56  ;;  %v14836_v5 = vld [vmem:[#allocation477_spill] sm:$0xff]  ;;  %v14838_v30 = vld [vmem:[#allocation476_spill] sm:$0xff]  ;;  %v14841_v17 = vld [vmem:[#allocation722_spill] sm:$0xff]  ;;  %vm14869_vm8 = vnez %v13596_v3 }
 0x434   :  { %14819 = vst [vmem:[#allocation534_spill] sm:$0xff] %v10155_v42  ;;  %v10167_v45 = vsub.f32 %v14829_v46, %v14824_v32  ;;  %v14835_v54 = vsel %vm14832_vm9, %v14833_v58, %v14834_v34  ;;  %vm14837_vm11 = vnez %v14836_v5  ;;  %v14839_v13 = vld [vmem:[#allocation156_spill] sm:$0xff]  ;;  %vm14842_vm13 = vnez %v14841_v17  ;;  %v14843_v21 = vld [vmem:[#allocation270_spill] sm:$0xff]  ;;  %v14849_v57 = vld [vmem:[#allocation157_spill] sm:$0xff] }
 0x435   :  { %v14840_v63 = vsel %vm14837_vm11, %v14838_v30, %v14839_v13  ;;  %v14844_v28 = vld [vmem:[#allocation100_spill] sm:$0xff]  ;;  %v14846_v43 = vld [vmem:[#allocation478_spill] sm:$0xff]  ;;  %v14851_v58 = vld [vmem:[#allocation271_spill] sm:$0xff]  ;;  %vm14876_vm11 = vnez %v13600_v15 }
 0x436   :  { %14830 = vst [vmem:[#allocation294_spill] sm:$0xff] %v10167_v45  ;;  %v10179_v26 = vsub.f32 %v14840_v63, %v14835_v54  ;;  %v14845_v42 = vsel %vm14842_vm13, %v14843_v21, %v14844_v28  ;;  %vm14847_vm14 = vnez %v14846_v43  ;;  %v14848_v32 = vld [vmem:[#allocation480_spill] sm:$0xff]  ;;  %vm14852_vm0 = vnez %v14851_v58  ;;  %v14853_v34 = vld [vmem:[#allocation723_spill] sm:$0xff]  ;;  %v14856_v30 = vld [vmem:[#allocation482_spill] sm:$0xff] }
 0x437   :  { %v14850_v46 = vsel %vm14847_vm14, %v14848_v32, %v14849_v57  ;;  %v14854_v5 = vld [vmem:[#allocation103_spill] sm:$0xff]  ;;  %vm14857_vm1 = vnez %v14856_v30  ;;  %v14858_v54 = vld [vmem:[#allocation481_spill] sm:$0xff]  ;;  %v14859_v13 = vld [vmem:[#allocation160_spill] sm:$0xff]  ;;  %v14870_v58 = vsel %vm14869_vm8, %v8650_v1, %v8691_v59  ;;  %v14883_v59 = vsel %vm8665_vm15, %v8671_v35, %v8698_v53 }
 0x438   :  { %v10191_v56 = vsub.f32 %v14850_v46, %v14845_v42  ;;  %v14855_v45 = vsel %vm14852_vm0, %v14853_v34, %v14854_v5  ;;  %v14860_v63 = vsel %vm14857_vm1, %v14858_v54, %v14859_v13  ;;  %v14862_v21 = vld [vmem:[#allocation273_spill] sm:$0xff]  ;;  %v14864_v43 = vld [vmem:[#allocation484_spill] sm:$0xff]  ;;  %v14866_v42 = vld [vmem:[#allocation483_spill] sm:$0xff]  ;;  %v14895_v35 = vsel %vm8707_vm7, %v8717_v14, %v8727_v6 }
 0x439   :  { %v10203_v17 = vsub.f32 %v14860_v63, %v14855_v45  ;;  %v14863_v28 = vsel %vm14861_vm2, %v8622_v49, %v14862_v21  ;;  %vm14865_vm3 = vnez %v14864_v43  ;;  %v14867_v32 = vld [vmem:[#allocation489_spill] sm:$0xff]  ;;  %v14873_v45 = vld [vmem:[#allocation486_spill] sm:$0xff]  ;;  %v14877_v49 = vsel %vm14876_vm11, %v8663_v29, %v8695_v25  ;;  %v14880_v13 = vld [vmem:[#allocation159_spill] sm:$0xff] }
 0x43a   :  { %v14868_v57 = vsel %vm14865_vm3, %v14866_v42, %v14867_v32  ;;  %v14871_v34 = vld [vmem:[#allocation485_spill] sm:$0xff]  ;;  %v14874_v5 = vld [vmem:[#allocation490_spill] sm:$0xff]  ;;  %v14884_v1 = vld [vmem:[#allocation488_spill] sm:$0xff]  ;;  %v14889_v25 = vsel %vm8679_vm10, %v8688_v2, %v8705_v9  ;;  %v3014_v2 = vmul.f32 %v8768_v39, %v8768_v39  ;;  %v3015_v9 = vmul.f32 %v8780_v40, %v8780_v40 }
 0x43b   :  { %v10215_v46 = vsub.f32 %v14868_v57, %v14863_v28  ;;  %vm14872_vm9 = vnez %v14871_v34  ;;  %v14878_v54 = vld [vmem:[#allocation158_spill] sm:$0xff]  ;;  %v14881_v63 = vld [vmem:[#allocation161_spill] sm:$0xff]  ;;  %vm14885_vm14 = vnez %v14884_v1  ;;  %v14886_v28 = vld [vmem:[#allocation487_spill] sm:$0xff]  ;;  %v3017_v6 = vmul.f32 %v8809_v16, %v8809_v16 }
 0x43c   :  { %v14875_v31 = vsel %vm14872_vm9, %v14873_v45, %v14874_v5  ;;  %vm14879_vm13 = vnez %v14878_v54  ;;  %v14887_v43 = vld [vmem:[#allocation162_spill] sm:$0xff]  ;;  %v14890_v29 = vld [vmem:[#allocation491_spill] sm:$0xff]  ;;  %v14892_v32 = vld [vmem:[#allocation492_spill] sm:$0xff]  ;;  %v3019_v14 = vmul.f32 %v8837_v7, %v8837_v7  ;;  %v3021_v39 = vmul.f32 %v8863_v8, %v8863_v8 }
 0x43d   :  { %v10227_v30 = vsub.f32 %v14875_v31, %v14870_v58  ;;  %v14882_v3 = vsel %vm14879_vm13, %v14880_v13, %v14881_v63  ;;  %v14888_v15 = vsel %vm14885_vm14, %v14886_v28, %v14887_v43  ;;  %vm14891_vm0 = vnez %v14890_v29  ;;  %v14893_v57 = vld [vmem:[#allocation163_spill] sm:$0xff]  ;;  %v14896_v53 = vld [vmem:[#allocation493_spill] sm:$0xff]  ;;  %v14898_v34 = vld [vmem:[#allocation494_spill] sm:$0xff] }
 0x43e   :  { %v10239_v21 = vsub.f32 %v14882_v3, %v14877_v49  ;;  %v10251_v42 = vsub.f32 %v14888_v15, %v14883_v59  ;;  %v14894_v19 = vsel %vm14891_vm0, %v14892_v32, %v14893_v57  ;;  %vm14897_vm15 = vnez %v14896_v53  ;;  %v14899_v45 = vld [vmem:[#allocation165_spill] sm:$0xff]  ;;  %v14905_v54 = vld [vmem:[#allocation500_spill] sm:$0xff]  ;;  %v14911_v63 = vld [vmem:[#allocation503_spill] sm:$0xff] }
 0x43f   :  { %v10263_v58 = vsub.f32 %v14894_v19, %v14889_v25  ;;  %v14900_v55 = vsel %vm14897_vm15, %v14898_v34, %v14899_v45  ;;  %v3016_v31 = vmul.f32 %v8797_v37, %v8797_v37  ;;  %v3020_v49 = vmul.f32 %v8849_v36, %v8849_v36  ;;  %v14902_v37 = vld [vmem:[#allocation496_spill] sm:$0xff]  ;;  %v14908_v36 = vld [vmem:[#allocation497_spill] sm:$0xff]  ;;  %v14916_v59 = vld [vmem:[#allocation499_spill] sm:$0xff] }
 0x440   :  { %v10275_v5 = vsub.f32 %v14900_v55, %v14895_v35  ;;  %v14901_v40 = vsel %vm8719_vm12, %v8730_v61, %v8782_v41  ;;  %vm14903_vm7 = vnez %v14902_v37  ;;  %v14907_v7 = vsel %vm8732_vm5, %v8741_v22, %v8851_v44  ;;  %v14910_v8 = vld [vmem:[#allocation164_spill] sm:$0xff]  ;;  %v14914_v41 = vld [vmem:[#allocation498_spill] sm:$0xff]  ;;  %v14923_v15 = vld [vmem:[#allocation167_spill] sm:$0xff] }
 0x441   :  { %v14906_v13 = vsel %vm14903_vm7, %v14904_v52, %v14905_v54  ;;  %vm14909_vm10 = vnez %v14908_v36  ;;  %v14913_v61 = vsel %vm8746_vm4, %v8744_v27, %v8941_v11  ;;  %vm14915_vm12 = vnez %v14914_v41  ;;  %v14917_v1 = vld [vmem:[#allocation166_spill] sm:$0xff]  ;;  %v14928_v53 = vld [vmem:[#allocation275_spill] sm:$0xff]  ;;  %v14931_v52 = vld [vmem:[#allocation505_spill] sm:$0xff] }
 0x442   :  { %v10303_v16 = vsub.f32 %v14906_v13, %v14901_v40  ;;  %v14912_v60 = vsel %vm14909_vm10, %v14910_v8, %v14911_v63  ;;  %v14918_v47 = vsel %vm14915_vm12, %v14916_v59, %v14917_v1  ;;  %v3022_v22 = vmul.f32 %v8875_v62, %v8875_v62  ;;  %v14920_v43 = vld [vmem:[#allocation502_spill] sm:$0xff] }
 0x443   :  { %v10315_v3 = vsub.f32 %v14912_v60, %v14907_v7  ;;  %v10327_v28 = vsub.f32 %v14918_v47, %v14913_v61  ;;  %v14919_v44 = vsel %vm8754_vm6, %v8785_v51, %v9019_v20  ;;  %vm14921_vm5 = vnez %v14920_v43  ;;  %v14925_v0 = vld [vmem:[#allocation106_spill] sm:$0xff]  ;;  %v14926_v51 = vld [vmem:[#allocation175_spill] sm:$0xff]  ;;  %v14937_v47 = vld [vmem:[#allocation508_spill] sm:$0xff] }
 0x444   :  { %v14924_v27 = vsel %vm14921_vm5, %v14922_v23, %v14923_v15  ;;  %v3023_v25 = vmul.f32 %v8887_v4, %v8887_v4  ;;  %v3024_v29 = vmul.f32 %v8899_v50, %v8899_v50  ;;  %v3025_v62 = vmul.f32 %v8911_v33, %v8911_v33  ;;  %v14927_v57 = vld [vmem:[#allocation274_spill] sm:$0xff]  ;;  %v14929_v50 = vld [vmem:[#allocation168_spill] sm:$0xff]  ;;  %v14930_v33 = vld [vmem:[#allocation169_spill] sm:$0xff] }
 0x445   :  { %v10341_v11 = vsub.f32 %v14924_v27, %v14919_v44  ;;  %v3026_v32 = vmul.f32 %v14925_v0, %v14925_v0  ;;  %v3027_v20 = vmul.f32 %v14926_v51, %v14926_v51  ;;  %v3028_v19 = vmul.f32 %v14927_v57, %v14927_v57  ;;  %v14932_v7 = vld [vmem:[#allocation119_spill] sm:$0xff]  ;;  %v14933_v63 = vld [vmem:[#allocation182_spill] sm:$0xff]  ;;  %v14938_v44 = vld [vmem:[#allocation277_spill] sm:$0xff] }
 0x446   :  { %v3146_v35 = vadd.f32 %v3018_v18, %v3014_v2  ;;  %v3029_v34 = vmul.f32 %v14928_v53, %v14928_v53  ;;  %v3177_v4 = vadd.f32 %v3019_v14, %v3015_v9  ;;  %v3208_v45 = vadd.f32 %v3020_v49, %v3016_v31  ;;  %v14934_v31 = vld [vmem:[#allocation30_spill] sm:$0xff]  ;;  %v14935_v14 = vld [vmem:[#allocation171_spill] sm:$0xff]  ;;  %v14941_v51 = vld [vmem:[#allocation504_spill] sm:$0xff] }
 0x447   :  { %v3239_v55 = vadd.f32 %v3021_v39, %v3017_v6  ;;  %v3030_v40 = vmul.f32 %v14929_v50, %v14929_v50  ;;  %v3031_v37 = vmul.f32 %v14930_v33, %v14930_v33  ;;  %v3032_v54 = vmul.f32 %v14931_v52, %v14931_v52  ;;  %v14936_v60 = vld [vmem:[#allocation170_spill] sm:$0xff]  ;;  %v14942_v57 = vld [vmem:[#allocation172_spill] sm:$0xff] }
 0x448   :  { %v3147_v13 = vadd.f32 %v3146_v35, %v3022_v22  ;;  %v3033_v36 = vmul.f32 %v14932_v7, %v14932_v7  ;;  %v3178_v2 = vadd.f32 %v3177_v4, %v3023_v25  ;;  %v3209_v18 = vadd.f32 %v3208_v45, %v3024_v29  ;;  %v14939_v23 = vld [vmem:[#allocation186_spill] sm:$0xff]  ;;  %v14940_v25 = vld [vmem:[#allocation116_spill] sm:$0xff] }
 0x449   :  { %v3240_v8 = vadd.f32 %v3239_v55, %v3025_v62  ;;  %v3034_v9 = vmul.f32 %v14933_v63, %v14933_v63  ;;  %v3035_v6 = vmul.f32 %v14934_v31, %v14934_v31  ;;  %v3036_v49 = vmul.f32 %v14935_v14, %v14935_v14  ;;  %v14948_v63 = vld [vmem:[#allocation173_spill] sm:$0xff]  ;;  %v14950_v14 = vld [vmem:[#allocation279_spill] sm:$0xff] }
 0x44a   :  { %v3148_v39 = vadd.f32 %v3147_v13, %v3026_v32  ;;  %v3037_v61 = vmul.f32 %v14936_v60, %v14936_v60  ;;  %v3179_v41 = vadd.f32 %v3178_v2, %v3027_v20  ;;  %v3210_v59 = vadd.f32 %v3209_v18, %v3028_v19  ;;  %v14949_v31 = vld [vmem:[#allocation177_spill] sm:$0xff]  ;;  %v14951_v60 = vld [vmem:[#allocation12_spill] sm:$0xff] }
 0x44b   :  { %v3241_v1 = vadd.f32 %v3240_v8, %v3029_v34  ;;  %v3038_v22 = vmul.f32 %v14937_v47, %v14937_v47  ;;  %v3039_v43 = vmul.f32 %v14938_v44, %v14938_v44  ;;  %v3040_v15 = vmul.f32 %v14939_v23, %v14939_v23  ;;  %v14943_v34 = vld [vmem:[#allocation176_spill] sm:$0xff]  ;;  %v14953_v44 = vld [vmem:[#allocation506_spill] sm:$0xff]  ;;  %v14954_v23 = vld [vmem:[#allocation507_spill] sm:$0xff] }
 0x44c   :  { %v3149_v27 = vadd.f32 %v3148_v39, %v3030_v40  ;;  %v3041_v29 = vmul.f32 %v14940_v25, %v14940_v25  ;;  %v3180_v62 = vadd.f32 %v3179_v41, %v3031_v37  ;;  %v3211_v0 = vadd.f32 %v3210_v59, %v3032_v54  ;;  %v14944_v40 = vld [vmem:[#allocation278_spill] sm:$0xff]  ;;  %v14945_v37 = vld [vmem:[#allocation11_spill] sm:$0xff]  ;;  %v14946_v54 = vld [vmem:[#allocation32_spill] sm:$0xff] }
 0x44d   :  { %v3242_v32 = vadd.f32 %v3241_v1, %v3033_v36  ;;  %v3042_v20 = vmul.f32 %v14941_v51, %v14941_v51  ;;  %v3043_v19 = vmul.f32 %v14942_v57, %v14942_v57  ;;  %v3044_v35 = vmul.f32 %v9155_v10, %v9155_v10  ;;  %v14947_v36 = vld [vmem:[#allocation174_spill] sm:$0xff]  ;;  %v14952_v47 = vld [vmem:[#allocation276_spill] sm:$0xff]  ;;  %v14956_v51 = vld [vmem:[#allocation281_spill] sm:$0xff] }
 0x44e   :  { %v3150_v53 = vadd.f32 %v3149_v27, %v3034_v9  ;;  %v3045_v4 = vmul.f32 %v14943_v34, %v14943_v34  ;;  %v3181_v45 = vadd.f32 %v3180_v62, %v3035_v6  ;;  %v3212_v55 = vadd.f32 %v3211_v0, %v3036_v49  ;;  %v14955_v25 = vld [vmem:[#allocation512_spill] sm:$0xff]  ;;  %v14957_v57 = vld [vmem:[#allocation13_spill] sm:$0xff] }
 0x44f   :  { %v3243_v50 = vadd.f32 %v3242_v32, %v3037_v61  ;;  %v3046_v33 = vmul.f32 %v14944_v40, %v14944_v40  ;;  %v3047_v52 = vmul.f32 %v14945_v37, %v14945_v37  ;;  %v3048_v13 = vmul.f32 %v14946_v54, %v14946_v54 }
 0x450   :  { %v3151_v7 = vadd.f32 %v3150_v53, %v3038_v22  ;;  %v3049_v10 = vmul.f32 %v14947_v36, %v14947_v36  ;;  %v3182_v2 = vadd.f32 %v3181_v45, %v3039_v43  ;;  %v3213_v18 = vadd.f32 %v3212_v55, %v3040_v15 }
 0x451   :  { %v3244_v8 = vadd.f32 %v3243_v50, %v3041_v29  ;;  %v3050_v9 = vmul.f32 %v14948_v63, %v14948_v63  ;;  %v3051_v6 = vmul.f32 %v14949_v31, %v14949_v31  ;;  %v3052_v49 = vmul.f32 %v14950_v14, %v14950_v14 }
 0x452   :  { %v3152_v39 = vadd.f32 %v3151_v7, %v3042_v20  ;;  %v3053_v61 = vmul.f32 %v14951_v60, %v14951_v60  ;;  %v3183_v41 = vadd.f32 %v3182_v2, %v3043_v19  ;;  %v3214_v59 = vadd.f32 %v3213_v18, %v3044_v35  ;;  %v14958_v35 = vld [vmem:[#allocation280_spill] sm:$0xff] }
 0x453   :  { %v3245_v1 = vadd.f32 %v3244_v8, %v3045_v4  ;;  %v3054_v22 = vmul.f32 %v14952_v47, %v14952_v47  ;;  %v3055_v43 = vmul.f32 %v14953_v44, %v14953_v44  ;;  %v3056_v15 = vmul.f32 %v14954_v23, %v14954_v23  ;;  %v14959_v4 = vld [vmem:[#allocation509_spill] sm:$0xff] }
 0x454   :  { %v3153_v27 = vadd.f32 %v3152_v39, %v3046_v33  ;;  %v3057_v29 = vmul.f32 %v14955_v25, %v14955_v25  ;;  %v3184_v62 = vadd.f32 %v3183_v41, %v3047_v52  ;;  %v3215_v0 = vadd.f32 %v3214_v59, %v3048_v13  ;;  %v14960_v33 = vld [vmem:[#allocation510_spill] sm:$0xff]  ;;  %v14961_v52 = vld [vmem:[#allocation179_spill] sm:$0xff]  ;;  %v14962_v13 = vld [vmem:[#allocation284_spill] sm:$0xff] }
 0x455   :  { %v3246_v32 = vadd.f32 %v3245_v1, %v3049_v10  ;;  %v3058_v20 = vmul.f32 %v14956_v51, %v14956_v51  ;;  %v3059_v19 = vmul.f32 %v14957_v57, %v14957_v57  ;;  %v3060_v53 = vmul.f32 %v14958_v35, %v14958_v35  ;;  %v14963_v10 = vld [vmem:[#allocation14_spill] sm:$0xff] }
 0x456   :  { %v3154_v34 = vadd.f32 %v3153_v27, %v3050_v9  ;;  %v3061_v45 = vmul.f32 %v14959_v4, %v14959_v4  ;;  %v3185_v55 = vadd.f32 %v3184_v62, %v3051_v6  ;;  %v3216_v50 = vadd.f32 %v3215_v0, %v3052_v49  ;;  %v14964_v9 = vld [vmem:[#allocation282_spill] sm:$0xff]  ;;  %v14965_v6 = vld [vmem:[#allocation511_spill] sm:$0xff] }
 0x457   :  { %v3247_v40 = vadd.f32 %v3246_v32, %v3053_v61  ;;  %v3062_v37 = vmul.f32 %v14960_v33, %v14960_v33  ;;  %v3063_v54 = vmul.f32 %v14961_v52, %v14961_v52  ;;  %v3064_v7 = vmul.f32 %v14962_v13, %v14962_v13  ;;  %v14966_v49 = vld [vmem:[#allocation178_spill] sm:$0xff]  ;;  %v14967_v61 = vld [vmem:[#allocation183_spill] sm:$0xff] }
 0x458   :  { %v3155_v36 = vadd.f32 %v3154_v34, %v3054_v22  ;;  %v3065_v2 = vmul.f32 %v14963_v10, %v14963_v10  ;;  %v3186_v18 = vadd.f32 %v3185_v55, %v3055_v43  ;;  %v3217_v8 = vadd.f32 %v3216_v50, %v3056_v15  ;;  %v14968_v22 = vld [vmem:[#allocation17_spill] sm:$0xff]  ;;  %v14969_v43 = vld [vmem:[#allocation15_spill] sm:$0xff] }
 0x459   :  { %v3248_v63 = vadd.f32 %v3247_v40, %v3057_v29  ;;  %v3066_v31 = vmul.f32 %v14964_v9, %v14964_v9  ;;  %v3067_v14 = vmul.f32 %v14965_v6, %v14965_v6  ;;  %v3068_v39 = vmul.f32 %v14966_v49, %v14966_v49  ;;  %v14970_v15 = vld [vmem:[#allocation283_spill] sm:$0xff]  ;;  %v14971_v29 = vld [vmem:[#allocation514_spill] sm:$0xff] }
 0x45a   :  { %v3156_v60 = vadd.f32 %v3155_v36, %v3058_v20  ;;  %v3069_v41 = vmul.f32 %v14967_v61, %v14967_v61  ;;  %v3187_v59 = vadd.f32 %v3186_v18, %v3059_v19  ;;  %v3218_v1 = vadd.f32 %v3217_v8, %v3060_v53  ;;  %v14972_v20 = vld [vmem:[#allocation513_spill] sm:$0xff]  ;;  %v14973_v19 = vld [vmem:[#allocation518_spill] sm:$0xff] }
 0x45b   :  { %v3249_v47 = vadd.f32 %v3248_v63, %v3061_v45  ;;  %v3070_v44 = vmul.f32 %v14968_v22, %v14968_v22  ;;  %v3071_v23 = vmul.f32 %v14969_v43, %v14969_v43  ;;  %v3072_v27 = vmul.f32 %v14970_v15, %v14970_v15  ;;  %v14974_v53 = vld [vmem:[#allocation18_spill] sm:$0xff]  ;;  %v14975_v45 = vld [vmem:[#allocation16_spill] sm:$0xff] }
 0x45c   :  { %v3157_v25 = vadd.f32 %v3156_v60, %v3062_v37  ;;  %v3073_v62 = vmul.f32 %v14971_v29, %v14971_v29  ;;  %v3188_v0 = vadd.f32 %v3187_v59, %v3063_v54  ;;  %v3219_v32 = vadd.f32 %v3218_v1, %v3064_v7  ;;  %v14976_v37 = vld [vmem:[#allocation285_spill] sm:$0xff]  ;;  %v14977_v54 = vld [vmem:[#allocation515_spill] sm:$0xff]  ;;  %v14978_v7 = vld [vmem:[#allocation180_spill] sm:$0xff] }
 0x45d   :  { %v3250_v51 = vadd.f32 %v3249_v47, %v3065_v2  ;;  %v3074_v57 = vmul.f32 %v14972_v20, %v14972_v20  ;;  %v3075_v35 = vmul.f32 %v14973_v19, %v14973_v19  ;;  %v3076_v34 = vmul.f32 %v14974_v53, %v14974_v53  ;;  %v14979_v2 = vld [vmem:[#allocation520_spill] sm:$0xff] }
 0x45e   :  { %v3158_v4 = vadd.f32 %v3157_v25, %v3066_v31  ;;  %v3077_v55 = vmul.f32 %v14975_v45, %v14975_v45  ;;  %v3189_v50 = vadd.f32 %v3188_v0, %v3067_v14  ;;  %v3220_v40 = vadd.f32 %v3219_v32, %v3068_v39  ;;  %v14980_v31 = vld [vmem:[#allocation20_spill] sm:$0xff]  ;;  %v14981_v14 = vld [vmem:[#allocation218_spill] sm:$0xff] }
 0x45f   :  { %v3251_v33 = vadd.f32 %v3250_v51, %v3069_v41  ;;  %v3078_v52 = vmul.f32 %v14976_v37, %v14976_v37  ;;  %v3079_v13 = vmul.f32 %v14977_v54, %v14977_v54  ;;  %v3080_v36 = vmul.f32 %v14978_v7, %v14978_v7  ;;  %v14982_v39 = vld [vmem:[#allocation286_spill] sm:$0xff]  ;;  %v14983_v41 = vld [vmem:[#allocation516_spill] sm:$0xff] }
 0x460   :  { %v3159_v10 = vadd.f32 %v3158_v4, %v3070_v44  ;;  %v3081_v18 = vmul.f32 %v14979_v2, %v14979_v2  ;;  %v3190_v8 = vadd.f32 %v3189_v50, %v3071_v23  ;;  %v3221_v63 = vadd.f32 %v3220_v40, %v3072_v27  ;;  %v14984_v44 = vld [vmem:[#allocation181_spill] sm:$0xff]  ;;  %v14985_v23 = vld [vmem:[#allocation187_spill] sm:$0xff]  ;;  %v14986_v27 = vld [vmem:[#allocation22_spill] sm:$0xff] }
 0x461   :  { %v3252_v9 = vadd.f32 %v3251_v33, %v3073_v62  ;;  %v3082_v6 = vmul.f32 %v14980_v31, %v14980_v31  ;;  %v3083_v49 = vmul.f32 %v14981_v14, %v14981_v14  ;;  %v3084_v60 = vmul.f32 %v14982_v39, %v14982_v39  ;;  %v14987_v62 = vld [vmem:[#allocation59_spill] sm:$0xff] }
 0x462   :  { %v3160_v61 = vadd.f32 %v3159_v10, %v3074_v57  ;;  %v3085_v59 = vmul.f32 %v14983_v41, %v14983_v41  ;;  %v3191_v1 = vadd.f32 %v3190_v8, %v3075_v35  ;;  %v3222_v47 = vadd.f32 %v3221_v63, %v3076_v34  ;;  %v14988_v57 = vld [vmem:[#allocation287_spill] sm:$0xff]  ;;  %v14990_v34 = vld [vmem:[#allocation517_spill] sm:$0xff] }
 0x463   :  { %v3253_v22 = vadd.f32 %v3252_v9, %v3077_v55  ;;  %v3086_v43 = vmul.f32 %v14984_v44, %v14984_v44  ;;  %v3087_v15 = vmul.f32 %v14985_v23, %v14985_v23  ;;  %v3088_v25 = vmul.f32 %v14986_v27, %v14986_v27  ;;  %v14989_v35 = vld [vmem:[#allocation519_spill] sm:$0xff]  ;;  %v14991_v55 = vld [vmem:[#allocation525_spill] sm:$0xff] }
 0x464   :  { %v3161_v29 = vadd.f32 %v3160_v61, %v3078_v52  ;;  %v3089_v0 = vmul.f32 %v14987_v62, %v14987_v62  ;;  %v3192_v32 = vadd.f32 %v3191_v1, %v3079_v13  ;;  %v3223_v51 = vadd.f32 %v3222_v47, %v3080_v36  ;;  %v14992_v52 = vld [vmem:[#allocation23_spill] sm:$0xff]  ;;  %v14993_v13 = vld [vmem:[#allocation230_spill] sm:$0xff] }
 0x465   :  { %v3254_v20 = vadd.f32 %v3253_v22, %v3081_v18  ;;  %v3090_v19 = vmul.f32 %v14988_v57, %v14988_v57  ;;  %v3091_v53 = vmul.f32 %v14989_v35, %v14989_v35  ;;  %v3092_v4 = vmul.f32 %v14990_v34, %v14990_v34  ;;  %v14994_v36 = vld [vmem:[#allocation19_spill] sm:$0xff]  ;;  %v14995_v18 = vld [vmem:[#allocation185_spill] sm:$0xff] }
 0x466   :  { %v3162_v45 = vadd.f32 %v3161_v29, %v3082_v6  ;;  %v3093_v50 = vmul.f32 %v14991_v55, %v14991_v55  ;;  %v3193_v40 = vadd.f32 %v3192_v32, %v3083_v49  ;;  %v3224_v33 = vadd.f32 %v3223_v51, %v3084_v60  ;;  %v14996_v6 = vld [vmem:[#allocation184_spill] sm:$0xff]  ;;  %v14997_v49 = vld [vmem:[#allocation527_spill] sm:$0xff] }
 0x467   :  { %v3255_v37 = vadd.f32 %v3254_v20, %v3085_v59  ;;  %v3094_v54 = vmul.f32 %v14992_v52, %v14992_v52  ;;  %v3095_v7 = vmul.f32 %v14993_v13, %v14993_v13  ;;  %v3096_v10 = vmul.f32 %v14994_v36, %v14994_v36  ;;  %v14998_v60 = vld [vmem:[#allocation24_spill] sm:$0xff]  ;;  %v14999_v59 = vld [vmem:[#allocation67_spill] sm:$0xff] }
 0x468   :  { %v3163_v2 = vadd.f32 %v3162_v45, %v3086_v43  ;;  %v3097_v8 = vmul.f32 %v14995_v18, %v14995_v18  ;;  %v3194_v63 = vadd.f32 %v3193_v40, %v3087_v15  ;;  %v3225_v9 = vadd.f32 %v3224_v33, %v3088_v25  ;;  %v15000_v43 = vld [vmem:[#allocation21_spill] sm:$0xff]  ;;  %v15001_v15 = vld [vmem:[#allocation522_spill] sm:$0xff] }
 0x469   :  { %v3256_v31 = vadd.f32 %v3255_v37, %v3089_v0  ;;  %v3098_v14 = vmul.f32 %v14996_v6, %v14996_v6  ;;  %v3099_v39 = vmul.f32 %v14997_v49, %v14997_v49  ;;  %v3100_v61 = vmul.f32 %v14998_v60, %v14998_v60  ;;  %v15002_v25 = vld [vmem:[#allocation521_spill] sm:$0xff]  ;;  %v15011_v49 = vld [vmem:[#allocation75_spill] sm:$0xff] }
 0x46a   :  { %v3164_v41 = vadd.f32 %v3163_v2, %v3090_v19  ;;  %v3101_v1 = vmul.f32 %v14999_v59, %v14999_v59  ;;  %v3195_v47 = vadd.f32 %v3194_v63, %v3091_v53  ;;  %v3226_v22 = vadd.f32 %v3225_v9, %v3092_v4  ;;  %v15003_v0 = vld [vmem:[#allocation189_spill] sm:$0xff]  ;;  %v15005_v53 = vld [vmem:[#allocation242_spill] sm:$0xff] }
 0x46b   :  { %v3257_v44 = vadd.f32 %v3256_v31, %v3093_v50  ;;  %v3102_v23 = vmul.f32 %v15000_v43, %v15000_v43  ;;  %v3103_v27 = vmul.f32 %v15001_v15, %v15001_v15  ;;  %v3104_v29 = vmul.f32 %v15002_v25, %v15002_v25  ;;  %v15004_v19 = vld [vmem:[#allocation289_spill] sm:$0xff]  ;;  %v15007_v50 = vld [vmem:[#allocation524_spill] sm:$0xff] }
 0x46c   :  { %v3165_v62 = vadd.f32 %v3164_v41, %v3094_v54  ;;  %v3105_v32 = vmul.f32 %v15003_v0, %v15003_v0  ;;  %v3196_v51 = vadd.f32 %v3195_v47, %v3095_v7  ;;  %v3227_v20 = vadd.f32 %v3226_v22, %v3096_v10  ;;  %v15006_v4 = vld [vmem:[#allocation261_spill] sm:$0xff]  ;;  %v15008_v54 = vld [vmem:[#allocation523_spill] sm:$0xff]  ;;  %v15010_v10 = vld [vmem:[#allocation290_spill] sm:$0xff] }
 0x46d   :  { %v3258_v57 = vadd.f32 %v3257_v44, %v3097_v8  ;;  %v3106_v35 = vmul.f32 %v15004_v19, %v15004_v19  ;;  %v3107_v34 = vmul.f32 %v15005_v53, %v15005_v53  ;;  %v3108_v45 = vmul.f32 %v15006_v4, %v15006_v4  ;;  %v15009_v7 = vld [vmem:[#allocation531_spill] sm:$0xff]  ;;  %v15014_v44 = vld [vmem:[#allocation188_spill] sm:$0xff]  ;;  %v15017_v0 = vld [vmem:[#allocation254_spill] sm:$0xff] }
 0x46e   :  { %v3166_v55 = vadd.f32 %v3165_v62, %v3098_v14  ;;  %v3109_v40 = vmul.f32 %v15007_v50, %v15007_v50  ;;  %v3197_v33 = vadd.f32 %v3196_v51, %v3099_v39  ;;  %v3228_v37 = vadd.f32 %v3227_v20, %v3100_v61  ;;  %v15012_v61 = vld [vmem:[#allocation288_spill] sm:$0xff]  ;;  %v15018_v51 = vld [vmem:[#allocation291_spill] sm:$0xff] }
 0x46f   :  { %v3259_v52 = vadd.f32 %v3258_v57, %v3101_v1  ;;  %v3110_v13 = vmul.f32 %v15008_v54, %v15008_v54  ;;  %v3111_v36 = vmul.f32 %v15009_v7, %v15009_v7  ;;  %v3112_v2 = vmul.f32 %v15010_v10, %v15010_v10  ;;  %v15016_v15 = vld [vmem:[#allocation292_spill] sm:$0xff] }
 0x470   :  { %v3167_v18 = vadd.f32 %v3166_v55, %v3102_v23  ;;  %v3113_v8 = vmul.f32 %v9987_v38, %v9987_v38  ;;  %v3198_v63 = vadd.f32 %v3197_v33, %v3103_v27  ;;  %v3229_v9 = vadd.f32 %v3228_v37, %v3104_v29  ;;  %v15013_v38 = vld [vmem:[#allocation526_spill] sm:$0xff]  ;;  %v15020_v55 = vld [vmem:[#allocation528_spill] sm:$0xff] }
 0x471   :  { %v3260_v31 = vadd.f32 %v3259_v52, %v3105_v32  ;;  %v3114_v6 = vmul.f32 %v9999_v24, %v9999_v24  ;;  %v3115_v14 = vmul.f32 %v10011_v12, %v10011_v12  ;;  %v3116_v39 = vmul.f32 %v15011_v49, %v15011_v49  ;;  %v15015_v24 = vld [vmem:[#allocation31_spill] sm:$0xff]  ;;  %v15022_v37 = vld [vmem:[#allocation294_spill] sm:$0xff] }
 0x472   :  { %v3168_v60 = vadd.f32 %v3167_v18, %v3106_v35  ;;  %v3117_v41 = vmul.f32 %v15012_v61, %v15012_v61  ;;  %v3199_v59 = vadd.f32 %v3198_v63, %v3107_v34  ;;  %v3230_v1 = vadd.f32 %v3229_v9, %v3108_v45  ;;  %v15019_v35 = vld [vmem:[#allocation529_spill] sm:$0xff] }
 0x473   :  { %v3261_v47 = vadd.f32 %v3260_v31, %v3109_v40  ;;  %v3118_v22 = vmul.f32 %v15013_v38, %v15013_v38  ;;  %v3119_v43 = vmul.f32 %v15014_v44, %v15014_v44  ;;  %v3120_v23 = vmul.f32 %v15015_v24, %v15015_v24  ;;  %v15021_v40 = vld [vmem:[#allocation534_spill] sm:$0xff] }
 0x474   :  { %v3169_v12 = vadd.f32 %v3168_v60, %v3110_v13  ;;  %v3121_v27 = vmul.f32 %v15016_v15, %v15016_v15  ;;  %v3200_v25 = vadd.f32 %v3199_v59, %v3111_v36  ;;  %v3231_v29 = vadd.f32 %v3230_v1, %v3112_v2 }
 0x475   :  { %v3262_v62 = vadd.f32 %v3261_v47, %v3113_v8  ;;  %v3122_v32 = vmul.f32 %v15017_v0, %v15017_v0  ;;  %v3123_v20 = vmul.f32 %v15018_v51, %v15018_v51  ;;  %v3124_v57 = vmul.f32 %v10119_v48, %v10119_v48 }
 0x476   :  { %v3170_v19 = vadd.f32 %v3169_v12, %v3114_v6  ;;  %v3125_v53 = vmul.f32 %v15019_v35, %v15019_v35  ;;  %v3201_v34 = vadd.f32 %v3200_v25, %v3115_v14  ;;  %v3232_v4 = vadd.f32 %v3231_v29, %v3116_v39 }
 0x477   :  { %v3263_v45 = vadd.f32 %v3262_v62, %v3117_v41  ;;  %v3126_v50 = vmul.f32 %v15020_v55, %v15020_v55  ;;  %v3127_v33 = vmul.f32 %v15021_v40, %v15021_v40  ;;  %v3128_v52 = vmul.f32 %v15022_v37, %v15022_v37 }
 0x478   :  { %v3171_v54 = vadd.f32 %v3170_v19, %v3118_v22  ;;  %v3129_v48 = vmul.f32 %v10179_v26, %v10179_v26  ;;  %v3202_v13 = vadd.f32 %v3201_v34, %v3119_v43  ;;  %v3233_v7 = vadd.f32 %v3232_v4, %v3120_v23 }
 0x479   :  { %v3264_v36 = vadd.f32 %v3263_v45, %v3121_v27  ;;  %v3130_v10 = vmul.f32 %v10191_v56, %v10191_v56  ;;  %v3131_v2 = vmul.f32 %v10203_v17, %v10203_v17  ;;  %v3132_v18 = vmul.f32 %v10215_v46, %v10215_v46 }
 0x47a   :  { %v3172_v8 = vadd.f32 %v3171_v54, %v3122_v32  ;;  %v3133_v63 = vmul.f32 %v10227_v30, %v10227_v30  ;;  %v3203_v9 = vadd.f32 %v3202_v13, %v3123_v20  ;;  %v3234_v31 = vadd.f32 %v3233_v7, %v3124_v57 }
 0x47b   :  { %v3265_v6 = vadd.f32 %v3264_v36, %v3125_v53  ;;  %v3134_v26 = vmul.f32 %v10239_v21, %v10239_v21  ;;  %v3135_v14 = vmul.f32 %v10251_v42, %v10251_v42  ;;  %v3136_v56 = vmul.f32 %v10263_v58, %v10263_v58 }
 0x47c   :  { %v3173_v17 = vadd.f32 %v3172_v8, %v3126_v50  ;;  %v3137_v46 = vmul.f32 %v10275_v5, %v10275_v5  ;;  %v3204_v49 = vadd.f32 %v3203_v9, %v3127_v33  ;;  %v3235_v39 = vadd.f32 %v3234_v31, %v3128_v52 }
 0x47d   :  { %v3266_v60 = vadd.f32 %v3265_v6, %v3129_v48  ;;  %v3138_v30 = vmul.f32 %v10303_v16, %v10303_v16  ;;  %v3139_v61 = vmul.f32 %v10315_v3, %v10315_v3  ;;  %v3140_v21 = vmul.f32 %v10327_v28, %v10327_v28 }
 0x47e   :  { %v3174_v42 = vadd.f32 %v3173_v17, %v3130_v10  ;;  %v3141_v58 = vmul.f32 %v10341_v11, %v10341_v11  ;;  %v3205_v41 = vadd.f32 %v3204_v49, %v3131_v2  ;;  %v3236_v59 = vadd.f32 %v3235_v39, %v3132_v18 }
 0x47f   :  { %v3267_v1 = vadd.f32 %v3266_v60, %v3133_v63 }
 0x480   :  { %v3175_v5 = vadd.f32 %v3174_v42, %v3134_v26  ;;  %v3206_v47 = vadd.f32 %v3205_v41, %v3135_v14  ;;  %v3237_v38 = vadd.f32 %v3236_v59, %v3136_v56 }
 0x481   :  { %v3268_v22 = vadd.f32 %v3267_v1, %v3137_v46 }
 0x482   :  { %v3176_v44 = vadd.f32 %v3175_v5, %v3138_v30  ;;  %v3207_v16 = vadd.f32 %v3206_v47, %v3139_v61  ;;  %v3238_v43 = vadd.f32 %v3237_v38, %v3140_v21 }
 0x483   :  { %v3269_v3 = vadd.f32 %v3268_v22, %v3141_v58 }
 0x484   :  { %3274 = vst [vmem:[#allocation7] sm:$0xff] %v3176_v44  ;;  %3275 = vst [vmem:[#allocation7 + $0x8] sm:$0xff] %v3207_v16 }
 0x485   :  { %3276 = vst [vmem:[#allocation7 + $0x10] sm:$0xff] %v3238_v43  ;;  %3277 = vst [vmem:[#allocation7 + $0x18] sm:$0xff] %v3269_v3 }
 0x486   :  { %3871 = shalt.err (!%p3868_p6)
}
 0x487   :  { %s3872_s10 = scalar_lea.hbm %s10595_s2, 512 }
 0x488   :  { %p3873_p7 = scmp.ne.s32.totalorder %s10595_s2, %s3872_s10  ;;  %p3876_p8 = scmp.lt.u32.totalorder %s3872_s10, %s10595_s2 }
 0x48a   :  { %p3878_p9 = pnand %p3876_p8, %p3873_p7 }
 0x48c   :  { %3881 = shalt.err (!%p3878_p9)
}
 0x48d   :  { %3287 = dma.vmem_to_hbm [thread:$0]  %s3285_s6, 512, %s10595_s2, [#allocation4]  }
 0x48e   :  { %3886 = dma.done.wait [#allocation4], 512  }
 0x48f   :  { %3887 = vsyncadd [#allocation4], 4294966784 }
 0x490   :  { %3291 = vsyncpa [#allocation3], 1 }
 0x491   :  { %3292 = vsyncpa [#allocation6], 1 }
 0x492   :  { %3293 = vsyncpa [#allocation4], 1 }

</bundles_post_ra>
